<compile_context>
chip_gen: v6e
topology: v6e:2x2x1
jax: 0.10.0
libtpu: 0.0.40
codegen_flags: <defaults>
</compile_context>

<pallas_src>
import functools

import jax
import jax.numpy as jnp
from jax import lax
from jax.experimental import pallas as pl
from jax.experimental.pallas import tpu as pltpu

LEAKY_SLOPE = 0.2


# --------------------------- fused forward kernel ---------------------------

def _fused_adversarial_kernel(col1_ref, w1_ref, b1_ref, w2_ref, b2_ref,
                              pool_ref, wf_ref, bf_ref,
                              loss_g_ref, loss_d_ref, pad_ref,
                              *, Ho, Wo, B, n_fake, neg_slope):
    """conv1 GEMM -> conv2 (parity-shift im2col, 9 GEMMs) -> GAP -> linear -> BCE."""
    C1 = w1_ref.shape[1]
    C2 = w2_ref.shape[2]
    P = Ho * Wo * B            # rows per parity block == conv2 output rows
    GRP = Wo * B               # row stride of one conv2 output-row group (oh)
    PAD = GRP + B              # low-side zero-padding rows in the scratch

    # ---- conv1: one MXU GEMM over the parity-ordered patch matrix ----------
    y1 = jnp.dot(col1_ref[...], w1_ref[...],
                 preferred_element_type=jnp.float32)           # (4P, C1)
    y1 = y1 + b1_ref[...]
    y1 = jnp.where(y1 >= 0.0, y1, neg_slope * y1)              # LeakyReLU

    # Mask zeroing rows with ow_out == 0 (used by dj == 0 taps: w_in = -1).
    row_id = lax.broadcasted_iota(jnp.int32, (P, C1), 0)
    ow0 = (row_id % GRP) < B

    # Scratch rows [0, PAD) stay zero: they feed the shifted (padded) taps.
    pad_ref[0:PAD, :] = jnp.zeros((PAD, C1), jnp.float32)

    # ---- conv2: 3x3 / stride 2 / pad 1 --------------------------------------
    # conv1 rows are ordered (h%2, w%2, h//2, w//2, b); with that layout every
    # stride-2 tap is a contiguous, 8-aligned row shift of one parity block.
    acc = jnp.zeros((P, C2), jnp.float32)
    for ph in range(2):
        for pw in range(2):
            q = 2 * ph + pw
            block = y1[q * P:(q + 1) * P, :]                   # (P, C1)
            if ph == 1 or pw == 1:                             # has shifted taps
                pad_ref[PAD:PAD + P, :] = block
            dis = (0, 2) if ph == 1 else (1,)
            djs = (0, 2) if pw == 1 else (1,)
            for di in dis:
                for dj in djs:
                    s = (GRP if di == 0 else 0) + (B if dj == 0 else 0)
                    t = block if s == 0 else pad_ref[PAD - s:PAD - s + P, :]
                    if dj == 0:                                # w_in = -1 rows
                        t = jnp.where(ow0, 0.0, t)
                    acc = acc + jnp.dot(t.astype(w2_ref.dtype),
                                        w2_ref[di * 3 + dj],
                                        preferred_element_type=jnp.float32)
    acc = acc + b2_ref[...]
    acc = jnp.where(acc >= 0.0, acc, neg_slope * acc)          # (P, C2)

    # ---- global average pool as a tiny MXU GEMM -----------------------------
    feats = jnp.dot(pool_ref[...], acc,
                    preferred_element_type=jnp.float32)        # (B, C2)

    # ---- final linear: one logit per sample ---------------------------------
    logits = jnp.sum(feats * wf_ref[...], axis=1, keepdims=True) + bf_ref[...]

    # ---- BCE-with-logits (mean reduction) epilogue ---------------------------
    def bce(x, label):
        return (jnp.maximum(x, 0.0) - x * label
                + jnp.log(1.0 + jnp.exp(-jnp.abs(x))))

    n_real = B - n_fake
    samp = lax.broadcasted_iota(jnp.int32, (B, 1), 0)
    is_fake = samp < n_fake
    bce0 = bce(logits, 0.0)
    bce1 = bce(logits, 1.0)
    loss_fake0 = jnp.sum(jnp.where(is_fake, bce0, 0.0),
                         axis=0, keepdims=True) / n_fake
    loss_fake1 = jnp.sum(jnp.where(is_fake, bce1, 0.0),
                         axis=0, keepdims=True) / n_fake
    loss_real1 = jnp.sum(jnp.where(is_fake, 0.0, bce1),
                         axis=0, keepdims=True) / n_real
    loss_d_ref[...] = loss_fake0 + loss_real1     # discriminator loss (self.loss)
    loss_g_ref[...] = loss_fake1                  # generator loss (return value)


# ------------------------------ host wrapper --------------------------------

def _conv1_patch_matrix_parity(x):
    """(B, C, H, W) -> (4*Ho*Wo*B, 9*C) conv1 patch matrix.

    Rows ordered (h%2, w%2, h//2, w//2, b); columns ordered (tap = di*3+dj, c).
    Pure layout plumbing on the raw HBM input (conv1's im2col); the stride-2
    im2col that matters (on the intermediate activation) happens in-kernel.
    """
    B, C, H, W = x.shape
    Ho, Wo = H // 2, W // 2
    xp = jnp.pad(x, ((0, 0), (0, 0), (1, 1), (1, 1)))
    taps = [xp[:, :, di:di + H, dj:dj + W] for di in range(3) for dj in range(3)]
    col = jnp.stack(taps, axis=0)                   # (9, B, C, H, W)
    col = col.transpose(3, 4, 1, 0, 2)              # (H, W, B, 9, C)
    col = col.reshape(Ho, 2, Wo, 2, B, 9 * C)       # (oh, ph, ow, pw, b, K)
    col = col.transpose(1, 3, 0, 2, 4, 5)           # (ph, pw, oh, ow, b, K)
    return col.reshape(4 * Ho * Wo * B, 9 * C)


@jax.jit
def _forward_fused(params, fake, real):
    n_fake = fake.shape[0]
    x = jnp.concatenate([fake, real], axis=0)       # (B, Cin, H, W)
    B, Cin, H, W = x.shape
    assert H % 2 == 0 and W % 2 == 0
    Ho, Wo = H // 2, W // 2
    C1 = params["w1"].shape[-1]
    C2 = params["w2"].shape[-1]

    # bf16 MXU inputs (f32 accumulation in-kernel); conv1 K padded 27 -> 32.
    K1, K1p = 9 * Cin, 32
    col1 = _conv1_patch_matrix_parity(x)
    col1 = jnp.pad(col1, ((0, 0), (0, K1p - K1))).astype(jnp.bfloat16)
    w1m = jnp.pad(params["w1"].reshape(K1, C1),
                  ((0, K1p - K1), (0, 0))).astype(jnp.bfloat16)
    w2t = params["w2"].reshape(9, C1, C2).astype(jnp.bfloat16)
    b1 = params["b1"].reshape(1, C1).astype(jnp.float32)
    b2 = params["b2"].reshape(1, C2).astype(jnp.float32)
    wf = params["wf"].reshape(1, C2).astype(jnp.float32)
    bf = params["bf"].reshape(1, 1).astype(jnp.float32)

    P = Ho * Wo * B
    pool = (jnp.arange(P)[None, :] % B == jnp.arange(B)[:, None]).astype(
        jnp.float32) / (Ho * Wo)                    # (B, P) average-pool matrix

    S1 = col1.shape[0]
    kern = functools.partial(_fused_adversarial_kernel, Ho=Ho, Wo=Wo, B=B,
                             n_fake=n_fake, neg_slope=LEAKY_SLOPE)
    loss_g, loss_d = pl.pallas_call(
        kern,
        out_shape=(jax.ShapeDtypeStruct((1, 1), jnp.float32),
                   jax.ShapeDtypeStruct((1, 1), jnp.float32)),
        grid=(1,),
        in_specs=[
            pl.BlockSpec((S1, K1p), lambda i: (0, 0)),       # col1
            pl.BlockSpec((K1p, C1), lambda i: (0, 0)),       # w1
            pl.BlockSpec((1, C1), lambda i: (0, 0)),         # b1
            pl.BlockSpec((9, C1, C2), lambda i: (0, 0, 0)),  # w2 taps
            pl.BlockSpec((1, C2), lambda i: (0, 0)),         # b2
            pl.BlockSpec((B, P), lambda i: (0, 0)),          # pooling matrix
            pl.BlockSpec((1, C2), lambda i: (0, 0)),         # wf
            pl.BlockSpec((1, 1), lambda i: (0, 0)),          # bf
        ],
        out_specs=(pl.BlockSpec((1, 1), lambda i: (0, 0)),
                   pl.BlockSpec((1, 1), lambda i: (0, 0))),
        scratch_shapes=[pltpu.VMEM((P + Wo * B + B, C1), jnp.float32)],
        compiler_params=pltpu.CompilerParams(
            dimension_semantics=("arbitrary",)),
    )(col1, w1m, b1, w2t, b2, pool, wf, bf)
    return loss_g[0, 0], loss_d[0, 0]


def adversarial_forward(params, fake, real):
    """Adversarial.forward for gan_type='GAN' (forward-value semantics).

    Returns (loss_g, loss_d): loss_g is the module's return value, loss_d is
    what the module stores in self.loss.  D(fake.detach()) == D(fake) in value,
    so both come from one fused discriminator pass on [fake; real].
    """
    return _forward_fused(params, fake, real)


# --------------------------- params & pure-JAX ref ---------------------------

def init_discriminator_params(key, in_ch=3, feat1=16, feat2=32):
    ks = jax.random.split(key, 6)
    s = 0.1
    return {
        "w1": s * jax.random.normal(ks[0], (3, 3, in_ch, feat1), jnp.float32),
        "b1": s * jax.random.normal(ks[1], (feat1,), jnp.float32),
        "w2": s * jax.random.normal(ks[2], (3, 3, feat1, feat2), jnp.float32),
        "b2": s * jax.random.normal(ks[3], (feat2,), jnp.float32),
        "wf": s * jax.random.normal(ks[4], (feat2,), jnp.float32),
        "bf": s * jax.random.normal(ks[5], (1,), jnp.float32),
    }


def _reference_forward(params, fake, real):
    """Pure-JAX (non-Pallas) reference for a loose correctness check."""
    x = jnp.concatenate([fake, real], axis=0)
    leaky = lambda v: jnp.where(v >= 0, v, LEAKY_SLOPE * v)
    dn = ("NCHW", "HWIO", "NCHW")
    y1 = lax.conv_general_dilated(x, params["w1"], (1, 1), ((1, 1), (1, 1)),
                                  dimension_numbers=dn)
    y1 = leaky(y1 + params["b1"][None, :, None, None])
    y2 = lax.conv_general_dilated(y1, params["w2"], (2, 2), ((1, 1), (1, 1)),
                                  dimension_numbers=dn)
    y2 = leaky(y2 + params["b2"][None, :, None, None])
    feats = jnp.mean(y2, axis=(2, 3))
    logits = feats @ params["wf"].reshape(-1, 1) + params["bf"]

    def bce(xx, lbl):
        return jnp.mean(jnp.maximum(xx, 0.0) - xx * lbl
                        + jnp.log1p(jnp.exp(-jnp.abs(xx))))

    n_fake = fake.shape[0]
    d_fake, d_real = logits[:n_fake], logits[n_fake:]
    loss_d = bce(d_fake, 0.0) + bce(d_real, 1.0)
    loss_g = bce(d_fake, 1.0)
    return loss_g, loss_d


# --------------------------------- main --------------------------------------

if __name__ == "__main__":
    key = jax.random.PRNGKey(0)
    k_params, k_fake, k_real = jax.random.split(key, 3)

    patch = 16
    batch = 4   # fake + real -> combined batch of 8 keeps rows sublane-aligned
    fake = jax.random.normal(k_fake, (batch, 3, patch, patch), jnp.float32)
    real = jax.random.normal(k_real, (batch, 3, patch, patch), jnp.float32)

    params = init_discriminator_params(k_params)

    loss_g, loss_d = adversarial_forward(params, fake, real)
    jax.block_until_ready((loss_g, loss_d))

    ref_g, ref_d = _reference_forward(params, fake, real)
    ok = (jnp.allclose(loss_g, ref_g, rtol=2e-2, atol=2e-2)
          and jnp.allclose(loss_d, ref_d, rtol=2e-2, atol=2e-2))
    if not ok:
        raise AssertionError(
            f"mismatch: pallas (g={float(loss_g):.5f}, d={float(loss_d):.5f}) "
            f"vs ref (g={float(ref_g):.5f}, d={float(ref_d):.5f})")
    print("KERNEL_OK")
</pallas_src>

<mosaic_0001>
module attributes {stable_mosaic.version = 11 : i64} {
  func.func @_fused_adversarial_kernel(%arg0: i32, %arg1: memref<2048x32xbf16, #tpu.memory_space<vmem>>, %arg2: memref<32x16xbf16, #tpu.memory_space<vmem>>, %arg3: memref<1x16xf32, #tpu.memory_space<vmem>>, %arg4: memref<9x16x32xbf16, #tpu.memory_space<vmem>>, %arg5: memref<1x32xf32, #tpu.memory_space<vmem>>, %arg6: memref<8x512xf32, #tpu.memory_space<vmem>>, %arg7: memref<1x32xf32, #tpu.memory_space<vmem>>, %arg8: memref<1x1xf32, #tpu.memory_space<vmem>>, %arg9: memref<1x1xf32, #tpu.memory_space<vmem>>, %arg10: memref<1x1xf32, #tpu.memory_space<vmem>>, %arg11: memref<584x16xf32, #tpu.memory_space<vmem>>) attributes {dimension_semantics = [#tpu.dimension_semantics<arbitrary>], iteration_bounds = array<i64: 1>, scalar_prefetch = 0 : i64, scratch_operands = 1 : i64, tpu.core_type = #tpu.core_type<tc>, window_params = [{pipeline_mode = #tpu.pipeline_mode<synchronous>, transform_indices = @transform_0, window_bounds = array<i64: 2048, 32>}, {pipeline_mode = #tpu.pipeline_mode<synchronous>, transform_indices = @transform_1, window_bounds = array<i64: 32, 16>}, {pipeline_mode = #tpu.pipeline_mode<synchronous>, transform_indices = @transform_2, window_bounds = array<i64: 1, 16>}, {pipeline_mode = #tpu.pipeline_mode<synchronous>, transform_indices = @transform_3, window_bounds = array<i64: 9, 16, 32>}, {pipeline_mode = #tpu.pipeline_mode<synchronous>, transform_indices = @transform_4, window_bounds = array<i64: 1, 32>}, {pipeline_mode = #tpu.pipeline_mode<synchronous>, transform_indices = @transform_5, window_bounds = array<i64: 8, 512>}, {pipeline_mode = #tpu.pipeline_mode<synchronous>, transform_indices = @transform_6, window_bounds = array<i64: 1, 32>}, {pipeline_mode = #tpu.pipeline_mode<synchronous>, transform_indices = @transform_7, window_bounds = array<i64: 1, 1>}, {pipeline_mode = #tpu.pipeline_mode<synchronous>, transform_indices = @transform_8, window_bounds = array<i64: 1, 1>}, {pipeline_mode = #tpu.pipeline_mode<synchronous>, transform_indices = @transform_9, window_bounds = array<i64: 1, 1>}]} {
    %c0 = arith.constant 0 : index
    %c0_0 = arith.constant 0 : index
    %0 = vector.load %arg1[%c0, %c0_0] : memref<2048x32xbf16, #tpu.memory_space<vmem>>, vector<2048x32xbf16>
    %c0_1 = arith.constant 0 : index
    %c0_2 = arith.constant 0 : index
    %1 = vector.load %arg2[%c0_1, %c0_2] : memref<32x16xbf16, #tpu.memory_space<vmem>>, vector<32x16xbf16>
    %cst = arith.constant dense<0.000000e+00> : vector<2048x16xf32>
    %2 = tpu.matmul %0, %1, %cst {dimension_numbers = #tpu.dot_dimension_numbers<[1], [0], [0], [1], [0, 0, 1, 1], [], []>} : vector<2048x32xbf16>, vector<32x16xbf16>, vector<2048x16xf32> -> vector<2048x16xf32>
    %c0_3 = arith.constant 0 : index
    %c0_4 = arith.constant 0 : index
    %3 = vector.load %arg3[%c0_3, %c0_4] : memref<1x16xf32, #tpu.memory_space<vmem>>, vector<1x16xf32>
    %4 = vector.broadcast %3 : vector<1x16xf32> to vector<2048x16xf32>
    %5 = arith.addf %2, %4 : vector<2048x16xf32>
    %cst_5 = arith.constant 0.000000e+00 : f32
    %6 = vector.broadcast %cst_5 : f32 to vector<2048x16xf32>
    %7 = arith.cmpf oge, %5, %6 : vector<2048x16xf32>
    %cst_6 = arith.constant 2.000000e-01 : f32
    %8 = vector.broadcast %cst_6 : f32 to vector<2048x16xf32>
    %9 = arith.mulf %8, %5 : vector<2048x16xf32>
    %10 = arith.select %7, %5, %9 : vector<2048x16xi1>, vector<2048x16xf32>
    %11 = tpu.iota {dimensions = array<i32: 0>} : vector<512x16xi32>
    %c64_i32 = arith.constant 64 : i32
    %c0_i32 = arith.constant 0 : i32
    %12 = arith.cmpi eq, %c64_i32, %c0_i32 : i32
    %c1_i32 = arith.constant 1 : i32
    %13 = arith.select %12, %c1_i32, %c64_i32 : i32
    %14 = vector.broadcast %13 : i32 to vector<512x16xi32>
    %15 = arith.remsi %11, %14 : vector<512x16xi32>
    %c0_i32_7 = arith.constant 0 : i32
    %16 = vector.broadcast %c0_i32_7 : i32 to vector<512x16xi32>
    %17 = arith.cmpi ne, %15, %16 : vector<512x16xi32>
    %c0_i32_8 = arith.constant 0 : i32
    %18 = vector.broadcast %c0_i32_8 : i32 to vector<512x16xi32>
    %19 = arith.cmpi slt, %15, %18 : vector<512x16xi32>
    %c0_i32_9 = arith.constant 0 : i32
    %20 = arith.cmpi slt, %13, %c0_i32_9 : i32
    %21 = vector.broadcast %20 : i1 to vector<512x16xi1>
    %22 = vector.broadcast %21 : vector<512x16xi1> to vector<512x16xi1>
    %23 = arith.xori %19, %22 : vector<512x16xi1>
    %24 = arith.andi %23, %17 : vector<512x16xi1>
    %25 = vector.broadcast %13 : i32 to vector<512x16xi32>
    %26 = arith.addi %15, %25 : vector<512x16xi32>
    %27 = arith.select %24, %26, %15 : vector<512x16xi1>, vector<512x16xi32>
    %c8_i32 = arith.constant 8 : i32
    %28 = vector.broadcast %c8_i32 : i32 to vector<512x16xi32>
    %29 = arith.cmpi slt, %27, %28 : vector<512x16xi32>
    %cst_10 = arith.constant 0.000000e+00 : f32
    %30 = vector.broadcast %cst_10 : f32 to vector<72x16xf32>
    %c0_11 = arith.constant 0 : index
    %c0_12 = arith.constant 0 : index
    %31 = vector.load %arg11[%c0_11, %c0_12] : memref<584x16xf32, #tpu.memory_space<vmem>>, vector<72x16xf32>
    tpu.vector_store %arg11[%c0_11, %c0_12], %30 {strides = array<i32>} : memref<584x16xf32, #tpu.memory_space<vmem>>, vector<72x16xf32>,
    %cst_13 = arith.constant 0.000000e+00 : f32
    %32 = vector.broadcast %cst_13 : f32 to vector<512x32xf32>
    %33 = vector.extract_strided_slice %10 {offsets = [0, 0], sizes = [512, 16], strides = [1, 1]} : vector<2048x16xf32> to vector<512x16xf32>
    %34 = arith.truncf %33 : vector<512x16xf32> to vector<512x16xbf16>
    %c4 = arith.constant 4 : index
    %c0_14 = arith.constant 0 : index
    %c0_15 = arith.constant 0 : index
    %35 = vector.load %arg4[%c4, %c0_14, %c0_15] : memref<9x16x32xbf16, #tpu.memory_space<vmem>>, vector<1x16x32xbf16>
    %36 = vector.shape_cast %35 : vector<1x16x32xbf16> to vector<16x32xbf16>
    %cst_16 = arith.constant dense<0.000000e+00> : vector<512x32xf32>
    %37 = tpu.matmul %34, %36, %cst_16 {dimension_numbers = #tpu.dot_dimension_numbers<[1], [0], [0], [1], [0, 0, 1, 1], [], []>} : vector<512x16xbf16>, vector<16x32xbf16>, vector<512x32xf32> -> vector<512x32xf32>
    %38 = arith.addf %32, %37 : vector<512x32xf32>
    %39 = vector.extract_strided_slice %10 {offsets = [512, 0], sizes = [512, 16], strides = [1, 1]} : vector<2048x16xf32> to vector<512x16xf32>
    %c72 = arith.constant 72 : index
    %c0_17 = arith.constant 0 : index
    %40 = vector.load %arg11[%c72, %c0_17] : memref<584x16xf32, #tpu.memory_space<vmem>>, vector<512x16xf32>
    tpu.vector_store %arg11[%c72, %c0_17], %39 {strides = array<i32>} : memref<584x16xf32, #tpu.memory_space<vmem>>, vector<512x16xf32>,
    %c64 = arith.constant 64 : index
    %c0_18 = arith.constant 0 : index
    %41 = vector.load %arg11[%c64, %c0_18] : memref<584x16xf32, #tpu.memory_space<vmem>>, vector<512x16xf32>
    %cst_19 = arith.constant 0.000000e+00 : f32
    %42 = vector.broadcast %cst_19 : f32 to vector<512x16xf32>
    %43 = arith.select %29, %42, %41 : vector<512x16xi1>, vector<512x16xf32>
    %44 = arith.truncf %43 : vector<512x16xf32> to vector<512x16xbf16>
    %c3 = arith.constant 3 : index
    %c0_20 = arith.constant 0 : index
    %c0_21 = arith.constant 0 : index
    %45 = vector.load %arg4[%c3, %c0_20, %c0_21] : memref<9x16x32xbf16, #tpu.memory_space<vmem>>, vector<1x16x32xbf16>
    %46 = vector.shape_cast %45 : vector<1x16x32xbf16> to vector<16x32xbf16>
    %cst_22 = arith.constant dense<0.000000e+00> : vector<512x32xf32>
    %47 = tpu.matmul %44, %46, %cst_22 {dimension_numbers = #tpu.dot_dimension_numbers<[1], [0], [0], [1], [0, 0, 1, 1], [], []>} : vector<512x16xbf16>, vector<16x32xbf16>, vector<512x32xf32> -> vector<512x32xf32>
    %48 = arith.addf %38, %47 : vector<512x32xf32>
    %49 = arith.truncf %39 : vector<512x16xf32> to vector<512x16xbf16>
    %c5 = arith.constant 5 : index
    %c0_23 = arith.constant 0 : index
    %c0_24 = arith.constant 0 : index
    %50 = vector.load %arg4[%c5, %c0_23, %c0_24] : memref<9x16x32xbf16, #tpu.memory_space<vmem>>, vector<1x16x32xbf16>
    %51 = vector.shape_cast %50 : vector<1x16x32xbf16> to vector<16x32xbf16>
    %cst_25 = arith.constant dense<0.000000e+00> : vector<512x32xf32>
    %52 = tpu.matmul %49, %51, %cst_25 {dimension_numbers = #tpu.dot_dimension_numbers<[1], [0], [0], [1], [0, 0, 1, 1], [], []>} : vector<512x16xbf16>, vector<16x32xbf16>, vector<512x32xf32> -> vector<512x32xf32>
    %53 = arith.addf %48, %52 : vector<512x32xf32>
    %54 = vector.extract_strided_slice %10 {offsets = [1024, 0], sizes = [512, 16], strides = [1, 1]} : vector<2048x16xf32> to vector<512x16xf32>
    %c72_26 = arith.constant 72 : index
    %c0_27 = arith.constant 0 : index
    %55 = vector.load %arg11[%c72_26, %c0_27] : memref<584x16xf32, #tpu.memory_space<vmem>>, vector<512x16xf32>
    tpu.vector_store %arg11[%c72_26, %c0_27], %54 {strides = array<i32>} : memref<584x16xf32, #tpu.memory_space<vmem>>, vector<512x16xf32>,
    %c8 = arith.constant 8 : index
    %c0_28 = arith.constant 0 : index
    %56 = vector.load %arg11[%c8, %c0_28] : memref<584x16xf32, #tpu.memory_space<vmem>>, vector<512x16xf32>
    %57 = arith.truncf %56 : vector<512x16xf32> to vector<512x16xbf16>
    %c1 = arith.constant 1 : index
    %c0_29 = arith.constant 0 : index
    %c0_30 = arith.constant 0 : index
    %58 = vector.load %arg4[%c1, %c0_29, %c0_30] : memref<9x16x32xbf16, #tpu.memory_space<vmem>>, vector<1x16x32xbf16>
    %59 = vector.shape_cast %58 : vector<1x16x32xbf16> to vector<16x32xbf16>
    %cst_31 = arith.constant dense<0.000000e+00> : vector<512x32xf32>
    %60 = tpu.matmul %57, %59, %cst_31 {dimension_numbers = #tpu.dot_dimension_numbers<[1], [0], [0], [1], [0, 0, 1, 1], [], []>} : vector<512x16xbf16>, vector<16x32xbf16>, vector<512x32xf32> -> vector<512x32xf32>
    %61 = arith.addf %53, %60 : vector<512x32xf32>
    %62 = arith.truncf %54 : vector<512x16xf32> to vector<512x16xbf16>
    %c7 = arith.constant 7 : index
    %c0_32 = arith.constant 0 : index
    %c0_33 = arith.constant 0 : index
    %63 = vector.load %arg4[%c7, %c0_32, %c0_33] : memref<9x16x32xbf16, #tpu.memory_space<vmem>>, vector<1x16x32xbf16>
    %64 = vector.shape_cast %63 : vector<1x16x32xbf16> to vector<16x32xbf16>
    %cst_34 = arith.constant dense<0.000000e+00> : vector<512x32xf32>
    %65 = tpu.matmul %62, %64, %cst_34 {dimension_numbers = #tpu.dot_dimension_numbers<[1], [0], [0], [1], [0, 0, 1, 1], [], []>} : vector<512x16xbf16>, vector<16x32xbf16>, vector<512x32xf32> -> vector<512x32xf32>
    %66 = arith.addf %61, %65 : vector<512x32xf32>
    %67 = vector.extract_strided_slice %10 {offsets = [1536, 0], sizes = [512, 16], strides = [1, 1]} : vector<2048x16xf32> to vector<512x16xf32>
    %c72_35 = arith.constant 72 : index
    %c0_36 = arith.constant 0 : index
    %68 = vector.load %arg11[%c72_35, %c0_36] : memref<584x16xf32, #tpu.memory_space<vmem>>, vector<512x16xf32>
    tpu.vector_store %arg11[%c72_35, %c0_36], %67 {strides = array<i32>} : memref<584x16xf32, #tpu.memory_space<vmem>>, vector<512x16xf32>,
    %c0_37 = arith.constant 0 : index
    %c0_38 = arith.constant 0 : index
    %69 = vector.load %arg11[%c0_37, %c0_38] : memref<584x16xf32, #tpu.memory_space<vmem>>, vector<512x16xf32>
    %cst_39 = arith.constant 0.000000e+00 : f32
    %70 = vector.broadcast %cst_39 : f32 to vector<512x16xf32>
    %71 = arith.select %29, %70, %69 : vector<512x16xi1>, vector<512x16xf32>
    %72 = arith.truncf %71 : vector<512x16xf32> to vector<512x16xbf16>
    %c0_40 = arith.constant 0 : index
    %c0_41 = arith.constant 0 : index
    %c0_42 = arith.constant 0 : index
    %73 = vector.load %arg4[%c0_40, %c0_41, %c0_42] : memref<9x16x32xbf16, #tpu.memory_space<vmem>>, vector<1x16x32xbf16>
    %74 = vector.shape_cast %73 : vector<1x16x32xbf16> to vector<16x32xbf16>
    %cst_43 = arith.constant dense<0.000000e+00> : vector<512x32xf32>
    %75 = tpu.matmul %72, %74, %cst_43 {dimension_numbers = #tpu.dot_dimension_numbers<[1], [0], [0], [1], [0, 0, 1, 1], [], []>} : vector<512x16xbf16>, vector<16x32xbf16>, vector<512x32xf32> -> vector<512x32xf32>
    %76 = arith.addf %66, %75 : vector<512x32xf32>
    %c8_44 = arith.constant 8 : index
    %c0_45 = arith.constant 0 : index
    %77 = vector.load %arg11[%c8_44, %c0_45] : memref<584x16xf32, #tpu.memory_space<vmem>>, vector<512x16xf32>
    %78 = arith.truncf %77 : vector<512x16xf32> to vector<512x16xbf16>
    %c2 = arith.constant 2 : index
    %c0_46 = arith.constant 0 : index
    %c0_47 = arith.constant 0 : index
    %79 = vector.load %arg4[%c2, %c0_46, %c0_47] : memref<9x16x32xbf16, #tpu.memory_space<vmem>>, vector<1x16x32xbf16>
    %80 = vector.shape_cast %79 : vector<1x16x32xbf16> to vector<16x32xbf16>
    %cst_48 = arith.constant dense<0.000000e+00> : vector<512x32xf32>
    %81 = tpu.matmul %78, %80, %cst_48 {dimension_numbers = #tpu.dot_dimension_numbers<[1], [0], [0], [1], [0, 0, 1, 1], [], []>} : vector<512x16xbf16>, vector<16x32xbf16>, vector<512x32xf32> -> vector<512x32xf32>
    %82 = arith.addf %76, %81 : vector<512x32xf32>
    %c64_49 = arith.constant 64 : index
    %c0_50 = arith.constant 0 : index
    %83 = vector.load %arg11[%c64_49, %c0_50] : memref<584x16xf32, #tpu.memory_space<vmem>>, vector<512x16xf32>
    %cst_51 = arith.constant 0.000000e+00 : f32
    %84 = vector.broadcast %cst_51 : f32 to vector<512x16xf32>
    %85 = arith.select %29, %84, %83 : vector<512x16xi1>, vector<512x16xf32>
    %86 = arith.truncf %85 : vector<512x16xf32> to vector<512x16xbf16>
    %c6 = arith.constant 6 : index
    %c0_52 = arith.constant 0 : index
    %c0_53 = arith.constant 0 : index
    %87 = vector.load %arg4[%c6, %c0_52, %c0_53] : memref<9x16x32xbf16, #tpu.memory_space<vmem>>, vector<1x16x32xbf16>
    %88 = vector.shape_cast %87 : vector<1x16x32xbf16> to vector<16x32xbf16>
    %cst_54 = arith.constant dense<0.000000e+00> : vector<512x32xf32>
    %89 = tpu.matmul %86, %88, %cst_54 {dimension_numbers = #tpu.dot_dimension_numbers<[1], [0], [0], [1], [0, 0, 1, 1], [], []>} : vector<512x16xbf16>, vector<16x32xbf16>, vector<512x32xf32> -> vector<512x32xf32>
    %90 = arith.addf %82, %89 : vector<512x32xf32>
    %91 = arith.truncf %67 : vector<512x16xf32> to vector<512x16xbf16>
    %c8_55 = arith.constant 8 : index
    %c0_56 = arith.constant 0 : index
    %c0_57 = arith.constant 0 : index
    %92 = vector.load %arg4[%c8_55, %c0_56, %c0_57] : memref<9x16x32xbf16, #tpu.memory_space<vmem>>, vector<1x16x32xbf16>
    %93 = vector.shape_cast %92 : vector<1x16x32xbf16> to vector<16x32xbf16>
    %cst_58 = arith.constant dense<0.000000e+00> : vector<512x32xf32>
    %94 = tpu.matmul %91, %93, %cst_58 {dimension_numbers = #tpu.dot_dimension_numbers<[1], [0], [0], [1], [0, 0, 1, 1], [], []>} : vector<512x16xbf16>, vector<16x32xbf16>, vector<512x32xf32> -> vector<512x32xf32>
    %95 = arith.addf %90, %94 : vector<512x32xf32>
    %c0_59 = arith.constant 0 : index
    %c0_60 = arith.constant 0 : index
    %96 = vector.load %arg5[%c0_59, %c0_60] : memref<1x32xf32, #tpu.memory_space<vmem>>, vector<1x32xf32>
    %97 = vector.broadcast %96 : vector<1x32xf32> to vector<512x32xf32>
    %98 = arith.addf %95, %97 : vector<512x32xf32>
    %cst_61 = arith.constant 0.000000e+00 : f32
    %99 = vector.broadcast %cst_61 : f32 to vector<512x32xf32>
    %100 = arith.cmpf oge, %98, %99 : vector<512x32xf32>
    %cst_62 = arith.constant 2.000000e-01 : f32
    %101 = vector.broadcast %cst_62 : f32 to vector<512x32xf32>
    %102 = arith.mulf %101, %98 : vector<512x32xf32>
    %103 = arith.select %100, %98, %102 : vector<512x32xi1>, vector<512x32xf32>
    %c0_63 = arith.constant 0 : index
    %c0_64 = arith.constant 0 : index
    %104 = vector.load %arg6[%c0_63, %c0_64] : memref<8x512xf32, #tpu.memory_space<vmem>>, vector<8x512xf32>
    %cst_65 = arith.constant dense<0.000000e+00> : vector<8x32xf32>
    %105 = tpu.matmul %104, %103, %cst_65 {dimension_numbers = #tpu.dot_dimension_numbers<[1], [0], [0], [1], [0, 0, 1, 1], [], []>} : vector<8x512xf32>, vector<512x32xf32>, vector<8x32xf32> -> vector<8x32xf32>
    %c0_66 = arith.constant 0 : index
    %c0_67 = arith.constant 0 : index
    %106 = vector.load %arg7[%c0_66, %c0_67] : memref<1x32xf32, #tpu.memory_space<vmem>>, vector<1x32xf32>
    %107 = vector.broadcast %106 : vector<1x32xf32> to vector<8x32xf32>
    %108 = arith.mulf %105, %107 : vector<8x32xf32>
    %cst_68 = arith.constant dense<0.000000e+00> : vector<8xf32>
    %109 = vector.multi_reduction <add>, %108, %cst_68 [1] : vector<8x32xf32> to vector<8xf32>
    %110 = vector.shape_cast %109 : vector<8xf32> to vector<8x1xf32>
    %c0_69 = arith.constant 0 : index
    %c0_70 = arith.constant 0 : index
    %111 = vector.load %arg8[%c0_69, %c0_70] : memref<1x1xf32, #tpu.memory_space<vmem>>, vector<1x1xf32>
    %112 = vector.broadcast %111 : vector<1x1xf32> to vector<8x1xf32>
    %113 = arith.addf %110, %112 : vector<8x1xf32>
    %114 = tpu.iota {dimensions = array<i32: 0>} : vector<8x1xi32>
    %c4_i32 = arith.constant 4 : i32
    %115 = vector.broadcast %c4_i32 : i32 to vector<8x1xi32>
    %116 = arith.cmpi slt, %114, %115 : vector<8x1xi32>
    %cst_71 = arith.constant 0.000000e+00 : f32
    %117 = vector.broadcast %cst_71 : f32 to vector<8x1xf32>
    %118 = arith.maximumf %113, %117 : vector<8x1xf32>
    %cst_72 = arith.constant 0.000000e+00 : f32
    %119 = vector.broadcast %cst_72 : f32 to vector<8x1xf32>
    %120 = arith.mulf %113, %119 : vector<8x1xf32>
    %121 = arith.subf %118, %120 : vector<8x1xf32>
    %122 = math.absf %113 : vector<8x1xf32>
    %cst_73 = arith.constant 0.000000e+00 : f32
    %123 = vector.broadcast %cst_73 : f32 to vector<8x1xf32>
    %124 = arith.subf %123, %122 : vector<8x1xf32>
    %125 = math.exp %124 : vector<8x1xf32>
    %cst_74 = arith.constant 1.000000e+00 : f32
    %126 = vector.broadcast %cst_74 : f32 to vector<8x1xf32>
    %127 = arith.addf %126, %125 : vector<8x1xf32>
    %128 = math.log %127 : vector<8x1xf32>
    %129 = arith.addf %121, %128 : vector<8x1xf32>
    %cst_75 = arith.constant 0.000000e+00 : f32
    %130 = vector.broadcast %cst_75 : f32 to vector<8x1xf32>
    %131 = arith.maximumf %113, %130 : vector<8x1xf32>
    %cst_76 = arith.constant 1.000000e+00 : f32
    %132 = vector.broadcast %cst_76 : f32 to vector<8x1xf32>
    %133 = arith.mulf %113, %132 : vector<8x1xf32>
    %134 = arith.subf %131, %133 : vector<8x1xf32>
    %135 = math.absf %113 : vector<8x1xf32>
    %cst_77 = arith.constant 0.000000e+00 : f32
    %136 = vector.broadcast %cst_77 : f32 to vector<8x1xf32>
    %137 = arith.subf %136, %135 : vector<8x1xf32>
    %138 = math.exp %137 : vector<8x1xf32>
    %cst_78 = arith.constant 1.000000e+00 : f32
    %139 = vector.broadcast %cst_78 : f32 to vector<8x1xf32>
    %140 = arith.addf %139, %138 : vector<8x1xf32>
    %141 = math.log %140 : vector<8x1xf32>
    %142 = arith.addf %134, %141 : vector<8x1xf32>
    %cst_79 = arith.constant 0.000000e+00 : f32
    %143 = vector.broadcast %cst_79 : f32 to vector<8x1xf32>
    %144 = arith.select %116, %129, %143 : vector<8x1xi1>, vector<8x1xf32>
    %cst_80 = arith.constant dense<0.000000e+00> : vector<1xf32>
    %145 = vector.multi_reduction <add>, %144, %cst_80 [0] : vector<8x1xf32> to vector<1xf32>
    %146 = vector.shape_cast %145 : vector<1xf32> to vector<1x1xf32>
    %cst_81 = arith.constant 4.000000e+00 : f32
    %147 = vector.broadcast %cst_81 : f32 to vector<1x1xf32>
    %148 = arith.divf %146, %147 : vector<1x1xf32>
    %cst_82 = arith.constant 0.000000e+00 : f32
    %149 = vector.broadcast %cst_82 : f32 to vector<8x1xf32>
    %150 = arith.select %116, %142, %149 : vector<8x1xi1>, vector<8x1xf32>
    %cst_83 = arith.constant dense<0.000000e+00> : vector<1xf32>
    %151 = vector.multi_reduction <add>, %150, %cst_83 [0] : vector<8x1xf32> to vector<1xf32>
    %152 = vector.shape_cast %151 : vector<1xf32> to vector<1x1xf32>
    %cst_84 = arith.constant 4.000000e+00 : f32
    %153 = vector.broadcast %cst_84 : f32 to vector<1x1xf32>
    %154 = arith.divf %152, %153 : vector<1x1xf32>
    %cst_85 = arith.constant 0.000000e+00 : f32
    %155 = vector.broadcast %cst_85 : f32 to vector<8x1xf32>
    %156 = arith.select %116, %155, %142 : vector<8x1xi1>, vector<8x1xf32>
    %cst_86 = arith.constant dense<0.000000e+00> : vector<1xf32>
    %157 = vector.multi_reduction <add>, %156, %cst_86 [0] : vector<8x1xf32> to vector<1xf32>
    %158 = vector.shape_cast %157 : vector<1xf32> to vector<1x1xf32>
    %cst_87 = arith.constant 4.000000e+00 : f32
    %159 = vector.broadcast %cst_87 : f32 to vector<1x1xf32>
    %160 = arith.divf %158, %159 : vector<1x1xf32>
    %161 = arith.addf %148, %160 : vector<1x1xf32>
    %c0_88 = arith.constant 0 : index
    %c0_89 = arith.constant 0 : index
    %162 = vector.load %arg10[%c0_88, %c0_89] : memref<1x1xf32, #tpu.memory_space<vmem>>, vector<1x1xf32>
    tpu.vector_store %arg10[%c0_88, %c0_89], %161 {strides = array<i32>} : memref<1x1xf32, #tpu.memory_space<vmem>>, vector<1x1xf32>,
    %c0_90 = arith.constant 0 : index
    %c0_91 = arith.constant 0 : index
    %163 = vector.load %arg9[%c0_90, %c0_91] : memref<1x1xf32, #tpu.memory_space<vmem>>, vector<1x1xf32>
    tpu.vector_store %arg9[%c0_90, %c0_91], %154 {strides = array<i32>} : memref<1x1xf32, #tpu.memory_space<vmem>>, vector<1x1xf32>,
    return
  }
  func.func @transform_0(%arg0: i32) -> (i32, i32) {
    %c0_i32 = arith.constant 0 : i32
    %c0_i32_0 = arith.constant 0 : i32
    %c0_i32_1 = arith.constant 0 : i32
    return %c0_i32, %c0_i32_0 : i32, i32
  }
  func.func @transform_1(%arg0: i32) -> (i32, i32) {
    %c0_i32 = arith.constant 0 : i32
    %c0_i32_0 = arith.constant 0 : i32
    %c0_i32_1 = arith.constant 0 : i32
    return %c0_i32, %c0_i32_0 : i32, i32
  }
  func.func @transform_2(%arg0: i32) -> (i32, i32) {
    %c0_i32 = arith.constant 0 : i32
    %c0_i32_0 = arith.constant 0 : i32
    %c0_i32_1 = arith.constant 0 : i32
    return %c0_i32, %c0_i32_0 : i32, i32
  }
  func.func @transform_3(%arg0: i32) -> (i32, i32, i32) {
    %c0_i32 = arith.constant 0 : i32
    %c0_i32_0 = arith.constant 0 : i32
    %c0_i32_1 = arith.constant 0 : i32
    %c0_i32_2 = arith.constant 0 : i32
    return %c0_i32, %c0_i32_0, %c0_i32_1 : i32, i32, i32
  }
  func.func @transform_4(%arg0: i32) -> (i32, i32) {
    %c0_i32 = arith.constant 0 : i32
    %c0_i32_0 = arith.constant 0 : i32
    %c0_i32_1 = arith.constant 0 : i32
    return %c0_i32, %c0_i32_0 : i32, i32
  }
  func.func @transform_5(%arg0: i32) -> (i32, i32) {
    %c0_i32 = arith.constant 0 : i32
    %c0_i32_0 = arith.constant 0 : i32
    %c0_i32_1 = arith.constant 0 : i32
    return %c0_i32, %c0_i32_0 : i32, i32
  }
  func.func @transform_6(%arg0: i32) -> (i32, i32) {
    %c0_i32 = arith.constant 0 : i32
    %c0_i32_0 = arith.constant 0 : i32
    %c0_i32_1 = arith.constant 0 : i32
    return %c0_i32, %c0_i32_0 : i32, i32
  }
  func.func @transform_7(%arg0: i32) -> (i32, i32) {
    %c0_i32 = arith.constant 0 : i32
    %c0_i32_0 = arith.constant 0 : i32
    %c0_i32_1 = arith.constant 0 : i32
    return %c0_i32, %c0_i32_0 : i32, i32
  }
  func.func @transform_8(%arg0: i32) -> (i32, i32) {
    %c0_i32 = arith.constant 0 : i32
    %c0_i32_0 = arith.constant 0 : i32
    %c0_i32_1 = arith.constant 0 : i32
    return %c0_i32, %c0_i32_0 : i32, i32
  }
  func.func @transform_9(%arg0: i32) -> (i32, i32) {
    %c0_i32 = arith.constant 0 : i32
    %c0_i32_0 = arith.constant 0 : i32
    %c0_i32_1 = arith.constant 0 : i32
    return %c0_i32, %c0_i32_0 : i32, i32
  }
}

</mosaic_0001>

<bundles_post_ra>
// kernel: _forward_fused.1
= control target key start
LH: loop header
LB: loop body
LE: loop exit
PB: predicated region body
PF: predicated region fallthrough
CT: control target
= control target key end

     0   :  { %s16852_s0 = inlined_call_operand.vmem [shape: bf16[2048,32], index: 0, kind: input, shape index: {}]   ;;  %s16853_s1 = inlined_call_operand.vmem [shape: bf16[32,16], index: 1, kind: input, shape index: {}]   ;;  %s16854_s2 = inlined_call_operand.vmem [shape: f32[1,16], index: 2, kind: input, shape index: {}]   ;;  %s16855_s3 = inlined_call_operand.vmem [shape: bf16[9,16,32], index: 3, kind: input, shape index: {}]   ;;  %s16856_s4 = inlined_call_operand.vmem [shape: f32[1,32], index: 4, kind: input, shape index: {}]   ;;  %s16857_s5 = inlined_call_operand.vmem [shape: f32[8,512], index: 5, kind: input, shape index: {}]   ;;  %s16858_s6 = inlined_call_operand.vmem [shape: f32[1,32], index: 6, kind: input, shape index: {}]   ;;  %s16859_s7 = inlined_call_operand.<no memory space> [shape: f32[1,1], index: 7, kind: input, shape index: {}]   ;;  %s16860_s8 = inlined_call_operand.hbm [shape: f32[1,1], index: 8, kind: output, shape index: {0}]   ;;  %s16861_s9 = inlined_call_operand.hbm [shape: f32[1,1], index: 9, kind: output, shape index: {1}]  }
   0x1   :  { %v15_v0 = vstv %s16859_s7 }
   0x2   :  { %16 = vst [vmem:[#allocation3] sm:$0x1] %v15_v0 }
   0x3   :  { %17 = vsyncpa [#allocation5], 0  ;;  %v11489_v1 = vld [vmem:[%s16853_s1 + $0x8] sm:$0xff]   ;;  %v11490_v2 = vld [vmem:[%s16853_s1] sm:$0xff]   ;;  %vm955_vm0 = vcmask 261120  }
   0x4   :  { %10630 = vmatprep.subr.bf16.mxu0 %v11489_v1  ;;  %v11491_v3 = vld [vmem:[%s16852_s0] sm:$0xff]   ;;  %v11492_v4 = vld [vmem:[%s16852_s0 + $0x8] sm:$0xff]   ;;  %v11493_v5 = vld [vmem:[%s16852_s0 + $0x10] sm:$0xff]  }
   0x5   :  { %10631 = vmatpush3.bf16.msra.mxu0 %v11489_v1  ;;  %10634 = vmatprep.mubr.msk.bf16.mxu0 %vm955_vm0, %v11491_v3  ;;  %v11494_v6 = vld [vmem:[%s16852_s0 + $0x18] sm:$0xff]   ;;  %v11495_v7 = vld [vmem:[%s16852_s0 + $0x20] sm:$0xff]   ;;  %v11496_v8 = vld [vmem:[%s16852_s0 + $0x28] sm:$0xff]  }
   0x6   :  { %10632 = vmatprep.subr.bf16.mxu0 %v11490_v2  ;;  %v11497_v9 = vld [vmem:[%s16852_s0 + $0x30] sm:$0xff]   ;;  %v11498_v10 = vld [vmem:[%s16852_s0 + $0x38] sm:$0xff]   ;;  %v11499_v11 = vld [vmem:[%s16852_s0 + $0x40] sm:$0xff]  }
   0x7   :  { %v11500_v12 = vld [vmem:[%s16852_s0 + $0x48] sm:$0xff]   ;;  %v11501_v13 = vld [vmem:[%s16852_s0 + $0x50] sm:$0xff]   ;;  %v11502_v14 = vld [vmem:[%s16852_s0 + $0x58] sm:$0xff]  }
   0x8   :  { %v11503_v15 = vld [vmem:[%s16852_s0 + $0x60] sm:$0xff]   ;;  %v11504_v16 = vld [vmem:[%s16852_s0 + $0x68] sm:$0xff]   ;;  %v11505_v17 = vld [vmem:[%s16852_s0 + $0x70] sm:$0xff]  }
   0x9   :  { %10633 = vmatpush3.bf16.msra.mxu0 %v11490_v2  ;;  %v11506_v18 = vld [vmem:[%s16852_s0 + $0x78] sm:$0xff]   ;;  %v11507_v19 = vld [vmem:[%s16852_s0 + $0x80] sm:$0xff]   ;;  %v11508_v20 = vld [vmem:[%s16852_s0 + $0x88] sm:$0xff]  }
   0xa   :  { %v11509_v21 = vld [vmem:[%s16852_s0 + $0x90] sm:$0xff]   ;;  %v11510_v22 = vld [vmem:[%s16852_s0 + $0x98] sm:$0xff]   ;;  %v11511_v23 = vld [vmem:[%s16852_s0 + $0xa0] sm:$0xff]  }
   0xb   :  { %v11512_v24 = vld [vmem:[%s16852_s0 + $0xa8] sm:$0xff]   ;;  %v11513_v25 = vld [vmem:[%s16852_s0 + $0xb0] sm:$0xff]   ;;  %v11514_v26 = vld [vmem:[%s16852_s0 + $0xb8] sm:$0xff]  }
   0xc   :  { %10635 = vmatmul.mubr.msk.bf16.vlgmr.msra.gmra.mxu0 %vm955_vm0, %v11492_v4  ;;  %v11515_v27 = vld [vmem:[%s16852_s0 + $0xc0] sm:$0xff]   ;;  %v11516_v28 = vld [vmem:[%s16852_s0 + $0xc8] sm:$0xff]   ;;  %v11517_v29 = vld [vmem:[%s16852_s0 + $0xd0] sm:$0xff]  }
   0xd   :  { %10638 = vmatprep.mubr.msk.bf16.mxu0 %vm955_vm0, %v11493_v5  ;;  %v11518_v30 = vld [vmem:[%s16852_s0 + $0xd8] sm:$0xff]   ;;  %v11519_v31 = vld [vmem:[%s16852_s0 + $0xe0] sm:$0xff]  }
  0x14   :  { %10639 = vmatmul.mubr.msk.bf16.gmra.mxu0 %vm955_vm0, %v11494_v6 }
  0x15   :  { %10642 = vmatprep.mubr.msk.bf16.mxu0 %vm955_vm0, %v11495_v7 }
  0x1c   :  { %10643 = vmatmul.mubr.msk.bf16.gmra.mxu0 %vm955_vm0, %v11496_v8 }
  0x1d   :  { %10646 = vmatprep.mubr.msk.bf16.mxu0 %vm955_vm0, %v11497_v9 }
  0x24   :  { %10647 = vmatmul.mubr.msk.bf16.gmra.mxu0 %vm955_vm0, %v11498_v10 }
  0x25   :  { %10650 = vmatprep.mubr.msk.bf16.mxu0 %vm955_vm0, %v11499_v11 }
  0x2c   :  { %10651 = vmatmul.mubr.msk.bf16.gmra.mxu0 %vm955_vm0, %v11500_v12 }
  0x2d   :  { %10654 = vmatprep.mubr.msk.bf16.mxu0 %vm955_vm0, %v11501_v13 }
  0x34   :  { %10655 = vmatmul.mubr.msk.bf16.gmra.mxu0 %vm955_vm0, %v11502_v14 }
  0x35   :  { %10658 = vmatprep.mubr.msk.bf16.mxu0 %vm955_vm0, %v11503_v15 }
  0x3c   :  { %10659 = vmatmul.mubr.msk.bf16.gmra.mxu0 %vm955_vm0, %v11504_v16 }
  0x3d   :  { %10662 = vmatprep.mubr.msk.bf16.mxu0 %vm955_vm0, %v11505_v17 }
  0x44   :  { %10663 = vmatmul.mubr.msk.bf16.gmra.mxu0 %vm955_vm0, %v11506_v18 }
  0x45   :  { %10666 = vmatprep.mubr.msk.bf16.mxu0 %vm955_vm0, %v11507_v19 }
  0x4c   :  { %10667 = vmatmul.mubr.msk.bf16.gmra.mxu0 %vm955_vm0, %v11508_v20 }
  0x4d   :  { %10670 = vmatprep.mubr.msk.bf16.mxu0 %vm955_vm0, %v11509_v21 }
  0x54   :  { %10671 = vmatmul.mubr.msk.bf16.gmra.mxu0 %vm955_vm0, %v11510_v22 }
  0x55   :  { %10674 = vmatprep.mubr.msk.bf16.mxu0 %vm955_vm0, %v11511_v23 }
  0x5c   :  { %10675 = vmatmul.mubr.msk.bf16.gmra.mxu0 %vm955_vm0, %v11512_v24 }
  0x5d   :  { %10678 = vmatprep.mubr.msk.bf16.mxu0 %vm955_vm0, %v11513_v25 }
  0x64   :  { %10679 = vmatmul.mubr.msk.bf16.gmra.mxu0 %vm955_vm0, %v11514_v26 }
  0x65   :  { %10682 = vmatprep.mubr.msk.bf16.mxu0 %vm955_vm0, %v11515_v27 }
  0x6c   :  { %10683 = vmatmul.mubr.msk.bf16.gmra.mxu0 %vm955_vm0, %v11516_v28 }
  0x6d   :  { %10686 = vmatprep.mubr.msk.bf16.mxu0 %vm955_vm0, %v11517_v29 }
  0x6e   :  { %18 = vsyncpa [#allocation7], 0  ;;  %v11520_v32 = vld [vmem:[%s16852_s0 + $0xe8] sm:$0xff]   ;;  %v11521_v33 = vld [vmem:[%s16852_s0 + $0xf0] sm:$0xff]   ;;  %vm4062_vm8 = vcmask 130048   ;;  %v16862_v29 = vmov 0.0  }
  0x6f   :  { %v11522_v34 = vld [vmem:[%s16852_s0 + $0xf8] sm:$0xff]   ;;  %v11523_v35 = vld [vmem:[%s16852_s0 + $0x100] sm:$0xff]   ;;  %v11524_v36 = vld [vmem:[%s16852_s0 + $0x108] sm:$0xff]   ;;  %4064 = vst.msk [vmem:[#allocation2 + $0x8] sm:$0xff] %vm4062_vm8, %v16862_v29  ;;  %s11729_s28 = smov [#allocation6]  }
  0x70   :  { %v11525_v37 = vld [vmem:[%s16852_s0 + $0x110] sm:$0xff]   ;;  %v11526_v38 = vld [vmem:[%s16852_s0 + $0x118] sm:$0xff]   ;;  %v11527_v39 = vld [vmem:[%s16852_s0 + $0x120] sm:$0xff]   ;;  %4065 = vst.msk [vmem:[#allocation2 + $0x10] sm:$0xff] %vm4062_vm8, %v16862_v29  ;;  %s9546_s29 = sshll.u32 %s11729_s28, 4  ;;  %s9547_s29 = int_to_ptr.vmem [resolvable:$true] %s9546_s29 }
  0x71   :  { %v11528_v40 = vld [vmem:[%s16852_s0 + $0x128] sm:$0xff]   ;;  %v11529_v41 = vld [vmem:[%s16852_s0 + $0x130] sm:$0xff]   ;;  %v11530_v42 = vld [vmem:[%s16852_s0 + $0x138] sm:$0xff]   ;;  %4066 = vst.msk [vmem:[#allocation2 + $0x18] sm:$0xff] %vm4062_vm8, %v16862_v29 }
  0x72   :  { %v11531_v43 = vld [vmem:[%s16852_s0 + $0x140] sm:$0xff]   ;;  %v11532_v44 = vld [vmem:[%s16852_s0 + $0x148] sm:$0xff]   ;;  %v11533_v45 = vld [vmem:[%s16852_s0 + $0x150] sm:$0xff]   ;;  %4067 = vst.msk [vmem:[#allocation2 + $0x20] sm:$0xff] %vm4062_vm8, %v16862_v29 }
  0x73   :  { %v11534_v46 = vld [vmem:[%s16852_s0 + $0x158] sm:$0xff]   ;;  %v11535_v47 = vld [vmem:[%s16852_s0 + $0x160] sm:$0xff]   ;;  %v11536_v48 = vld [vmem:[%s16852_s0 + $0x168] sm:$0xff]   ;;  %4068 = vst.msk [vmem:[#allocation2 + $0x28] sm:$0xff] %vm4062_vm8, %v16862_v29 }
  0x74   :  { %10687 = vmatmul.mubr.msk.bf16.gmra.mxu0 %vm955_vm0, %v11518_v30  ;;  %v11537_v49 = vld [vmem:[%s16852_s0 + $0x170] sm:$0xff]   ;;  %v11538_v50 = vld [vmem:[%s16852_s0 + $0x178] sm:$0xff]   ;;  %v11539_v51 = vld [vmem:[%s16852_s0 + $0x180] sm:$0xff]   ;;  %4069 = vst.msk [vmem:[#allocation2 + $0x30] sm:$0xff] %vm4062_vm8, %v16862_v29 }
  0x75   :  { %10690 = vmatprep.mubr.msk.bf16.mxu0 %vm955_vm0, %v11519_v31  ;;  %v11540_v52 = vld [vmem:[%s16852_s0 + $0x188] sm:$0xff]   ;;  %v11541_v53 = vld [vmem:[%s16852_s0 + $0x190] sm:$0xff]   ;;  %v11994_v54 = vld [vmem:[%s16854_s2] ss:$0 sm:$0xff]  ;;  %4070 = vst.msk [vmem:[#allocation2 + $0x38] sm:$0xff] %vm4062_vm8, %v16862_v29 }
  0x76   :  { %v11542_v61 = vld [vmem:[%s16852_s0 + $0x198] sm:$0xff]   ;;  %v11543_v63 = vld [vmem:[%s16852_s0 + $0x1a0] sm:$0xff]   ;;  %v11544_v17 = vld [vmem:[%s16852_s0 + $0x1a8] sm:$0xff]   ;;  %4071 = vst.msk [vmem:[#allocation2 + $0x40] sm:$0xff] %vm4062_vm8, %v16862_v29 }
  0x77   :  { %v11545_v19 = vld [vmem:[%s16852_s0 + $0x1b0] sm:$0xff]  }
  0x7c   :  { %10691 = vmatmul.mubr.msk.bf16.gmra.mxu0 %vm955_vm0, %v11520_v32 }
  0x7d   :  { %10694 = vmatprep.mubr.msk.bf16.mxu0 %vm955_vm0, %v11521_v33 }
  0x84   :  { %10695 = vmatmul.mubr.msk.bf16.gmra.mxu0 %vm955_vm0, %v11522_v34 }
  0x85   :  { %10698 = vmatprep.mubr.msk.bf16.mxu0 %vm955_vm0, %v11523_v35 }
  0x8c   :  { %10699 = vmatmul.mubr.msk.bf16.gmra.mxu0 %vm955_vm0, %v11524_v36 }
  0x8d   :  { %10702 = vmatprep.mubr.msk.bf16.mxu0 %vm955_vm0, %v11525_v37 }
  0x94   :  { %10703 = vmatmul.mubr.msk.bf16.gmra.mxu0 %vm955_vm0, %v11526_v38  ;;  %v11546_v38 = vld [vmem:[%s16852_s0 + $0x1b8] sm:$0xff]  }
  0x95   :  { %10706 = vmatprep.mubr.msk.bf16.mxu0 %vm955_vm0, %v11527_v39 }
  0x9c   :  { %10707 = vmatmul.mubr.msk.bf16.gmra.mxu0 %vm955_vm0, %v11528_v40  ;;  %v11547_v40 = vld [vmem:[%s16852_s0 + $0x1c0] sm:$0xff]  }
  0x9d   :  { %10710 = vmatprep.mubr.msk.bf16.mxu0 %vm955_vm0, %v11529_v41 }
  0xa4   :  { %10711 = vmatmul.mubr.msk.bf16.gmra.mxu0 %vm955_vm0, %v11530_v42 }
  0xa5   :  { %10714 = vmatprep.mubr.msk.bf16.mxu0 %vm955_vm0, %v11531_v43 }
  0xac   :  { %10715 = vmatmul.mubr.msk.bf16.gmra.mxu0 %vm955_vm0, %v11532_v44 }
  0xad   :  { %10718 = vmatprep.mubr.msk.bf16.mxu0 %vm955_vm0, %v11533_v45 }
  0xb4   :  { %10719 = vmatmul.mubr.msk.bf16.gmra.mxu0 %vm955_vm0, %v11534_v46 }
  0xb5   :  { %10722 = vmatprep.mubr.msk.bf16.mxu0 %vm955_vm0, %v11535_v47 }
  0xbc   :  { %10723 = vmatmul.mubr.msk.bf16.gmra.mxu0 %vm955_vm0, %v11536_v48 }
  0xbd   :  { %10726 = vmatprep.mubr.msk.bf16.mxu0 %vm955_vm0, %v11537_v49 }
  0xc4   :  { %10727 = vmatmul.mubr.msk.bf16.gmra.mxu0 %vm955_vm0, %v11538_v50 }
  0xc5   :  { %10730 = vmatprep.mubr.msk.bf16.mxu0 %vm955_vm0, %v11539_v51 }
  0xcc   :  { %v10636_v55 = vpop.f32.mrf.mxu0  ;;  %10731 = vmatmul.mubr.msk.bf16.gmra.mxu0 %vm955_vm0, %v11540_v52 }
  0xcd   :  { %v1383_v56 = vadd.f32 %v10636_v55, %v11994_v54  ;;  %10734 = vmatprep.mubr.msk.bf16.mxu0 %vm955_vm0, %v11541_v53 }
  0xce   :  { %v1374_v57 = vpop.f32.mrf.mxu0 }
  0xcf   :  { %v1375_v58 = vadd.f32 %v11994_v54, %v1374_v57  ;;  %v2655_v59 = vmul.f32 0.2, %v1383_v56  ;;  %vm2399_vm1 = vcmp.ge.f32.partialorder %v1383_v56, 0.0 }
  0xd0   :  { %v10637_v60 = vpop.f32.mrf.mxu0 }
  0xd1   :  { %v1386_v62 = vadd.f32 %v10637_v60, %v11994_v54  ;;  %v2653_v1 = vmul.f32 0.2, %v1375_v58  ;;  %v12008_v4 = vsel %vm2399_vm1, %v1383_v56, %v2655_v59  ;;  %vm2397_vm3 = vcmp.ge.f32.partialorder %v1375_v58, 0.0  ;;  %v11548_v59 = vld [vmem:[%s16852_s0 + $0x1c8] sm:$0xff]  }
  0xd2   :  { %v1377_v0 = vpop.f32.mrf.mxu0 }
  0xd3   :  { %vm2400_vm2 = vcmp.ge.f32.partialorder %v1386_v62, 0.0  ;;  %v2656_v2 = vmul.f32 0.2, %v1386_v62  ;;  %v1378_v3 = vadd.f32 %v11994_v54, %v1377_v0  ;;  %v12017_v11 = vsel %vm2397_vm3, %v1375_v58, %v2653_v1 }
  0xd4   :  { %v10640_v5 = vpop.f32.mrf.mxu0  ;;  %10735 = vmatmul.mubr.msk.bf16.gmra.mxu0 %vm955_vm0, %v11542_v61  ;;  %v11549_v61 = vld [vmem:[%s16852_s0 + $0x1d0] sm:$0xff]  }
  0xd5   :  { %v12011_v6 = vsel %vm2400_vm2, %v1386_v62, %v2656_v2  ;;  %vm2398_vm4 = vcmp.ge.f32.partialorder %v1378_v3, 0.0  ;;  %v2654_v7 = vmul.f32 0.2, %v1378_v3  ;;  %v1399_v8 = vadd.f32 %v10640_v5, %v11994_v54  ;;  %10738 = vmatprep.mubr.msk.bf16.mxu0 %vm955_vm0, %v11543_v63 }
  0xd6   :  { %v1390_v10 = vpop.f32.mrf.mxu0 }
  0xd7   :  { %v12019_v12 = vsel %vm2398_vm4, %v1378_v3, %v2654_v7  ;;  %v1391_v13 = vadd.f32 %v11994_v54, %v1390_v10  ;;  %v2659_v15 = vmul.f32 0.2, %v1399_v8  ;;  %vm2403_vm5 = vcmp.ge.f32.partialorder %v1399_v8, 0.0 }
  0xd8   :  { %v10641_v16 = vpop.f32.mrf.mxu0 }
  0xd9   :  { %v1402_v18 = vadd.f32 %v10641_v16, %v11994_v54  ;;  %v2657_v21 = vmul.f32 0.2, %v1391_v13  ;;  %v12032_v24 = vsel %vm2403_vm5, %v1399_v8, %v2659_v15  ;;  %vm2401_vm7 = vcmp.ge.f32.partialorder %v1391_v13, 0.0 }
  0xda   :  { %v1393_v20 = vpop.f32.mrf.mxu0 }
  0xdb   :  { %vm2404_vm6 = vcmp.ge.f32.partialorder %v1402_v18, 0.0  ;;  %v2660_v22 = vmul.f32 0.2, %v1402_v18  ;;  %v1394_v23 = vadd.f32 %v11994_v54, %v1393_v20  ;;  %v12058_v32 = vsel %vm2401_vm7, %v1391_v13, %v2657_v21  ;;  %v11550_v21 = vld [vmem:[%s16852_s0 + $0x1d8] sm:$0xff]  }
  0xdc   :  { %v10644_v25 = vpop.f32.mrf.mxu0  ;;  %10739 = vmatmul.mubr.msk.bf16.gmra.mxu0 %vm955_vm0, %v11544_v17 }
  0xdd   :  { %v12035_v26 = vsel %vm2404_vm6, %v1402_v18, %v2660_v22  ;;  %vm2402_vm9 = vcmp.ge.f32.partialorder %v1394_v23, 0.0  ;;  %v2658_v27 = vmul.f32 0.2, %v1394_v23  ;;  %v1415_v28 = vadd.f32 %v10644_v25, %v11994_v54  ;;  %10742 = vmatprep.mubr.msk.bf16.mxu0 %vm955_vm0, %v11545_v19 }
  0xde   :  { %v1406_v31 = vpop.f32.mrf.mxu0 }
  0xdf   :  { %v12061_v33 = vsel %vm2402_vm9, %v1394_v23, %v2658_v27  ;;  %v1407_v34 = vadd.f32 %v11994_v54, %v1406_v31  ;;  %v2663_v36 = vmul.f32 0.2, %v1415_v28  ;;  %vm2407_vm10 = vcmp.ge.f32.partialorder %v1415_v28, 0.0  ;;  %v11551_v23 = vld [vmem:[%s16852_s0 + $0x1e0] sm:$0xff]  }
  0xe0   :  { %v10645_v37 = vpop.f32.mrf.mxu0 }
  0xe1   :  { %v1418_v39 = vadd.f32 %v10645_v37, %v11994_v54  ;;  %v2661_v42 = vmul.f32 0.2, %v1407_v34  ;;  %v12074_v45 = vsel %vm2407_vm10, %v1415_v28, %v2663_v36  ;;  %vm2405_vm12 = vcmp.ge.f32.partialorder %v1407_v34, 0.0 }
  0xe2   :  { %v1409_v41 = vpop.f32.mrf.mxu0 }
  0xe3   :  { %vm2408_vm11 = vcmp.ge.f32.partialorder %v1418_v39, 0.0  ;;  %v2664_v43 = vmul.f32 0.2, %v1418_v39  ;;  %v1410_v44 = vadd.f32 %v11994_v54, %v1409_v41  ;;  %v12083_v52 = vsel %vm2405_vm12, %v1407_v34, %v2661_v42 }
  0xe4   :  { %v10648_v46 = vpop.f32.mrf.mxu0  ;;  %10743 = vmatmul.mubr.msk.bf16.gmra.mxu0 %vm955_vm0, %v11546_v38 }
  0xe5   :  { %v12077_v47 = vsel %vm2408_vm11, %v1418_v39, %v2664_v43  ;;  %vm2406_vm13 = vcmp.ge.f32.partialorder %v1410_v44, 0.0  ;;  %v2662_v48 = vmul.f32 0.2, %v1410_v44  ;;  %v1431_v49 = vadd.f32 %v10648_v46, %v11994_v54  ;;  %10746 = vmatprep.mubr.msk.bf16.mxu0 %vm955_vm0, %v11547_v40 }
  0xe6   :  { %v1422_v51 = vpop.f32.mrf.mxu0 }
  0xe7   :  { %v12085_v53 = vsel %vm2406_vm13, %v1410_v44, %v2662_v48  ;;  %v1423_v55 = vadd.f32 %v11994_v54, %v1422_v51  ;;  %v2667_v57 = vmul.f32 0.2, %v1431_v49  ;;  %vm2411_vm14 = vcmp.ge.f32.partialorder %v1431_v49, 0.0  ;;  %v11552_v51 = vld [vmem:[%s16852_s0 + $0x1e8] sm:$0xff]  }
  0xe8   :  { %v10649_v58 = vpop.f32.mrf.mxu0 }
  0xe9   :  { %v1434_v60 = vadd.f32 %v10649_v58, %v11994_v54  ;;  %v2665_v63 = vmul.f32 0.2, %v1423_v55  ;;  %v12098_v2 = vsel %vm2411_vm14, %v1431_v49, %v2667_v57  ;;  %vm2409_vm1 = vcmp.ge.f32.partialorder %v1423_v55, 0.0  ;;  %v11553_v57 = vld [vmem:[%s16852_s0 + $0x1f0] sm:$0xff]  }
  0xea   :  { %v1425_v62 = vpop.f32.mrf.mxu0 }
  0xeb   :  { %vm2412_vm15 = vcmp.ge.f32.partialorder %v1434_v60, 0.0  ;;  %v2668_v0 = vmul.f32 0.2, %v1434_v60  ;;  %v1426_v1 = vadd.f32 %v11994_v54, %v1425_v62  ;;  %v12107_v15 = vsel %vm2409_vm1, %v1423_v55, %v2665_v63 }
  0xec   :  { %v10652_v3 = vpop.f32.mrf.mxu0  ;;  %10747 = vmatmul.mubr.msk.bf16.gmra.mxu0 %vm955_vm0, %v11548_v59 }
  0xed   :  { %v12101_v5 = vsel %vm2412_vm15, %v1434_v60, %v2668_v0  ;;  %vm2410_vm2 = vcmp.ge.f32.partialorder %v1426_v1, 0.0  ;;  %v2666_v7 = vmul.f32 0.2, %v1426_v1  ;;  %v1447_v8 = vadd.f32 %v10652_v3, %v11994_v54  ;;  %10750 = vmatprep.mubr.msk.bf16.mxu0 %vm955_vm0, %v11549_v61 }
  0xee   :  { %v1438_v13 = vpop.f32.mrf.mxu0 }
  0xef   :  { %v12109_v16 = vsel %vm2410_vm2, %v1426_v1, %v2666_v7  ;;  %v1439_v17 = vadd.f32 %v11994_v54, %v1438_v13  ;;  %v2671_v19 = vmul.f32 0.2, %v1447_v8  ;;  %vm2415_vm3 = vcmp.ge.f32.partialorder %v1447_v8, 0.0 }
  0xf0   :  { %v10653_v20 = vpop.f32.mrf.mxu0 }
  0xf1   :  { %v1450_v22 = vadd.f32 %v10653_v20, %v11994_v54  ;;  %v2669_v27 = vmul.f32 0.2, %v1439_v17  ;;  %v12122_v34 = vsel %vm2415_vm3, %v1447_v8, %v2671_v19  ;;  %vm2413_vm5 = vcmp.ge.f32.partialorder %v1439_v17, 0.0 }
  0xf2   :  { %v1441_v25 = vpop.f32.mrf.mxu0 }
  0xf3   :  { %vm2416_vm4 = vcmp.ge.f32.partialorder %v1450_v22, 0.0  ;;  %v2672_v28 = vmul.f32 0.2, %v1450_v22  ;;  %v1442_v31 = vadd.f32 %v11994_v54, %v1441_v25  ;;  %v12131_v42 = vsel %vm2413_vm5, %v1439_v17, %v2669_v27  ;;  %v11555_v27 = vld [vmem:[%s16852_s0 + $0x200] sm:$0xff]  }
  0xf4   :  { %v10656_v36 = vpop.f32.mrf.mxu0  ;;  %10751 = vmatmul.mubr.msk.bf16.gmra.mxu0 %vm955_vm0, %v11550_v21 }
  0xf5   :  { %v12125_v37 = vsel %vm2416_vm4, %v1450_v22, %v2672_v28  ;;  %vm2414_vm6 = vcmp.ge.f32.partialorder %v1442_v31, 0.0  ;;  %v2670_v38 = vmul.f32 0.2, %v1442_v31  ;;  %v1463_v39 = vadd.f32 %v10656_v36, %v11994_v54  ;;  %10754 = vmatprep.mubr.msk.bf16.mxu0 %vm955_vm0, %v11551_v23  ;;  %v11554_v23 = vld [vmem:[%s16852_s0 + $0x1f8] sm:$0xff]  }
  0xf6   :  { %v1454_v41 = vpop.f32.mrf.mxu0 }
  0xf7   :  { %v12133_v43 = vsel %vm2414_vm6, %v1442_v31, %v2670_v38  ;;  %v1455_v44 = vadd.f32 %v11994_v54, %v1454_v41  ;;  %v2675_v48 = vmul.f32 0.2, %v1463_v39  ;;  %vm2419_vm7 = vcmp.ge.f32.partialorder %v1463_v39, 0.0 }
  0xf8   :  { %v10657_v49 = vpop.f32.mrf.mxu0 }
  0xf9   :  { %v1466_v55 = vadd.f32 %v10657_v49, %v11994_v54  ;;  %v2673_v59 = vmul.f32 0.2, %v1455_v44  ;;  %v12146_v62 = vsel %vm2419_vm7, %v1463_v39, %v2675_v48  ;;  %vm2417_vm10 = vcmp.ge.f32.partialorder %v1455_v44, 0.0 }
  0xfa   :  { %v1457_v58 = vpop.f32.mrf.mxu0 }
  0xfb   :  { %vm2420_vm9 = vcmp.ge.f32.partialorder %v1466_v55, 0.0  ;;  %v2676_v60 = vmul.f32 0.2, %v1466_v55  ;;  %v1458_v61 = vadd.f32 %v11994_v54, %v1457_v58  ;;  %v12155_v13 = vsel %vm2417_vm10, %v1455_v44, %v2673_v59  ;;  %v11587_v44 = vld [vmem:[%s16855_s3 + $0x18] sm:$0xff]  }
  0xfc   :  { %v10660_v63 = vpop.f32.mrf.mxu0  ;;  %10755 = vmatmul.mubr.msk.bf16.gmra.mxu0 %vm955_vm0, %v11552_v51  ;;  %11484 = vmatprep.subr.bf16.mxu1 %v11587_v44 }
  0xfd   :  { %v12149_v0 = vsel %vm2420_vm9, %v1466_v55, %v2676_v60  ;;  %vm2418_vm11 = vcmp.ge.f32.partialorder %v1458_v61, 0.0  ;;  %v2674_v1 = vmul.f32 0.2, %v1458_v61  ;;  %v1479_v3 = vadd.f32 %v10660_v63, %v11994_v54  ;;  %10758 = vmatprep.mubr.msk.bf16.mxu0 %vm955_vm0, %v11553_v57  ;;  %10890 = vmatprep.subr.bf16.mxu0 %v11587_v44 }
  0xfe   :  { %v1470_v8 = vpop.f32.mrf.mxu0  ;;  %11485 = vmatpush3.bf16.msra.mxu1 %v11587_v44  ;;  %10891 = vmatpush3.bf16.msra.mxu0 %v11587_v44 }
  0xff   :  { %v12157_v17 = vsel %vm2418_vm11, %v1458_v61, %v2674_v1  ;;  %v1471_v19 = vadd.f32 %v11994_v54, %v1470_v8  ;;  %v2679_v21 = vmul.f32 0.2, %v1479_v3  ;;  %vm2423_vm12 = vcmp.ge.f32.partialorder %v1479_v3, 0.0 }
 0x100   :  { %v10661_v22 = vpop.f32.mrf.mxu0 }
 0x101   :  { %v1482_v25 = vadd.f32 %v10661_v22, %v11994_v54  ;;  %v2677_v31 = vmul.f32 0.2, %v1471_v19  ;;  %v12170_v39 = vsel %vm2423_vm12, %v1479_v3, %v2679_v21  ;;  %vm2421_vm14 = vcmp.ge.f32.partialorder %v1471_v19, 0.0  ;;  %v11556_v3 = vld [vmem:[%s16852_s0 + $0x208] sm:$0xff]  }
 0x102   :  { %v1473_v28 = vpop.f32.mrf.mxu0 }
 0x103   :  { %vm2424_vm13 = vcmp.ge.f32.partialorder %v1482_v25, 0.0  ;;  %v2680_v36 = vmul.f32 0.2, %v1482_v25  ;;  %v1474_v38 = vadd.f32 %v11994_v54, %v1473_v28  ;;  %v12182_v58 = vsel %vm2421_vm14, %v1471_v19, %v2677_v31  ;;  %v11557_v19 = vld [vmem:[%s16852_s0 + $0x210] sm:$0xff]  }
 0x104   :  { %v10664_v41 = vpop.f32.mrf.mxu0  ;;  %10759 = vmatmul.mubr.msk.bf16.gmra.mxu0 %vm955_vm0, %v11554_v23 }
 0x105   :  { %v12176_v48 = vsel %vm2424_vm13, %v1482_v25, %v2680_v36  ;;  %vm2422_vm15 = vcmp.ge.f32.partialorder %v1474_v38, 0.0  ;;  %v2678_v49 = vmul.f32 0.2, %v1474_v38  ;;  %v1495_v51 = vadd.f32 %v10664_v41, %v11994_v54  ;;  %10762 = vmatprep.mubr.msk.bf16.mxu0 %vm955_vm0, %v11555_v27 }
 0x106   :  { %v1486_v57 = vpop.f32.mrf.mxu0 }
 0x107   :  { %v12184_v59 = vsel %vm2422_vm15, %v1474_v38, %v2678_v49  ;;  %v1487_v60 = vadd.f32 %v11994_v54, %v1486_v57  ;;  %v2683_v63 = vmul.f32 0.2, %v1495_v51  ;;  %vm2427_vm1 = vcmp.ge.f32.partialorder %v1495_v51, 0.0 }
 0x108   :  { %v10665_v1 = vpop.f32.mrf.mxu0 }
 0x109   :  { %v1498_v8 = vadd.f32 %v10665_v1, %v11994_v54  ;;  %v2681_v22 = vmul.f32 0.2, %v1487_v60  ;;  %v12197_v27 = vsel %vm2427_vm1, %v1495_v51, %v2683_v63  ;;  %vm2425_vm3 = vcmp.ge.f32.partialorder %v1487_v60, 0.0 }
 0x10a   :  { %v1489_v21 = vpop.f32.mrf.mxu0 }
 0x10b   :  { %vm2428_vm2 = vcmp.ge.f32.partialorder %v1498_v8, 0.0  ;;  %v2684_v23 = vmul.f32 0.2, %v1498_v8  ;;  %v1490_v25 = vadd.f32 %v11994_v54, %v1489_v21  ;;  %v12206_v49 = vsel %vm2425_vm3, %v1487_v60, %v2681_v22  ;;  %v11559_v60 = vld [vmem:[%s16852_s0 + $0x220] sm:$0xff]  }
 0x10c   :  { %v10668_v28 = vpop.f32.mrf.mxu0  ;;  %10763 = vmatmul.mubr.msk.bf16.gmra.mxu0 %vm955_vm0, %v11556_v3 }
 0x10d   :  { %v12200_v31 = vsel %vm2428_vm2, %v1498_v8, %v2684_v23  ;;  %vm2426_vm4 = vcmp.ge.f32.partialorder %v1490_v25, 0.0  ;;  %v2682_v36 = vmul.f32 0.2, %v1490_v25  ;;  %v1511_v38 = vadd.f32 %v10668_v28, %v11994_v54  ;;  %10766 = vmatprep.mubr.msk.bf16.mxu0 %vm955_vm0, %v11557_v19  ;;  %v11558_v8 = vld [vmem:[%s16852_s0 + $0x218] sm:$0xff]  }
 0x10e   :  { %v1502_v44 = vpop.f32.mrf.mxu0 }
 0x10f   :  { %v12208_v51 = vsel %vm2426_vm4, %v1490_v25, %v2682_v36  ;;  %v1503_v57 = vadd.f32 %v11994_v54, %v1502_v44  ;;  %v2687_v1 = vmul.f32 0.2, %v1511_v38  ;;  %vm2431_vm5 = vcmp.ge.f32.partialorder %v1511_v38, 0.0 }
 0x110   :  { %v10669_v3 = vpop.f32.mrf.mxu0 }
 0x111   :  { %v1514_v19 = vadd.f32 %v10669_v3, %v11994_v54  ;;  %v2685_v22 = vmul.f32 0.2, %v1503_v57  ;;  %v12221_v28 = vsel %vm2431_vm5, %v1511_v38, %v2687_v1  ;;  %vm2429_vm7 = vcmp.ge.f32.partialorder %v1503_v57, 0.0 }
 0x112   :  { %v1505_v21 = vpop.f32.mrf.mxu0 }
 0x113   :  { %vm2432_vm6 = vcmp.ge.f32.partialorder %v1514_v19, 0.0  ;;  %v2688_v23 = vmul.f32 0.2, %v1514_v19  ;;  %v1506_v25 = vadd.f32 %v11994_v54, %v1505_v21  ;;  %v12230_v61 = vsel %vm2429_vm7, %v1503_v57, %v2685_v22  ;;  %v11561_v57 = vld [vmem:[%s16852_s0 + $0x230] sm:$0xff]  }
 0x114   :  { %v10672_v36 = vpop.f32.mrf.mxu0  ;;  %10767 = vmatmul.mubr.msk.bf16.gmra.mxu0 %vm955_vm0, %v11558_v8 }
 0x115   :  { %v12224_v44 = vsel %vm2432_vm6, %v1514_v19, %v2688_v23  ;;  %vm2430_vm9 = vcmp.ge.f32.partialorder %v1506_v25, 0.0  ;;  %v2686_v3 = vmul.f32 0.2, %v1506_v25  ;;  %v1527_v41 = vadd.f32 %v10672_v36, %v11994_v54  ;;  %10770 = vmatprep.mubr.msk.bf16.mxu0 %vm955_vm0, %v11559_v60  ;;  %v11560_v23 = vld [vmem:[%s16852_s0 + $0x228] sm:$0xff]  }
 0x116   :  { %v1518_v55 = vpop.f32.mrf.mxu0 }
 0x117   :  { %v12232_v38 = vsel %vm2430_vm9, %v1506_v25, %v2686_v3  ;;  %v1519_v1 = vadd.f32 %v11994_v54, %v1518_v55  ;;  %v2691_v19 = vmul.f32 0.2, %v1527_v41  ;;  %vm2435_vm10 = vcmp.ge.f32.partialorder %v1527_v41, 0.0 }
 0x118   :  { %v10673_v21 = vpop.f32.mrf.mxu0 }
 0x119   :  { %v1530_v60 = vadd.f32 %v10673_v21, %v11994_v54  ;;  %v2689_v25 = vmul.f32 0.2, %v1519_v1  ;;  %v12245_v3 = vsel %vm2435_vm10, %v1527_v41, %v2691_v19  ;;  %vm2433_vm12 = vcmp.ge.f32.partialorder %v1519_v1, 0.0 }
 0x11a   :  { %v1521_v22 = vpop.f32.mrf.mxu0 }
 0x11b   :  { %vm2436_vm11 = vcmp.ge.f32.partialorder %v1530_v60, 0.0  ;;  %v2692_v55 = vmul.f32 0.2, %v1530_v60  ;;  %v1522_v36 = vadd.f32 %v11994_v54, %v1521_v22  ;;  %v12254_v46 = vsel %vm2433_vm12, %v1519_v1, %v2689_v25  ;;  %v11563_v1 = vld [vmem:[%s16852_s0 + $0x240] sm:$0xff]  }
 0x11c   :  { %v10676_v63 = vpop.f32.mrf.mxu0  ;;  %10771 = vmatmul.mubr.msk.bf16.gmra.mxu0 %vm955_vm0, %v11560_v23 }
 0x11d   :  { %v12248_v8 = vsel %vm2436_vm11, %v1530_v60, %v2692_v55  ;;  %vm2434_vm13 = vcmp.ge.f32.partialorder %v1522_v36, 0.0  ;;  %v2690_v21 = vmul.f32 0.2, %v1522_v36  ;;  %v1543_v7 = vadd.f32 %v10676_v63, %v11994_v54  ;;  %10774 = vmatprep.mubr.msk.bf16.mxu0 %vm955_vm0, %v11561_v57  ;;  %v11562_v63 = vld [vmem:[%s16852_s0 + $0x238] sm:$0xff]  }
 0x11e   :  { %v1534_v40 = vpop.f32.mrf.mxu0 }
 0x11f   :  { %v12256_v41 = vsel %vm2434_vm13, %v1522_v36, %v2690_v21  ;;  %v1535_v19 = vadd.f32 %v11994_v54, %v1534_v40  ;;  %v2695_v60 = vmul.f32 0.2, %v1543_v7  ;;  %vm2439_vm14 = vcmp.ge.f32.partialorder %v1543_v7, 0.0 }
 0x120   :  { %v10677_v22 = vpop.f32.mrf.mxu0 }
 0x121   :  { %v1546_v57 = vadd.f32 %v10677_v22, %v11994_v54  ;;  %v2693_v55 = vmul.f32 0.2, %v1535_v19  ;;  %v12269_v21 = vsel %vm2439_vm14, %v1543_v7, %v2695_v60  ;;  %vm2437_vm1 = vcmp.ge.f32.partialorder %v1535_v19, 0.0 }
 0x122   :  { %v1537_v25 = vpop.f32.mrf.mxu0  ;;  %17120 = vst [vmem:[#allocation10_spill] sm:$0xff] %v12269_v21 }
 0x123   :  { %vm2440_vm15 = vcmp.ge.f32.partialorder %v1546_v57, 0.0  ;;  %v2696_v40 = vmul.f32 0.2, %v1546_v57  ;;  %v1538_v36 = vadd.f32 %v11994_v54, %v1537_v25  ;;  %v12278_v56 = vsel %vm2437_vm1, %v1535_v19, %v2693_v55  ;;  %v11565_v19 = vld [vmem:[%s16852_s0 + $0x250] sm:$0xff]  }
 0x124   :  { %v10680_v20 = vpop.f32.mrf.mxu0  ;;  %10775 = vmatmul.mubr.msk.bf16.gmra.mxu0 %vm955_vm0, %v11562_v63  ;;  %17122 = vst [vmem:[#allocation12_spill] sm:$0xff] %v12278_v56  ;;  %v11611_v56 = vld [vmem:[%s16852_s0 + $0x3b0] sm:$0xff]  }
 0x125   :  { %v12272_v23 = vsel %vm2440_vm15, %v1546_v57, %v2696_v40  ;;  %vm2438_vm2 = vcmp.ge.f32.partialorder %v1538_v36, 0.0  ;;  %v2694_v22 = vmul.f32 0.2, %v1538_v36  ;;  %v1559_v10 = vadd.f32 %v10680_v20, %v11994_v54  ;;  %10778 = vmatprep.mubr.msk.bf16.mxu0 %vm955_vm0, %v11563_v1  ;;  %v11564_v20 = vld [vmem:[%s16852_s0 + $0x248] sm:$0xff]  }
 0x126   :  { %17121 = vst [vmem:[#allocation11_spill] sm:$0xff] %v12272_v23  ;;  %v1550_v50 = vpop.f32.mrf.mxu0 }
 0x127   :  { %v12280_v7 = vsel %vm2438_vm2, %v1538_v36, %v2694_v22  ;;  %v1551_v60 = vadd.f32 %v11994_v54, %v1550_v50  ;;  %v2699_v57 = vmul.f32 0.2, %v1559_v10  ;;  %vm2443_vm3 = vcmp.ge.f32.partialorder %v1559_v10, 0.0 }
 0x128   :  { %v10681_v25 = vpop.f32.mrf.mxu0 }
 0x129   :  { %v1562_v1 = vadd.f32 %v10681_v25, %v11994_v54  ;;  %v2697_v40 = vmul.f32 0.2, %v1551_v60  ;;  %v12293_v22 = vsel %vm2443_vm3, %v1559_v10, %v2699_v57  ;;  %vm2441_vm5 = vcmp.ge.f32.partialorder %v1551_v60, 0.0 }
 0x12a   :  { %v1553_v55 = vpop.f32.mrf.mxu0  ;;  %17123 = vst [vmem:[#allocation13_spill] sm:$0xff] %v12293_v22 }
 0x12b   :  { %vm2444_vm4 = vcmp.ge.f32.partialorder %v1562_v1, 0.0  ;;  %v2700_v50 = vmul.f32 0.2, %v1562_v1  ;;  %v1554_v36 = vadd.f32 %v11994_v54, %v1553_v55  ;;  %v12302_v14 = vsel %vm2441_vm5, %v1551_v60, %v2697_v40  ;;  %v11567_v60 = vld [vmem:[%s16852_s0 + $0x260] sm:$0xff]  }
 0x12c   :  { %v10684_v18 = vpop.f32.mrf.mxu0  ;;  %10779 = vmatmul.mubr.msk.bf16.gmra.mxu0 %vm955_vm0, %v11564_v20  ;;  %17125 = vst [vmem:[#allocation15_spill] sm:$0xff] %v12302_v14 }
 0x12d   :  { %v12296_v63 = vsel %vm2444_vm4, %v1562_v1, %v2700_v50  ;;  %vm2442_vm6 = vcmp.ge.f32.partialorder %v1554_v36, 0.0  ;;  %v2698_v25 = vmul.f32 0.2, %v1554_v36  ;;  %v1575_v30 = vadd.f32 %v10684_v18, %v11994_v54  ;;  %10782 = vmatprep.mubr.msk.bf16.mxu0 %vm955_vm0, %v11565_v19  ;;  %v11566_v18 = vld [vmem:[%s16852_s0 + $0x258] sm:$0xff]  }
 0x12e   :  { %17124 = vst [vmem:[#allocation14_spill] sm:$0xff] %v12296_v63  ;;  %v1566_v9 = vpop.f32.mrf.mxu0 }
 0x12f   :  { %v12304_v10 = vsel %vm2442_vm6, %v1554_v36, %v2698_v25  ;;  %v1567_v57 = vadd.f32 %v11994_v54, %v1566_v9  ;;  %v2703_v1 = vmul.f32 0.2, %v1575_v30  ;;  %vm2447_vm7 = vcmp.ge.f32.partialorder %v1575_v30, 0.0 }
 0x130   :  { %17126 = vst [vmem:[#allocation16_spill] sm:$0xff] %v12304_v10  ;;  %v10685_v55 = vpop.f32.mrf.mxu0 }
 0x131   :  { %v1578_v19 = vadd.f32 %v10685_v55, %v11994_v54  ;;  %v2701_v50 = vmul.f32 0.2, %v1567_v57  ;;  %v12317_v25 = vsel %vm2447_vm7, %v1575_v30, %v2703_v1  ;;  %vm2445_vm10 = vcmp.ge.f32.partialorder %v1567_v57, 0.0 }
 0x132   :  { %v1569_v40 = vpop.f32.mrf.mxu0  ;;  %17127 = vst [vmem:[#allocation17_spill] sm:$0xff] %v12317_v25 }
 0x133   :  { %vm2448_vm9 = vcmp.ge.f32.partialorder %v1578_v19, 0.0  ;;  %v2704_v9 = vmul.f32 0.2, %v1578_v19  ;;  %v1570_v36 = vadd.f32 %v11994_v54, %v1569_v40  ;;  %v12326_v14 = vsel %vm2445_vm10, %v1567_v57, %v2701_v50  ;;  %v11569_v57 = vld [vmem:[%s16852_s0 + $0x270] sm:$0xff]  }
 0x134   :  { %v10688_v35 = vpop.f32.mrf.mxu0  ;;  %10783 = vmatmul.mubr.msk.bf16.gmra.mxu0 %vm955_vm0, %v11566_v18  ;;  %17129 = vst [vmem:[#allocation19_spill] sm:$0xff] %v12326_v14 }
 0x135   :  { %v12320_v20 = vsel %vm2448_vm9, %v1578_v19, %v2704_v9  ;;  %vm2446_vm11 = vcmp.ge.f32.partialorder %v1570_v36, 0.0  ;;  %v2702_v55 = vmul.f32 0.2, %v1570_v36  ;;  %v1591_v29 = vadd.f32 %v10688_v35, %v11994_v54  ;;  %10786 = vmatprep.mubr.msk.bf16.mxu0 %vm955_vm0, %v11567_v60  ;;  %v11568_v35 = vld [vmem:[%s16852_s0 + $0x268] sm:$0xff]  }
 0x136   :  { %17128 = vst [vmem:[#allocation18_spill] sm:$0xff] %v12320_v20  ;;  %v1582_v63 = vpop.f32.mrf.mxu0 }
 0x137   :  { %v12328_v30 = vsel %vm2446_vm11, %v1570_v36, %v2702_v55  ;;  %v1583_v1 = vadd.f32 %v11994_v54, %v1582_v63  ;;  %v2707_v19 = vmul.f32 0.2, %v1591_v29  ;;  %vm2451_vm12 = vcmp.ge.f32.partialorder %v1591_v29, 0.0 }
 0x138   :  { %17130 = vst [vmem:[#allocation20_spill] sm:$0xff] %v12328_v30  ;;  %v10689_v40 = vpop.f32.mrf.mxu0 }
 0x139   :  { %v1594_v60 = vadd.f32 %v10689_v40, %v11994_v54  ;;  %v2705_v9 = vmul.f32 0.2, %v1583_v1  ;;  %v12341_v55 = vsel %vm2451_vm12, %v1591_v29, %v2707_v19  ;;  %vm2449_vm14 = vcmp.ge.f32.partialorder %v1583_v1, 0.0 }
 0x13a   :  { %v1585_v50 = vpop.f32.mrf.mxu0  ;;  %17131 = vst [vmem:[#allocation21_spill] sm:$0xff] %v12341_v55 }
 0x13b   :  { %vm2452_vm13 = vcmp.ge.f32.partialorder %v1594_v60, 0.0  ;;  %v2708_v63 = vmul.f32 0.2, %v1594_v60  ;;  %v1586_v36 = vadd.f32 %v11994_v54, %v1585_v50  ;;  %v12350_v30 = vsel %vm2449_vm14, %v1583_v1, %v2705_v9  ;;  %v11571_v1 = vld [vmem:[%s16852_s0 + $0x280] sm:$0xff]  }
 0x13c   :  { %v10692_v22 = vpop.f32.mrf.mxu0  ;;  %10787 = vmatmul.mubr.msk.bf16.gmra.mxu0 %vm955_vm0, %v11568_v35  ;;  %17133 = vst [vmem:[#allocation23_spill] sm:$0xff] %v12350_v30 }
 0x13d   :  { %v12344_v18 = vsel %vm2452_vm13, %v1594_v60, %v2708_v63  ;;  %vm2450_vm15 = vcmp.ge.f32.partialorder %v1586_v36, 0.0  ;;  %v2706_v40 = vmul.f32 0.2, %v1586_v36  ;;  %v1607_v25 = vadd.f32 %v10692_v22, %v11994_v54  ;;  %10790 = vmatprep.mubr.msk.bf16.mxu0 %vm955_vm0, %v11569_v57  ;;  %v11570_v22 = vld [vmem:[%s16852_s0 + $0x278] sm:$0xff]  }
 0x13e   :  { %17132 = vst [vmem:[#allocation22_spill] sm:$0xff] %v12344_v18  ;;  %v1598_v14 = vpop.f32.mrf.mxu0 }
 0x13f   :  { %v12352_v29 = vsel %vm2450_vm15, %v1586_v36, %v2706_v40  ;;  %v1599_v19 = vadd.f32 %v11994_v54, %v1598_v14  ;;  %v2711_v60 = vmul.f32 0.2, %v1607_v25  ;;  %vm2455_vm1 = vcmp.ge.f32.partialorder %v1607_v25, 0.0 }
 0x140   :  { %17134 = vst [vmem:[#allocation24_spill] sm:$0xff] %v12352_v29  ;;  %v10693_v50 = vpop.f32.mrf.mxu0 }
 0x141   :  { %v1610_v57 = vadd.f32 %v10693_v50, %v11994_v54  ;;  %v2709_v63 = vmul.f32 0.2, %v1599_v19  ;;  %v12365_v40 = vsel %vm2455_vm1, %v1607_v25, %v2711_v60  ;;  %vm2453_vm3 = vcmp.ge.f32.partialorder %v1599_v19, 0.0 }
 0x142   :  { %v1601_v9 = vpop.f32.mrf.mxu0  ;;  %17135 = vst [vmem:[#allocation25_spill] sm:$0xff] %v12365_v40 }
 0x143   :  { %vm2456_vm2 = vcmp.ge.f32.partialorder %v1610_v57, 0.0  ;;  %v2712_v14 = vmul.f32 0.2, %v1610_v57  ;;  %v1602_v36 = vadd.f32 %v11994_v54, %v1601_v9  ;;  %v12374_v29 = vsel %vm2453_vm3, %v1599_v19, %v2709_v63  ;;  %v11573_v19 = vld [vmem:[%s16852_s0 + $0x290] sm:$0xff]  }
 0x144   :  { %v10696_v20 = vpop.f32.mrf.mxu0  ;;  %10791 = vmatmul.mubr.msk.bf16.gmra.mxu0 %vm955_vm0, %v11570_v22  ;;  %17137 = vst [vmem:[#allocation27_spill] sm:$0xff] %v12374_v29 }
 0x145   :  { %v12368_v35 = vsel %vm2456_vm2, %v1610_v57, %v2712_v14  ;;  %vm2454_vm4 = vcmp.ge.f32.partialorder %v1602_v36, 0.0  ;;  %v2710_v50 = vmul.f32 0.2, %v1602_v36  ;;  %v1623_v55 = vadd.f32 %v10696_v20, %v11994_v54  ;;  %10794 = vmatprep.mubr.msk.bf16.mxu0 %vm955_vm0, %v11571_v1  ;;  %v11572_v20 = vld [vmem:[%s16852_s0 + $0x288] sm:$0xff]  }
 0x146   :  { %17136 = vst [vmem:[#allocation26_spill] sm:$0xff] %v12368_v35  ;;  %v1614_v30 = vpop.f32.mrf.mxu0 }
 0x147   :  { %v12376_v25 = vsel %vm2454_vm4, %v1602_v36, %v2710_v50  ;;  %v1615_v60 = vadd.f32 %v11994_v54, %v1614_v30  ;;  %v2715_v57 = vmul.f32 0.2, %v1623_v55  ;;  %vm2459_vm5 = vcmp.ge.f32.partialorder %v1623_v55, 0.0 }
 0x148   :  { %17138 = vst [vmem:[#allocation28_spill] sm:$0xff] %v12376_v25  ;;  %v10697_v9 = vpop.f32.mrf.mxu0 }
 0x149   :  { %v1626_v1 = vadd.f32 %v10697_v9, %v11994_v54  ;;  %v2713_v63 = vmul.f32 0.2, %v1615_v60  ;;  %vm2457_vm6 = vcmp.ge.f32.partialorder %v1615_v60, 0.0  ;;  %v12389_v50 = vsel %vm2459_vm5, %v1623_v55, %v2715_v57  ;;  %v12403_v55 = vld [vmem:[%s16855_s3 + $0x20] sm:$0xff]  }
 0x14a   :  { %v1617_v14 = vpop.f32.mrf.mxu0  ;;  %17139 = vst [vmem:[#allocation29_spill] sm:$0xff] %v12389_v50  ;;  %10956 = vmatprep.subr.bf16.mxu1 %v12403_v55 }
 0x14b   :  { %vm2460_vm7 = vcmp.ge.f32.partialorder %v1626_v1, 0.0  ;;  %v2716_v30 = vmul.f32 0.2, %v1626_v1  ;;  %v1618_v36 = vadd.f32 %v11994_v54, %v1617_v14  ;;  %v12396_v35 = vsel %vm2457_vm6, %v1615_v60, %v2713_v63 }
 0x14c   :  { %v10700_v18 = vpop.f32.mrf.mxu0  ;;  %10795 = vmatmul.mubr.msk.bf16.gmra.mxu0 %vm955_vm0, %v11572_v20  ;;  %17141 = vst [vmem:[#allocation31_spill] sm:$0xff] %v12396_v35 }
 0x14d   :  { %v12392_v22 = vsel %vm2460_vm7, %v1626_v1, %v2716_v30  ;;  %vm2458_vm9 = vcmp.ge.f32.partialorder %v1618_v36, 0.0  ;;  %v2714_v9 = vmul.f32 0.2, %v1618_v36  ;;  %v1639_v40 = vadd.f32 %v10700_v18, %v11994_v54  ;;  %10798 = vmatprep.mubr.msk.bf16.mxu0 %vm955_vm0, %v11573_v19  ;;  %v11574_v19 = vld [vmem:[%s16852_s0 + $0x298] sm:$0xff]  }
 0x14e   :  { %17140 = vst [vmem:[#allocation30_spill] sm:$0xff] %v12392_v22  ;;  %v1630_v25 = vpop.f32.mrf.mxu0 }
 0x14f   :  { %v12405_v57 = vsel %vm2458_vm9, %v1618_v36, %v2714_v9  ;;  %vm2463_vm10 = vcmp.ge.f32.partialorder %v1639_v40, 0.0  ;;  %v2719_v20 = vmul.f32 0.2, %v1639_v40  ;;  %v1631_v1 = vadd.f32 %v11994_v54, %v1630_v25  ;;  %v11575_v25 = vld [vmem:[%s16852_s0 + $0x2a0] sm:$0xff]  }
 0x150   :  { %17142 = vst [vmem:[#allocation32_spill] sm:$0xff] %v12405_v57  ;;  %v10701_v60 = vpop.f32.mrf.mxu0 }
 0x151   :  { %v12414_v63 = vsel %vm2463_vm10, %v1639_v40, %v2719_v20  ;;  %vm2461_vm11 = vcmp.ge.f32.partialorder %v1631_v1, 0.0  ;;  %v2717_v14 = vmul.f32 0.2, %v1631_v1  ;;  %v1642_v30 = vadd.f32 %v10701_v60, %v11994_v54 }
 0x152   :  { %17143 = vst [vmem:[#allocation33_spill] sm:$0xff] %v12414_v63  ;;  %4109 = vst.msk [vmem:[#allocation2 + $0x58] sm:$0xff] %vm4062_vm8, %v12414_v63  ;;  %v1633_v36 = vpop.f32.mrf.mxu0 }
 0x153   :  { %v12422_v9 = vsel %vm2461_vm11, %v1631_v1, %v2717_v14  ;;  %vm2464_vm12 = vcmp.ge.f32.partialorder %v1642_v30, 0.0  ;;  %v2720_v29 = vmul.f32 0.2, %v1642_v30  ;;  %v1634_v18 = vadd.f32 %v11994_v54, %v1633_v36 }
 0x154   :  { %17144 = vst [vmem:[#allocation34_spill] sm:$0xff] %v12422_v9  ;;  %4107 = vst.msk [vmem:[#allocation2 + $0x48] sm:$0xff] %vm4062_vm8, %v12422_v9  ;;  %v10704_v40 = vpop.f32.mrf.mxu0  ;;  %10799 = vmatmul.mubr.msk.bf16.gmra.mxu0 %vm955_vm0, %v11574_v19 }
 0x155   :  { %v12428_v20 = vsel %vm2464_vm12, %v1642_v30, %v2720_v29  ;;  %vm2462_vm13 = vcmp.ge.f32.partialorder %v1634_v18, 0.0  ;;  %v2718_v60 = vmul.f32 0.2, %v1634_v18  ;;  %v1655_v50 = vadd.f32 %v10704_v40, %v11994_v54  ;;  %10802 = vmatprep.mubr.msk.bf16.mxu0 %vm955_vm0, %v11575_v25  ;;  %v11576_v25 = vld [vmem:[%s16852_s0 + $0x2a8] sm:$0xff]  }
 0x156   :  { %17145 = vst [vmem:[#allocation35_spill] sm:$0xff] %v12428_v20  ;;  %4110 = vst.msk [vmem:[#allocation2 + $0x60] sm:$0xff] %vm4062_vm8, %v12428_v20  ;;  %v1646_v14 = vpop.f32.mrf.mxu0 }
 0x157   :  { %v12436_v36 = vsel %vm2462_vm13, %v1634_v18, %v2718_v60  ;;  %vm2467_vm14 = vcmp.ge.f32.partialorder %v1655_v50, 0.0  ;;  %v2723_v22 = vmul.f32 0.2, %v1655_v50  ;;  %v1647_v29 = vadd.f32 %v11994_v54, %v1646_v14  ;;  %v11577_v14 = vld [vmem:[%s16852_s0 + $0x2b0] sm:$0xff]  }
 0x158   :  { %17146 = vst [vmem:[#allocation36_spill] sm:$0xff] %v12436_v36  ;;  %4108 = vst.msk [vmem:[#allocation2 + $0x50] sm:$0xff] %vm4062_vm8, %v12436_v36  ;;  %v10705_v30 = vpop.f32.mrf.mxu0 }
 0x159   :  { %v12446_v40 = vsel %vm2467_vm14, %v1655_v50, %v2723_v22  ;;  %vm2465_vm15 = vcmp.ge.f32.partialorder %v1647_v29, 0.0  ;;  %v2721_v18 = vmul.f32 0.2, %v1647_v29  ;;  %v1658_v60 = vadd.f32 %v10705_v30, %v11994_v54 }
 0x15a   :  { %17147 = vst [vmem:[#allocation37_spill] sm:$0xff] %v12446_v40  ;;  %4113 = vst.msk [vmem:[#allocation2 + $0x78] sm:$0xff] %vm4062_vm8, %v12446_v40  ;;  %v1649_v1 = vpop.f32.mrf.mxu0 }
 0x15b   :  { %v12454_v19 = vsel %vm2465_vm15, %v1647_v29, %v2721_v18  ;;  %vm2468_vm1 = vcmp.ge.f32.partialorder %v1658_v60, 0.0  ;;  %v2724_v63 = vmul.f32 0.2, %v1658_v60  ;;  %v1650_v20 = vadd.f32 %v11994_v54, %v1649_v1 }
 0x15c   :  { %17148 = vst [vmem:[#allocation38_spill] sm:$0xff] %v12454_v19  ;;  %4111 = vst.msk [vmem:[#allocation2 + $0x68] sm:$0xff] %vm4062_vm8, %v12454_v19  ;;  %v10708_v22 = vpop.f32.mrf.mxu0  ;;  %10803 = vmatmul.mubr.msk.bf16.gmra.mxu0 %vm955_vm0, %v11576_v25 }
 0x15d   :  { %v12460_v50 = vsel %vm2468_vm1, %v1658_v60, %v2724_v63  ;;  %vm2466_vm2 = vcmp.ge.f32.partialorder %v1650_v20, 0.0  ;;  %v2722_v30 = vmul.f32 0.2, %v1650_v20  ;;  %v1671_v9 = vadd.f32 %v10708_v22, %v11994_v54  ;;  %10806 = vmatprep.mubr.msk.bf16.mxu0 %vm955_vm0, %v11577_v14  ;;  %v11578_v14 = vld [vmem:[%s16852_s0 + $0x2b8] sm:$0xff]  }
 0x15e   :  { %17149 = vst [vmem:[#allocation39_spill] sm:$0xff] %v12460_v50  ;;  %4114 = vst.msk [vmem:[#allocation2 + $0x80] sm:$0xff] %vm4062_vm8, %v12460_v50  ;;  %v1662_v29 = vpop.f32.mrf.mxu0 }
 0x15f   :  { %v12468_v18 = vsel %vm2466_vm2, %v1650_v20, %v2722_v30  ;;  %vm2471_vm3 = vcmp.ge.f32.partialorder %v1671_v9, 0.0  ;;  %v2727_v36 = vmul.f32 0.2, %v1671_v9  ;;  %v1663_v63 = vadd.f32 %v11994_v54, %v1662_v29  ;;  %v11579_v29 = vld [vmem:[%s16852_s0 + $0x2c0] sm:$0xff]  }
 0x160   :  { %17150 = vst [vmem:[#allocation40_spill] sm:$0xff] %v12468_v18  ;;  %4112 = vst.msk [vmem:[#allocation2 + $0x70] sm:$0xff] %vm4062_vm8, %v12468_v18  ;;  %v10709_v60 = vpop.f32.mrf.mxu0 }
 0x161   :  { %v12478_v22 = vsel %vm2471_vm3, %v1671_v9, %v2727_v36  ;;  %vm2469_vm4 = vcmp.ge.f32.partialorder %v1663_v63, 0.0  ;;  %v2725_v20 = vmul.f32 0.2, %v1663_v63  ;;  %v1674_v30 = vadd.f32 %v10709_v60, %v11994_v54  ;;  %v12491_v9 = vld [vmem:[%s16854_s2] ss:$0 sm:$0xff] }
 0x162   :  { %17151 = vst [vmem:[#allocation41_spill] sm:$0xff] %v12478_v22  ;;  %4117 = vst.msk [vmem:[#allocation2 + $0x98] sm:$0xff] %vm4062_vm8, %v12478_v22  ;;  %v1665_v1 = vpop.f32.mrf.mxu0 }
 0x163   :  { %v12486_v25 = vsel %vm2469_vm4, %v1663_v63, %v2725_v20  ;;  %vm2472_vm5 = vcmp.ge.f32.partialorder %v1674_v30, 0.0  ;;  %v2728_v40 = vmul.f32 0.2, %v1674_v30  ;;  %v1666_v36 = vadd.f32 %v12491_v9, %v1665_v1 }
 0x164   :  { %17152 = vst [vmem:[#allocation42_spill] sm:$0xff] %v12486_v25  ;;  %4115 = vst.msk [vmem:[#allocation2 + $0x88] sm:$0xff] %vm4062_vm8, %v12486_v25  ;;  %v10712_v54 = vpop.f32.mrf.mxu0  ;;  %10807 = vmatmul.mubr.msk.bf16.gmra.mxu0 %vm955_vm0, %v11578_v14 }
 0x165   :  { %v12497_v60 = vsel %vm2472_vm5, %v1674_v30, %v2728_v40  ;;  %vm2470_vm6 = vcmp.ge.f32.partialorder %v1666_v36, 0.0  ;;  %v2726_v63 = vmul.f32 0.2, %v1666_v36  ;;  %v1687_v20 = vadd.f32 %v12491_v9, %v10712_v54  ;;  %10810 = vmatprep.mubr.msk.bf16.mxu0 %vm955_vm0, %v11579_v29  ;;  %v11580_v29 = vld [vmem:[%s16852_s0 + $0x2c8] sm:$0xff]  }
 0x166   :  { %17153 = vst [vmem:[#allocation43_spill] sm:$0xff] %v12497_v60  ;;  %4118 = vst.msk [vmem:[#allocation2 + $0xa0] sm:$0xff] %vm4062_vm8, %v12497_v60  ;;  %v1678_v50 = vpop.f32.mrf.mxu0 }
 0x167   :  { %v12505_v19 = vsel %vm2470_vm6, %v1666_v36, %v2726_v63  ;;  %vm2475_vm7 = vcmp.ge.f32.partialorder %v1687_v20, 0.0  ;;  %v2731_v18 = vmul.f32 0.2, %v1687_v20  ;;  %v1679_v40 = vadd.f32 %v12491_v9, %v1678_v50  ;;  %v11581_v50 = vld [vmem:[%s16852_s0 + $0x2d0] sm:$0xff]  }
 0x168   :  { %17154 = vst [vmem:[#allocation44_spill] sm:$0xff] %v12505_v19  ;;  %4116 = vst.msk [vmem:[#allocation2 + $0x90] sm:$0xff] %vm4062_vm8, %v12505_v19  ;;  %v10713_v30 = vpop.f32.mrf.mxu0 }
 0x169   :  { %v12515_v54 = vsel %vm2475_vm7, %v1687_v20, %v2731_v18  ;;  %vm2473_vm9 = vcmp.ge.f32.partialorder %v1679_v40, 0.0  ;;  %v2729_v36 = vmul.f32 0.2, %v1679_v40  ;;  %v1690_v63 = vadd.f32 %v12491_v9, %v10713_v30 }
 0x16a   :  { %17155 = vst [vmem:[#allocation45_spill] sm:$0xff] %v12515_v54  ;;  %4121 = vst.msk [vmem:[#allocation2 + $0xb8] sm:$0xff] %vm4062_vm8, %v12515_v54  ;;  %v1681_v1 = vpop.f32.mrf.mxu0 }
 0x16b   :  { %v12523_v14 = vsel %vm2473_vm9, %v1679_v40, %v2729_v36  ;;  %vm2476_vm10 = vcmp.ge.f32.partialorder %v1690_v63, 0.0  ;;  %v2732_v22 = vmul.f32 0.2, %v1690_v63  ;;  %v1682_v60 = vadd.f32 %v12491_v9, %v1681_v1 }
 0x16c   :  { %17156 = vst [vmem:[#allocation46_spill] sm:$0xff] %v12523_v14  ;;  %4119 = vst.msk [vmem:[#allocation2 + $0xa8] sm:$0xff] %vm4062_vm8, %v12523_v14  ;;  %v10716_v18 = vpop.f32.mrf.mxu0  ;;  %10811 = vmatmul.mubr.msk.bf16.gmra.mxu0 %vm955_vm0, %v11580_v29 }
 0x16d   :  { %v12529_v20 = vsel %vm2476_vm10, %v1690_v63, %v2732_v22  ;;  %vm2474_vm11 = vcmp.ge.f32.partialorder %v1682_v60, 0.0  ;;  %v2730_v30 = vmul.f32 0.2, %v1682_v60  ;;  %v1703_v25 = vadd.f32 %v12491_v9, %v10716_v18  ;;  %10814 = vmatprep.mubr.msk.bf16.mxu0 %vm955_vm0, %v11581_v50  ;;  %v11582_v50 = vld [vmem:[%s16852_s0 + $0x2d8] sm:$0xff]  }
 0x16e   :  { %17157 = vst [vmem:[#allocation47_spill] sm:$0xff] %v12529_v20  ;;  %4122 = vst.msk [vmem:[#allocation2 + $0xc0] sm:$0xff] %vm4062_vm8, %v12529_v20  ;;  %v1694_v40 = vpop.f32.mrf.mxu0 }
 0x16f   :  { %v12537_v36 = vsel %vm2474_vm11, %v1682_v60, %v2730_v30  ;;  %vm2479_vm12 = vcmp.ge.f32.partialorder %v1703_v25, 0.0  ;;  %v2735_v19 = vmul.f32 0.2, %v1703_v25  ;;  %v1695_v22 = vadd.f32 %v12491_v9, %v1694_v40  ;;  %v11583_v40 = vld [vmem:[%s16852_s0 + $0x2e0] sm:$0xff]  }
 0x170   :  { %17158 = vst [vmem:[#allocation48_spill] sm:$0xff] %v12537_v36  ;;  %4120 = vst.msk [vmem:[#allocation2 + $0xb0] sm:$0xff] %vm4062_vm8, %v12537_v36  ;;  %v10717_v63 = vpop.f32.mrf.mxu0 }
 0x171   :  { %v12547_v18 = vsel %vm2479_vm12, %v1703_v25, %v2735_v19  ;;  %vm2477_vm13 = vcmp.ge.f32.partialorder %v1695_v22, 0.0  ;;  %v2733_v60 = vmul.f32 0.2, %v1695_v22  ;;  %v1706_v30 = vadd.f32 %v12491_v9, %v10717_v63 }
 0x172   :  { %17159 = vst [vmem:[#allocation49_spill] sm:$0xff] %v12547_v18  ;;  %4125 = vst.msk [vmem:[#allocation2 + $0xd8] sm:$0xff] %vm4062_vm8, %v12547_v18  ;;  %v1697_v1 = vpop.f32.mrf.mxu0 }
 0x173   :  { %v12555_v29 = vsel %vm2477_vm13, %v1695_v22, %v2733_v60  ;;  %vm2480_vm14 = vcmp.ge.f32.partialorder %v1706_v30, 0.0  ;;  %v2736_v54 = vmul.f32 0.2, %v1706_v30  ;;  %v1698_v20 = vadd.f32 %v12491_v9, %v1697_v1 }
 0x174   :  { %17160 = vst [vmem:[#allocation50_spill] sm:$0xff] %v12555_v29  ;;  %4123 = vst.msk [vmem:[#allocation2 + $0xc8] sm:$0xff] %vm4062_vm8, %v12555_v29  ;;  %v10720_v19 = vpop.f32.mrf.mxu0  ;;  %10815 = vmatmul.mubr.msk.bf16.gmra.mxu0 %vm955_vm0, %v11582_v50 }
 0x175   :  { %v12561_v25 = vsel %vm2480_vm14, %v1706_v30, %v2736_v54  ;;  %vm2478_vm15 = vcmp.ge.f32.partialorder %v1698_v20, 0.0  ;;  %v2734_v63 = vmul.f32 0.2, %v1698_v20  ;;  %v1719_v14 = vadd.f32 %v12491_v9, %v10720_v19  ;;  %10818 = vmatprep.mubr.msk.bf16.mxu0 %vm955_vm0, %v11583_v40  ;;  %v11584_v40 = vld [vmem:[%s16852_s0 + $0x2e8] sm:$0xff]  }
 0x176   :  { %17161 = vst [vmem:[#allocation51_spill] sm:$0xff] %v12561_v25  ;;  %4126 = vst.msk [vmem:[#allocation2 + $0xe0] sm:$0xff] %vm4062_vm8, %v12561_v25  ;;  %v1710_v22 = vpop.f32.mrf.mxu0 }
 0x177   :  { %v12569_v60 = vsel %vm2478_vm15, %v1698_v20, %v2734_v63  ;;  %vm2483_vm1 = vcmp.ge.f32.partialorder %v1719_v14, 0.0  ;;  %v2739_v36 = vmul.f32 0.2, %v1719_v14  ;;  %v1711_v54 = vadd.f32 %v12491_v9, %v1710_v22  ;;  %v11585_v22 = vld [vmem:[%s16852_s0 + $0x2f0] sm:$0xff]  }
 0x178   :  { %17162 = vst [vmem:[#allocation52_spill] sm:$0xff] %v12569_v60  ;;  %4124 = vst.msk [vmem:[#allocation2 + $0xd0] sm:$0xff] %vm4062_vm8, %v12569_v60  ;;  %v10721_v30 = vpop.f32.mrf.mxu0 }
 0x179   :  { %v12579_v19 = vsel %vm2483_vm1, %v1719_v14, %v2739_v36  ;;  %vm2481_vm2 = vcmp.ge.f32.partialorder %v1711_v54, 0.0  ;;  %v2737_v20 = vmul.f32 0.2, %v1711_v54  ;;  %v1722_v63 = vadd.f32 %v12491_v9, %v10721_v30 }
 0x17a   :  { %17163 = vst [vmem:[#allocation53_spill] sm:$0xff] %v12579_v19  ;;  %4129 = vst.msk [vmem:[#allocation2 + $0xf8] sm:$0xff] %vm4062_vm8, %v12579_v19  ;;  %v1713_v1 = vpop.f32.mrf.mxu0 }
 0x17b   :  { %v12587_v50 = vsel %vm2481_vm2, %v1711_v54, %v2737_v20  ;;  %vm2484_vm3 = vcmp.ge.f32.partialorder %v1722_v63, 0.0  ;;  %v2740_v18 = vmul.f32 0.2, %v1722_v63  ;;  %v1714_v25 = vadd.f32 %v12491_v9, %v1713_v1 }
 0x17c   :  { %17164 = vst [vmem:[#allocation54_spill] sm:$0xff] %v12587_v50  ;;  %4127 = vst.msk [vmem:[#allocation2 + $0xe8] sm:$0xff] %vm4062_vm8, %v12587_v50  ;;  %v10724_v14 = vpop.f32.mrf.mxu0  ;;  %10819 = vmatmul.mubr.msk.bf16.gmra.mxu0 %vm955_vm0, %v11584_v40 }
 0x17d   :  { %v12593_v36 = vsel %vm2484_vm3, %v1722_v63, %v2740_v18  ;;  %vm2482_vm4 = vcmp.ge.f32.partialorder %v1714_v25, 0.0  ;;  %v2738_v30 = vmul.f32 0.2, %v1714_v25  ;;  %v1735_v29 = vadd.f32 %v12491_v9, %v10724_v14  ;;  %10822 = vmatprep.mubr.msk.bf16.mxu0 %vm955_vm0, %v11585_v22  ;;  %v11586_v22 = vld [vmem:[%s16852_s0 + $0x2f8] sm:$0xff]  }
 0x17e   :  { %17165 = vst [vmem:[#allocation55_spill] sm:$0xff] %v12593_v36  ;;  %4130 = vst.msk [vmem:[#allocation2 + $0x100] sm:$0xff] %vm4062_vm8, %v12593_v36  ;;  %v1726_v54 = vpop.f32.mrf.mxu0 }
 0x17f   :  { %v12601_v20 = vsel %vm2482_vm4, %v1714_v25, %v2738_v30  ;;  %vm2487_vm5 = vcmp.ge.f32.partialorder %v1735_v29, 0.0  ;;  %v2743_v60 = vmul.f32 0.2, %v1735_v29  ;;  %v1727_v18 = vadd.f32 %v12491_v9, %v1726_v54  ;;  %v11588_v54 = vld [vmem:[%s16852_s0 + $0x300] sm:$0xff]  }
 0x180   :  { %17166 = vst [vmem:[#allocation56_spill] sm:$0xff] %v12601_v20  ;;  %4128 = vst.msk [vmem:[#allocation2 + $0xf0] sm:$0xff] %vm4062_vm8, %v12601_v20  ;;  %v10725_v63 = vpop.f32.mrf.mxu0 }
 0x181   :  { %v12611_v14 = vsel %vm2487_vm5, %v1735_v29, %v2743_v60  ;;  %vm2485_vm6 = vcmp.ge.f32.partialorder %v1727_v18, 0.0  ;;  %v2741_v25 = vmul.f32 0.2, %v1727_v18  ;;  %v1738_v30 = vadd.f32 %v12491_v9, %v10725_v63  ;;  %v4191_v29 = vld [vmem:[#allocation2 + $0xe0] sm:$0xff] }
 0x182   :  { %17167 = vst [vmem:[#allocation57_spill] sm:$0xff] %v12611_v14  ;;  %4133 = vst.msk [vmem:[#allocation2 + $0x118] sm:$0xff] %vm4062_vm8, %v12611_v14  ;;  %v1729_v1 = vpop.f32.mrf.mxu0  ;;  %v17173_v14 = vmov 0.0  }
 0x183   :  { %v12619_v40 = vsel %vm2485_vm6, %v1727_v18, %v2741_v25  ;;  %vm2488_vm7 = vcmp.ge.f32.partialorder %v1738_v30, 0.0  ;;  %v2744_v19 = vmul.f32 0.2, %v1738_v30  ;;  %v1730_v36 = vadd.f32 %v12491_v9, %v1729_v1  ;;  %v4192_v60 = vld [vmem:[#allocation2 + $0xe8] sm:$0xff]  ;;  %v11590_v1 = vld [vmem:[%s16852_s0 + $0x310] sm:$0xff]  }
 0x184   :  { %17168 = vst [vmem:[#allocation58_spill] sm:$0xff] %v12619_v40  ;;  %4131 = vst.msk [vmem:[#allocation2 + $0x108] sm:$0xff] %vm4062_vm8, %v12619_v40  ;;  %v10728_v63 = vpop.f32.mrf.mxu0  ;;  %10823 = vmatmul.mubr.msk.bf16.gmra.mxu0 %vm955_vm0, %v11586_v22  ;;  %v4309_v50 = vpack.c.bf16 %v4192_v60, %v4191_v29  ;;  %v4194_v29 = vld [vmem:[#allocation2 + $0xf8] sm:$0xff] }
 0x185   :  { %v12625_v20 = vsel %vm2488_vm7, %v1738_v30, %v2744_v19  ;;  %vm2486_vm9 = vcmp.ge.f32.partialorder %v1730_v36, 0.0  ;;  %v2742_v35 = vmul.f32 0.2, %v1730_v36  ;;  %v1751_v18 = vadd.f32 %v12491_v9, %v10728_v63  ;;  %10826 = vmatprep.mubr.msk.bf16.mxu0 %vm955_vm0, %v11588_v54 }
 0x186   :  { %17169 = vst [vmem:[#allocation59_spill] sm:$0xff] %v12625_v20  ;;  %4134 = vst.msk [vmem:[#allocation2 + $0x120] sm:$0xff] %vm4062_vm8, %v12625_v20  ;;  %v1742_v25 = vpop.f32.mrf.mxu0  ;;  %10912 = vmatprep.mubr.msk.bf16.mxu1 %vm4062_vm8, %v4309_v50  ;;  %v11589_v50 = vld [vmem:[%s16852_s0 + $0x308] sm:$0xff]  }
 0x187   :  { %v12634_v57 = vsel %vm2486_vm9, %v1730_v36, %v2742_v35  ;;  %vm2491_vm10 = vcmp.ge.f32.partialorder %v1751_v18, 0.0  ;;  %v2747_v19 = vmul.f32 0.2, %v1751_v18  ;;  %v1743_v22 = vadd.f32 %v12491_v9, %v1742_v25  ;;  %v4193_v30 = vld [vmem:[#allocation2 + $0xf0] sm:$0xff] }
 0x188   :  { %17170 = vst [vmem:[#allocation60_spill] sm:$0xff] %v12634_v57  ;;  %4132 = vst.msk [vmem:[#allocation2 + $0x110] sm:$0xff] %vm4062_vm8, %v12634_v57  ;;  %v10729_v60 = vpop.f32.mrf.mxu0  ;;  %v4310_v63 = vpack.c.bf16 %v4194_v29, %v4193_v30 }
 0x189   :  { %v12644_v35 = vsel %vm2491_vm10, %v1751_v18, %v2747_v19  ;;  %vm2489_vm11 = vcmp.ge.f32.partialorder %v1743_v22, 0.0  ;;  %v2745_v36 = vmul.f32 0.2, %v1743_v22  ;;  %v1754_v25 = vadd.f32 %v12491_v9, %v10729_v60 }
 0x18a   :  { %17171 = vst [vmem:[#allocation61_spill] sm:$0xff] %v12644_v35  ;;  %4137 = vst.msk [vmem:[#allocation2 + $0x138] sm:$0xff] %vm4062_vm8, %v12644_v35  ;;  %v1745_v54 = vpop.f32.mrf.mxu0  ;;  %10913 = vmatmul.mubr.msk.bf16.vlgmr.msra.gmra.mxu1 %vm4062_vm8, %v4310_v63 }
 0x18b   :  { %v12653_v30 = vsel %vm2489_vm11, %v1743_v22, %v2745_v36  ;;  %vm2492_vm12 = vcmp.ge.f32.partialorder %v1754_v25, 0.0  ;;  %v2748_v29 = vmul.f32 0.2, %v1754_v25  ;;  %v1746_v18 = vadd.f32 %v12491_v9, %v1745_v54  ;;  %v4196_v19 = vld [vmem:[#allocation2 + $0x108] sm:$0xff]  ;;  %10957 = vmatpush3.bf16.msra.mxu1 %v12403_v55  ;;  %v11592_v55 = vld [vmem:[%s16852_s0 + $0x320] sm:$0xff]  }
 0x18c   :  { %17172 = vst [vmem:[#allocation62_spill] sm:$0xff] %v12653_v30  ;;  %4135 = vst.msk [vmem:[#allocation2 + $0x128] sm:$0xff] %vm4062_vm8, %v12653_v30  ;;  %v10732_v60 = vpop.f32.mrf.mxu0  ;;  %10827 = vmatmul.mubr.msk.bf16.gmra.mxu0 %vm955_vm0, %v11589_v50  ;;  %v4311_v20 = vpack.c.bf16 %v4196_v19, %v17173_v14  ;;  %v4198_v19 = vld [vmem:[#allocation2 + $0x118] sm:$0xff] }
 0x18d   :  { %v12661_v40 = vsel %vm2492_vm12, %v1754_v25, %v2748_v29  ;;  %vm2490_vm13 = vcmp.ge.f32.partialorder %v1746_v18, 0.0  ;;  %v2746_v22 = vmul.f32 0.2, %v1746_v18  ;;  %v1767_v63 = vadd.f32 %v12491_v9, %v10732_v60  ;;  %10830 = vmatprep.mubr.msk.bf16.mxu0 %vm955_vm0, %v11590_v1 }
 0x18e   :  { %17174 = vst [vmem:[#allocation63_spill] sm:$0xff] %v12661_v40  ;;  %4138 = vst.msk [vmem:[#allocation2 + $0x140] sm:$0xff] %vm4062_vm8, %v12661_v40  ;;  %v1758_v54 = vpop.f32.mrf.mxu0  ;;  %10916 = vmatprep.mubr.msk.bf16.mxu1 %vm4062_vm8, %v4311_v20  ;;  %v11591_v20 = vld [vmem:[%s16852_s0 + $0x318] sm:$0xff]  }
 0x18f   :  { %v12670_v50 = vsel %vm2490_vm13, %v1746_v18, %v2746_v22  ;;  %vm2495_vm14 = vcmp.ge.f32.partialorder %v1767_v63, 0.0  ;;  %v2751_v36 = vmul.f32 0.2, %v1767_v63  ;;  %v1759_v25 = vadd.f32 %v12491_v9, %v1758_v54  ;;  %v4197_v29 = vld [vmem:[#allocation2 + $0x110] sm:$0xff] }
 0x190   :  { %17175 = vst [vmem:[#allocation64_spill] sm:$0xff] %v12670_v50  ;;  %4136 = vst.msk [vmem:[#allocation2 + $0x130] sm:$0xff] %vm4062_vm8, %v12670_v50  ;;  %v10733_v60 = vpop.f32.mrf.mxu0  ;;  %v4312_v57 = vpack.c.bf16 %v4198_v19, %v4197_v29 }
 0x191   :  { %v12680_v18 = vsel %vm2495_vm14, %v1767_v63, %v2751_v36  ;;  %vm2493_vm15 = vcmp.ge.f32.partialorder %v1759_v25, 0.0  ;;  %v2749_v22 = vmul.f32 0.2, %v1759_v25  ;;  %v1770_v54 = vadd.f32 %v12491_v9, %v10733_v60  ;;  %v4199_v36 = vld [vmem:[#allocation2 + $0x120] sm:$0xff] }
 0x192   :  { %17176 = vst [vmem:[#allocation65_spill] sm:$0xff] %v12680_v18  ;;  %4141 = vst.msk [vmem:[#allocation2 + $0x158] sm:$0xff] %vm4062_vm8, %v12680_v18  ;;  %v1761_v1 = vpop.f32.mrf.mxu0  ;;  %10917 = vmatmul.mubr.msk.bf16.gmra.mxu1 %vm4062_vm8, %v4312_v57 }
 0x193   :  { %v12689_v29 = vsel %vm2493_vm15, %v1759_v25, %v2749_v22  ;;  %vm2496_vm1 = vcmp.ge.f32.partialorder %v1770_v54, 0.0  ;;  %v2752_v19 = vmul.f32 0.2, %v1770_v54  ;;  %v1762_v63 = vadd.f32 %v12491_v9, %v1761_v1  ;;  %v4200_v35 = vld [vmem:[#allocation2 + $0x128] sm:$0xff]  ;;  %v11594_v25 = vld [vmem:[%s16852_s0 + $0x330] sm:$0xff]  }
 0x194   :  { %17177 = vst [vmem:[#allocation66_spill] sm:$0xff] %v12689_v29  ;;  %4139 = vst.msk [vmem:[#allocation2 + $0x148] sm:$0xff] %vm4062_vm8, %v12689_v29  ;;  %v10736_v60 = vpop.f32.mrf.mxu0  ;;  %10831 = vmatmul.mubr.msk.bf16.gmra.mxu0 %vm955_vm0, %v11591_v20  ;;  %v4313_v40 = vpack.c.bf16 %v4200_v35, %v4199_v36 }
 0x195   :  { %v12695_v30 = vsel %vm2496_vm1, %v1770_v54, %v2752_v19  ;;  %vm2494_vm2 = vcmp.ge.f32.partialorder %v1762_v63, 0.0  ;;  %v2750_v50 = vmul.f32 0.2, %v1762_v63  ;;  %v1783_v57 = vadd.f32 %v12491_v9, %v10736_v60  ;;  %10834 = vmatprep.mubr.msk.bf16.mxu0 %vm955_vm0, %v11592_v55  ;;  %v4202_v19 = vld [vmem:[#allocation2 + $0x138] sm:$0xff] }
 0x196   :  { %17178 = vst [vmem:[#allocation67_spill] sm:$0xff] %v12695_v30  ;;  %4142 = vst.msk [vmem:[#allocation2 + $0x160] sm:$0xff] %vm4062_vm8, %v12695_v30  ;;  %v1774_v1 = vpop.f32.mrf.mxu0  ;;  %10920 = vmatprep.mubr.msk.bf16.mxu1 %vm4062_vm8, %v4313_v40  ;;  %v11593_v40 = vld [vmem:[%s16852_s0 + $0x328] sm:$0xff]  }
 0x197   :  { %v12704_v22 = vsel %vm2494_vm2, %v1762_v63, %v2750_v50  ;;  %vm2499_vm3 = vcmp.ge.f32.partialorder %v1783_v57, 0.0  ;;  %v2755_v35 = vmul.f32 0.2, %v1783_v57  ;;  %v1775_v20 = vadd.f32 %v12491_v9, %v1774_v1  ;;  %v4201_v54 = vld [vmem:[#allocation2 + $0x130] sm:$0xff] }
 0x198   :  { %17179 = vst [vmem:[#allocation68_spill] sm:$0xff] %v12704_v22  ;;  %4140 = vst.msk [vmem:[#allocation2 + $0x150] sm:$0xff] %vm4062_vm8, %v12704_v22  ;;  %v10737_v36 = vpop.f32.mrf.mxu0  ;;  %v4314_v60 = vpack.c.bf16 %v4202_v19, %v4201_v54 }
 0x199   :  { %v12714_v50 = vsel %vm2499_vm3, %v1783_v57, %v2755_v35  ;;  %vm2497_vm4 = vcmp.ge.f32.partialorder %v1775_v20, 0.0  ;;  %v2753_v63 = vmul.f32 0.2, %v1775_v20  ;;  %v1786_v1 = vadd.f32 %v12491_v9, %v10737_v36 }
 0x19a   :  { %17180 = vst [vmem:[#allocation69_spill] sm:$0xff] %v12714_v50  ;;  %4145 = vst.msk [vmem:[#allocation2 + $0x178] sm:$0xff] %vm4062_vm8, %v12714_v50  ;;  %v1777_v55 = vpop.f32.mrf.mxu0  ;;  %10921 = vmatmul.mubr.msk.bf16.gmra.mxu1 %vm4062_vm8, %v4314_v60 }
 0x19b   :  { %v12723_v54 = vsel %vm2497_vm4, %v1775_v20, %v2753_v63  ;;  %vm2500_vm5 = vcmp.ge.f32.partialorder %v1786_v1, 0.0  ;;  %v2756_v19 = vmul.f32 0.2, %v1786_v1  ;;  %v1778_v57 = vadd.f32 %v12491_v9, %v1777_v55  ;;  %v4204_v35 = vld [vmem:[#allocation2 + $0x148] sm:$0xff]  ;;  %v11596_v55 = vld [vmem:[%s16852_s0 + $0x340] sm:$0xff]  }
 0x19c   :  { %17181 = vst [vmem:[#allocation70_spill] sm:$0xff] %v12723_v54  ;;  %4143 = vst.msk [vmem:[#allocation2 + $0x168] sm:$0xff] %vm4062_vm8, %v12723_v54  ;;  %v10740_v36 = vpop.f32.mrf.mxu0  ;;  %10835 = vmatmul.mubr.msk.bf16.gmra.mxu0 %vm955_vm0, %v11593_v40  ;;  %v4315_v18 = vpack.c.bf16 %v4204_v35, %v17173_v14  ;;  %v4206_v35 = vld [vmem:[#allocation2 + $0x158] sm:$0xff] }
 0x19d   :  { %v12730_v30 = vsel %vm2500_vm5, %v1786_v1, %v2756_v19  ;;  %vm2498_vm6 = vcmp.ge.f32.partialorder %v1778_v57, 0.0  ;;  %v2754_v29 = vmul.f32 0.2, %v1778_v57  ;;  %v1799_v20 = vadd.f32 %v12491_v9, %v10740_v36  ;;  %10838 = vmatprep.mubr.msk.bf16.mxu0 %vm955_vm0, %v11594_v25 }
 0x19e   :  { %17182 = vst [vmem:[#allocation71_spill] sm:$0xff] %v12730_v30  ;;  %4146 = vst.msk [vmem:[#allocation2 + $0x180] sm:$0xff] %vm4062_vm8, %v12730_v30  ;;  %v1790_v60 = vpop.f32.mrf.mxu0  ;;  %10924 = vmatprep.mubr.msk.bf16.mxu1 %vm4062_vm8, %v4315_v18  ;;  %v11595_v18 = vld [vmem:[%s16852_s0 + $0x338] sm:$0xff]  }
 0x19f   :  { %v12739_v40 = vsel %vm2498_vm6, %v1778_v57, %v2754_v29  ;;  %vm2503_vm7 = vcmp.ge.f32.partialorder %v1799_v20, 0.0  ;;  %v2759_v63 = vmul.f32 0.2, %v1799_v20  ;;  %v1791_v1 = vadd.f32 %v12491_v9, %v1790_v60  ;;  %v4205_v19 = vld [vmem:[#allocation2 + $0x150] sm:$0xff] }
 0x1a0   :  { %17183 = vst [vmem:[#allocation72_spill] sm:$0xff] %v12739_v40  ;;  %4144 = vst.msk [vmem:[#allocation2 + $0x170] sm:$0xff] %vm4062_vm8, %v12739_v40  ;;  %v10741_v36 = vpop.f32.mrf.mxu0  ;;  %v4316_v22 = vpack.c.bf16 %v4206_v35, %v4205_v19 }
 0x1a1   :  { %v12749_v29 = vsel %vm2503_vm7, %v1799_v20, %v2759_v63  ;;  %vm2501_vm9 = vcmp.ge.f32.partialorder %v1791_v1, 0.0  ;;  %v2757_v57 = vmul.f32 0.2, %v1791_v1  ;;  %v1802_v60 = vadd.f32 %v12491_v9, %v10741_v36  ;;  %v4207_v63 = vld [vmem:[#allocation2 + $0x160] sm:$0xff] }
 0x1a2   :  { %17184 = vst [vmem:[#allocation73_spill] sm:$0xff] %v12749_v29  ;;  %4149 = vst.msk [vmem:[#allocation2 + $0x198] sm:$0xff] %vm4062_vm8, %v12749_v29  ;;  %v1793_v25 = vpop.f32.mrf.mxu0  ;;  %10925 = vmatmul.mubr.msk.bf16.gmra.mxu1 %vm4062_vm8, %v4316_v22  ;;  %v11598_v29 = vld [vmem:[%s16852_s0 + $0x350] sm:$0xff]  }
 0x1a3   :  { %v12758_v19 = vsel %vm2501_vm9, %v1791_v1, %v2757_v57  ;;  %vm2504_vm10 = vcmp.ge.f32.partialorder %v1802_v60, 0.0  ;;  %v2760_v35 = vmul.f32 0.2, %v1802_v60  ;;  %v1794_v20 = vadd.f32 %v12491_v9, %v1793_v25  ;;  %v4208_v50 = vld [vmem:[#allocation2 + $0x168] sm:$0xff] }
 0x1a4   :  { %17185 = vst [vmem:[#allocation74_spill] sm:$0xff] %v12758_v19  ;;  %4147 = vst.msk [vmem:[#allocation2 + $0x188] sm:$0xff] %vm4062_vm8, %v12758_v19  ;;  %v10744_v36 = vpop.f32.mrf.mxu0  ;;  %10839 = vmatmul.mubr.msk.bf16.gmra.mxu0 %vm955_vm0, %v11595_v18  ;;  %v4317_v30 = vpack.c.bf16 %v4208_v50, %v4207_v63  ;;  %v12776_v50 = vld [vmem:[%s16855_s3 + $0x28] sm:$0xff]  }
 0x1a5   :  { %v12764_v54 = vsel %vm2504_vm10, %v1802_v60, %v2760_v35  ;;  %vm2502_vm11 = vcmp.ge.f32.partialorder %v1794_v20, 0.0  ;;  %v2758_v40 = vmul.f32 0.2, %v1794_v20  ;;  %v1815_v22 = vadd.f32 %v12491_v9, %v10744_v36  ;;  %10842 = vmatprep.mubr.msk.bf16.mxu0 %vm955_vm0, %v11596_v55  ;;  %v4210_v35 = vld [vmem:[#allocation2 + $0x178] sm:$0xff]  ;;  %v11597_v1 = vld [vmem:[%s16852_s0 + $0x348] sm:$0xff]   ;;  %11022 = vmatprep.subr.bf16.mxu1 %v12776_v50 }
 0x1a6   :  { %17186 = vst [vmem:[#allocation75_spill] sm:$0xff] %v12764_v54  ;;  %4150 = vst.msk [vmem:[#allocation2 + $0x1a0] sm:$0xff] %vm4062_vm8, %v12764_v54  ;;  %v1806_v25 = vpop.f32.mrf.mxu0  ;;  %10928 = vmatprep.mubr.msk.bf16.mxu1 %vm4062_vm8, %v4317_v30 }
 0x1a7   :  { %v12778_v18 = vsel %vm2502_vm11, %v1794_v20, %v2758_v40  ;;  %vm2507_vm12 = vcmp.ge.f32.partialorder %v1815_v22, 0.0  ;;  %v2763_v57 = vmul.f32 0.2, %v1815_v22  ;;  %v1807_v55 = vadd.f32 %v12491_v9, %v1806_v25  ;;  %v4209_v60 = vld [vmem:[#allocation2 + $0x170] sm:$0xff] }
 0x1a8   :  { %17187 = vst [vmem:[#allocation76_spill] sm:$0xff] %v12778_v18  ;;  %4148 = vst.msk [vmem:[#allocation2 + $0x190] sm:$0xff] %vm4062_vm8, %v12778_v18  ;;  %v10745_v30 = vpop.f32.mrf.mxu0  ;;  %v4318_v36 = vpack.c.bf16 %v4210_v35, %v4209_v60 }
 0x1a9   :  { %v12789_v40 = vsel %vm2507_vm12, %v1815_v22, %v2763_v57  ;;  %vm2505_vm13 = vcmp.ge.f32.partialorder %v1807_v55, 0.0  ;;  %v2761_v20 = vmul.f32 0.2, %v1807_v55  ;;  %v1818_v25 = vadd.f32 %v12491_v9, %v10745_v30 }
 0x1aa   :  { %17188 = vst [vmem:[#allocation77_spill] sm:$0xff] %v12789_v40  ;;  %4153 = vst.msk [vmem:[#allocation2 + $0x1b8] sm:$0xff] %vm4062_vm8, %v12789_v40  ;;  %v1809_v60 = vpop.f32.mrf.mxu0  ;;  %10929 = vmatmul.mubr.msk.bf16.gmra.mxu1 %vm4062_vm8, %v4318_v36  ;;  %v11600_v36 = vld [vmem:[%s16852_s0 + $0x360] sm:$0xff]  }
 0x1ab   :  { %v12798_v35 = vsel %vm2505_vm13, %v1807_v55, %v2761_v20  ;;  %vm2508_vm14 = vcmp.ge.f32.partialorder %v1818_v25, 0.0  ;;  %v2764_v63 = vmul.f32 0.2, %v1818_v25  ;;  %v1810_v22 = vadd.f32 %v12491_v9, %v1809_v60  ;;  %v4212_v57 = vld [vmem:[#allocation2 + $0x188] sm:$0xff] }
 0x1ac   :  { %17189 = vst [vmem:[#allocation78_spill] sm:$0xff] %v12798_v35  ;;  %4151 = vst.msk [vmem:[#allocation2 + $0x1a8] sm:$0xff] %vm4062_vm8, %v12798_v35  ;;  %v10748_v30 = vpop.f32.mrf.mxu0  ;;  %10843 = vmatmul.mubr.msk.bf16.gmra.mxu0 %vm955_vm0, %v11597_v1  ;;  %v4319_v54 = vpack.c.bf16 %v4212_v57, %v17173_v14  ;;  %v4214_v57 = vld [vmem:[#allocation2 + $0x198] sm:$0xff] }
 0x1ad   :  { %v12805_v19 = vsel %vm2508_vm14, %v1818_v25, %v2764_v63  ;;  %vm2506_vm15 = vcmp.ge.f32.partialorder %v1810_v22, 0.0  ;;  %v2762_v18 = vmul.f32 0.2, %v1810_v22  ;;  %v1831_v55 = vadd.f32 %v12491_v9, %v10748_v30  ;;  %10846 = vmatprep.mubr.msk.bf16.mxu0 %vm955_vm0, %v11598_v29 }
 0x1ae   :  { %17190 = vst [vmem:[#allocation79_spill] sm:$0xff] %v12805_v19  ;;  %4154 = vst.msk [vmem:[#allocation2 + $0x1c0] sm:$0xff] %vm4062_vm8, %v12805_v19  ;;  %v1822_v20 = vpop.f32.mrf.mxu0  ;;  %10932 = vmatprep.mubr.msk.bf16.mxu1 %vm4062_vm8, %v4319_v54  ;;  %v11599_v54 = vld [vmem:[%s16852_s0 + $0x358] sm:$0xff]  }
 0x1af   :  { %v12814_v1 = vsel %vm2506_vm15, %v1810_v22, %v2762_v18  ;;  %vm2511_vm1 = vcmp.ge.f32.partialorder %v1831_v55, 0.0  ;;  %v2767_v63 = vmul.f32 0.2, %v1831_v55  ;;  %v1823_v25 = vadd.f32 %v12491_v9, %v1822_v20  ;;  %v4213_v60 = vld [vmem:[#allocation2 + $0x190] sm:$0xff] }
 0x1b0   :  { %17191 = vst [vmem:[#allocation80_spill] sm:$0xff] %v12814_v1  ;;  %4152 = vst.msk [vmem:[#allocation2 + $0x1b0] sm:$0xff] %vm4062_vm8, %v12814_v1  ;;  %v10749_v30 = vpop.f32.mrf.mxu0  ;;  %v4320_v10 = vpack.c.bf16 %v4214_v57, %v4213_v60 }
 0x1b1   :  { %v12824_v18 = vsel %vm2511_vm1, %v1831_v55, %v2767_v63  ;;  %vm2509_vm2 = vcmp.ge.f32.partialorder %v1823_v25, 0.0  ;;  %v2765_v22 = vmul.f32 0.2, %v1823_v25  ;;  %v1834_v20 = vadd.f32 %v12491_v9, %v10749_v30  ;;  %v4215_v63 = vld [vmem:[#allocation2 + $0x1a0] sm:$0xff] }
 0x1b2   :  { %17192 = vst [vmem:[#allocation81_spill] sm:$0xff] %v12824_v18  ;;  %4157 = vst.msk [vmem:[#allocation2 + $0x1d8] sm:$0xff] %vm4062_vm8, %v12824_v18  ;;  %v1825_v29 = vpop.f32.mrf.mxu0  ;;  %10933 = vmatmul.mubr.msk.bf16.gmra.mxu1 %vm4062_vm8, %v4320_v10 }
 0x1b3   :  { %v12833_v60 = vsel %vm2509_vm2, %v1823_v25, %v2765_v22  ;;  %vm2512_vm3 = vcmp.ge.f32.partialorder %v1834_v20, 0.0  ;;  %v2768_v57 = vmul.f32 0.2, %v1834_v20  ;;  %v1826_v55 = vadd.f32 %v12491_v9, %v1825_v29  ;;  %v4216_v40 = vld [vmem:[#allocation2 + $0x1a8] sm:$0xff]  ;;  %v11602_v25 = vld [vmem:[%s16852_s0 + $0x370] sm:$0xff]  }
 0x1b4   :  { %17193 = vst [vmem:[#allocation82_spill] sm:$0xff] %v12833_v60  ;;  %4155 = vst.msk [vmem:[#allocation2 + $0x1c8] sm:$0xff] %vm4062_vm8, %v12833_v60  ;;  %v10752_v30 = vpop.f32.mrf.mxu0  ;;  %10847 = vmatmul.mubr.msk.bf16.gmra.mxu0 %vm955_vm0, %v11599_v54  ;;  %v4321_v19 = vpack.c.bf16 %v4216_v40, %v4215_v63 }
 0x1b5   :  { %v12839_v35 = vsel %vm2512_vm3, %v1834_v20, %v2768_v57  ;;  %vm2510_vm4 = vcmp.ge.f32.partialorder %v1826_v55, 0.0  ;;  %v2766_v1 = vmul.f32 0.2, %v1826_v55  ;;  %v1847_v10 = vadd.f32 %v12491_v9, %v10752_v30  ;;  %10850 = vmatprep.mubr.msk.bf16.mxu0 %vm955_vm0, %v11600_v36  ;;  %v4218_v57 = vld [vmem:[#allocation2 + $0x1b8] sm:$0xff] }
 0x1b6   :  { %17194 = vst [vmem:[#allocation83_spill] sm:$0xff] %v12839_v35  ;;  %4158 = vst.msk [vmem:[#allocation2 + $0x1e0] sm:$0xff] %vm4062_vm8, %v12839_v35  ;;  %v1838_v29 = vpop.f32.mrf.mxu0  ;;  %10936 = vmatprep.mubr.msk.bf16.mxu1 %vm4062_vm8, %v4321_v19  ;;  %v11601_v19 = vld [vmem:[%s16852_s0 + $0x368] sm:$0xff]  }
 0x1b7   :  { %v12848_v22 = vsel %vm2510_vm4, %v1826_v55, %v2766_v1  ;;  %vm2515_vm5 = vcmp.ge.f32.partialorder %v1847_v10, 0.0  ;;  %v2771_v40 = vmul.f32 0.2, %v1847_v10  ;;  %v1839_v54 = vadd.f32 %v12491_v9, %v1838_v29  ;;  %v4217_v20 = vld [vmem:[#allocation2 + $0x1b0] sm:$0xff] }
 0x1b8   :  { %17195 = vst [vmem:[#allocation84_spill] sm:$0xff] %v12848_v22  ;;  %4156 = vst.msk [vmem:[#allocation2 + $0x1d0] sm:$0xff] %vm4062_vm8, %v12848_v22  ;;  %v10753_v63 = vpop.f32.mrf.mxu0  ;;  %v4322_v30 = vpack.c.bf16 %v4218_v57, %v4217_v20 }
 0x1b9   :  { %v12858_v1 = vsel %vm2515_vm5, %v1847_v10, %v2771_v40  ;;  %vm2513_vm6 = vcmp.ge.f32.partialorder %v1839_v54, 0.0  ;;  %v2769_v55 = vmul.f32 0.2, %v1839_v54  ;;  %v1850_v29 = vadd.f32 %v12491_v9, %v10753_v63 }
 0x1ba   :  { %17196 = vst [vmem:[#allocation85_spill] sm:$0xff] %v12858_v1  ;;  %4161 = vst.msk [vmem:[#allocation2 + $0x1f8] sm:$0xff] %vm4062_vm8, %v12858_v1  ;;  %v1841_v36 = vpop.f32.mrf.mxu0  ;;  %10937 = vmatmul.mubr.msk.bf16.gmra.mxu1 %vm4062_vm8, %v4322_v30 }
 0x1bb   :  { %v12867_v20 = vsel %vm2513_vm6, %v1839_v54, %v2769_v55  ;;  %vm2516_vm7 = vcmp.ge.f32.partialorder %v1850_v29, 0.0  ;;  %v2772_v57 = vmul.f32 0.2, %v1850_v29  ;;  %v1842_v10 = vadd.f32 %v12491_v9, %v1841_v36  ;;  %v4220_v40 = vld [vmem:[#allocation2 + $0x1c8] sm:$0xff]  ;;  %v11605_v36 = vld [vmem:[%s16852_s0 + $0x380] sm:$0xff]  }
 0x1bc   :  { %17197 = vst [vmem:[#allocation86_spill] sm:$0xff] %v12867_v20  ;;  %4159 = vst.msk [vmem:[#allocation2 + $0x1e8] sm:$0xff] %vm4062_vm8, %v12867_v20  ;;  %v10756_v63 = vpop.f32.mrf.mxu0  ;;  %10851 = vmatmul.mubr.msk.bf16.gmra.mxu0 %vm955_vm0, %v11601_v19  ;;  %v4323_v18 = vpack.c.bf16 %v4220_v40, %v17173_v14  ;;  %v4222_v40 = vld [vmem:[#allocation2 + $0x1d8] sm:$0xff] }
 0x1bd   :  { %v12874_v35 = vsel %vm2516_vm7, %v1850_v29, %v2772_v57  ;;  %vm2514_vm9 = vcmp.ge.f32.partialorder %v1842_v10, 0.0  ;;  %v2770_v60 = vmul.f32 0.2, %v1842_v10  ;;  %v1863_v54 = vadd.f32 %v12491_v9, %v10756_v63  ;;  %10854 = vmatprep.mubr.msk.bf16.mxu0 %vm955_vm0, %v11602_v25 }
 0x1be   :  { %17198 = vst [vmem:[#allocation87_spill] sm:$0xff] %v12874_v35  ;;  %4162 = vst.msk [vmem:[#allocation2 + $0x200] sm:$0xff] %vm4062_vm8, %v12874_v35  ;;  %v1854_v30 = vpop.f32.mrf.mxu0  ;;  %10940 = vmatprep.mubr.msk.bf16.mxu1 %vm4062_vm8, %v4323_v18  ;;  %v11603_v18 = vld [vmem:[%s16852_s0 + $0x378] sm:$0xff]  }
 0x1bf   :  { %v12883_v19 = vsel %vm2514_vm9, %v1842_v10, %v2770_v60  ;;  %vm2519_vm10 = vcmp.ge.f32.partialorder %v1863_v54, 0.0  ;;  %v2775_v55 = vmul.f32 0.2, %v1863_v54  ;;  %v1855_v29 = vadd.f32 %v12491_v9, %v1854_v30  ;;  %v4221_v57 = vld [vmem:[#allocation2 + $0x1d0] sm:$0xff] }
 0x1c0   :  { %17199 = vst [vmem:[#allocation88_spill] sm:$0xff] %v12883_v19  ;;  %4160 = vst.msk [vmem:[#allocation2 + $0x1f0] sm:$0xff] %vm4062_vm8, %v12883_v19  ;;  %v10757_v63 = vpop.f32.mrf.mxu0  ;;  %v4324_v22 = vpack.c.bf16 %v4222_v40, %v4221_v57 }
 0x1c1   :  { %v12893_v60 = vsel %vm2519_vm10, %v1863_v54, %v2775_v55  ;;  %vm2517_vm11 = vcmp.ge.f32.partialorder %v1855_v29, 0.0  ;;  %v2773_v10 = vmul.f32 0.2, %v1855_v29  ;;  %v1866_v30 = vadd.f32 %v12491_v9, %v10757_v63  ;;  %v4223_v55 = vld [vmem:[#allocation2 + $0x1e0] sm:$0xff] }
 0x1c2   :  { %17200 = vst [vmem:[#allocation89_spill] sm:$0xff] %v12893_v60  ;;  %4165 = vst.msk [vmem:[#allocation2 + $0x218] sm:$0xff] %vm4062_vm8, %v12893_v60  ;;  %v1857_v25 = vpop.f32.mrf.mxu0  ;;  %10941 = vmatmul.mubr.msk.bf16.gmra.mxu1 %vm4062_vm8, %v4324_v22 }
 0x1c3   :  { %v12902_v57 = vsel %vm2517_vm11, %v1855_v29, %v2773_v10  ;;  %vm2520_vm12 = vcmp.ge.f32.partialorder %v1866_v30, 0.0  ;;  %v2776_v40 = vmul.f32 0.2, %v1866_v30  ;;  %v1858_v54 = vadd.f32 %v12491_v9, %v1857_v25  ;;  %v4224_v1 = vld [vmem:[#allocation2 + $0x1e8] sm:$0xff]  ;;  %v11607_v29 = vld [vmem:[%s16852_s0 + $0x390] sm:$0xff]  }
 0x1c4   :  { %17201 = vst [vmem:[#allocation90_spill] sm:$0xff] %v12902_v57  ;;  %4163 = vst.msk [vmem:[#allocation2 + $0x208] sm:$0xff] %vm4062_vm8, %v12902_v57  ;;  %v10760_v63 = vpop.f32.mrf.mxu0  ;;  %10855 = vmatmul.mubr.msk.bf16.gmra.mxu0 %vm955_vm0, %v11603_v18  ;;  %v4325_v35 = vpack.c.bf16 %v4224_v1, %v4223_v55 }
 0x1c5   :  { %v12908_v20 = vsel %vm2520_vm12, %v1866_v30, %v2776_v40  ;;  %vm2518_vm13 = vcmp.ge.f32.partialorder %v1858_v54, 0.0  ;;  %v2774_v19 = vmul.f32 0.2, %v1858_v54  ;;  %v1879_v22 = vadd.f32 %v12491_v9, %v10760_v63  ;;  %10858 = vmatprep.mubr.msk.bf16.mxu0 %vm955_vm0, %v11605_v36  ;;  %v4226_v40 = vld [vmem:[#allocation2 + $0x1f8] sm:$0xff] }
 0x1c6   :  { %17202 = vst [vmem:[#allocation91_spill] sm:$0xff] %v12908_v20  ;;  %4166 = vst.msk [vmem:[#allocation2 + $0x220] sm:$0xff] %vm4062_vm8, %v12908_v20  ;;  %v1870_v25 = vpop.f32.mrf.mxu0  ;;  %10944 = vmatprep.mubr.msk.bf16.mxu1 %vm4062_vm8, %v4325_v35  ;;  %v11606_v35 = vld [vmem:[%s16852_s0 + $0x388] sm:$0xff]  }
 0x1c7   :  { %v12917_v10 = vsel %vm2518_vm13, %v1858_v54, %v2774_v19  ;;  %vm2523_vm14 = vcmp.ge.f32.partialorder %v1879_v22, 0.0  ;;  %v2779_v1 = vmul.f32 0.2, %v1879_v22  ;;  %v1871_v18 = vadd.f32 %v12491_v9, %v1870_v25  ;;  %v4225_v30 = vld [vmem:[#allocation2 + $0x1f0] sm:$0xff] }
 0x1c8   :  { %17203 = vst [vmem:[#allocation92_spill] sm:$0xff] %v12917_v10  ;;  %4164 = vst.msk [vmem:[#allocation2 + $0x210] sm:$0xff] %vm4062_vm8, %v12917_v10  ;;  %v10761_v55 = vpop.f32.mrf.mxu0  ;;  %v4326_v63 = vpack.c.bf16 %v4226_v40, %v4225_v30 }
 0x1c9   :  { %v12927_v19 = vsel %vm2523_vm14, %v1879_v22, %v2779_v1  ;;  %vm2521_vm15 = vcmp.ge.f32.partialorder %v1871_v18, 0.0  ;;  %v2777_v54 = vmul.f32 0.2, %v1871_v18  ;;  %v1882_v25 = vadd.f32 %v12491_v9, %v10761_v55 }
 0x1ca   :  { %17204 = vst [vmem:[#allocation93_spill] sm:$0xff] %v12927_v19  ;;  %4169 = vst.msk [vmem:[#allocation2 + $0x238] sm:$0xff] %vm4062_vm8, %v12927_v19  ;;  %v1873_v36 = vpop.f32.mrf.mxu0  ;;  %10945 = vmatmul.mubr.msk.bf16.gmra.mxu1 %vm4062_vm8, %v4326_v63  ;;  %v11609_v19 = vld [vmem:[%s16852_s0 + $0x3a0] sm:$0xff]  }
 0x1cb   :  { %v12936_v30 = vsel %vm2521_vm15, %v1871_v18, %v2777_v54  ;;  %vm2524_vm1 = vcmp.ge.f32.partialorder %v1882_v25, 0.0  ;;  %v2780_v40 = vmul.f32 0.2, %v1882_v25  ;;  %v1874_v22 = vadd.f32 %v12491_v9, %v1873_v36  ;;  %v4228_v1 = vld [vmem:[#allocation2 + $0x208] sm:$0xff] }
 0x1cc   :  { %17205 = vst [vmem:[#allocation94_spill] sm:$0xff] %v12936_v30  ;;  %4167 = vst.msk [vmem:[#allocation2 + $0x228] sm:$0xff] %vm4062_vm8, %v12936_v30  ;;  %v10764_v55 = vpop.f32.mrf.mxu0  ;;  %10859 = vmatmul.mubr.msk.bf16.gmra.mxu0 %vm955_vm0, %v11606_v35  ;;  %v4327_v60 = vpack.c.bf16 %v4228_v1, %v17173_v14  ;;  %v12974_v30 = vld [vmem:[#allocation2 + $0x48] sm:$0xff] }
 0x1cd   :  { %v12943_v20 = vsel %vm2524_vm1, %v1882_v25, %v2780_v40  ;;  %vm2522_vm2 = vcmp.ge.f32.partialorder %v1874_v22, 0.0  ;;  %v2778_v57 = vmul.f32 0.2, %v1874_v22  ;;  %v1895_v18 = vadd.f32 %v12491_v9, %v10764_v55  ;;  %10862 = vmatprep.mubr.msk.bf16.mxu0 %vm955_vm0, %v11607_v29  ;;  %v4230_v40 = vld [vmem:[#allocation2 + $0x218] sm:$0xff]  ;;  %v4231_v29 = vld [vmem:[#allocation2 + $0x220] sm:$0xff] }
 0x1ce   :  { %17206 = vst [vmem:[#allocation95_spill] sm:$0xff] %v12943_v20  ;;  %v1886_v63 = vpop.f32.mrf.mxu0  ;;  %10948 = vmatprep.mubr.msk.bf16.mxu1 %vm4062_vm8, %v4327_v60  ;;  %v11608_v60 = vld [vmem:[%s16852_s0 + $0x398] sm:$0xff]  }
 0x1cf   :  { %v12950_v54 = vsel %vm2522_vm2, %v1874_v22, %v2778_v57  ;;  %vm2527_vm3 = vcmp.ge.f32.partialorder %v1895_v18, 0.0  ;;  %v2783_v35 = vmul.f32 0.2, %v1895_v18  ;;  %v1887_v1 = vadd.f32 %v12491_v9, %v1886_v63  ;;  %v4229_v25 = vld [vmem:[#allocation2 + $0x210] sm:$0xff]  ;;  %v12962_v22 = vld [vmem:[#allocation2 + $0x58] sm:$0xff] }
 0x1d0   :  { %17207 = vst [vmem:[#allocation96_spill] sm:$0xff] %v12950_v54  ;;  %4168 = vst.msk [vmem:[#allocation2 + $0x230] sm:$0xff] %vm4062_vm8, %v12950_v54  ;;  %v10765_v55 = vpop.f32.mrf.mxu0  ;;  %v4328_v10 = vpack.c.bf16 %v4230_v40, %v4229_v25 }
 0x1d1   :  { %v12960_v57 = vsel %vm2527_vm3, %v1895_v18, %v2783_v35  ;;  %vm2525_vm4 = vcmp.ge.f32.partialorder %v1887_v1, 0.0  ;;  %v2781_v63 = vmul.f32 0.2, %v1887_v1  ;;  %v1898_v36 = vadd.f32 %v12491_v9, %v10765_v55 }
 0x1d2   :  { %17208 = vst [vmem:[#allocation97_spill] sm:$0xff] %v12960_v57  ;;  %5608 = vst.msk [vmem:[#allocation2 + $0x58] sm:$0xff] %vm4062_vm8, %v12960_v57  ;;  %v1889_v25 = vpop.f32.mrf.mxu0  ;;  %10949 = vmatmul.mubr.msk.bf16.gmra.mxu1 %vm4062_vm8, %v4328_v10  ;;  %v13009_v57 = vld [vmem:[#allocation2 + $0x78] sm:$0xff] }
 0x1d3   :  { %v12971_v40 = vsel %vm2525_vm4, %v1887_v1, %v2781_v63  ;;  %vm2528_vm5 = vcmp.ge.f32.partialorder %v1898_v36, 0.0  ;;  %v2784_v18 = vmul.f32 0.2, %v1898_v36  ;;  %v1890_v35 = vadd.f32 %v12491_v9, %v1889_v25  ;;  %v4232_v20 = vld [vmem:[#allocation2 + $0x228] sm:$0xff]  ;;  %v12983_v63 = vld [vmem:[#allocation2 + $0x60] sm:$0xff] }
 0x1d4   :  { %17209 = vst [vmem:[#allocation98_spill] sm:$0xff] %v12971_v40  ;;  %v10768_v55 = vpop.f32.mrf.mxu0  ;;  %10863 = vmatmul.mubr.msk.bf16.gmra.mxu0 %vm955_vm0, %v11608_v60  ;;  %v4329_v54 = vpack.c.bf16 %v4232_v20, %v4231_v29  ;;  %5606 = vst.msk [vmem:[#allocation2 + $0x48] sm:$0xff] %vm4062_vm8, %v12971_v40  ;;  %v12990_v20 = vld [vmem:[#allocation2 + $0x50] sm:$0xff] }
 0x1d5   :  { %v12979_v21 = vsel %vm2528_vm5, %v1898_v36, %v2784_v18  ;;  %vm2526_vm6 = vcmp.ge.f32.partialorder %v1890_v35, 0.0  ;;  %v2782_v10 = vmul.f32 0.2, %v1890_v35  ;;  %v1911_v1 = vadd.f32 %v12491_v9, %v10768_v55  ;;  %10866 = vmatprep.mubr.msk.bf16.mxu0 %vm955_vm0, %v11609_v19  ;;  %v12997_v9 = vld [vmem:[%s16854_s2] ss:$0 sm:$0xff]  ;;  %v4234_v18 = vld [vmem:[#allocation2 + $0x238] sm:$0xff] }
 0x1d6   :  { %17210 = vst [vmem:[#allocation99_spill] sm:$0xff] %v12979_v21  ;;  %v1902_v23 = vpop.f32.mrf.mxu0  ;;  %10952 = vmatprep.mubr.msk.bf16.mxu1 %vm4062_vm8, %v4329_v54  ;;  %5609 = vst.msk [vmem:[#allocation2 + $0x60] sm:$0xff] %vm4062_vm8, %v12979_v21  ;;  %v17214_v54 = vpack.c.bf16 %v12019_v12, %v12017_v11 }
 0x1d7   :  { %v12992_v36 = vsel %vm2526_vm6, %v1890_v35, %v2782_v10  ;;  %vm2531_vm7 = vcmp.ge.f32.partialorder %v1911_v1, 0.0  ;;  %v2787_v29 = vmul.f32 0.2, %v1911_v1  ;;  %v1903_v19 = vadd.f32 %v12997_v9, %v1902_v23  ;;  %v4233_v60 = vld [vmem:[#allocation2 + $0x230] sm:$0xff]  ;;  %v11610_v10 = vld [vmem:[%s16852_s0 + $0x3a8] sm:$0xff]  }
 0x1d8   :  { %17211 = vst [vmem:[#allocation100_spill] sm:$0xff] %v12992_v36  ;;  %5607 = vst.msk [vmem:[#allocation2 + $0x50] sm:$0xff] %vm4062_vm8, %v12992_v36  ;;  %v10769_v55 = vpop.f32.mrf.mxu0  ;;  %v4330_v35 = vpack.c.bf16 %v4234_v18, %v4233_v60 }
 0x1d9   :  { %v13007_v25 = vsel %vm2531_vm7, %v1911_v1, %v2787_v29  ;;  %vm2529_vm9 = vcmp.ge.f32.partialorder %v1903_v19, 0.0  ;;  %v2785_v23 = vmul.f32 0.2, %v1903_v19  ;;  %v1914_v21 = vadd.f32 %v12997_v9, %v10769_v55  ;;  %v13025_v55 = vld [vmem:[#allocation2 + $0x68] sm:$0xff] }
 0x1da   :  { %17212 = vst [vmem:[#allocation101_spill] sm:$0xff] %v13007_v25  ;;  %5612 = vst.msk [vmem:[#allocation2 + $0x78] sm:$0xff] %vm4062_vm8, %v13007_v25  ;;  %v1905_v60 = vpop.f32.mrf.mxu0  ;;  %10953 = vmatmul.mubr.msk.bf16.gmra.mxu1 %vm4062_vm8, %v4330_v35 }
 0x1db   :  { %v13018_v18 = vsel %vm2529_vm9, %v1903_v19, %v2785_v23  ;;  %vm2532_vm10 = vcmp.ge.f32.partialorder %v1914_v21, 0.0  ;;  %v2788_v1 = vmul.f32 0.2, %v1914_v21  ;;  %v1906_v29 = vadd.f32 %v12997_v9, %v1905_v60  ;;  %10958 = vmatprep.mubr.msk.bf16.mxu1 %vm4062_vm8, %v17214_v54 }
 0x1dc   :  { %17213 = vst [vmem:[#allocation102_spill] sm:$0xff] %v13018_v18  ;;  %v10772_v40 = vpop.f32.mrf.mxu0  ;;  %10867 = vmatmul.mubr.msk.bf16.gmra.mxu0 %vm955_vm0, %v11610_v10  ;;  %5610 = vst.msk [vmem:[#allocation2 + $0x68] sm:$0xff] %vm4062_vm8, %v13018_v18  ;;  %v13040_v10 = vld [vmem:[#allocation2 + $0x70] sm:$0xff] }
 0x1dd   :  { %v13030_v35 = vsel %vm2532_vm10, %v1914_v21, %v2788_v1  ;;  %vm2530_vm11 = vcmp.ge.f32.partialorder %v1906_v29, 0.0  ;;  %v2786_v19 = vmul.f32 0.2, %v1906_v29  ;;  %v1927_v23 = vadd.f32 %v12997_v9, %v10772_v40  ;;  %10870 = vmatprep.mubr.msk.bf16.mxu0 %vm955_vm0, %v11611_v56  ;;  %v11612_v1 = vld [vmem:[%s16852_s0 + $0x3b8] sm:$0xff]  }
 0x1de   :  { %17215 = vst [vmem:[#allocation103_spill] sm:$0xff] %v13030_v35  ;;  %5613 = vst.msk [vmem:[#allocation2 + $0x80] sm:$0xff] %vm4062_vm8, %v13030_v35  ;;  %v1918_v12 = vpop.f32.mrf.mxu0  ;;  %v17218_v35 = vpack.c.bf16 %v12011_v6, %v12008_v4 }
 0x1df   :  { %v13038_v54 = vsel %vm2530_vm11, %v1906_v29, %v2786_v19  ;;  %vm2535_vm12 = vcmp.ge.f32.partialorder %v1927_v23, 0.0  ;;  %v2791_v21 = vmul.f32 0.2, %v1927_v23  ;;  %v1919_v60 = vadd.f32 %v12997_v9, %v1918_v12  ;;  %v13052_v29 = vld [vmem:[#allocation2 + $0x98] sm:$0xff]  ;;  %v11613_v12 = vld [vmem:[%s16852_s0 + $0x3c0] sm:$0xff]  }
 0x1e0   :  { %17216 = vst [vmem:[#allocation104_spill] sm:$0xff] %v13038_v54  ;;  %5611 = vst.msk [vmem:[#allocation2 + $0x70] sm:$0xff] %vm4062_vm8, %v13038_v54  ;;  %v10773_v40 = vpop.f32.mrf.mxu0  ;;  %v13071_v54 = vld [vmem:[#allocation2 + $0x88] sm:$0xff] }
 0x1e1   :  { %v13050_v11 = vsel %vm2535_vm12, %v1927_v23, %v2791_v21  ;;  %vm2533_vm13 = vcmp.ge.f32.partialorder %v1919_v60, 0.0  ;;  %v2789_v19 = vmul.f32 0.2, %v1919_v60  ;;  %v1930_v25 = vadd.f32 %v12997_v9, %v10773_v40 }
 0x1e2   :  { %17217 = vst [vmem:[#allocation105_spill] sm:$0xff] %v13050_v11  ;;  %5616 = vst.msk [vmem:[#allocation2 + $0x98] sm:$0xff] %vm4062_vm8, %v13050_v11  ;;  %v1921_v56 = vpop.f32.mrf.mxu0  ;;  %10959 = vmatmul.mubr.msk.bf16.vlgmr.msra.gmra.mxu1 %vm4062_vm8, %v17218_v35  ;;  %v17220_v40 = vpack.c.bf16 %v12061_v33, %v12058_v32  ;;  %v13081_v32 = vld [vmem:[#allocation2 + $0xa0] sm:$0xff] }
 0x1e3   :  { %v13064_v23 = vsel %vm2533_vm13, %v1919_v60, %v2789_v19  ;;  %vm2536_vm14 = vcmp.ge.f32.partialorder %v1930_v25, 0.0  ;;  %v2792_v21 = vmul.f32 0.2, %v1930_v25  ;;  %v1922_v18 = vadd.f32 %v12997_v9, %v1921_v56  ;;  %11023 = vmatpush3.bf16.msra.mxu1 %v12776_v50  ;;  %v13089_v56 = vld [vmem:[#allocation2 + $0x90] sm:$0xff] }
 0x1e4   :  { %17219 = vst [vmem:[#allocation106_spill] sm:$0xff] %v13064_v23  ;;  %10962 = vmatprep.mubr.msk.bf16.mxu1 %vm4062_vm8, %v17220_v40  ;;  %v10776_v36 = vpop.f32.mrf.mxu0  ;;  %10871 = vmatmul.mubr.msk.bf16.gmra.mxu0 %vm955_vm0, %v11612_v1  ;;  %5614 = vst.msk [vmem:[#allocation2 + $0x88] sm:$0xff] %vm4062_vm8, %v13064_v23 }
 0x1e5   :  { %v13077_v4 = vsel %vm2536_vm14, %v1930_v25, %v2792_v21  ;;  %vm2534_vm15 = vcmp.ge.f32.partialorder %v1922_v18, 0.0  ;;  %v2790_v6 = vmul.f32 0.2, %v1922_v18  ;;  %v1943_v35 = vadd.f32 %v12997_v9, %v10776_v36  ;;  %10874 = vmatprep.mubr.msk.bf16.mxu0 %vm955_vm0, %v11613_v12  ;;  %v11614_v12 = vld [vmem:[%s16852_s0 + $0x3c8] sm:$0xff]  }
 0x1e6   :  { %17221 = vst [vmem:[#allocation107_spill] sm:$0xff] %v13077_v4  ;;  %v1934_v50 = vpop.f32.mrf.mxu0  ;;  %5617 = vst.msk [vmem:[#allocation2 + $0xa0] sm:$0xff] %vm4062_vm8, %v13077_v4  ;;  %v17224_v36 = vpack.c.bf16 %v12035_v26, %v12032_v24  ;;  %v13120_v4 = vld [vmem:[#allocation2 + $0xa8] sm:$0xff] }
 0x1e7   :  { %v13087_v60 = vsel %vm2534_vm15, %v1922_v18, %v2790_v6  ;;  %vm2539_vm1 = vcmp.ge.f32.partialorder %v1943_v35, 0.0  ;;  %v2795_v25 = vmul.f32 0.2, %v1943_v35  ;;  %v1935_v1 = vadd.f32 %v12997_v9, %v1934_v50  ;;  %v13101_v18 = vld [vmem:[#allocation2 + $0xb8] sm:$0xff]  ;;  %v11615_v50 = vld [vmem:[%s16852_s0 + $0x3d0] sm:$0xff]  }
 0x1e8   :  { %17222 = vst [vmem:[#allocation108_spill] sm:$0xff] %v13087_v60  ;;  %5615 = vst.msk [vmem:[#allocation2 + $0x90] sm:$0xff] %vm4062_vm8, %v13087_v60  ;;  %v10777_v19 = vpop.f32.mrf.mxu0 }
 0x1e9   :  { %v13099_v21 = vsel %vm2539_vm1, %v1943_v35, %v2795_v25  ;;  %vm2537_vm2 = vcmp.ge.f32.partialorder %v1935_v1, 0.0  ;;  %v2793_v40 = vmul.f32 0.2, %v1935_v1  ;;  %v1946_v6 = vadd.f32 %v12997_v9, %v10777_v19 }
 0x1ea   :  { %17223 = vst [vmem:[#allocation109_spill] sm:$0xff] %v13099_v21  ;;  %5620 = vst.msk [vmem:[#allocation2 + $0xb8] sm:$0xff] %vm4062_vm8, %v13099_v21  ;;  %v1937_v33 = vpop.f32.mrf.mxu0  ;;  %10963 = vmatmul.mubr.msk.bf16.gmra.mxu1 %vm4062_vm8, %v17224_v36  ;;  %v17226_v19 = vpack.c.bf16 %v12085_v53, %v12083_v52  ;;  %v13135_v36 = vld [vmem:[#allocation2 + $0xb0] sm:$0xff] }
 0x1eb   :  { %v13113_v35 = vsel %vm2537_vm2, %v1935_v1, %v2793_v40  ;;  %vm2540_vm3 = vcmp.ge.f32.partialorder %v1946_v6, 0.0  ;;  %v2796_v25 = vmul.f32 0.2, %v1946_v6  ;;  %v1938_v11 = vadd.f32 %v12997_v9, %v1937_v33 }
 0x1ec   :  { %17225 = vst [vmem:[#allocation110_spill] sm:$0xff] %v13113_v35  ;;  %10966 = vmatprep.mubr.msk.bf16.mxu1 %vm4062_vm8, %v17226_v19  ;;  %v10780_v23 = vpop.f32.mrf.mxu0  ;;  %10875 = vmatmul.mubr.msk.bf16.gmra.mxu0 %vm955_vm0, %v11614_v12  ;;  %5618 = vst.msk [vmem:[#allocation2 + $0xa8] sm:$0xff] %vm4062_vm8, %v13113_v35 }
 0x1ed   :  { %v13125_v24 = vsel %vm2540_vm3, %v1946_v6, %v2796_v25  ;;  %vm2538_vm4 = vcmp.ge.f32.partialorder %v1938_v11, 0.0  ;;  %v2794_v26 = vmul.f32 0.2, %v1938_v11  ;;  %v1959_v1 = vadd.f32 %v12997_v9, %v10780_v23  ;;  %10878 = vmatprep.mubr.msk.bf16.mxu0 %vm955_vm0, %v11615_v50  ;;  %v11616_v50 = vld [vmem:[%s16852_s0 + $0x3d8] sm:$0xff]  }
 0x1ee   :  { %17227 = vst [vmem:[#allocation111_spill] sm:$0xff] %v13125_v24  ;;  %5621 = vst.msk [vmem:[#allocation2 + $0xc0] sm:$0xff] %vm4062_vm8, %v13125_v24  ;;  %v1950_v53 = vpop.f32.mrf.mxu0  ;;  %v17230_v23 = vpack.c.bf16 %v12077_v47, %v12074_v45  ;;  %v13166_v24 = vld [vmem:[#allocation2 + $0xc8] sm:$0xff] }
 0x1ef   :  { %v13133_v33 = vsel %vm2538_vm4, %v1938_v11, %v2794_v26  ;;  %vm2543_vm5 = vcmp.ge.f32.partialorder %v1959_v1, 0.0  ;;  %v2799_v12 = vmul.f32 0.2, %v1959_v1  ;;  %v1951_v40 = vadd.f32 %v12997_v9, %v1950_v53  ;;  %v13147_v11 = vld [vmem:[#allocation2 + $0xd8] sm:$0xff]  ;;  %v11617_v53 = vld [vmem:[%s16852_s0 + $0x3e0] sm:$0xff]  }
 0x1f0   :  { %17228 = vst [vmem:[#allocation112_spill] sm:$0xff] %v13133_v33  ;;  %5619 = vst.msk [vmem:[#allocation2 + $0xb0] sm:$0xff] %vm4062_vm8, %v13133_v33  ;;  %v10781_v6 = vpop.f32.mrf.mxu0 }
 0x1f1   :  { %v13145_v25 = vsel %vm2543_vm5, %v1959_v1, %v2799_v12  ;;  %vm2541_vm6 = vcmp.ge.f32.partialorder %v1951_v40, 0.0  ;;  %v2797_v19 = vmul.f32 0.2, %v1951_v40  ;;  %v1962_v26 = vadd.f32 %v12997_v9, %v10781_v6 }
 0x1f2   :  { %17229 = vst [vmem:[#allocation113_spill] sm:$0xff] %v13145_v25  ;;  %5624 = vst.msk [vmem:[#allocation2 + $0xd8] sm:$0xff] %vm4062_vm8, %v13145_v25  ;;  %v1953_v52 = vpop.f32.mrf.mxu0  ;;  %10967 = vmatmul.mubr.msk.bf16.gmra.mxu1 %vm4062_vm8, %v17230_v23  ;;  %v17232_v6 = vpack.c.bf16 %v12109_v16, %v12107_v15  ;;  %v13181_v23 = vld [vmem:[#allocation2 + $0xd0] sm:$0xff]  ;;  %v17236_v15 = vpack.c.bf16 %v12101_v5, %v12098_v2 }
 0x1f3   :  { %v13159_v1 = vsel %vm2541_vm6, %v1951_v40, %v2797_v19  ;;  %vm2544_vm7 = vcmp.ge.f32.partialorder %v1962_v26, 0.0  ;;  %v2800_v12 = vmul.f32 0.2, %v1962_v26  ;;  %v1954_v21 = vadd.f32 %v12997_v9, %v1953_v52 }
 0x1f4   :  { %17231 = vst [vmem:[#allocation114_spill] sm:$0xff] %v13159_v1  ;;  %10970 = vmatprep.mubr.msk.bf16.mxu1 %vm4062_vm8, %v17232_v6  ;;  %v10784_v35 = vpop.f32.mrf.mxu0  ;;  %10879 = vmatmul.mubr.msk.bf16.gmra.mxu0 %vm955_vm0, %v11616_v50  ;;  %5622 = vst.msk [vmem:[#allocation2 + $0xc8] sm:$0xff] %vm4062_vm8, %v13159_v1 }
 0x1f5   :  { %v13171_v45 = vsel %vm2544_vm7, %v1962_v26, %v2800_v12  ;;  %vm2542_vm9 = vcmp.ge.f32.partialorder %v1954_v21, 0.0  ;;  %v2798_v47 = vmul.f32 0.2, %v1954_v21  ;;  %v1975_v40 = vadd.f32 %v12997_v9, %v10784_v35  ;;  %10882 = vmatprep.mubr.msk.bf16.mxu0 %vm955_vm0, %v11617_v53  ;;  %v11618_v53 = vld [vmem:[%s16852_s0 + $0x3e8] sm:$0xff]  }
 0x1f6   :  { %17233 = vst [vmem:[#allocation115_spill] sm:$0xff] %v13171_v45  ;;  %5625 = vst.msk [vmem:[#allocation2 + $0xe0] sm:$0xff] %vm4062_vm8, %v13171_v45  ;;  %v1966_v16 = vpop.f32.mrf.mxu0  ;;  %v17396_v45 = vld [vmem:[#allocation45_spill] sm:$0xff] }
 0x1f7   :  { %v13179_v52 = vsel %vm2542_vm9, %v1954_v21, %v2798_v47  ;;  %vm2547_vm10 = vcmp.ge.f32.partialorder %v1975_v40, 0.0  ;;  %v2803_v50 = vmul.f32 0.2, %v1975_v40  ;;  %v1967_v19 = vadd.f32 %v12997_v9, %v1966_v16  ;;  %v11619_v47 = vld [vmem:[%s16852_s0 + $0x3f0] sm:$0xff]  }
 0x1f8   :  { %17234 = vst [vmem:[#allocation116_spill] sm:$0xff] %v13179_v52  ;;  %5623 = vst.msk [vmem:[#allocation2 + $0xd0] sm:$0xff] %vm4062_vm8, %v13179_v52  ;;  %v10785_v26 = vpop.f32.mrf.mxu0 }
 0x1f9   :  { %v13191_v12 = vsel %vm2547_vm10, %v1975_v40, %v2803_v50  ;;  %vm2545_vm11 = vcmp.ge.f32.partialorder %v1967_v19, 0.0  ;;  %v2801_v21 = vmul.f32 0.2, %v1967_v19  ;;  %v1978_v6 = vadd.f32 %v12997_v9, %v10785_v26 }
 0x1fa   :  { %17235 = vst [vmem:[#allocation117_spill] sm:$0xff] %v13191_v12  ;;  %5628 = vst.msk [vmem:[#allocation2 + $0xf8] sm:$0xff] %vm4062_vm8, %v13191_v12  ;;  %v1969_v16 = vpop.f32.mrf.mxu0  ;;  %10971 = vmatmul.mubr.msk.bf16.gmra.mxu1 %vm4062_vm8, %v17236_v15  ;;  %v17238_v26 = vpack.c.bf16 %v12133_v43, %v12131_v42 }
 0x1fb   :  { %v13203_v35 = vsel %vm2545_vm11, %v1967_v19, %v2801_v21  ;;  %vm2548_vm12 = vcmp.ge.f32.partialorder %v1978_v6, 0.0  ;;  %v2804_v40 = vmul.f32 0.2, %v1978_v6  ;;  %v1970_v50 = vadd.f32 %v12997_v9, %v1969_v16 }
 0x1fc   :  { %17237 = vst [vmem:[#allocation118_spill] sm:$0xff] %v13203_v35  ;;  %10974 = vmatprep.mubr.msk.bf16.mxu1 %vm4062_vm8, %v17238_v26  ;;  %5626 = vst.msk [vmem:[#allocation2 + $0xe8] sm:$0xff] %vm4062_vm8, %v13203_v35  ;;  %v10788_v25 = vpop.f32.mrf.mxu0  ;;  %10883 = vmatmul.mubr.msk.bf16.gmra.mxu0 %vm955_vm0, %v11618_v53  ;;  %v13820_v35 = vld [vmem:[#allocation2 + $0x88] sm:$0xff] }
 0x1fd   :  { %v13213_v2 = vsel %vm2548_vm12, %v1978_v6, %v2804_v40  ;;  %vm2546_vm13 = vcmp.ge.f32.partialorder %v1970_v50, 0.0  ;;  %v2802_v5 = vmul.f32 0.2, %v1970_v50  ;;  %v1991_v15 = vadd.f32 %v12997_v9, %v10788_v25  ;;  %10886 = vmatprep.mubr.msk.bf16.mxu0 %vm955_vm0, %v11619_v47  ;;  %v11620_v47 = vld [vmem:[%s16852_s0 + $0x3f8] sm:$0xff]  }
 0x1fe   :  { %17239 = vst [vmem:[#allocation119_spill] sm:$0xff] %v13213_v2  ;;  %5629 = vst.msk [vmem:[#allocation2 + $0x100] sm:$0xff] %vm4062_vm8, %v13213_v2  ;;  %v1982_v43 = vpop.f32.mrf.mxu0  ;;  %v13806_v2 = vld [vmem:[#allocation2 + $0xe0] sm:$0xff] }
 0x1ff   :  { %v13221_v19 = vsel %vm2546_vm13, %v1970_v50, %v2802_v5  ;;  %vm2551_vm14 = vcmp.ge.f32.partialorder %v1991_v15, 0.0  ;;  %v2807_v21 = vmul.f32 0.2, %v1991_v15  ;;  %v1983_v53 = vadd.f32 %v12997_v9, %v1982_v43 }
 0x200   :  { %17240 = vst [vmem:[#allocation120_spill] sm:$0xff] %v13221_v19  ;;  %5627 = vst.msk [vmem:[#allocation2 + $0xf0] sm:$0xff] %vm4062_vm8, %v13221_v19  ;;  %v10789_v6 = vpop.f32.mrf.mxu0  ;;  %v17242_v5 = vpack.c.bf16 %v12125_v37, %v12122_v34  ;;  %v4299_v43 = vpack.c.bf16 %v12974_v30, %v17173_v14 }
 0x201   :  { %v13231_v16 = vsel %vm2551_vm14, %v1991_v15, %v2807_v21  ;;  %vm2549_vm15 = vcmp.ge.f32.partialorder %v1983_v53, 0.0  ;;  %v2805_v40 = vmul.f32 0.2, %v1983_v53  ;;  %v1994_v50 = vadd.f32 %v12997_v9, %v10789_v6 }
 0x202   :  { %17241 = vst [vmem:[#allocation121_spill] sm:$0xff] %v13231_v16  ;;  %5632 = vst.msk [vmem:[#allocation2 + $0x118] sm:$0xff] %vm4062_vm8, %v13231_v16  ;;  %v1985_v26 = vpop.f32.mrf.mxu0  ;;  %10975 = vmatmul.mubr.msk.bf16.gmra.mxu1 %vm4062_vm8, %v17242_v5  ;;  %v17244_v6 = vpack.c.bf16 %v12157_v17, %v12155_v13  ;;  %v17381_v16 = vld [vmem:[#allocation41_spill] sm:$0xff] }
 0x203   :  { %v13242_v42 = vsel %vm2549_vm15, %v1983_v53, %v2805_v40  ;;  %vm2552_vm1 = vcmp.ge.f32.partialorder %v1994_v50, 0.0  ;;  %v2808_v15 = vmul.f32 0.2, %v1994_v50  ;;  %v1986_v21 = vadd.f32 %v12997_v9, %v1985_v26 }
 0x204   :  { %17243 = vst [vmem:[#allocation122_spill] sm:$0xff] %v13242_v42  ;;  %10978 = vmatprep.mubr.msk.bf16.mxu1 %vm4062_vm8, %v17244_v6  ;;  %5630 = vst.msk [vmem:[#allocation2 + $0x108] sm:$0xff] %vm4062_vm8, %v13242_v42  ;;  %v10792_v34 = vpop.f32.mrf.mxu0  ;;  %10887 = vmatmul.mubr.msk.bf16.gmra.mxu0 %vm955_vm0, %v11620_v47 }
 0x205   :  { %v13252_v37 = vsel %vm2552_vm1, %v1994_v50, %v2808_v15  ;;  %vm2550_vm2 = vcmp.ge.f32.partialorder %v1986_v21, 0.0  ;;  %v2806_v30 = vmul.f32 0.2, %v1986_v21  ;;  %v2007_v53 = vadd.f32 %v12997_v9, %v10792_v34  ;;  %10892 = vmatprep.mubr.msk.bf16.mxu0 %vm4062_vm8, %v4299_v43  ;;  %v17315_v50 = vld [vmem:[#allocation27_spill] sm:$0xff] }
 0x206   :  { %17245 = vst [vmem:[#allocation123_spill] sm:$0xff] %v13252_v37  ;;  %5633 = vst.msk [vmem:[#allocation2 + $0x120] sm:$0xff] %vm4062_vm8, %v13252_v37  ;;  %v1998_v17 = vpop.f32.mrf.mxu0 }
 0x207   :  { %v13260_v40 = vsel %vm2550_vm2, %v1986_v21, %v2806_v30  ;;  %vm2555_vm3 = vcmp.ge.f32.partialorder %v2007_v53, 0.0  ;;  %v2811_v26 = vmul.f32 0.2, %v2007_v53  ;;  %v1999_v47 = vadd.f32 %v12997_v9, %v1998_v17 }
 0x208   :  { %17246 = vst [vmem:[#allocation124_spill] sm:$0xff] %v13260_v40  ;;  %5631 = vst.msk [vmem:[#allocation2 + $0x110] sm:$0xff] %vm4062_vm8, %v13260_v40  ;;  %v10793_v5 = vpop.f32.mrf.mxu0  ;;  %v4300_v21 = vpack.c.bf16 %v12962_v22, %v12990_v20  ;;  %v17248_v30 = vpack.c.bf16 %v12149_v0, %v12146_v62  ;;  %v17250_v22 = vpack.c.bf16 %v12184_v59, %v12182_v58 }
 0x209   :  { %v13267_v43 = vsel %vm2555_vm3, %v2007_v53, %v2811_v26  ;;  %vm2553_vm4 = vcmp.ge.f32.partialorder %v1999_v47, 0.0  ;;  %v2809_v15 = vmul.f32 0.2, %v1999_v47  ;;  %v2010_v6 = vadd.f32 %v12997_v9, %v10793_v5 }
 0x20a   :  { %17247 = vst [vmem:[#allocation125_spill] sm:$0xff] %v13267_v43  ;;  %5636 = vst.msk [vmem:[#allocation2 + $0x138] sm:$0xff] %vm4062_vm8, %v13267_v43  ;;  %v2001_v34 = vpop.f32.mrf.mxu0  ;;  %10979 = vmatmul.mubr.msk.bf16.gmra.mxu1 %vm4062_vm8, %v17248_v30  ;;  %v4301_v53 = vpack.c.bf16 %v13025_v55, %v12983_v63 }
 0x20b   :  { %v13280_v17 = vsel %vm2553_vm4, %v1999_v47, %v2809_v15  ;;  %vm2556_vm5 = vcmp.ge.f32.partialorder %v2010_v6, 0.0  ;;  %v2812_v26 = vmul.f32 0.2, %v2010_v6  ;;  %v2002_v5 = vadd.f32 %v12997_v9, %v2001_v34  ;;  %10982 = vmatprep.mubr.msk.bf16.mxu1 %vm4062_vm8, %v17250_v22 }
 0x20c   :  { %17249 = vst [vmem:[#allocation126_spill] sm:$0xff] %v13280_v17  ;;  %5634 = vst.msk [vmem:[#allocation2 + $0x128] sm:$0xff] %vm4062_vm8, %v13280_v17  ;;  %v10796_v62 = vpop.f32.mrf.mxu0  ;;  %10893 = vmatmul.mubr.msk.bf16.vlgmr.msra.gmra.mxu0 %vm4062_vm8, %v4300_v21  ;;  %v4302_v22 = vpack.c.bf16 %v13009_v57, %v13040_v10  ;;  %v13768_v17 = vld [vmem:[#allocation2 + $0x68] sm:$0xff] }
 0x20d   :  { %v13290_v0 = vsel %vm2556_vm5, %v2010_v6, %v2812_v26  ;;  %vm2554_vm6 = vcmp.ge.f32.partialorder %v2002_v5, 0.0  ;;  %v2810_v63 = vmul.f32 0.2, %v2002_v5  ;;  %v2023_v20 = vadd.f32 %v12997_v9, %v10796_v62  ;;  %10896 = vmatprep.mubr.msk.bf16.mxu0 %vm4062_vm8, %v4301_v53 }
 0x20e   :  { %17251 = vst [vmem:[#allocation127_spill] sm:$0xff] %v13290_v0  ;;  %5637 = vst.msk [vmem:[#allocation2 + $0x140] sm:$0xff] %vm4062_vm8, %v13290_v0  ;;  %v2014_v59 = vpop.f32.mrf.mxu0  ;;  %v4303_v62 = vpack.c.bf16 %v13071_v54, %v17173_v14 }
 0x20f   :  { %v13298_v55 = vsel %vm2554_vm6, %v2002_v5, %v2810_v63  ;;  %vm2559_vm7 = vcmp.ge.f32.partialorder %v2023_v20, 0.0  ;;  %v2815_v47 = vmul.f32 0.2, %v2023_v20  ;;  %v2015_v15 = vadd.f32 %v12997_v9, %v2014_v59 }
 0x210   :  { %17252 = vst [vmem:[#allocation128_spill] sm:$0xff] %v13298_v55  ;;  %5635 = vst.msk [vmem:[#allocation2 + $0x130] sm:$0xff] %vm4062_vm8, %v13298_v55  ;;  %v10797_v21 = vpop.f32.mrf.mxu0  ;;  %v17254_v5 = vpack.c.bf16 %v12176_v48, %v12170_v39 }
 0x211   :  { %v13305_v34 = vsel %vm2559_vm7, %v2023_v20, %v2815_v47  ;;  %vm2557_vm9 = vcmp.ge.f32.partialorder %v2015_v15, 0.0  ;;  %v2813_v30 = vmul.f32 0.2, %v2015_v15  ;;  %v2026_v53 = vadd.f32 %v12997_v9, %v10797_v21 }
 0x212   :  { %17253 = vst [vmem:[#allocation129_spill] sm:$0xff] %v13305_v34  ;;  %5640 = vst.msk [vmem:[#allocation2 + $0x158] sm:$0xff] %vm4062_vm8, %v13305_v34  ;;  %v2017_v26 = vpop.f32.mrf.mxu0  ;;  %10983 = vmatmul.mubr.msk.bf16.gmra.mxu1 %vm4062_vm8, %v17254_v5  ;;  %v17256_v47 = vpack.c.bf16 %v12208_v51, %v12206_v49  ;;  %v17304_v49 = vld [vmem:[#allocation23_spill] sm:$0xff]  ;;  %v17367_v34 = vld [vmem:[#allocation37_spill] sm:$0xff] }
 0x213   :  { %v13318_v63 = vsel %vm2557_vm9, %v2015_v15, %v2813_v30  ;;  %vm2560_vm10 = vcmp.ge.f32.partialorder %v2026_v53, 0.0  ;;  %v2816_v20 = vmul.f32 0.2, %v2026_v53  ;;  %v2018_v59 = vadd.f32 %v12997_v9, %v2017_v26 }
 0x214   :  { %17255 = vst [vmem:[#allocation130_spill] sm:$0xff] %v13318_v63  ;;  %10986 = vmatprep.mubr.msk.bf16.mxu1 %vm4062_vm8, %v17256_v47  ;;  %5638 = vst.msk [vmem:[#allocation2 + $0x148] sm:$0xff] %vm4062_vm8, %v13318_v63  ;;  %v10800_v39 = vpop.f32.mrf.mxu0  ;;  %10897 = vmatmul.mubr.msk.bf16.gmra.mxu0 %vm4062_vm8, %v4302_v22  ;;  %v4305_v47 = vpack.c.bf16 %v13120_v4, %v13081_v32 }
 0x215   :  { %v13328_v48 = vsel %vm2560_vm10, %v2026_v53, %v2816_v20  ;;  %vm2558_vm11 = vcmp.ge.f32.partialorder %v2018_v59, 0.0  ;;  %v2814_v57 = vmul.f32 0.2, %v2018_v59  ;;  %v2039_v54 = vadd.f32 %v12997_v9, %v10800_v39  ;;  %10900 = vmatprep.mubr.msk.bf16.mxu0 %vm4062_vm8, %v4303_v62 }
 0x216   :  { %17257 = vst [vmem:[#allocation131_spill] sm:$0xff] %v13328_v48  ;;  %5641 = vst.msk [vmem:[#allocation2 + $0x160] sm:$0xff] %vm4062_vm8, %v13328_v48  ;;  %v2030_v51 = vpop.f32.mrf.mxu0  ;;  %v17260_v20 = vpack.c.bf16 %v12200_v31, %v12197_v27 }
 0x217   :  { %v13336_v10 = vsel %vm2558_vm11, %v2018_v59, %v2814_v57  ;;  %vm2563_vm12 = vcmp.ge.f32.partialorder %v2039_v54, 0.0  ;;  %v2819_v15 = vmul.f32 0.2, %v2039_v54  ;;  %v2031_v21 = vadd.f32 %v12997_v9, %v2030_v51 }
 0x218   :  { %17258 = vst [vmem:[#allocation132_spill] sm:$0xff] %v13336_v10  ;;  %5639 = vst.msk [vmem:[#allocation2 + $0x150] sm:$0xff] %vm4062_vm8, %v13336_v10  ;;  %v10801_v53 = vpop.f32.mrf.mxu0  ;;  %v4304_v59 = vpack.c.bf16 %v13052_v29, %v13089_v56  ;;  %v17262_v51 = vpack.c.bf16 %v12232_v38, %v12230_v61 }
 0x219   :  { %v13343_v26 = vsel %vm2563_vm12, %v2039_v54, %v2819_v15  ;;  %vm2561_vm13 = vcmp.ge.f32.partialorder %v2031_v21, 0.0  ;;  %v2817_v5 = vmul.f32 0.2, %v2031_v21  ;;  %v2042_v22 = vadd.f32 %v12997_v9, %v10801_v53 }
 0x21a   :  { %17259 = vst [vmem:[#allocation133_spill] sm:$0xff] %v13343_v26  ;;  %5644 = vst.msk [vmem:[#allocation2 + $0x178] sm:$0xff] %vm4062_vm8, %v13343_v26  ;;  %v2033_v62 = vpop.f32.mrf.mxu0  ;;  %10987 = vmatmul.mubr.msk.bf16.gmra.mxu1 %vm4062_vm8, %v17260_v20 }
 0x21b   :  { %v13356_v39 = vsel %vm2561_vm13, %v2031_v21, %v2817_v5  ;;  %vm2564_vm14 = vcmp.ge.f32.partialorder %v2042_v22, 0.0  ;;  %v2820_v57 = vmul.f32 0.2, %v2042_v22  ;;  %v2034_v54 = vadd.f32 %v12997_v9, %v2033_v62  ;;  %10990 = vmatprep.mubr.msk.bf16.mxu1 %vm4062_vm8, %v17262_v51 }
 0x21c   :  { %17261 = vst [vmem:[#allocation134_spill] sm:$0xff] %v13356_v39  ;;  %5642 = vst.msk [vmem:[#allocation2 + $0x168] sm:$0xff] %vm4062_vm8, %v13356_v39  ;;  %v10804_v27 = vpop.f32.mrf.mxu0  ;;  %10901 = vmatmul.mubr.msk.bf16.gmra.mxu0 %vm4062_vm8, %v4304_v59  ;;  %v17266_v59 = vpack.c.bf16 %v12224_v44, %v12221_v28 }
 0x21d   :  { %v13366_v31 = vsel %vm2564_vm14, %v2042_v22, %v2820_v57  ;;  %vm2562_vm15 = vcmp.ge.f32.partialorder %v2034_v54, 0.0  ;;  %v2818_v29 = vmul.f32 0.2, %v2034_v54  ;;  %v2055_v4 = vadd.f32 %v12997_v9, %v10804_v27  ;;  %10904 = vmatprep.mubr.msk.bf16.mxu0 %vm4062_vm8, %v4305_v47 }
 0x21e   :  { %17263 = vst [vmem:[#allocation135_spill] sm:$0xff] %v13366_v31  ;;  %5645 = vst.msk [vmem:[#allocation2 + $0x180] sm:$0xff] %vm4062_vm8, %v13366_v31  ;;  %v2046_v38 = vpop.f32.mrf.mxu0  ;;  %v4306_v47 = vpack.c.bf16 %v13101_v18, %v13135_v36  ;;  %v4307_v57 = vpack.c.bf16 %v13166_v24, %v17173_v14  ;;  %v13415_v36 = vld [vmem:[%s16855_s3 + $0x8] sm:$0xff]  }
 0x21f   :  { %v13374_v32 = vsel %vm2562_vm15, %v2034_v54, %v2818_v29  ;;  %vm2567_vm1 = vcmp.ge.f32.partialorder %v2055_v4, 0.0  ;;  %v2823_v56 = vmul.f32 0.2, %v2055_v4  ;;  %v2047_v15 = vadd.f32 %v12997_v9, %v2046_v38  ;;  %11088 = vmatprep.subr.bf16.mxu1 %v13415_v36 }
 0x220   :  { %17264 = vst [vmem:[#allocation136_spill] sm:$0xff] %v13374_v32  ;;  %5643 = vst.msk [vmem:[#allocation2 + $0x170] sm:$0xff] %vm4062_vm8, %v13374_v32  ;;  %v10805_v53 = vpop.f32.mrf.mxu0  ;;  %v17268_v29 = vpack.c.bf16 %v12256_v41, %v12254_v46  ;;  %v17294_v46 = vld [vmem:[#allocation19_spill] sm:$0xff] }
 0x221   :  { %v13381_v5 = vsel %vm2567_vm1, %v2055_v4, %v2823_v56  ;;  %vm2565_vm2 = vcmp.ge.f32.partialorder %v2047_v15, 0.0  ;;  %v2821_v22 = vmul.f32 0.2, %v2047_v15  ;;  %v2058_v62 = vadd.f32 %v12997_v9, %v10805_v53  ;;  %v13722_v32 = vld [vmem:[#allocation2 + $0x50] sm:$0xff] }
 0x222   :  { %17265 = vst [vmem:[#allocation137_spill] sm:$0xff] %v13381_v5  ;;  %5648 = vst.msk [vmem:[#allocation2 + $0x198] sm:$0xff] %vm4062_vm8, %v13381_v5  ;;  %v2049_v20 = vpop.f32.mrf.mxu0  ;;  %10991 = vmatmul.mubr.msk.bf16.gmra.mxu1 %vm4062_vm8, %v17266_v59  ;;  %v13681_v5 = vld [vmem:[#allocation2 + $0x98] sm:$0xff] }
 0x223   :  { %v13394_v54 = vsel %vm2565_vm2, %v2047_v15, %v2821_v22  ;;  %vm2568_vm3 = vcmp.ge.f32.partialorder %v2058_v62, 0.0  ;;  %v2824_v51 = vmul.f32 0.2, %v2058_v62  ;;  %v2050_v27 = vadd.f32 %v12997_v9, %v2049_v20  ;;  %10994 = vmatprep.mubr.msk.bf16.mxu1 %vm4062_vm8, %v17268_v29 }
 0x224   :  { %17267 = vst [vmem:[#allocation138_spill] sm:$0xff] %v13394_v54  ;;  %5646 = vst.msk [vmem:[#allocation2 + $0x188] sm:$0xff] %vm4062_vm8, %v13394_v54  ;;  %v10808_v28 = vpop.f32.mrf.mxu0  ;;  %10905 = vmatmul.mubr.msk.bf16.gmra.mxu0 %vm4062_vm8, %v4306_v47  ;;  %v17272_v47 = vpack.c.bf16 %v12248_v8, %v12245_v3  ;;  %v17356_v54 = vld [vmem:[#allocation38_spill] sm:$0xff] }
 0x225   :  { %v13404_v44 = vsel %vm2568_vm3, %v2058_v62, %v2824_v51  ;;  %vm2566_vm4 = vcmp.ge.f32.partialorder %v2050_v27, 0.0  ;;  %v2822_v18 = vmul.f32 0.2, %v2050_v27  ;;  %v2071_v24 = vadd.f32 %v12997_v9, %v10808_v28  ;;  %10908 = vmatprep.mubr.msk.bf16.mxu0 %vm4062_vm8, %v4307_v57  ;;  %v17274_v28 = vld [vmem:[#allocation12_spill] sm:$0xff] }
 0x226   :  { %17269 = vst [vmem:[#allocation139_spill] sm:$0xff] %v13404_v44  ;;  %5649 = vst.msk [vmem:[#allocation2 + $0x1a0] sm:$0xff] %vm4062_vm8, %v13404_v44  ;;  %v2062_v41 = vpop.f32.mrf.mxu0  ;;  %v4308_v57 = vpack.c.bf16 %v13147_v11, %v13181_v23 }
 0x227   :  { %v13417_v4 = vsel %vm2566_vm4, %v2050_v27, %v2822_v18  ;;  %vm2571_vm5 = vcmp.ge.f32.partialorder %v2071_v24, 0.0  ;;  %v2827_v38 = vmul.f32 0.2, %v2071_v24  ;;  %v2063_v56 = vadd.f32 %v12997_v9, %v2062_v41 }
 0x228   :  { %17270 = vst [vmem:[#allocation140_spill] sm:$0xff] %v13417_v4  ;;  %5647 = vst.msk [vmem:[#allocation2 + $0x190] sm:$0xff] %vm4062_vm8, %v13417_v4  ;;  %v10809_v53 = vpop.f32.mrf.mxu0  ;;  %v17275_v18 = vpack.c.bf16 %v12280_v7, %v17274_v28 }
 0x229   :  { %v13425_v22 = vsel %vm2571_vm5, %v2071_v24, %v2827_v38  ;;  %vm2569_vm6 = vcmp.ge.f32.partialorder %v2063_v56, 0.0  ;;  %v2825_v62 = vmul.f32 0.2, %v2063_v56  ;;  %v2074_v20 = vadd.f32 %v12997_v9, %v10809_v53 }
 0x22a   :  { %17271 = vst [vmem:[#allocation141_spill] sm:$0xff] %v13425_v22  ;;  %5652 = vst.msk [vmem:[#allocation2 + $0x1b8] sm:$0xff] %vm4062_vm8, %v13425_v22  ;;  %v2065_v59 = vpop.f32.mrf.mxu0  ;;  %10995 = vmatmul.mubr.msk.bf16.gmra.mxu1 %vm4062_vm8, %v17272_v47 }
 0x22b   :  { %v13436_v51 = vsel %vm2569_vm6, %v2063_v56, %v2825_v62  ;;  %vm2572_vm7 = vcmp.ge.f32.partialorder %v2074_v20, 0.0  ;;  %v2828_v27 = vmul.f32 0.2, %v2074_v20  ;;  %v2066_v29 = vadd.f32 %v12997_v9, %v2065_v59  ;;  %10998 = vmatprep.mubr.msk.bf16.mxu1 %vm4062_vm8, %v17275_v18 }
 0x22c   :  { %17273 = vst [vmem:[#allocation142_spill] sm:$0xff] %v13436_v51  ;;  %5650 = vst.msk [vmem:[#allocation2 + $0x1a8] sm:$0xff] %vm4062_vm8, %v13436_v51  ;;  %v10812_v8 = vpop.f32.mrf.mxu0  ;;  %10909 = vmatmul.mubr.msk.bf16.gmra.mxu0 %vm4062_vm8, %v4308_v57  ;;  %v13661_v51 = vld [vmem:[#allocation2 + $0x80] sm:$0xff] }
 0x22d   :  { %v13446_v3 = vsel %vm2572_vm7, %v2074_v20, %v2828_v27  ;;  %vm2570_vm9 = vcmp.ge.f32.partialorder %v2066_v29, 0.0  ;;  %v2826_v11 = vmul.f32 0.2, %v2066_v29  ;;  %v2087_v23 = vadd.f32 %v12997_v9, %v10812_v8  ;;  %v17279_v27 = vld [vmem:[#allocation11_spill] sm:$0xff] }
 0x22e   :  { %17276 = vst [vmem:[#allocation12_spill] sm:$0xff] %v13446_v3  ;;  %5653 = vst.msk [vmem:[#allocation2 + $0x1c0] sm:$0xff] %vm4062_vm8, %v13446_v3  ;;  %v2078_v24 = vpop.f32.mrf.mxu0 }
 0x22f   :  { %v13453_v41 = vsel %vm2570_vm9, %v2066_v29, %v2826_v11  ;;  %vm2575_vm10 = vcmp.ge.f32.partialorder %v2087_v23, 0.0  ;;  %v2831_v38 = vmul.f32 0.2, %v2087_v23  ;;  %v2079_v56 = vadd.f32 %v12997_v9, %v2078_v24  ;;  %v17280_v29 = vld [vmem:[#allocation10_spill] sm:$0xff]  ;;  %v17284_v24 = vld [vmem:[#allocation15_spill] sm:$0xff] }
 0x230   :  { %17277 = vst [vmem:[#allocation143_spill] sm:$0xff] %v13453_v41  ;;  %5651 = vst.msk [vmem:[#allocation2 + $0x1b0] sm:$0xff] %vm4062_vm8, %v13453_v41  ;;  %v10813_v62 = vpop.f32.mrf.mxu0  ;;  %v17281_v28 = vpack.c.bf16 %v17279_v27, %v17280_v29 }
 0x231   :  { %v13460_v20 = vsel %vm2575_vm10, %v2087_v23, %v2831_v38  ;;  %vm2573_vm11 = vcmp.ge.f32.partialorder %v2079_v56, 0.0  ;;  %v2829_v59 = vmul.f32 0.2, %v2079_v56  ;;  %v2090_v47 = vadd.f32 %v12997_v9, %v10813_v62  ;;  %v17283_v23 = vld [vmem:[#allocation16_spill] sm:$0xff] }
 0x232   :  { %17278 = vst [vmem:[#allocation144_spill] sm:$0xff] %v13460_v20  ;;  %5656 = vst.msk [vmem:[#allocation2 + $0x1d8] sm:$0xff] %vm4062_vm8, %v13460_v20  ;;  %v2081_v57 = vpop.f32.mrf.mxu0  ;;  %10999 = vmatmul.mubr.msk.bf16.gmra.mxu1 %vm4062_vm8, %v17281_v28  ;;  %v17285_v38 = vpack.c.bf16 %v17283_v23, %v17284_v24  ;;  %v17339_v20 = vld [vmem:[#allocation29_spill] sm:$0xff] }
 0x233   :  { %v13469_v18 = vsel %vm2573_vm11, %v2079_v56, %v2829_v59  ;;  %vm2576_vm12 = vcmp.ge.f32.partialorder %v2090_v47, 0.0  ;;  %v2832_v8 = vmul.f32 0.2, %v2090_v47  ;;  %v2082_v11 = vadd.f32 %v12997_v9, %v2081_v57  ;;  %v17290_v59 = vld [vmem:[#allocation13_spill] sm:$0xff] }
 0x234   :  { %17282 = vst [vmem:[#allocation11_spill] sm:$0xff] %v13469_v18  ;;  %11002 = vmatprep.mubr.msk.bf16.mxu1 %vm4062_vm8, %v17285_v38  ;;  %5654 = vst.msk [vmem:[#allocation2 + $0x1c8] sm:$0xff] %vm4062_vm8, %v13469_v18  ;;  %v10816_v62 = vpop.f32.mrf.mxu0  ;;  %v17342_v18 = vld [vmem:[#allocation34_spill] sm:$0xff] }
 0x235   :  { %v13478_v7 = vsel %vm2576_vm12, %v2090_v47, %v2832_v8  ;;  %vm2574_vm13 = vcmp.ge.f32.partialorder %v2082_v11, 0.0  ;;  %v2830_v27 = vmul.f32 0.2, %v2082_v11  ;;  %v2103_v56 = vadd.f32 %v12997_v9, %v10816_v62 }
 0x236   :  { %17286 = vst [vmem:[#allocation10_spill] sm:$0xff] %v13478_v7  ;;  %5657 = vst.msk [vmem:[#allocation2 + $0x1e0] sm:$0xff] %vm4062_vm8, %v13478_v7  ;;  %v2094_v57 = vpop.f32.mrf.mxu0 }
 0x237   :  { %v13485_v29 = vsel %vm2574_vm13, %v2082_v11, %v2830_v27  ;;  %vm2579_vm14 = vcmp.ge.f32.partialorder %v2103_v56, 0.0  ;;  %v2835_v28 = vmul.f32 0.2, %v2103_v56  ;;  %v2095_v23 = vadd.f32 %v12997_v9, %v2094_v57  ;;  %v17289_v27 = vld [vmem:[#allocation14_spill] sm:$0xff] }
 0x238   :  { %17287 = vst [vmem:[#allocation16_spill] sm:$0xff] %v13485_v29  ;;  %5655 = vst.msk [vmem:[#allocation2 + $0x1d0] sm:$0xff] %vm4062_vm8, %v13485_v29  ;;  %v10817_v8 = vpop.f32.mrf.mxu0  ;;  %v17291_v57 = vpack.c.bf16 %v17289_v27, %v17290_v59 }
 0x239   :  { %v13492_v24 = vsel %vm2579_vm14, %v2103_v56, %v2835_v28  ;;  %vm2577_vm15 = vcmp.ge.f32.partialorder %v2095_v23, 0.0  ;;  %v2833_v38 = vmul.f32 0.2, %v2095_v23  ;;  %v2106_v62 = vadd.f32 %v12997_v9, %v10817_v8  ;;  %v17293_v28 = vld [vmem:[#allocation20_spill] sm:$0xff] }
 0x23a   :  { %17288 = vst [vmem:[#allocation15_spill] sm:$0xff] %v13492_v24  ;;  %5660 = vst.msk [vmem:[#allocation2 + $0x1f8] sm:$0xff] %vm4062_vm8, %v13492_v24  ;;  %v2097_v11 = vpop.f32.mrf.mxu0  ;;  %11003 = vmatmul.mubr.msk.bf16.gmra.mxu1 %vm4062_vm8, %v17291_v57  ;;  %v17295_v15 = vpack.c.bf16 %v17293_v28, %v17294_v46 }
 0x23b   :  { %v13501_v53 = vsel %vm2577_vm15, %v2095_v23, %v2833_v38  ;;  %vm2580_vm1 = vcmp.ge.f32.partialorder %v2106_v62, 0.0  ;;  %v2836_v47 = vmul.f32 0.2, %v2106_v62  ;;  %v2098_v56 = vadd.f32 %v12997_v9, %v2097_v11  ;;  %v17300_v38 = vld [vmem:[#allocation17_spill] sm:$0xff] }
 0x23c   :  { %17292 = vst [vmem:[#allocation14_spill] sm:$0xff] %v13501_v53  ;;  %11006 = vmatprep.mubr.msk.bf16.mxu1 %vm4062_vm8, %v17295_v15  ;;  %5658 = vst.msk [vmem:[#allocation2 + $0x1e8] sm:$0xff] %vm4062_vm8, %v13501_v53  ;;  %v10820_v8 = vpop.f32.mrf.mxu0  ;;  %v13616_v53 = vld [vmem:[#allocation2 + $0x60] sm:$0xff] }
 0x23d   :  { %v13510_v61 = vsel %vm2580_vm1, %v2106_v62, %v2836_v47  ;;  %vm2578_vm2 = vcmp.ge.f32.partialorder %v2098_v56, 0.0  ;;  %v2834_v59 = vmul.f32 0.2, %v2098_v56  ;;  %v2119_v23 = vadd.f32 %v12997_v9, %v10820_v8 }
 0x23e   :  { %17296 = vst [vmem:[#allocation13_spill] sm:$0xff] %v13510_v61  ;;  %5661 = vst.msk [vmem:[#allocation2 + $0x200] sm:$0xff] %vm4062_vm8, %v13510_v61  ;;  %v2110_v11 = vpop.f32.mrf.mxu0 }
 0x23f   :  { %v13517_v46 = vsel %vm2578_vm2, %v2098_v56, %v2834_v59  ;;  %vm2583_vm3 = vcmp.ge.f32.partialorder %v2119_v23, 0.0  ;;  %v2839_v15 = vmul.f32 0.2, %v2119_v23  ;;  %v2111_v27 = vadd.f32 %v12997_v9, %v2110_v11  ;;  %v17299_v59 = vld [vmem:[#allocation18_spill] sm:$0xff] }
 0x240   :  { %17297 = vst [vmem:[#allocation20_spill] sm:$0xff] %v13517_v46  ;;  %5659 = vst.msk [vmem:[#allocation2 + $0x1f0] sm:$0xff] %vm4062_vm8, %v13517_v46  ;;  %v10821_v62 = vpop.f32.mrf.mxu0  ;;  %v17301_v11 = vpack.c.bf16 %v17299_v59, %v17300_v38 }
 0x241   :  { %v13524_v57 = vsel %vm2583_vm3, %v2119_v23, %v2839_v15  ;;  %vm2581_vm4 = vcmp.ge.f32.partialorder %v2111_v27, 0.0  ;;  %v2837_v28 = vmul.f32 0.2, %v2111_v27  ;;  %v2122_v8 = vadd.f32 %v12997_v9, %v10821_v62  ;;  %v17303_v15 = vld [vmem:[#allocation24_spill] sm:$0xff] }
 0x242   :  { %17298 = vst [vmem:[#allocation19_spill] sm:$0xff] %v13524_v57  ;;  %5664 = vst.msk [vmem:[#allocation2 + $0x218] sm:$0xff] %vm4062_vm8, %v13524_v57  ;;  %v2113_v56 = vpop.f32.mrf.mxu0  ;;  %11007 = vmatmul.mubr.msk.bf16.gmra.mxu1 %vm4062_vm8, %v17301_v11  ;;  %v17305_v30 = vpack.c.bf16 %v17303_v15, %v17304_v49 }
 0x243   :  { %v13533_v21 = vsel %vm2581_vm4, %v2111_v27, %v2837_v28  ;;  %vm2584_vm5 = vcmp.ge.f32.partialorder %v2122_v8, 0.0  ;;  %v2840_v47 = vmul.f32 0.2, %v2122_v8  ;;  %v2114_v23 = vadd.f32 %v12997_v9, %v2113_v56  ;;  %v17311_v28 = vld [vmem:[#allocation21_spill] sm:$0xff] }
 0x244   :  { %17302 = vst [vmem:[#allocation18_spill] sm:$0xff] %v13533_v21  ;;  %11010 = vmatprep.mubr.msk.bf16.mxu1 %vm4062_vm8, %v17305_v30  ;;  %5662 = vst.msk [vmem:[#allocation2 + $0x208] sm:$0xff] %vm4062_vm8, %v13533_v21  ;;  %v10824_v62 = vpop.f32.mrf.mxu0  ;;  %v17325_v21 = vld [vmem:[#allocation25_spill] sm:$0xff] }
 0x245   :  { %v13542_v58 = vsel %vm2584_vm5, %v2122_v8, %v2840_v47  ;;  %vm2582_vm6 = vcmp.ge.f32.partialorder %v2114_v23, 0.0  ;;  %v2838_v38 = vmul.f32 0.2, %v2114_v23  ;;  %v2135_v27 = vadd.f32 %v12997_v9, %v10824_v62  ;;  %v17314_v47 = vld [vmem:[#allocation28_spill] sm:$0xff] }
 0x246   :  { %17306 = vst [vmem:[#allocation17_spill] sm:$0xff] %v13542_v58  ;;  %5665 = vst.msk [vmem:[#allocation2 + $0x220] sm:$0xff] %vm4062_vm8, %v13542_v58  ;;  %v2126_v56 = vpop.f32.mrf.mxu0 }
 0x247   :  { %v13549_v49 = vsel %vm2582_vm6, %v2114_v23, %v2838_v38  ;;  %vm2587_vm7 = vcmp.ge.f32.partialorder %v2135_v27, 0.0  ;;  %v2843_v30 = vmul.f32 0.2, %v2135_v27  ;;  %v2127_v59 = vadd.f32 %v12997_v9, %v2126_v56  ;;  %v17310_v56 = vld [vmem:[#allocation22_spill] sm:$0xff] }
 0x248   :  { %17307 = vst [vmem:[#allocation24_spill] sm:$0xff] %v13549_v49  ;;  %5663 = vst.msk [vmem:[#allocation2 + $0x210] sm:$0xff] %vm4062_vm8, %v13549_v49  ;;  %v10825_v8 = vpop.f32.mrf.mxu0  ;;  %v17312_v6 = vpack.c.bf16 %v17310_v56, %v17311_v28 }
 0x249   :  { %v13556_v11 = vsel %vm2587_vm7, %v2135_v27, %v2843_v30  ;;  %vm2585_vm9 = vcmp.ge.f32.partialorder %v2127_v59, 0.0  ;;  %v2841_v15 = vmul.f32 0.2, %v2127_v59  ;;  %v2138_v62 = vadd.f32 %v12997_v9, %v10825_v8 }
 0x24a   :  { %17308 = vst [vmem:[#allocation23_spill] sm:$0xff] %v13556_v11  ;;  %5668 = vst.msk [vmem:[#allocation2 + $0x238] sm:$0xff] %vm4062_vm8, %v13556_v11  ;;  %v2129_v23 = vpop.f32.mrf.mxu0  ;;  %v13561_v38 = vpop.f32.mrf.mxu1  ;;  %11011 = vmatmul.mubr.msk.bf16.gmra.mxu1 %vm4062_vm8, %v17312_v6  ;;  %v17316_v8 = vpack.c.bf16 %v17314_v47, %v17315_v50 }
 0x24b   :  { %17309 = vst [vmem:[#allocation145_spill] sm:$0xff] %v13561_v38  ;;  %v13567_v13 = vsel %vm2585_vm9, %v2127_v59, %v2841_v15  ;;  %vm2588_vm10 = vcmp.ge.f32.partialorder %v2138_v62, 0.0  ;;  %v2844_v27 = vmul.f32 0.2, %v2138_v62  ;;  %v2130_v30 = vadd.f32 %v12997_v9, %v2129_v23  ;;  %v13596_v15 = vld [vmem:[#allocation2 + $0x58] sm:$0xff] }
 0x24c   :  { %17313 = vst [vmem:[#allocation22_spill] sm:$0xff] %v13567_v13  ;;  %11014 = vmatprep.mubr.msk.bf16.mxu1 %vm4062_vm8, %v17316_v8  ;;  %5666 = vst.msk [vmem:[#allocation2 + $0x228] sm:$0xff] %vm4062_vm8, %v13567_v13  ;;  %v10828_v25 = vpop.f32.mrf.mxu0  ;;  %v13576_v57 = vpop.f32.mrf.mxu1  ;;  %v17328_v13 = vld [vmem:[#allocation31_spill] sm:$0xff] }
 0x24d   :  { %17317 = vst [vmem:[#allocation21_spill] sm:$0xff] %v13576_v57  ;;  %v13578_v28 = vsel %vm2588_vm10, %v2138_v62, %v2844_v27  ;;  %vm2586_vm11 = vcmp.ge.f32.partialorder %v2130_v30, 0.0  ;;  %v2842_v6 = vmul.f32 0.2, %v2130_v30  ;;  %v2151_v59 = vadd.f32 %v12997_v9, %v10828_v25  ;;  %v17327_v62 = vld [vmem:[#allocation32_spill] sm:$0xff]  ;;  %v14138_v57 = vld [vmem:[#allocation2 + $0x148] sm:$0xff] }
 0x24e   :  { %17318 = vst [vmem:[#allocation28_spill] sm:$0xff] %v13578_v28  ;;  %v2142_v23 = vpop.f32.mrf.mxu0  ;;  %v13583_v56 = vpop.f32.mrf.mxu1  ;;  %v17324_v28 = vld [vmem:[#allocation26_spill] sm:$0xff]  ;;  %17487 = vst [vmem:[#allocation203_spill] sm:$0xff] %v14138_v57  ;;  %v17493_v57 = vld [vmem:[#allocation69_spill] sm:$0xff] }
 0x24f   :  { %17319 = vst [vmem:[#allocation27_spill] sm:$0xff] %v13583_v56  ;;  %v13585_v50 = vsel %vm2586_vm11, %v2130_v30, %v2842_v6  ;;  %vm2591_vm12 = vcmp.ge.f32.partialorder %v2151_v59, 0.0  ;;  %v2847_v47 = vmul.f32 0.2, %v2151_v59  ;;  %v2143_v8 = vadd.f32 %v12997_v9, %v2142_v23 }
 0x250   :  { %17320 = vst [vmem:[#allocation146_spill] sm:$0xff] %v13585_v50  ;;  %5667 = vst.msk [vmem:[#allocation2 + $0x230] sm:$0xff] %vm4062_vm8, %v13585_v50  ;;  %v10829_v27 = vpop.f32.mrf.mxu0  ;;  %v13592_v25 = vpop.f32.mrf.mxu1  ;;  %v17326_v49 = vpack.c.bf16 %v17324_v28, %v17325_v21 }
 0x251   :  { %17321 = vst [vmem:[#allocation147_spill] sm:$0xff] %v13592_v25  ;;  %v13594_v58 = vsel %vm2591_vm12, %v2151_v59, %v2847_v47  ;;  %v2154_v30 = vadd.f32 %v12997_v9, %v10829_v27  ;;  %v2845_v6 = vmul.f32 0.2, %v2143_v8  ;;  %vm2589_vm13 = vcmp.ge.f32.partialorder %v2143_v8, 0.0 }
 0x252   :  { %17322 = vst [vmem:[#allocation148_spill] sm:$0xff] %v13594_v58  ;;  %6716 = vst.msk [vmem:[#allocation2 + $0x58] sm:$0xff] %vm4062_vm8, %v13594_v58  ;;  %v2145_v23 = vpop.f32.mrf.mxu0  ;;  %v13601_v11 = vpop.f32.mrf.mxu1  ;;  %11015 = vmatmul.mubr.msk.bf16.gmra.mxu1 %vm4062_vm8, %v17326_v49  ;;  %v17329_v27 = vpack.c.bf16 %v17327_v62, %v17328_v13  ;;  %v13641_v58 = vld [vmem:[#allocation2 + $0x78] sm:$0xff] }
 0x253   :  { %17323 = vst [vmem:[#allocation149_spill] sm:$0xff] %v13601_v11  ;;  %vm2592_vm14 = vcmp.ge.f32.partialorder %v2154_v30, 0.0  ;;  %v2848_v59 = vmul.f32 0.2, %v2154_v30  ;;  %v2146_v47 = vadd.f32 %v12997_v9, %v2145_v23  ;;  %v13619_v28 = vsel %vm2589_vm13, %v2143_v8, %v2845_v6 }
 0x254   :  { %11018 = vmatprep.mubr.msk.bf16.mxu1 %vm4062_vm8, %v17329_v27  ;;  %v10832_v50 = vpop.f32.mrf.mxu0  ;;  %v13612_v24 = vpop.f32.mrf.mxu1  ;;  %17332 = vst [vmem:[#allocation32_spill] sm:$0xff] %v13619_v28 }
 0x255   :  { %17330 = vst [vmem:[#allocation26_spill] sm:$0xff] %v13612_v24  ;;  %v13614_v61 = vsel %vm2592_vm14, %v2154_v30, %v2848_v59  ;;  %vm2590_vm15 = vcmp.ge.f32.partialorder %v2146_v47, 0.0  ;;  %v2846_v21 = vmul.f32 0.2, %v2146_v47  ;;  %v2167_v49 = vadd.f32 %v12997_v9, %v10832_v50  ;;  %v13632_v59 = vld [vmem:[%s16854_s2] ss:$0 sm:$0xff] }
 0x256   :  { %17331 = vst [vmem:[#allocation25_spill] sm:$0xff] %v13614_v61  ;;  %6717 = vst.msk [vmem:[#allocation2 + $0x60] sm:$0xff] %vm4062_vm8, %v13614_v61  ;;  %v2158_v62 = vpop.f32.mrf.mxu0  ;;  %v13625_v23 = vpop.f32.mrf.mxu1  ;;  %v17341_v50 = vld [vmem:[#allocation36_spill] sm:$0xff] }
 0x257   :  { %17333 = vst [vmem:[#allocation31_spill] sm:$0xff] %v13625_v23  ;;  %v13627_v27 = vsel %vm2590_vm15, %v2146_v47, %v2846_v21  ;;  %vm2595_vm1 = vcmp.ge.f32.partialorder %v2167_v49, 0.0  ;;  %v2851_v30 = vmul.f32 0.2, %v2167_v49  ;;  %v2159_v9 = vadd.f32 %v13632_v59, %v2158_v62  ;;  %v17338_v62 = vld [vmem:[#allocation30_spill] sm:$0xff] }
 0x258   :  { %17334 = vst [vmem:[#allocation150_spill] sm:$0xff] %v13627_v27  ;;  %v10833_v8 = vpop.f32.mrf.mxu0  ;;  %v13637_v6 = vpop.f32.mrf.mxu1  ;;  %v17340_v7 = vpack.c.bf16 %v17338_v62, %v17339_v20  ;;  %6715 = vst.msk [vmem:[#allocation2 + $0x50] sm:$0xff] %vm4062_vm8, %v13627_v27  ;;  %v17370_v27 = vld [vmem:[#allocation42_spill] sm:$0xff] }
 0x259   :  { %17335 = vst [vmem:[#allocation151_spill] sm:$0xff] %v13637_v6  ;;  %v13639_v13 = vsel %vm2595_vm1, %v2167_v49, %v2851_v30  ;;  %v2170_v47 = vadd.f32 %v13632_v59, %v10833_v8  ;;  %v2849_v21 = vmul.f32 0.2, %v2159_v9  ;;  %vm2593_vm2 = vcmp.ge.f32.partialorder %v2159_v9, 0.0 }
 0x25a   :  { %17336 = vst [vmem:[#allocation152_spill] sm:$0xff] %v13639_v13  ;;  %6720 = vst.msk [vmem:[#allocation2 + $0x78] sm:$0xff] %vm4062_vm8, %v13639_v13  ;;  %v2161_v61 = vpop.f32.mrf.mxu0  ;;  %v13646_v46 = vpop.f32.mrf.mxu1  ;;  %11019 = vmatmul.mubr.msk.bf16.gmra.mxu1 %vm4062_vm8, %v17340_v7  ;;  %v17343_v8 = vpack.c.bf16 %v17341_v50, %v17342_v18 }
 0x25b   :  { %17337 = vst [vmem:[#allocation153_spill] sm:$0xff] %v13646_v46  ;;  %vm2596_vm3 = vcmp.ge.f32.partialorder %v2170_v47, 0.0  ;;  %v2852_v49 = vmul.f32 0.2, %v2170_v47  ;;  %v2162_v30 = vadd.f32 %v13632_v59, %v2161_v61  ;;  %v13664_v62 = vsel %vm2593_vm2, %v2159_v9, %v2849_v21 }
 0x25c   :  { %11024 = vmatprep.mubr.msk.bf16.mxu1 %vm4062_vm8, %v17343_v8  ;;  %v10836_v29 = vpop.f32.mrf.mxu0  ;;  %v13657_v22 = vpop.f32.mrf.mxu1  ;;  %17346 = vst [vmem:[#allocation36_spill] sm:$0xff] %v13664_v62  ;;  %6718 = vst.msk [vmem:[#allocation2 + $0x68] sm:$0xff] %vm4062_vm8, %v13664_v62  ;;  %v17380_v62 = vld [vmem:[#allocation43_spill] sm:$0xff] }
 0x25d   :  { %17344 = vst [vmem:[#allocation30_spill] sm:$0xff] %v13657_v22  ;;  %v13659_v3 = vsel %vm2596_vm3, %v2170_v47, %v2852_v49  ;;  %vm2594_vm4 = vcmp.ge.f32.partialorder %v2162_v30, 0.0  ;;  %v2850_v20 = vmul.f32 0.2, %v2162_v30  ;;  %v2183_v7 = vadd.f32 %v13632_v59, %v10836_v29  ;;  %v17355_v29 = vld [vmem:[#allocation40_spill] sm:$0xff] }
 0x25e   :  { %17345 = vst [vmem:[#allocation29_spill] sm:$0xff] %v13659_v3  ;;  %6721 = vst.msk [vmem:[#allocation2 + $0x80] sm:$0xff] %vm4062_vm8, %v13659_v3  ;;  %v2174_v18 = vpop.f32.mrf.mxu0  ;;  %v13670_v50 = vpop.f32.mrf.mxu1  ;;  %v17353_v3 = vld [vmem:[#allocation33_spill] sm:$0xff]  ;;  %v17382_v37 = vpack.c.bf16 %v17380_v62, %v17381_v16 }
 0x25f   :  { %17347 = vst [vmem:[#allocation34_spill] sm:$0xff] %v13670_v50  ;;  %v13672_v8 = vsel %vm2594_vm4, %v2162_v30, %v2850_v20  ;;  %vm2599_vm5 = vcmp.ge.f32.partialorder %v2183_v7, 0.0  ;;  %v2855_v47 = vmul.f32 0.2, %v2183_v7  ;;  %v2175_v49 = vadd.f32 %v13632_v59, %v2174_v18  ;;  %v17352_v18 = vld [vmem:[#allocation35_spill] sm:$0xff] }
 0x260   :  { %17348 = vst [vmem:[#allocation154_spill] sm:$0xff] %v13672_v8  ;;  %v10837_v9 = vpop.f32.mrf.mxu0  ;;  %v13677_v21 = vpop.f32.mrf.mxu1  ;;  %v17354_v44 = vpack.c.bf16 %v17352_v18, %v17353_v3  ;;  %v13702_v3 = vld [vmem:[#allocation2 + $0xa0] sm:$0xff] }
 0x261   :  { %17349 = vst [vmem:[#allocation155_spill] sm:$0xff] %v13677_v21  ;;  %v13679_v41 = vsel %vm2599_vm5, %v2183_v7, %v2855_v47  ;;  %v2186_v61 = vadd.f32 %v13632_v59, %v10837_v9  ;;  %v2853_v30 = vmul.f32 0.2, %v2175_v49  ;;  %vm2597_vm6 = vcmp.ge.f32.partialorder %v2175_v49, 0.0 }
 0x262   :  { %17350 = vst [vmem:[#allocation156_spill] sm:$0xff] %v13679_v41  ;;  %6724 = vst.msk [vmem:[#allocation2 + $0x98] sm:$0xff] %vm4062_vm8, %v13679_v41  ;;  %v2177_v20 = vpop.f32.mrf.mxu0  ;;  %v13686_v13 = vpop.f32.mrf.mxu1  ;;  %11025 = vmatmul.mubr.msk.bf16.vlgmr.msra.gmra.mxu1 %vm4062_vm8, %v17354_v44  ;;  %v17357_v9 = vpack.c.bf16 %v17355_v29, %v17356_v54  ;;  %v13730_v54 = vld [vmem:[#allocation2 + $0xb8] sm:$0xff] }
 0x263   :  { %17351 = vst [vmem:[#allocation157_spill] sm:$0xff] %v13686_v13  ;;  %vm2600_vm7 = vcmp.ge.f32.partialorder %v2186_v61, 0.0  ;;  %v2856_v7 = vmul.f32 0.2, %v2186_v61  ;;  %v2178_v47 = vadd.f32 %v13632_v59, %v2177_v20  ;;  %11089 = vmatpush3.bf16.msra.mxu1 %v13415_v36  ;;  %v13705_v39 = vsel %vm2597_vm6, %v2175_v49, %v2853_v30 }
 0x264   :  { %11028 = vmatprep.mubr.msk.bf16.mxu1 %vm4062_vm8, %v17357_v9  ;;  %v10840_v4 = vpop.f32.mrf.mxu0  ;;  %v13698_v26 = vpop.f32.mrf.mxu1  ;;  %17360 = vst [vmem:[#allocation40_spill] sm:$0xff] %v13705_v39  ;;  %v13716_v9 = vld [vmem:[#allocation2 + $0x48] sm:$0xff]  ;;  %6722 = vst.msk [vmem:[#allocation2 + $0x88] sm:$0xff] %vm4062_vm8, %v13705_v39  ;;  %v17395_v39 = vld [vmem:[#allocation47_spill] sm:$0xff] }
 0x265   :  { %17358 = vst [vmem:[#allocation35_spill] sm:$0xff] %v13698_v26  ;;  %v13700_v31 = vsel %vm2600_vm7, %v2186_v61, %v2856_v7  ;;  %vm2598_vm9 = vcmp.ge.f32.partialorder %v2178_v47, 0.0  ;;  %v2854_v44 = vmul.f32 0.2, %v2178_v47  ;;  %v2199_v18 = vadd.f32 %v13632_v59, %v10840_v4  ;;  %6714 = vst.msk [vmem:[#allocation2 + $0x48] sm:$0xff] %vm4062_vm8, %v13619_v28  ;;  %v17366_v28 = vld [vmem:[#allocation39_spill] sm:$0xff] }
 0x266   :  { %17359 = vst [vmem:[#allocation33_spill] sm:$0xff] %v13700_v31  ;;  %6725 = vst.msk [vmem:[#allocation2 + $0xa0] sm:$0xff] %vm4062_vm8, %v13700_v31  ;;  %v2190_v36 = vpop.f32.mrf.mxu0  ;;  %v13711_v29 = vpop.f32.mrf.mxu1  ;;  %v17368_v48 = vpack.c.bf16 %v17366_v28, %v17367_v34  ;;  %v13754_v34 = vld [vmem:[#allocation2 + $0xc0] sm:$0xff]  ;;  %v17397_v1 = vpack.c.bf16 %v17395_v39, %v17396_v45 }
 0x267   :  { %17361 = vst [vmem:[#allocation38_spill] sm:$0xff] %v13711_v29  ;;  %v13713_v20 = vsel %vm2598_vm9, %v2178_v47, %v2854_v44  ;;  %vm2603_vm10 = vcmp.ge.f32.partialorder %v2199_v18, 0.0  ;;  %v2859_v61 = vmul.f32 0.2, %v2199_v18  ;;  %v2191_v7 = vadd.f32 %v13632_v59, %v2190_v36  ;;  %v17369_v47 = vld [vmem:[#allocation44_spill] sm:$0xff] }
 0x268   :  { %17362 = vst [vmem:[#allocation158_spill] sm:$0xff] %v13713_v20  ;;  %v10841_v49 = vpop.f32.mrf.mxu0  ;;  %v13720_v30 = vpop.f32.mrf.mxu1  ;;  %v17371_v63 = vpack.c.bf16 %v17369_v47, %v17370_v27 }
 0x269   :  { %17363 = vst [vmem:[#allocation159_spill] sm:$0xff] %v13720_v30  ;;  %v13728_v44 = vsel %vm2603_vm10, %v2199_v18, %v2859_v61  ;;  %v2202_v36 = vadd.f32 %v13632_v59, %v10841_v49  ;;  %v2857_v4 = vmul.f32 0.2, %v2191_v7  ;;  %vm2601_vm11 = vcmp.ge.f32.partialorder %v2191_v7, 0.0 }
 0x26a   :  { %17364 = vst [vmem:[#allocation160_spill] sm:$0xff] %v13728_v44  ;;  %6728 = vst.msk [vmem:[#allocation2 + $0xb8] sm:$0xff] %vm4062_vm8, %v13728_v44  ;;  %v2193_v41 = vpop.f32.mrf.mxu0  ;;  %v13737_v31 = vpop.f32.mrf.mxu1  ;;  %11029 = vmatmul.mubr.msk.bf16.gmra.mxu1 %vm4062_vm8, %v17368_v48 }
 0x26b   :  { %17365 = vst [vmem:[#allocation161_spill] sm:$0xff] %v13737_v31  ;;  %vm2604_vm12 = vcmp.ge.f32.partialorder %v2202_v36, 0.0  ;;  %v2860_v61 = vmul.f32 0.2, %v2202_v36  ;;  %v2194_v49 = vadd.f32 %v13632_v59, %v2193_v41  ;;  %11032 = vmatprep.mubr.msk.bf16.mxu1 %vm4062_vm8, %v17371_v63  ;;  %v13757_v18 = vsel %vm2601_vm11, %v2191_v7, %v2857_v4 }
 0x26c   :  { %v10844_v10 = vpop.f32.mrf.mxu0  ;;  %v13750_v43 = vpop.f32.mrf.mxu1  ;;  %17374 = vst [vmem:[#allocation44_spill] sm:$0xff] %v13757_v18 }
 0x26d   :  { %17372 = vst [vmem:[#allocation39_spill] sm:$0xff] %v13750_v43  ;;  %v13752_v0 = vsel %vm2604_vm12, %v2202_v36, %v2860_v61  ;;  %vm2602_vm13 = vcmp.ge.f32.partialorder %v2194_v49, 0.0  ;;  %v2858_v48 = vmul.f32 0.2, %v2194_v49  ;;  %v2215_v28 = vadd.f32 %v13632_v59, %v10844_v10  ;;  %v13770_v10 = vld [vmem:[#allocation2 + $0x70] sm:$0xff] }
 0x26e   :  { %17373 = vst [vmem:[#allocation37_spill] sm:$0xff] %v13752_v0  ;;  %6729 = vst.msk [vmem:[#allocation2 + $0xc0] sm:$0xff] %vm4062_vm8, %v13752_v0  ;;  %v2206_v63 = vpop.f32.mrf.mxu0  ;;  %v13763_v27 = vpop.f32.mrf.mxu1 }
 0x26f   :  { %17375 = vst [vmem:[#allocation42_spill] sm:$0xff] %v13763_v27  ;;  %v13765_v47 = vsel %vm2602_vm13, %v2194_v49, %v2858_v48  ;;  %vm2607_vm14 = vcmp.ge.f32.partialorder %v2215_v28, 0.0  ;;  %v2863_v36 = vmul.f32 0.2, %v2215_v28  ;;  %v2207_v61 = vadd.f32 %v13632_v59, %v2206_v63  ;;  %6719 = vst.msk [vmem:[#allocation2 + $0x70] sm:$0xff] %vm4062_vm8, %v13672_v8  ;;  %v13786_v63 = vld [vmem:[#allocation2 + $0xd8] sm:$0xff] }
 0x270   :  { %17376 = vst [vmem:[#allocation162_spill] sm:$0xff] %v13765_v47  ;;  %v10845_v4 = vpop.f32.mrf.mxu0  ;;  %v13774_v55 = vpop.f32.mrf.mxu1  ;;  %v17383_v49 = vld [vmem:[#allocation48_spill] sm:$0xff]  ;;  %v17384_v8 = vld [vmem:[#allocation46_spill] sm:$0xff] }
 0x271   :  { %17377 = vst [vmem:[#allocation163_spill] sm:$0xff] %v13774_v55  ;;  %v13784_v48 = vsel %vm2607_vm14, %v2215_v28, %v2863_v36  ;;  %v2218_v7 = vadd.f32 %v13632_v59, %v10845_v4  ;;  %v2861_v44 = vmul.f32 0.2, %v2207_v61  ;;  %vm2605_vm15 = vcmp.ge.f32.partialorder %v2207_v61, 0.0 }
 0x272   :  { %17378 = vst [vmem:[#allocation164_spill] sm:$0xff] %v13784_v48  ;;  %6732 = vst.msk [vmem:[#allocation2 + $0xd8] sm:$0xff] %vm4062_vm8, %v13784_v48  ;;  %v2209_v41 = vpop.f32.mrf.mxu0  ;;  %v13791_v0 = vpop.f32.mrf.mxu1  ;;  %11033 = vmatmul.mubr.msk.bf16.gmra.mxu1 %vm4062_vm8, %v17382_v37  ;;  %v17385_v4 = vpack.c.bf16 %v17383_v49, %v17384_v8 }
 0x273   :  { %17379 = vst [vmem:[#allocation165_spill] sm:$0xff] %v13791_v0  ;;  %vm2608_vm1 = vcmp.ge.f32.partialorder %v2218_v7, 0.0  ;;  %v2864_v28 = vmul.f32 0.2, %v2218_v7  ;;  %v2210_v36 = vadd.f32 %v13632_v59, %v2209_v41  ;;  %v13809_v62 = vsel %vm2605_vm15, %v2207_v61, %v2861_v44 }
 0x274   :  { %11036 = vmatprep.mubr.msk.bf16.mxu1 %vm4062_vm8, %v17385_v4  ;;  %v10848_v42 = vpop.f32.mrf.mxu0  ;;  %v13802_v40 = vpop.f32.mrf.mxu1  ;;  %17388 = vst [vmem:[#allocation48_spill] sm:$0xff] %v13809_v62 }
 0x275   :  { %17386 = vst [vmem:[#allocation43_spill] sm:$0xff] %v13802_v40  ;;  %v13804_v12 = vsel %vm2608_vm1, %v2218_v7, %v2864_v28  ;;  %vm2606_vm2 = vcmp.ge.f32.partialorder %v2210_v36, 0.0  ;;  %v2862_v16 = vmul.f32 0.2, %v2210_v36  ;;  %v2231_v37 = vadd.f32 %v13632_v59, %v10848_v42  ;;  %v13822_v42 = vld [vmem:[#allocation2 + $0x90] sm:$0xff] }
 0x276   :  { %17387 = vst [vmem:[#allocation41_spill] sm:$0xff] %v13804_v12  ;;  %6733 = vst.msk [vmem:[#allocation2 + $0xe0] sm:$0xff] %vm4062_vm8, %v13804_v12  ;;  %v2222_v41 = vpop.f32.mrf.mxu0  ;;  %v13815_v49 = vpop.f32.mrf.mxu1 }
 0x277   :  { %17389 = vst [vmem:[#allocation46_spill] sm:$0xff] %v13815_v49  ;;  %v13817_v4 = vsel %vm2606_vm2, %v2210_v36, %v2862_v16  ;;  %vm2611_vm3 = vcmp.ge.f32.partialorder %v2231_v37, 0.0  ;;  %v2867_v7 = vmul.f32 0.2, %v2231_v37  ;;  %v2223_v28 = vadd.f32 %v13632_v59, %v2222_v41  ;;  %6723 = vst.msk [vmem:[#allocation2 + $0x90] sm:$0xff] %vm4062_vm8, %v13713_v20  ;;  %v13838_v41 = vld [vmem:[#allocation2 + $0xf8] sm:$0xff] }
 0x278   :  { %17390 = vst [vmem:[#allocation166_spill] sm:$0xff] %v13817_v4  ;;  %v10849_v61 = vpop.f32.mrf.mxu0  ;;  %v13826_v19 = vpop.f32.mrf.mxu1  ;;  %17393 = vst [vmem:[#allocation169_spill] sm:$0xff] %v13838_v41  ;;  %v17398_v36 = vld [vmem:[#allocation52_spill] sm:$0xff]  ;;  %v17399_v20 = vld [vmem:[#allocation50_spill] sm:$0xff] }
 0x279   :  { %17391 = vst [vmem:[#allocation167_spill] sm:$0xff] %v13826_v19  ;;  %v13836_v16 = vsel %vm2611_vm3, %v2231_v37, %v2867_v7  ;;  %v2234_v44 = vadd.f32 %v13632_v59, %v10849_v61  ;;  %v2865_v48 = vmul.f32 0.2, %v2223_v28  ;;  %vm2609_vm4 = vcmp.ge.f32.partialorder %v2223_v28, 0.0 }
 0x27a   :  { %17392 = vst [vmem:[#allocation168_spill] sm:$0xff] %v13836_v16  ;;  %6736 = vst.msk [vmem:[#allocation2 + $0xf8] sm:$0xff] %vm4062_vm8, %v13836_v16  ;;  %v2225_v8 = vpop.f32.mrf.mxu0  ;;  %v13843_v12 = vpop.f32.mrf.mxu1  ;;  %11037 = vmatmul.mubr.msk.bf16.gmra.mxu1 %vm4062_vm8, %v17397_v1  ;;  %v17400_v61 = vpack.c.bf16 %v17398_v36, %v17399_v20 }
 0x27b   :  { %17394 = vst [vmem:[#allocation170_spill] sm:$0xff] %v13843_v12  ;;  %vm2612_vm5 = vcmp.ge.f32.partialorder %v2234_v44, 0.0  ;;  %v2868_v37 = vmul.f32 0.2, %v2234_v44  ;;  %v2226_v7 = vadd.f32 %v13632_v59, %v2225_v8  ;;  %v13858_v12 = vld [vmem:[#allocation2 + $0x100] sm:$0xff]  ;;  %v13861_v39 = vsel %vm2609_vm4, %v2223_v28, %v2865_v48 }
 0x27c   :  { %11040 = vmatprep.mubr.msk.bf16.mxu1 %vm4062_vm8, %v17400_v61  ;;  %v10852_v52 = vpop.f32.mrf.mxu0  ;;  %v13854_v19 = vpop.f32.mrf.mxu1  ;;  %17403 = vst [vmem:[#allocation52_spill] sm:$0xff] %v13861_v39 }
 0x27d   :  { %17401 = vst [vmem:[#allocation47_spill] sm:$0xff] %v13854_v19  ;;  %v13856_v49 = vsel %vm2612_vm5, %v2234_v44, %v2868_v37  ;;  %vm2610_vm6 = vcmp.ge.f32.partialorder %v2226_v7, 0.0  ;;  %v2866_v45 = vmul.f32 0.2, %v2226_v7  ;;  %v2247_v1 = vadd.f32 %v13632_v59, %v10852_v52  ;;  %v13872_v19 = vld [vmem:[#allocation2 + $0xa8] sm:$0xff]  ;;  %v13874_v52 = vld [vmem:[#allocation2 + $0xb0] sm:$0xff] }
 0x27e   :  { %17402 = vst [vmem:[#allocation45_spill] sm:$0xff] %v13856_v49  ;;  %6737 = vst.msk [vmem:[#allocation2 + $0x100] sm:$0xff] %vm4062_vm8, %v13856_v49  ;;  %v2238_v8 = vpop.f32.mrf.mxu0  ;;  %v13867_v36 = vpop.f32.mrf.mxu1 }
 0x27f   :  { %17404 = vst [vmem:[#allocation50_spill] sm:$0xff] %v13867_v36  ;;  %v13869_v61 = vsel %vm2610_vm6, %v2226_v7, %v2866_v45  ;;  %vm2615_vm7 = vcmp.ge.f32.partialorder %v2247_v1, 0.0  ;;  %v2871_v44 = vmul.f32 0.2, %v2247_v1  ;;  %v2239_v37 = vadd.f32 %v13632_v59, %v2238_v8  ;;  %6726 = vst.msk [vmem:[#allocation2 + $0xa8] sm:$0xff] %vm4062_vm8, %v13757_v18  ;;  %v13890_v8 = vld [vmem:[#allocation2 + $0x118] sm:$0xff] }
 0x280   :  { %17405 = vst [vmem:[#allocation171_spill] sm:$0xff] %v13869_v61  ;;  %v10853_v28 = vpop.f32.mrf.mxu0  ;;  %v13878_v33 = vpop.f32.mrf.mxu1  ;;  %6727 = vst.msk [vmem:[#allocation2 + $0xb0] sm:$0xff] %vm4062_vm8, %v13765_v47  ;;  %v17410_v18 = vld [vmem:[#allocation51_spill] sm:$0xff]  ;;  %v17413_v7 = vld [vmem:[#allocation56_spill] sm:$0xff] }
 0x281   :  { %17406 = vst [vmem:[#allocation172_spill] sm:$0xff] %v13878_v33  ;;  %v13888_v45 = vsel %vm2615_vm7, %v2247_v1, %v2871_v44  ;;  %17408 = vst [vmem:[#allocation174_spill] sm:$0xff] %v13890_v8  ;;  %v2250_v48 = vadd.f32 %v13632_v59, %v10853_v28  ;;  %v2869_v16 = vmul.f32 0.2, %v2239_v37  ;;  %v17411_v33 = vld [vmem:[#allocation49_spill] sm:$0xff]  ;;  %vm2613_vm9 = vcmp.ge.f32.partialorder %v2239_v37, 0.0 }
 0x282   :  { %17407 = vst [vmem:[#allocation173_spill] sm:$0xff] %v13888_v45  ;;  %6740 = vst.msk [vmem:[#allocation2 + $0x118] sm:$0xff] %vm4062_vm8, %v13888_v45  ;;  %v2241_v20 = vpop.f32.mrf.mxu0  ;;  %v13895_v49 = vpop.f32.mrf.mxu1  ;;  %v17412_v36 = vpack.c.bf16 %v17410_v18, %v17411_v33  ;;  %v17414_v47 = vld [vmem:[#allocation54_spill] sm:$0xff] }
 0x283   :  { %17409 = vst [vmem:[#allocation175_spill] sm:$0xff] %v13895_v49  ;;  %vm2616_vm10 = vcmp.ge.f32.partialorder %v2250_v48, 0.0  ;;  %v2872_v1 = vmul.f32 0.2, %v2250_v48  ;;  %v2242_v44 = vadd.f32 %v13632_v59, %v2241_v20  ;;  %v17415_v28 = vpack.c.bf16 %v17413_v7, %v17414_v47  ;;  %v13910_v49 = vld [vmem:[#allocation2 + $0x120] sm:$0xff]  ;;  %v14242_v8 = vld [vmem:[#allocation2 + $0x188] sm:$0xff] }
 0x284   :  { %11041 = vmatmul.mubr.msk.bf16.gmra.mxu1 %vm4062_vm8, %v17412_v36  ;;  %v10856_v40 = vpop.f32.mrf.mxu0  ;;  %v13906_v0 = vpop.f32.mrf.mxu1  ;;  %17418 = vst [vmem:[#allocation56_spill] sm:$0xff] %v13910_v49  ;;  %v13913_v36 = vsel %vm2613_vm9, %v2239_v37, %v2869_v16  ;;  %17517 = vst [vmem:[#allocation213_spill] sm:$0xff] %v14242_v8  ;;  %v17523_v8 = vld [vmem:[#allocation77_spill] sm:$0xff] }
 0x285   :  { %11044 = vmatprep.mubr.msk.bf16.mxu1 %vm4062_vm8, %v17415_v28  ;;  %17416 = vst [vmem:[#allocation51_spill] sm:$0xff] %v13906_v0  ;;  %v13908_v55 = vsel %vm2616_vm10, %v2250_v48, %v2872_v1  ;;  %vm2614_vm11 = vcmp.ge.f32.partialorder %v2242_v44, 0.0  ;;  %v2870_v33 = vmul.f32 0.2, %v2242_v44  ;;  %v2263_v18 = vadd.f32 %v13632_v59, %v10856_v40  ;;  %17419 = vst [vmem:[#allocation54_spill] sm:$0xff] %v13913_v36  ;;  %v13924_v0 = vld [vmem:[#allocation2 + $0xc8] sm:$0xff] }
 0x286   :  { %17417 = vst [vmem:[#allocation49_spill] sm:$0xff] %v13908_v55  ;;  %6741 = vst.msk [vmem:[#allocation2 + $0x120] sm:$0xff] %vm4062_vm8, %v13908_v55  ;;  %v2254_v20 = vpop.f32.mrf.mxu0  ;;  %v13919_v7 = vpop.f32.mrf.mxu1  ;;  %v13926_v40 = vld [vmem:[#allocation2 + $0xd0] sm:$0xff] }
 0x287   :  { %17420 = vst [vmem:[#allocation176_spill] sm:$0xff] %v13919_v7  ;;  %v13921_v28 = vsel %vm2614_vm11, %v2242_v44, %v2870_v33  ;;  %vm2619_vm12 = vcmp.ge.f32.partialorder %v2263_v18, 0.0  ;;  %v2875_v48 = vmul.f32 0.2, %v2263_v18  ;;  %v2255_v1 = vadd.f32 %v13632_v59, %v2254_v20  ;;  %6730 = vst.msk [vmem:[#allocation2 + $0xc8] sm:$0xff] %vm4062_vm8, %v13809_v62  ;;  %v13942_v20 = vld [vmem:[#allocation2 + $0x138] sm:$0xff] }
 0x288   :  { %17421 = vst [vmem:[#allocation177_spill] sm:$0xff] %v13921_v28  ;;  %v10857_v37 = vpop.f32.mrf.mxu0  ;;  %v13930_v27 = vpop.f32.mrf.mxu1  ;;  %6731 = vst.msk [vmem:[#allocation2 + $0xd0] sm:$0xff] %vm4062_vm8, %v13817_v4  ;;  %v17426_v62 = vld [vmem:[#allocation55_spill] sm:$0xff]  ;;  %v17429_v44 = vld [vmem:[#allocation60_spill] sm:$0xff] }
 0x289   :  { %17422 = vst [vmem:[#allocation178_spill] sm:$0xff] %v13930_v27  ;;  %v13940_v33 = vsel %vm2619_vm12, %v2263_v18, %v2875_v48  ;;  %17424 = vst [vmem:[#allocation180_spill] sm:$0xff] %v13942_v20  ;;  %v2266_v16 = vadd.f32 %v13632_v59, %v10857_v37  ;;  %v2873_v45 = vmul.f32 0.2, %v2255_v1  ;;  %v17427_v27 = vld [vmem:[#allocation53_spill] sm:$0xff]  ;;  %vm2617_vm13 = vcmp.ge.f32.partialorder %v2255_v1, 0.0 }
 0x28a   :  { %17423 = vst [vmem:[#allocation179_spill] sm:$0xff] %v13940_v33  ;;  %6744 = vst.msk [vmem:[#allocation2 + $0x138] sm:$0xff] %vm4062_vm8, %v13940_v33  ;;  %v2257_v47 = vpop.f32.mrf.mxu0  ;;  %v13947_v55 = vpop.f32.mrf.mxu1  ;;  %v17428_v7 = vpack.c.bf16 %v17426_v62, %v17427_v27  ;;  %v17430_v4 = vld [vmem:[#allocation58_spill] sm:$0xff] }
 0x28b   :  { %17425 = vst [vmem:[#allocation181_spill] sm:$0xff] %v13947_v55  ;;  %vm2620_vm14 = vcmp.ge.f32.partialorder %v2266_v16, 0.0  ;;  %v2876_v18 = vmul.f32 0.2, %v2266_v16  ;;  %v2258_v48 = vadd.f32 %v13632_v59, %v2257_v47  ;;  %v17431_v37 = vpack.c.bf16 %v17429_v44, %v17430_v4  ;;  %v13962_v55 = vld [vmem:[#allocation2 + $0x140] sm:$0xff] }
 0x28c   :  { %11045 = vmatmul.mubr.msk.bf16.gmra.mxu1 %vm4062_vm8, %v17428_v7  ;;  %v10860_v60 = vpop.f32.mrf.mxu0  ;;  %v13958_v43 = vpop.f32.mrf.mxu1  ;;  %17434 = vst [vmem:[#allocation60_spill] sm:$0xff] %v13962_v55  ;;  %v13965_v7 = vsel %vm2617_vm13, %v2255_v1, %v2873_v45  ;;  %v14176_v55 = vld [vmem:[#allocation2 + $0x1c0] sm:$0xff] }
 0x28d   :  { %11048 = vmatprep.mubr.msk.bf16.mxu1 %vm4062_vm8, %v17431_v37  ;;  %17432 = vst [vmem:[#allocation55_spill] sm:$0xff] %v13958_v43  ;;  %v13960_v31 = vsel %vm2620_vm14, %v2266_v16, %v2876_v18  ;;  %vm2618_vm15 = vcmp.ge.f32.partialorder %v2258_v48, 0.0  ;;  %v2874_v27 = vmul.f32 0.2, %v2258_v48  ;;  %v2279_v62 = vadd.f32 %v13632_v59, %v10860_v60  ;;  %17435 = vst [vmem:[#allocation58_spill] sm:$0xff] %v13965_v7  ;;  %v13976_v43 = vld [vmem:[#allocation2 + $0xe8] sm:$0xff] }
 0x28e   :  { %17433 = vst [vmem:[#allocation53_spill] sm:$0xff] %v13960_v31  ;;  %6745 = vst.msk [vmem:[#allocation2 + $0x140] sm:$0xff] %vm4062_vm8, %v13960_v31  ;;  %v2270_v47 = vpop.f32.mrf.mxu0  ;;  %v13971_v44 = vpop.f32.mrf.mxu1  ;;  %v13978_v60 = vld [vmem:[#allocation2 + $0xf0] sm:$0xff] }
 0x28f   :  { %17436 = vst [vmem:[#allocation182_spill] sm:$0xff] %v13971_v44  ;;  %v13973_v37 = vsel %vm2618_vm15, %v2258_v48, %v2874_v27  ;;  %vm2623_vm1 = vcmp.ge.f32.partialorder %v2279_v62, 0.0  ;;  %v2879_v16 = vmul.f32 0.2, %v2279_v62  ;;  %v2271_v18 = vadd.f32 %v13632_v59, %v2270_v47  ;;  %6734 = vst.msk [vmem:[#allocation2 + $0xe8] sm:$0xff] %vm4062_vm8, %v13861_v39  ;;  %v13994_v47 = vld [vmem:[#allocation2 + $0x158] sm:$0xff] }
 0x290   :  { %17437 = vst [vmem:[#allocation183_spill] sm:$0xff] %v13973_v37  ;;  %v10861_v1 = vpop.f32.mrf.mxu0  ;;  %v13982_v30 = vpop.f32.mrf.mxu1  ;;  %6735 = vst.msk [vmem:[#allocation2 + $0xf0] sm:$0xff] %vm4062_vm8, %v13869_v61  ;;  %v17442_v39 = vld [vmem:[#allocation59_spill] sm:$0xff]  ;;  %v17445_v48 = vld [vmem:[#allocation64_spill] sm:$0xff] }
 0x291   :  { %17438 = vst [vmem:[#allocation184_spill] sm:$0xff] %v13982_v30  ;;  %v13992_v27 = vsel %vm2623_vm1, %v2279_v62, %v2879_v16  ;;  %17440 = vst [vmem:[#allocation186_spill] sm:$0xff] %v13994_v47  ;;  %v2282_v45 = vadd.f32 %v13632_v59, %v10861_v1  ;;  %v2877_v33 = vmul.f32 0.2, %v2271_v18  ;;  %v17443_v30 = vld [vmem:[#allocation57_spill] sm:$0xff]  ;;  %vm2621_vm2 = vcmp.ge.f32.partialorder %v2271_v18, 0.0 }
 0x292   :  { %17439 = vst [vmem:[#allocation185_spill] sm:$0xff] %v13992_v27  ;;  %6748 = vst.msk [vmem:[#allocation2 + $0x158] sm:$0xff] %vm4062_vm8, %v13992_v27  ;;  %v2273_v4 = vpop.f32.mrf.mxu0  ;;  %v13999_v31 = vpop.f32.mrf.mxu1  ;;  %v17444_v44 = vpack.c.bf16 %v17442_v39, %v17443_v30  ;;  %v17446_v61 = vld [vmem:[#allocation62_spill] sm:$0xff] }
 0x293   :  { %17441 = vst [vmem:[#allocation187_spill] sm:$0xff] %v13999_v31  ;;  %vm2624_vm3 = vcmp.ge.f32.partialorder %v2282_v45, 0.0  ;;  %v2880_v62 = vmul.f32 0.2, %v2282_v45  ;;  %v2274_v16 = vadd.f32 %v13632_v59, %v2273_v4  ;;  %v17447_v1 = vpack.c.bf16 %v17445_v48, %v17446_v61  ;;  %v14014_v31 = vld [vmem:[#allocation2 + $0x160] sm:$0xff]  ;;  %17499 = vst [vmem:[#allocation69_spill] sm:$0xff] %v14176_v55 }
 0x294   :  { %11049 = vmatmul.mubr.msk.bf16.gmra.mxu1 %vm4062_vm8, %v17444_v44  ;;  %v10864_v29 = vpop.f32.mrf.mxu0  ;;  %v14010_v26 = vpop.f32.mrf.mxu1  ;;  %17450 = vst [vmem:[#allocation64_spill] sm:$0xff] %v14014_v31  ;;  %v14017_v44 = vsel %vm2621_vm2, %v2271_v18, %v2877_v33 }
 0x295   :  { %11052 = vmatprep.mubr.msk.bf16.mxu1 %vm4062_vm8, %v17447_v1  ;;  %17448 = vst [vmem:[#allocation59_spill] sm:$0xff] %v14010_v26  ;;  %v14012_v13 = vsel %vm2624_vm3, %v2282_v45, %v2880_v62  ;;  %vm2622_vm4 = vcmp.ge.f32.partialorder %v2274_v16, 0.0  ;;  %v2878_v30 = vmul.f32 0.2, %v2274_v16  ;;  %v2295_v39 = vadd.f32 %v13632_v59, %v10864_v29  ;;  %17451 = vst [vmem:[#allocation62_spill] sm:$0xff] %v14017_v44  ;;  %v14028_v26 = vld [vmem:[#allocation2 + $0x108] sm:$0xff] }
 0x296   :  { %17449 = vst [vmem:[#allocation57_spill] sm:$0xff] %v14012_v13  ;;  %6749 = vst.msk [vmem:[#allocation2 + $0x160] sm:$0xff] %vm4062_vm8, %v14012_v13  ;;  %v2286_v4 = vpop.f32.mrf.mxu0  ;;  %v14023_v48 = vpop.f32.mrf.mxu1  ;;  %v14030_v29 = vld [vmem:[#allocation2 + $0x110] sm:$0xff] }
 0x297   :  { %17452 = vst [vmem:[#allocation188_spill] sm:$0xff] %v14023_v48  ;;  %v14025_v1 = vsel %vm2622_vm4, %v2274_v16, %v2878_v30  ;;  %vm2627_vm5 = vcmp.ge.f32.partialorder %v2295_v39, 0.0  ;;  %v2883_v45 = vmul.f32 0.2, %v2295_v39  ;;  %v2287_v62 = vadd.f32 %v13632_v59, %v2286_v4  ;;  %17454 = vst [vmem:[#allocation190_spill] sm:$0xff] %v14028_v26  ;;  %v14046_v4 = vld [vmem:[#allocation2 + $0x178] sm:$0xff] }
 0x298   :  { %17453 = vst [vmem:[#allocation189_spill] sm:$0xff] %v14025_v1  ;;  %17455 = vst [vmem:[#allocation191_spill] sm:$0xff] %v14030_v29  ;;  %v10865_v18 = vpop.f32.mrf.mxu0  ;;  %v14034_v21 = vpop.f32.mrf.mxu1  ;;  %v17463_v16 = vld [vmem:[#allocation68_spill] sm:$0xff]  ;;  %v14294_v29 = vld [vmem:[#allocation2 + $0x1a8] sm:$0xff] }
 0x299   :  { %17456 = vst [vmem:[#allocation192_spill] sm:$0xff] %v14034_v21  ;;  %6738 = vst.msk [vmem:[#allocation2 + $0x108] sm:$0xff] %vm4062_vm8, %v13913_v36  ;;  %v14044_v30 = vsel %vm2627_vm5, %v2295_v39, %v2883_v45  ;;  %v2298_v33 = vadd.f32 %v13632_v59, %v10865_v18  ;;  %v2881_v27 = vmul.f32 0.2, %v2287_v62  ;;  %v17460_v36 = vld [vmem:[#allocation63_spill] sm:$0xff]  ;;  %v17461_v21 = vld [vmem:[#allocation61_spill] sm:$0xff] }
 0x29a   :  { %6739 = vst.msk [vmem:[#allocation2 + $0x110] sm:$0xff] %vm4062_vm8, %v13921_v28  ;;  %17457 = vst [vmem:[#allocation193_spill] sm:$0xff] %v14044_v30  ;;  %v2289_v61 = vpop.f32.mrf.mxu0  ;;  %v14051_v13 = vpop.f32.mrf.mxu1  ;;  %v17462_v48 = vpack.c.bf16 %v17460_v36, %v17461_v21  ;;  %vm2625_vm6 = vcmp.ge.f32.partialorder %v2287_v62, 0.0  ;;  %v17464_v28 = vld [vmem:[#allocation66_spill] sm:$0xff]  ;;  %v14280_v26 = vld [vmem:[#allocation2 + $0x200] sm:$0xff] }
 0x29b   :  { %17458 = vst [vmem:[#allocation194_spill] sm:$0xff] %v14046_v4  ;;  %6752 = vst.msk [vmem:[#allocation2 + $0x178] sm:$0xff] %vm4062_vm8, %v14044_v30  ;;  %vm2628_vm7 = vcmp.ge.f32.partialorder %v2298_v33, 0.0  ;;  %v2884_v39 = vmul.f32 0.2, %v2298_v33  ;;  %v2290_v45 = vadd.f32 %v13632_v59, %v2289_v61  ;;  %v17465_v18 = vpack.c.bf16 %v17463_v16, %v17464_v28  ;;  %v14104_v30 = vld [vmem:[%s16855_s3 + $0x38] sm:$0xff]  }
 0x29c   :  { %17459 = vst [vmem:[#allocation195_spill] sm:$0xff] %v14051_v13  ;;  %11053 = vmatmul.mubr.msk.bf16.gmra.mxu1 %vm4062_vm8, %v17462_v48  ;;  %v10868_v50 = vpop.f32.mrf.mxu0  ;;  %v14062_v22 = vpop.f32.mrf.mxu1  ;;  %v14066_v13 = vld [vmem:[#allocation2 + $0x180] sm:$0xff]  ;;  %v14069_v48 = vsel %vm2625_vm6, %v2287_v62, %v2881_v27  ;;  %11154 = vmatprep.subr.bf16.mxu1 %v14104_v30  ;;  %6746 = vst.msk [vmem:[#allocation2 + $0x148] sm:$0xff] %vm4062_vm8, %v14017_v44  ;;  %v17492_v44 = vld [vmem:[#allocation71_spill] sm:$0xff] }
 0x29d   :  { %11056 = vmatprep.mubr.msk.bf16.mxu1 %vm4062_vm8, %v17465_v18  ;;  %17466 = vst [vmem:[#allocation63_spill] sm:$0xff] %v14062_v22  ;;  %v14064_v46 = vsel %vm2628_vm7, %v2298_v33, %v2884_v39  ;;  %17468 = vst [vmem:[#allocation68_spill] sm:$0xff] %v14066_v13  ;;  %vm2626_vm9 = vcmp.ge.f32.partialorder %v2290_v45, 0.0  ;;  %v2882_v21 = vmul.f32 0.2, %v2290_v45  ;;  %v2311_v36 = vadd.f32 %v13632_v59, %v10868_v50  ;;  %v14080_v22 = vld [vmem:[#allocation2 + $0x128] sm:$0xff] }
 0x29e   :  { %17467 = vst [vmem:[#allocation61_spill] sm:$0xff] %v14064_v46  ;;  %17469 = vst [vmem:[#allocation66_spill] sm:$0xff] %v14069_v48  ;;  %v2302_v61 = vpop.f32.mrf.mxu0  ;;  %v14075_v16 = vpop.f32.mrf.mxu1  ;;  %v14082_v50 = vld [vmem:[#allocation2 + $0x130] sm:$0xff] }
 0x29f   :  { %6753 = vst.msk [vmem:[#allocation2 + $0x180] sm:$0xff] %vm4062_vm8, %v14064_v46  ;;  %17470 = vst [vmem:[#allocation196_spill] sm:$0xff] %v14075_v16  ;;  %v14077_v18 = vsel %vm2626_vm9, %v2290_v45, %v2882_v21  ;;  %vm2631_vm10 = vcmp.ge.f32.partialorder %v2311_v36, 0.0  ;;  %v2887_v33 = vmul.f32 0.2, %v2311_v36  ;;  %v2303_v39 = vadd.f32 %v13632_v59, %v2302_v61  ;;  %v14098_v61 = vld [vmem:[#allocation2 + $0x198] sm:$0xff] }
 0x2a0   :  { %17471 = vst [vmem:[#allocation197_spill] sm:$0xff] %v14077_v18  ;;  %17472 = vst [vmem:[#allocation198_spill] sm:$0xff] %v14080_v22  ;;  %v10869_v62 = vpop.f32.mrf.mxu0  ;;  %v14086_v6 = vpop.f32.mrf.mxu1  ;;  %v17478_v45 = vld [vmem:[#allocation65_spill] sm:$0xff]  ;;  %v17481_v16 = vld [vmem:[#allocation70_spill] sm:$0xff] }
 0x2a1   :  { %17473 = vst [vmem:[#allocation199_spill] sm:$0xff] %v14082_v50  ;;  %17474 = vst [vmem:[#allocation200_spill] sm:$0xff] %v14086_v6  ;;  %v14096_v21 = vsel %vm2631_vm10, %v2311_v36, %v2887_v33  ;;  %v2314_v27 = vadd.f32 %v13632_v59, %v10869_v62  ;;  %v2885_v28 = vmul.f32 0.2, %v2303_v39  ;;  %vm2629_vm11 = vcmp.ge.f32.partialorder %v2303_v39, 0.0  ;;  %v17480_v6 = vld [vmem:[#allocation72_spill] sm:$0xff] }
 0x2a2   :  { %6742 = vst.msk [vmem:[#allocation2 + $0x128] sm:$0xff] %vm4062_vm8, %v13965_v7  ;;  %6743 = vst.msk [vmem:[#allocation2 + $0x130] sm:$0xff] %vm4062_vm8, %v13973_v37  ;;  %v2305_v46 = vpop.f32.mrf.mxu0  ;;  %v14108_v7 = vpop.f32.mrf.mxu1  ;;  %v17477_v37 = vld [vmem:[#allocation67_spill] sm:$0xff]  ;;  %v17482_v23 = vpack.c.bf16 %v17480_v6, %v17481_v16  ;;  %v14228_v50 = vld [vmem:[#allocation2 + $0x1e0] sm:$0xff] }
 0x2a3   :  { %17475 = vst [vmem:[#allocation201_spill] sm:$0xff] %v14096_v21  ;;  %17476 = vst [vmem:[#allocation202_spill] sm:$0xff] %v14098_v61  ;;  %v17479_v36 = vpack.c.bf16 %v17477_v37, %v17478_v45  ;;  %vm2632_vm12 = vcmp.ge.f32.partialorder %v2314_v27, 0.0  ;;  %v2888_v33 = vmul.f32 0.2, %v2314_v27  ;;  %v2306_v62 = vadd.f32 %v13632_v59, %v2305_v46  ;;  %v14124_v37 = vld [vmem:[#allocation2 + $0x1a0] sm:$0xff] }
 0x2a4   :  { %6756 = vst.msk [vmem:[#allocation2 + $0x198] sm:$0xff] %vm4062_vm8, %v14096_v21  ;;  %v10872_v24 = vpop.f32.mrf.mxu0  ;;  %v14120_v11 = vpop.f32.mrf.mxu1  ;;  %17484 = vst [vmem:[#allocation65_spill] sm:$0xff] %v14124_v37  ;;  %v14127_v56 = vsel %vm2629_vm11, %v2303_v39, %v2885_v28 }
 0x2a5   :  { %11057 = vmatmul.mubr.msk.bf16.gmra.mxu1 %vm4062_vm8, %v17479_v36  ;;  %v14122_v25 = vsel %vm2632_vm12, %v2314_v27, %v2888_v33  ;;  %vm2630_vm13 = vcmp.ge.f32.partialorder %v2306_v62, 0.0  ;;  %v2886_v45 = vmul.f32 0.2, %v2306_v62  ;;  %v2327_v36 = vadd.f32 %v13632_v59, %v10872_v24  ;;  %17485 = vst [vmem:[#allocation72_spill] sm:$0xff] %v14127_v56  ;;  %v14140_v24 = vld [vmem:[#allocation2 + $0x150] sm:$0xff]  ;;  %6754 = vst.msk [vmem:[#allocation2 + $0x188] sm:$0xff] %vm4062_vm8, %v14127_v56 }
 0x2a6   :  { %11060 = vmatprep.mubr.msk.bf16.mxu1 %vm4062_vm8, %v17482_v23  ;;  %17483 = vst [vmem:[#allocation67_spill] sm:$0xff] %v14122_v25  ;;  %6757 = vst.msk [vmem:[#allocation2 + $0x1a0] sm:$0xff] %vm4062_vm8, %v14122_v25  ;;  %v2318_v23 = vpop.f32.mrf.mxu0  ;;  %v14133_v6 = vpop.f32.mrf.mxu1  ;;  %v17522_v56 = vld [vmem:[#allocation79_spill] sm:$0xff] }
 0x2a7   :  { %v14135_v16 = vsel %vm2630_vm13, %v2306_v62, %v2886_v45  ;;  %vm2635_vm14 = vcmp.ge.f32.partialorder %v2327_v36, 0.0  ;;  %v2891_v27 = vmul.f32 0.2, %v2327_v36  ;;  %v2319_v33 = vadd.f32 %v13632_v59, %v2318_v23  ;;  %17488 = vst [vmem:[#allocation204_spill] sm:$0xff] %v14140_v24  ;;  %6747 = vst.msk [vmem:[#allocation2 + $0x150] sm:$0xff] %vm4062_vm8, %v14025_v1  ;;  %v14156_v23 = vld [vmem:[#allocation2 + $0x1b8] sm:$0xff] }
 0x2a8   :  { %17486 = vst [vmem:[#allocation70_spill] sm:$0xff] %v14135_v16  ;;  %v10873_v39 = vpop.f32.mrf.mxu0  ;;  %v14144_v38 = vpop.f32.mrf.mxu1  ;;  %17491 = vst [vmem:[#allocation207_spill] sm:$0xff] %v14156_v23  ;;  %v17494_v24 = vpack.c.bf16 %v17492_v44, %v17493_v57  ;;  %v17495_v62 = vld [vmem:[#allocation76_spill] sm:$0xff]  ;;  %v17496_v1 = vld [vmem:[#allocation74_spill] sm:$0xff] }
 0x2a9   :  { %17489 = vst [vmem:[#allocation205_spill] sm:$0xff] %v14144_v38  ;;  %v14154_v45 = vsel %vm2635_vm14, %v2327_v36, %v2891_v27  ;;  %v2330_v28 = vadd.f32 %v13632_v59, %v10873_v39  ;;  %v2889_v21 = vmul.f32 0.2, %v2319_v33  ;;  %vm2633_vm15 = vcmp.ge.f32.partialorder %v2319_v33, 0.0  ;;  %v14190_v38 = vld [vmem:[#allocation2 + $0x168] sm:$0xff]  ;;  %17529 = vst [vmem:[#allocation77_spill] sm:$0xff] %v14280_v26 }
 0x2aa   :  { %17490 = vst [vmem:[#allocation206_spill] sm:$0xff] %v14154_v45  ;;  %6760 = vst.msk [vmem:[#allocation2 + $0x1b8] sm:$0xff] %vm4062_vm8, %v14154_v45  ;;  %v2321_v46 = vpop.f32.mrf.mxu0  ;;  %v14161_v25 = vpop.f32.mrf.mxu1  ;;  %v17497_v39 = vpack.c.bf16 %v17495_v62, %v17496_v1  ;;  %v17541_v23 = vld [vmem:[#allocation86_spill] sm:$0xff]  ;;  %v17572_v26 = vld [vmem:[#allocation95_spill] sm:$0xff] }
 0x2ab   :  { %vm2636_vm1 = vcmp.ge.f32.partialorder %v2330_v28, 0.0  ;;  %v2892_v36 = vmul.f32 0.2, %v2330_v28  ;;  %v2322_v27 = vadd.f32 %v13632_v59, %v2321_v46  ;;  %17502 = vst [vmem:[#allocation208_spill] sm:$0xff] %v14190_v38  ;;  %6750 = vst.msk [vmem:[#allocation2 + $0x168] sm:$0xff] %vm4062_vm8, %v14069_v48  ;;  %v17507_v48 = vld [vmem:[#allocation75_spill] sm:$0xff] }
 0x2ac   :  { %v10876_v47 = vpop.f32.mrf.mxu0  ;;  %v14172_v31 = vpop.f32.mrf.mxu1  ;;  %v17508_v38 = vld [vmem:[#allocation73_spill] sm:$0xff]  ;;  %17532 = vst [vmem:[#allocation218_spill] sm:$0xff] %v14294_v29 }
 0x2ad   :  { %11061 = vmatmul.mubr.msk.bf16.gmra.mxu1 %vm4062_vm8, %v17494_v24  ;;  %v14174_v20 = vsel %vm2636_vm1, %v2330_v28, %v2892_v36  ;;  %vm2634_vm2 = vcmp.ge.f32.partialorder %v2322_v27, 0.0  ;;  %v2890_v57 = vmul.f32 0.2, %v2322_v27  ;;  %v2343_v44 = vadd.f32 %v13632_v59, %v10876_v47  ;;  %v14192_v47 = vld [vmem:[#allocation2 + $0x170] sm:$0xff]  ;;  %17514 = vst [vmem:[#allocation73_spill] sm:$0xff] %v14228_v50 }
 0x2ae   :  { %11064 = vmatprep.mubr.msk.bf16.mxu1 %vm4062_vm8, %v17497_v39  ;;  %17498 = vst [vmem:[#allocation71_spill] sm:$0xff] %v14174_v20  ;;  %v14179_v24 = vsel %vm2633_vm15, %v2319_v33, %v2889_v21  ;;  %6761 = vst.msk [vmem:[#allocation2 + $0x1c0] sm:$0xff] %vm4062_vm8, %v14174_v20  ;;  %v2334_v46 = vpop.f32.mrf.mxu0  ;;  %v14185_v62 = vpop.f32.mrf.mxu1 }
 0x2af   :  { %17500 = vst [vmem:[#allocation76_spill] sm:$0xff] %v14179_v24  ;;  %v14187_v39 = vsel %vm2634_vm2, %v2322_v27, %v2890_v57  ;;  %vm2639_vm3 = vcmp.ge.f32.partialorder %v2343_v44, 0.0  ;;  %v2895_v28 = vmul.f32 0.2, %v2343_v44  ;;  %v2335_v36 = vadd.f32 %v13632_v59, %v2334_v46  ;;  %17503 = vst [vmem:[#allocation209_spill] sm:$0xff] %v14192_v47  ;;  %v14208_v46 = vld [vmem:[#allocation2 + $0x1d8] sm:$0xff] }
 0x2b0   :  { %17501 = vst [vmem:[#allocation74_spill] sm:$0xff] %v14187_v39  ;;  %v10877_v33 = vpop.f32.mrf.mxu0  ;;  %v14196_v22 = vpop.f32.mrf.mxu1  ;;  %6751 = vst.msk [vmem:[#allocation2 + $0x170] sm:$0xff] %vm4062_vm8, %v14077_v18  ;;  %v17509_v47 = vpack.c.bf16 %v17507_v48, %v17508_v38  ;;  %v17510_v27 = vld [vmem:[#allocation80_spill] sm:$0xff]  ;;  %v17511_v18 = vld [vmem:[#allocation78_spill] sm:$0xff] }
 0x2b1   :  { %17504 = vst [vmem:[#allocation210_spill] sm:$0xff] %v14196_v22  ;;  %v14206_v57 = vsel %vm2639_vm3, %v2343_v44, %v2895_v28  ;;  %17506 = vst [vmem:[#allocation212_spill] sm:$0xff] %v14208_v46  ;;  %v2346_v21 = vadd.f32 %v13632_v59, %v10877_v33  ;;  %v2893_v45 = vmul.f32 0.2, %v2335_v36  ;;  %vm2637_vm4 = vcmp.ge.f32.partialorder %v2335_v36, 0.0  ;;  %v17553_v46 = vld [vmem:[#allocation90_spill] sm:$0xff] }
 0x2b2   :  { %17505 = vst [vmem:[#allocation211_spill] sm:$0xff] %v14206_v57  ;;  %6764 = vst.msk [vmem:[#allocation2 + $0x1d8] sm:$0xff] %vm4062_vm8, %v14206_v57  ;;  %v2337_v1 = vpop.f32.mrf.mxu0  ;;  %v14213_v20 = vpop.f32.mrf.mxu1  ;;  %v17512_v33 = vpack.c.bf16 %v17510_v27, %v17511_v18 }
 0x2b3   :  { %vm2640_vm5 = vcmp.ge.f32.partialorder %v2346_v21, 0.0  ;;  %v2896_v44 = vmul.f32 0.2, %v2346_v21  ;;  %v2338_v28 = vadd.f32 %v13632_v59, %v2337_v1  ;;  %6758 = vst.msk [vmem:[#allocation2 + $0x1a8] sm:$0xff] %vm4062_vm8, %v14179_v24  ;;  %v17537_v24 = vld [vmem:[#allocation81_spill] sm:$0xff] }
 0x2b4   :  { %v10880_v4 = vpop.f32.mrf.mxu0  ;;  %v14224_v13 = vpop.f32.mrf.mxu1 }
 0x2b5   :  { %11065 = vmatmul.mubr.msk.bf16.gmra.mxu1 %vm4062_vm8, %v17509_v47  ;;  %v14226_v22 = vsel %vm2640_vm5, %v2346_v21, %v2896_v44  ;;  %vm2638_vm6 = vcmp.ge.f32.partialorder %v2338_v28, 0.0  ;;  %v2894_v38 = vmul.f32 0.2, %v2338_v28  ;;  %v2359_v48 = vadd.f32 %v13632_v59, %v10880_v4  ;;  %v14244_v4 = vld [vmem:[#allocation2 + $0x190] sm:$0xff] }
 0x2b6   :  { %11068 = vmatprep.mubr.msk.bf16.mxu1 %vm4062_vm8, %v17512_v33  ;;  %17513 = vst [vmem:[#allocation75_spill] sm:$0xff] %v14226_v22  ;;  %v14231_v47 = vsel %vm2637_vm4, %v2335_v36, %v2893_v45  ;;  %6765 = vst.msk [vmem:[#allocation2 + $0x1e0] sm:$0xff] %vm4062_vm8, %v14226_v22  ;;  %v2350_v1 = vpop.f32.mrf.mxu0  ;;  %v14237_v27 = vpop.f32.mrf.mxu1 }
 0x2b7   :  { %17515 = vst [vmem:[#allocation80_spill] sm:$0xff] %v14231_v47  ;;  %v14239_v33 = vsel %vm2638_vm6, %v2338_v28, %v2894_v38  ;;  %vm2643_vm7 = vcmp.ge.f32.partialorder %v2359_v48, 0.0  ;;  %v2899_v21 = vmul.f32 0.2, %v2359_v48  ;;  %v2351_v44 = vadd.f32 %v13632_v59, %v2350_v1  ;;  %17518 = vst [vmem:[#allocation214_spill] sm:$0xff] %v14244_v4  ;;  %v14260_v1 = vld [vmem:[#allocation2 + $0x1f8] sm:$0xff] }
 0x2b8   :  { %17516 = vst [vmem:[#allocation78_spill] sm:$0xff] %v14239_v33  ;;  %v10881_v36 = vpop.f32.mrf.mxu0  ;;  %v14248_v49 = vpop.f32.mrf.mxu1  ;;  %6755 = vst.msk [vmem:[#allocation2 + $0x190] sm:$0xff] %vm4062_vm8, %v14135_v16  ;;  %v17524_v4 = vpack.c.bf16 %v17522_v56, %v17523_v8  ;;  %v17525_v28 = vld [vmem:[#allocation84_spill] sm:$0xff]  ;;  %v17526_v16 = vld [vmem:[#allocation82_spill] sm:$0xff] }
 0x2b9   :  { %17519 = vst [vmem:[#allocation215_spill] sm:$0xff] %v14248_v49  ;;  %v14258_v38 = vsel %vm2643_vm7, %v2359_v48, %v2899_v21  ;;  %17521 = vst [vmem:[#allocation217_spill] sm:$0xff] %v14260_v1  ;;  %v2362_v45 = vadd.f32 %v13632_v59, %v10881_v36  ;;  %v2897_v57 = vmul.f32 0.2, %v2351_v44  ;;  %vm2641_vm9 = vcmp.ge.f32.partialorder %v2351_v44, 0.0 }
 0x2ba   :  { %17520 = vst [vmem:[#allocation216_spill] sm:$0xff] %v14258_v38  ;;  %6768 = vst.msk [vmem:[#allocation2 + $0x1f8] sm:$0xff] %vm4062_vm8, %v14258_v38  ;;  %v2353_v18 = vpop.f32.mrf.mxu0  ;;  %v14265_v22 = vpop.f32.mrf.mxu1  ;;  %v17527_v36 = vpack.c.bf16 %v17525_v28, %v17526_v16 }
 0x2bb   :  { %vm2644_vm10 = vcmp.ge.f32.partialorder %v2362_v45, 0.0  ;;  %v2900_v48 = vmul.f32 0.2, %v2362_v45  ;;  %v2354_v21 = vadd.f32 %v13632_v59, %v2353_v18 }
 0x2bc   :  { %v10884_v61 = vpop.f32.mrf.mxu0  ;;  %v14276_v37 = vpop.f32.mrf.mxu1 }
 0x2bd   :  { %11069 = vmatmul.mubr.msk.bf16.gmra.mxu1 %vm4062_vm8, %v17524_v4  ;;  %v14278_v49 = vsel %vm2644_vm10, %v2362_v45, %v2900_v48  ;;  %vm2642_vm11 = vcmp.ge.f32.partialorder %v2354_v21, 0.0  ;;  %v2898_v56 = vmul.f32 0.2, %v2354_v21  ;;  %v2375_v8 = vadd.f32 %v13632_v59, %v10884_v61  ;;  %v14296_v61 = vld [vmem:[#allocation2 + $0x1b0] sm:$0xff] }
 0x2be   :  { %11072 = vmatprep.mubr.msk.bf16.mxu1 %vm4062_vm8, %v17527_v36  ;;  %17528 = vst [vmem:[#allocation79_spill] sm:$0xff] %v14278_v49  ;;  %v14283_v4 = vsel %vm2641_vm9, %v2351_v44, %v2897_v57  ;;  %6769 = vst.msk [vmem:[#allocation2 + $0x200] sm:$0xff] %vm4062_vm8, %v14278_v49  ;;  %v2366_v18 = vpop.f32.mrf.mxu0  ;;  %v14289_v28 = vpop.f32.mrf.mxu1  ;;  %v17536_v49 = vld [vmem:[#allocation83_spill] sm:$0xff] }
 0x2bf   :  { %17530 = vst [vmem:[#allocation84_spill] sm:$0xff] %v14283_v4  ;;  %v14291_v36 = vsel %vm2642_vm11, %v2354_v21, %v2898_v56  ;;  %vm2647_vm12 = vcmp.ge.f32.partialorder %v2375_v8, 0.0  ;;  %v2903_v45 = vmul.f32 0.2, %v2375_v8  ;;  %v2367_v48 = vadd.f32 %v13632_v59, %v2366_v18  ;;  %17533 = vst [vmem:[#allocation219_spill] sm:$0xff] %v14296_v61  ;;  %v17540_v21 = vld [vmem:[#allocation88_spill] sm:$0xff] }
 0x2c0   :  { %17531 = vst [vmem:[#allocation82_spill] sm:$0xff] %v14291_v36  ;;  %v10885_v44 = vpop.f32.mrf.mxu0  ;;  %v14300_v41 = vpop.f32.mrf.mxu1  ;;  %6759 = vst.msk [vmem:[#allocation2 + $0x1b0] sm:$0xff] %vm4062_vm8, %v14187_v39  ;;  %v17538_v29 = vpack.c.bf16 %v17536_v49, %v17537_v24  ;;  %v11635_v24 = vld [vmem:[%s16854_s2] ss:$0 sm:$0xff] }
 0x2c1   :  { %17534 = vst [vmem:[#allocation220_spill] sm:$0xff] %v14300_v41  ;;  %v14310_v56 = vsel %vm2647_vm12, %v2375_v8, %v2903_v45  ;;  %vm2645_vm13 = vcmp.ge.f32.partialorder %v2367_v48, 0.0  ;;  %v2901_v18 = vmul.f32 0.2, %v2367_v48  ;;  %v2378_v57 = vadd.f32 %v13632_v59, %v10885_v44 }
 0x2c2   :  { %17535 = vst [vmem:[#allocation221_spill] sm:$0xff] %v14310_v56  ;;  %6772 = vst.msk [vmem:[#allocation2 + $0x218] sm:$0xff] %vm4062_vm8, %v14310_v56  ;;  %v2369_v38 = vpop.f32.mrf.mxu0  ;;  %v14315_v16 = vpop.f32.mrf.mxu1  ;;  %v17542_v44 = vpack.c.bf16 %v17540_v21, %v17541_v23 }
 0x2c3   :  { %v14321_v39 = vsel %vm2645_vm13, %v2367_v48, %v2901_v18  ;;  %vm2648_vm14 = vcmp.ge.f32.partialorder %v2378_v57, 0.0  ;;  %v2904_v8 = vmul.f32 0.2, %v2378_v57  ;;  %v2370_v45 = vadd.f32 %v13632_v59, %v2369_v38 }
 0x2c4   :  { %17539 = vst [vmem:[#allocation83_spill] sm:$0xff] %v14321_v39  ;;  %6770 = vst.msk [vmem:[#allocation2 + $0x208] sm:$0xff] %vm4062_vm8, %v14321_v39  ;;  %v10888_v55 = vpop.f32.mrf.mxu0  ;;  %v14330_v61 = vpop.f32.mrf.mxu1 }
 0x2c5   :  { %11073 = vmatmul.mubr.msk.bf16.gmra.mxu1 %vm4062_vm8, %v17538_v29  ;;  %v14332_v49 = vsel %vm2648_vm14, %v2378_v57, %v2904_v8  ;;  %vm2646_vm15 = vcmp.ge.f32.partialorder %v2370_v45, 0.0  ;;  %v2902_v29 = vmul.f32 0.2, %v2370_v45  ;;  %v2391_v59 = vadd.f32 %v11635_v24, %v10888_v55  ;;  %v14345_v8 = vld [vmem:[#allocation2 + $0x1c8] sm:$0xff] }
 0x2c6   :  { %11076 = vmatprep.mubr.msk.bf16.mxu1 %vm4062_vm8, %v17542_v44  ;;  %17543 = vst [vmem:[#allocation81_spill] sm:$0xff] %v14332_v49  ;;  %6773 = vst.msk [vmem:[#allocation2 + $0x220] sm:$0xff] %vm4062_vm8, %v14332_v49  ;;  %v2382_v38 = vpop.f32.mrf.mxu0  ;;  %v14341_v48 = vpop.f32.mrf.mxu1  ;;  %v14347_v44 = vld [vmem:[#allocation2 + $0x1d0] sm:$0xff] }
 0x2c7   :  { %v14343_v21 = vsel %vm2646_vm15, %v2370_v45, %v2902_v29  ;;  %vm2651_vm1 = vcmp.ge.f32.partialorder %v2391_v59, 0.0  ;;  %v2907_v57 = vmul.f32 0.2, %v2391_v59  ;;  %v2383_v18 = vadd.f32 %v11635_v24, %v2382_v38  ;;  %17545 = vst [vmem:[#allocation86_spill] sm:$0xff] %v14345_v8  ;;  %17546 = vst [vmem:[#allocation222_spill] sm:$0xff] %v14347_v44  ;;  %v17548_v45 = vld [vmem:[#allocation87_spill] sm:$0xff] }
 0x2c8   :  { %17544 = vst [vmem:[#allocation88_spill] sm:$0xff] %v14343_v21  ;;  %6771 = vst.msk [vmem:[#allocation2 + $0x210] sm:$0xff] %vm4062_vm8, %v14343_v21  ;;  %v10889_v41 = vpop.f32.mrf.mxu0  ;;  %v14353_v23 = vpop.f32.mrf.mxu1  ;;  %v17549_v21 = vld [vmem:[#allocation85_spill] sm:$0xff] }
 0x2c9   :  { %6762 = vst.msk [vmem:[#allocation2 + $0x1c8] sm:$0xff] %vm4062_vm8, %v14231_v47  ;;  %6763 = vst.msk [vmem:[#allocation2 + $0x1d0] sm:$0xff] %vm4062_vm8, %v14239_v33  ;;  %v14363_v38 = vsel %vm2651_vm1, %v2391_v59, %v2907_v57  ;;  %vm2649_vm2 = vcmp.ge.f32.partialorder %v2383_v18, 0.0  ;;  %v2905_v56 = vmul.f32 0.2, %v2383_v18  ;;  %v2394_v55 = vadd.f32 %v11635_v24, %v10889_v41  ;;  %v17552_v57 = vld [vmem:[#allocation92_spill] sm:$0xff] }
 0x2ca   :  { %17547 = vst [vmem:[#allocation223_spill] sm:$0xff] %v14363_v38  ;;  %6776 = vst.msk [vmem:[#allocation2 + $0x238] sm:$0xff] %vm4062_vm8, %v14363_v38  ;;  %v2385_v49 = vpop.f32.mrf.mxu0  ;;  %v14367_v39 = vpop.f32.mrf.mxu1  ;;  %v17550_v47 = vpack.c.bf16 %v17548_v45, %v17549_v21  ;;  %v17554_v50 = vpack.c.bf16 %v17552_v57, %v17553_v46  ;;  %v17566_v38 = vld [vmem:[#allocation94_spill] sm:$0xff] }
 0x2cb   :  { %v14373_v33 = vsel %vm2649_vm2, %v2383_v18, %v2905_v56  ;;  %vm2652_vm3 = vcmp.ge.f32.partialorder %v2394_v55, 0.0  ;;  %v2908_v29 = vmul.f32 0.2, %v2394_v55  ;;  %v2386_v59 = vadd.f32 %v11635_v24, %v2385_v49  ;;  %v14397_v18 = vld [vmem:[#allocation2 + $0x1e8] sm:$0xff] }
 0x2cc   :  { %17551 = vst [vmem:[#allocation87_spill] sm:$0xff] %v14373_v33  ;;  %6774 = vst.msk [vmem:[#allocation2 + $0x228] sm:$0xff] %vm4062_vm8, %v14373_v33  ;;  %v10894_v41 = vpop.f32.mrf.mxu0  ;;  %v14381_v8 = vpop.f32.mrf.mxu1  ;;  %v17563_v49 = vld [vmem:[#allocation89_spill] sm:$0xff] }
 0x2cd   :  { %11077 = vmatmul.mubr.msk.bf16.gmra.mxu1 %vm4062_vm8, %v17550_v47  ;;  %v14383_v44 = vsel %vm2652_vm3, %v2394_v55, %v2908_v29  ;;  %vm2650_vm4 = vcmp.ge.f32.partialorder %v2386_v59, 0.0  ;;  %v2906_v47 = vmul.f32 0.2, %v2386_v59  ;;  %v14386_v56 = vadd.f32 %v14108_v7, %v10894_v41  ;;  %17558 = vst [vmem:[#allocation224_spill] sm:$0xff] %v14397_v18  ;;  %v14399_v55 = vld [vmem:[#allocation2 + $0x1f0] sm:$0xff]  ;;  %6766 = vst.msk [vmem:[#allocation2 + $0x1e8] sm:$0xff] %vm4062_vm8, %v14283_v4 }
 0x2ce   :  { %11080 = vmatprep.mubr.msk.bf16.mxu1 %vm4062_vm8, %v17554_v50  ;;  %17555 = vst [vmem:[#allocation85_spill] sm:$0xff] %v14383_v44  ;;  %v4470_v24 = vpop.f32.mrf.mxu0  ;;  %v14390_v46 = vpop.f32.mrf.mxu1  ;;  %17559 = vst [vmem:[#allocation225_spill] sm:$0xff] %v14399_v55  ;;  %v5675_v55 = vld [vmem:[#allocation2 + $0x30] sm:$0xff] }
 0x2cf   :  { %17556 = vst [vmem:[#allocation92_spill] sm:$0xff] %v14390_v46  ;;  %v14392_v50 = vsel %vm2650_vm4, %v2386_v59, %v2906_v47  ;;  %v14395_v21 = vadd.f32 %v14120_v11, %v4470_v24  ;;  %6767 = vst.msk [vmem:[#allocation2 + $0x1f0] sm:$0xff] %vm4062_vm8, %v14291_v36  ;;  %v17562_v24 = vld [vmem:[#allocation91_spill] sm:$0xff]  ;;  %v17565_v59 = vld [vmem:[#allocation96_spill] sm:$0xff] }
 0x2d0   :  { %17557 = vst [vmem:[#allocation90_spill] sm:$0xff] %v14392_v50  ;;  %6775 = vst.msk [vmem:[#allocation2 + $0x230] sm:$0xff] %vm4062_vm8, %v14392_v50  ;;  %v10895_v45 = vpop.f32.mrf.mxu0  ;;  %v14405_v29 = vpop.f32.mrf.mxu1  ;;  %v17564_v7 = vpack.c.bf16 %v17562_v24, %v17563_v49  ;;  %v17567_v44 = vpack.c.bf16 %v17565_v59, %v17566_v38  ;;  %v5670_v11 = vld [vmem:[#allocation2 + $0x8] sm:$0xff] }
 0x2d1   :  { %17560 = vst [vmem:[#allocation226_spill] sm:$0xff] %v14405_v29  ;;  %v14416_v57 = vadd.f32 %v14133_v6, %v10895_v45  ;;  %v5671_v6 = vld [vmem:[#allocation2 + $0x10] sm:$0xff] }
 0x2d2   :  { %v14418_v41 = vpop.f32.mrf.mxu0  ;;  %v14420_v47 = vpop.f32.mrf.mxu1 }
 0x2d3   :  { %17561 = vst [vmem:[#allocation227_spill] sm:$0xff] %v14420_v47 }
 0x2d4   :  { %v10898_v33 = vpop.f32.mrf.mxu0  ;;  %v14430_v50 = vpop.f32.mrf.mxu1 }
 0x2d5   :  { %11081 = vmatmul.mubr.msk.bf16.gmra.mxu1 %vm4062_vm8, %v17564_v7  ;;  %17568 = vst [vmem:[#allocation91_spill] sm:$0xff] %v14430_v50  ;;  %v14433_v45 = vadd.f32 %v14161_v25, %v10898_v33  ;;  %v5734_v7 = vpack.c.bf16 %v5671_v6, %v5670_v11  ;;  %v17573_v25 = vld [vmem:[#allocation93_spill] sm:$0xff] }
 0x2d6   :  { %11084 = vmatprep.mubr.msk.bf16.mxu1 %vm4062_vm8, %v17567_v44  ;;  %v4486_v4 = vpop.f32.mrf.mxu0  ;;  %v14435_v36 = vpop.f32.mrf.mxu1  ;;  %v17574_v33 = vpack.c.bf16 %v17572_v26, %v17573_v25 }
 0x2d7   :  { %17569 = vst [vmem:[#allocation89_spill] sm:$0xff] %v14435_v36  ;;  %v14438_v49 = vadd.f32 %v14172_v31, %v4486_v4  ;;  %v5672_v31 = vld [vmem:[#allocation2 + $0x18] sm:$0xff]  ;;  %v5673_v4 = vld [vmem:[#allocation2 + $0x20] sm:$0xff] }
 0x2d8   :  { %v10899_v24 = vpop.f32.mrf.mxu0  ;;  %v14440_v1 = vpop.f32.mrf.mxu1  ;;  %v5735_v25 = vpack.c.bf16 %v5673_v4, %v5672_v31  ;;  %v6907_v47 = vpack.c.bf16 %v5672_v31, %v5671_v6 }
 0x2d9   :  { %17570 = vst [vmem:[#allocation96_spill] sm:$0xff] %v14440_v1  ;;  %v14443_v44 = vadd.f32 %v14185_v62, %v10899_v24  ;;  %v5674_v1 = vld [vmem:[#allocation2 + $0x28] sm:$0xff]  ;;  %v11624_v24 = vld [vmem:[%s16855_s3] sm:$0xff]  }
 0x2da   :  { %v14445_v38 = vpop.f32.mrf.mxu0  ;;  %v14447_v59 = vpop.f32.mrf.mxu1  ;;  %11220 = vmatprep.subr.bf16.mxu0 %v11624_v24 }
 0x2db   :  { %17571 = vst [vmem:[#allocation94_spill] sm:$0xff] %v14447_v59  ;;  %11221 = vmatpush3.bf16.msra.mxu0 %v11624_v24 }
 0x2dc   :  { %v10902_v36 = vpop.f32.mrf.mxu0  ;;  %v14454_v18 = vpop.f32.mrf.mxu1 }
 0x2dd   :  { %11085 = vmatmul.mubr.msk.bf16.gmra.mxu1 %vm4062_vm8, %v17574_v33  ;;  %17575 = vst [vmem:[#allocation95_spill] sm:$0xff] %v14454_v18  ;;  %v14457_v62 = vadd.f32 %v14213_v20, %v10902_v36  ;;  %v5736_v33 = vpack.c.bf16 %v5675_v55, %v5674_v1  ;;  %v6906_v20 = vpack.c.bf16 %v5670_v11, %v17173_v14 }
 0x2de   :  { %11090 = vmatprep.mubr.msk.bf16.mxu1 %vm4062_vm8, %v5734_v7  ;;  %v4502_v59 = vpop.f32.mrf.mxu0  ;;  %v14462_v26 = vpop.f32.mrf.mxu1 }
 0x2df   :  { %v14465_v7 = vadd.f32 %v14224_v13, %v4502_v59  ;;  %11222 = vmatprep.mubr.msk.bf16.mxu0 %vm4062_vm8, %v6906_v20  ;;  %v5676_v13 = vld [vmem:[#allocation2 + $0x38] sm:$0xff]  ;;  %v5677_v59 = vld [vmem:[#allocation2 + $0x40] sm:$0xff] }
 0x2e0   :  { %v10903_v50 = vpop.f32.mrf.mxu0  ;;  %v14467_v18 = vpop.f32.mrf.mxu1  ;;  %11223 = vmatmul.mubr.msk.bf16.vlgmr.msra.gmra.mxu0 %vm4062_vm8, %v6907_v47  ;;  %v5737_v31 = vpack.c.bf16 %v5677_v59, %v5676_v13 }
 0x2e1   :  { %17576 = vst [vmem:[#allocation93_spill] sm:$0xff] %v14467_v18  ;;  %v14471_v36 = vadd.f32 %v14237_v27, %v10903_v50 }
 0x2e2   :  { %v14473_v29 = vpop.f32.mrf.mxu0  ;;  %v14475_v46 = vpop.f32.mrf.mxu1 }
 0x2e3   :  { %17577 = vst [vmem:[#allocation228_spill] sm:$0xff] %v14475_v46  ;;  %v6908_v46 = vpack.c.bf16 %v5674_v1, %v5673_v4 }
 0x2e4   :  { %v10906_v24 = vpop.f32.mrf.mxu0  ;;  %v14481_v11 = vpop.f32.mrf.mxu1 }
 0x2e5   :  { %11091 = vmatmul.mubr.msk.bf16.vlgmr.msra.gmra.mxu1 %vm4062_vm8, %v5735_v25  ;;  %17578 = vst [vmem:[#allocation229_spill] sm:$0xff] %v14481_v11  ;;  %v14485_v27 = vadd.f32 %v14265_v22, %v10906_v24  ;;  %v6909_v11 = vpack.c.bf16 %v5676_v13, %v5675_v55  ;;  %11226 = vmatprep.mubr.msk.bf16.mxu0 %vm4062_vm8, %v6908_v46  ;;  %v6787_v46 = vld [vmem:[#allocation2 + $0x48] sm:$0xff] }
 0x2e6   :  { %11094 = vmatprep.mubr.msk.bf16.mxu1 %vm4062_vm8, %v5736_v33  ;;  %11155 = vmatpush3.bf16.msra.mxu1 %v14104_v30  ;;  %v4518_v50 = vpop.f32.mrf.mxu0  ;;  %v14487_v6 = vpop.f32.mrf.mxu1  ;;  %v17579_v22 = vpack.c.bf16 %v13722_v32, %v13716_v9  ;;  %v14521_v32 = vpack.c.bf16 %v6787_v46, %v17173_v14  ;;  %v6788_v9 = vld [vmem:[#allocation2 + $0x50] sm:$0xff] }
 0x2e7   :  { %v14490_v25 = vadd.f32 %v14276_v37, %v4518_v50  ;;  %v6789_v50 = vld [vmem:[#allocation2 + $0x58] sm:$0xff]  ;;  %v6792_v46 = vld [vmem:[#allocation2 + $0x70] sm:$0xff] }
 0x2e8   :  { %v10907_v33 = vpop.f32.mrf.mxu0  ;;  %v14492_v20 = vpop.f32.mrf.mxu1  ;;  %11227 = vmatmul.mubr.msk.bf16.gmra.mxu0 %vm4062_vm8, %v6909_v11 }
 0x2e9   :  { %v14495_v30 = vadd.f32 %v14289_v28, %v10907_v33  ;;  %11230 = vmatprep.mubr.msk.bf16.mxu0 %vm4062_vm8, %v14521_v32  ;;  %v17581_v33 = vpack.c.bf16 %v13770_v10, %v13768_v17  ;;  %v17582_v10 = vpack.c.bf16 %v13661_v51, %v13641_v58  ;;  %v6796_v51 = vld [vmem:[#allocation2 + $0x90] sm:$0xff] }
 0x2ea   :  { %v14497_v18 = vpop.f32.mrf.mxu0  ;;  %v14499_v47 = vpop.f32.mrf.mxu1 }
 0x2ec   :  { %v10910_v37 = vpop.f32.mrf.mxu0  ;;  %v14507_v59 = vpop.f32.mrf.mxu1 }
 0x2ed   :  { %11095 = vmatmul.mubr.msk.bf16.gmra.mxu1 %vm4062_vm8, %v5737_v31  ;;  %v14511_v1 = vadd.f32 %v14315_v16, %v10910_v37  ;;  %v14526_v16 = vpack.c.bf16 %v6789_v50, %v6788_v9  ;;  %v6790_v37 = vld [vmem:[#allocation2 + $0x60] sm:$0xff]  ;;  %v17583_v50 = vpack.c.bf16 %v13822_v42, %v13820_v35  ;;  %v17586_v42 = vpack.c.bf16 %v13702_v3, %v13681_v5 }
 0x2ee   :  { %11098 = vmatprep.mubr.msk.bf16.mxu1 %vm4062_vm8, %v17579_v22  ;;  %v4534_v28 = vpop.f32.mrf.mxu0  ;;  %v14513_v55 = vpop.f32.mrf.mxu1 }
 0x2ef   :  { %v14516_v4 = vadd.f32 %v14330_v61, %v4534_v28  ;;  %v17580_v61 = vpack.c.bf16 %v13616_v53, %v13596_v15  ;;  %v6791_v28 = vld [vmem:[#allocation2 + $0x68] sm:$0xff] }
 0x2f0   :  { %v10911_v13 = vpop.f32.mrf.mxu0  ;;  %v14518_v24 = vpop.f32.mrf.mxu1  ;;  %11231 = vmatmul.mubr.msk.bf16.gmra.mxu0 %vm4062_vm8, %v14526_v16  ;;  %v14548_v15 = vpack.c.bf16 %v6791_v28, %v6790_v37  ;;  %v6795_v37 = vld [vmem:[#allocation2 + $0x88] sm:$0xff] }
 0x2f1   :  { %v14524_v11 = vadd.f32 %v14341_v48, %v10911_v13  ;;  %v6793_v13 = vld [vmem:[#allocation2 + $0x78] sm:$0xff]  ;;  %v14573_v58 = vpack.c.bf16 %v6795_v37, %v17173_v14 }
 0x2f2   :  { %v14528_v31 = vpop.f32.mrf.mxu1  ;;  %v14550_v9 = vpack.c.bf16 %v6793_v13, %v6792_v46  ;;  %11234 = vmatprep.mubr.msk.bf16.mxu0 %vm4062_vm8, %v14548_v15  ;;  %v6797_v46 = vld [vmem:[#allocation2 + $0x98] sm:$0xff] }
 0x2f3   :  { %v14575_v13 = vpack.c.bf16 %v6797_v46, %v6796_v51  ;;  %v6798_v51 = vld [vmem:[#allocation2 + $0xa0] sm:$0xff]  ;;  %v6799_v46 = vld [vmem:[#allocation2 + $0xa8] sm:$0xff] }
 0x2f4   :  { %v14540_v22 = vpop.f32.mrf.mxu1  ;;  %v14597_v3 = vpack.c.bf16 %v6799_v46, %v6798_v51  ;;  %v6803_v46 = vld [vmem:[#allocation2 + $0xc8] sm:$0xff] }
 0x2f5   :  { %11099 = vmatmul.mubr.msk.bf16.gmra.mxu1 %vm4062_vm8, %v17580_v61 }
 0x2f6   :  { %11102 = vmatprep.mubr.msk.bf16.mxu1 %vm4062_vm8, %v17581_v33  ;;  %v14544_v48 = vpop.f32.mrf.mxu1 }
 0x2f8   :  { %v14546_v53 = vpop.f32.mrf.mxu1  ;;  %11235 = vmatmul.mubr.msk.bf16.gmra.mxu0 %vm4062_vm8, %v14550_v9 }
 0x2f9   :  { %11238 = vmatprep.mubr.msk.bf16.mxu0 %vm4062_vm8, %v14573_v58 }
 0x2fa   :  { %v14552_v17 = vpop.f32.mrf.mxu1 }
 0x2fc   :  { %v14564_v61 = vpop.f32.mrf.mxu1 }
 0x2fd   :  { %11103 = vmatmul.mubr.msk.bf16.gmra.mxu1 %vm4062_vm8, %v17582_v10  ;;  %v17587_v10 = vpack.c.bf16 %v13874_v52, %v13872_v19  ;;  %v17590_v52 = vpack.c.bf16 %v13754_v34, %v13730_v54  ;;  %v14622_v54 = vpack.c.bf16 %v6803_v46, %v17173_v14  ;;  %v6804_v34 = vld [vmem:[#allocation2 + $0xd0] sm:$0xff] }
 0x2fe   :  { %11106 = vmatprep.mubr.msk.bf16.mxu1 %vm4062_vm8, %v17583_v50  ;;  %v14568_v33 = vpop.f32.mrf.mxu1 }
 0x300   :  { %v14570_v28 = vpop.f32.mrf.mxu1  ;;  %11239 = vmatmul.mubr.msk.bf16.gmra.mxu0 %vm4062_vm8, %v14575_v13 }
 0x301   :  { %17584 = vst [vmem:[#allocation230_spill] sm:$0xff] %v14570_v28  ;;  %11242 = vmatprep.mubr.msk.bf16.mxu0 %vm4062_vm8, %v14597_v3 }
 0x302   :  { %v14577_v35 = vpop.f32.mrf.mxu1 }
 0x303   :  { %17585 = vst [vmem:[#allocation231_spill] sm:$0xff] %v14577_v35  ;;  %v6801_v35 = vld [vmem:[#allocation2 + $0xb8] sm:$0xff] }
 0x304   :  { %v14589_v50 = vpop.f32.mrf.mxu1 }
 0x305   :  { %11107 = vmatmul.mubr.msk.bf16.gmra.mxu1 %vm4062_vm8, %v17586_v42  ;;  %v6800_v42 = vld [vmem:[#allocation2 + $0xb0] sm:$0xff] }
 0x306   :  { %11110 = vmatprep.mubr.msk.bf16.mxu1 %vm4062_vm8, %v17587_v10  ;;  %v14593_v37 = vpop.f32.mrf.mxu1  ;;  %v14599_v28 = vpack.c.bf16 %v6801_v35, %v6800_v42  ;;  %v17591_v10 = vpack.c.bf16 %v13926_v40, %v13924_v0  ;;  %v17596_v40 = vpack.c.bf16 %v13806_v2, %v13786_v63 }
 0x308   :  { %v14595_v5 = vpop.f32.mrf.mxu1  ;;  %11243 = vmatmul.mubr.msk.bf16.gmra.mxu0 %vm4062_vm8, %v14599_v28 }
 0x309   :  { %17588 = vst [vmem:[#allocation232_spill] sm:$0xff] %v14595_v5  ;;  %11246 = vmatprep.mubr.msk.bf16.mxu0 %vm4062_vm8, %v14622_v54 }
 0x30a   :  { %v14601_v19 = vpop.f32.mrf.mxu1 }
 0x30b   :  { %17589 = vst [vmem:[#allocation233_spill] sm:$0xff] %v14601_v19 }
 0x30c   :  { %v14613_v51 = vpop.f32.mrf.mxu1 }
 0x30d   :  { %11111 = vmatmul.mubr.msk.bf16.gmra.mxu1 %vm4062_vm8, %v17590_v52  ;;  %17592 = vst [vmem:[#allocation234_spill] sm:$0xff] %v14613_v51  ;;  %v6805_v52 = vld [vmem:[#allocation2 + $0xd8] sm:$0xff] }
 0x30e   :  { %11114 = vmatprep.mubr.msk.bf16.mxu1 %vm4062_vm8, %v17591_v10  ;;  %v14617_v35 = vpop.f32.mrf.mxu1  ;;  %v14624_v19 = vpack.c.bf16 %v6805_v52, %v6804_v34  ;;  %v17597_v10 = vpack.c.bf16 %v13978_v60, %v13976_v43  ;;  %v6806_v52 = vld [vmem:[#allocation2 + $0xe0] sm:$0xff] }
 0x30f   :  { %17593 = vst [vmem:[#allocation235_spill] sm:$0xff] %v14617_v35  ;;  %v17604_v60 = vld [vmem:[#allocation169_spill] sm:$0xff] }
 0x310   :  { %v14619_v42 = vpop.f32.mrf.mxu1  ;;  %11247 = vmatmul.mubr.msk.bf16.gmra.mxu0 %vm4062_vm8, %v14624_v19 }
 0x311   :  { %17594 = vst [vmem:[#allocation236_spill] sm:$0xff] %v14619_v42  ;;  %v6809_v42 = vld [vmem:[#allocation2 + $0xf8] sm:$0xff] }
 0x312   :  { %v14626_v0 = vpop.f32.mrf.mxu1 }
 0x313   :  { %17595 = vst [vmem:[#allocation237_spill] sm:$0xff] %v14626_v0  ;;  %v6807_v0 = vld [vmem:[#allocation2 + $0xe8] sm:$0xff] }
 0x314   :  { %v14638_v46 = vpop.f32.mrf.mxu1  ;;  %v14646_v63 = vpack.c.bf16 %v6807_v0, %v6806_v52  ;;  %v6811_v52 = vld [vmem:[#allocation2 + $0x108] sm:$0xff] }
 0x315   :  { %11115 = vmatmul.mubr.msk.bf16.gmra.mxu1 %vm4062_vm8, %v17596_v40  ;;  %17598 = vst [vmem:[#allocation238_spill] sm:$0xff] %v14638_v46  ;;  %v6808_v40 = vld [vmem:[#allocation2 + $0xf0] sm:$0xff] }
 0x316   :  { %11118 = vmatprep.mubr.msk.bf16.mxu1 %vm4062_vm8, %v17597_v10  ;;  %v14642_v34 = vpop.f32.mrf.mxu1  ;;  %17601 = vst [vmem:[#allocation241_spill] sm:$0xff] %v14646_v63  ;;  %v14648_v35 = vpack.c.bf16 %v6809_v42, %v6808_v40  ;;  %v17605_v10 = vpack.c.bf16 %v13858_v12, %v17604_v60  ;;  %11250 = vmatprep.mubr.msk.bf16.mxu0 %vm4062_vm8, %v14646_v63  ;;  %v17607_v46 = vld [vmem:[#allocation190_spill] sm:$0xff] }
 0x317   :  { %17599 = vst [vmem:[#allocation239_spill] sm:$0xff] %v14642_v34  ;;  %v17606_v34 = vld [vmem:[#allocation191_spill] sm:$0xff]  ;;  %v14671_v12 = vpack.c.bf16 %v6811_v52, %v17173_v14 }
 0x318   :  { %v14644_v2 = vpop.f32.mrf.mxu1  ;;  %17602 = vst [vmem:[#allocation242_spill] sm:$0xff] %v14648_v35  ;;  %v17608_v51 = vpack.c.bf16 %v17606_v34, %v17607_v46  ;;  %11251 = vmatmul.mubr.msk.bf16.gmra.mxu0 %vm4062_vm8, %v14648_v35  ;;  %v6812_v60 = vld [vmem:[#allocation2 + $0x110] sm:$0xff] }
 0x319   :  { %17600 = vst [vmem:[#allocation240_spill] sm:$0xff] %v14644_v2  ;;  %17612 = vst [vmem:[#allocation244_spill] sm:$0xff] %v14671_v12  ;;  %v14676_v46 = vld [vmem:[%s16855_s3 + $0x10] sm:$0xff]   ;;  %11254 = vmatprep.mubr.msk.bf16.mxu0 %vm4062_vm8, %v14671_v12  ;;  %v6817_v12 = vld [vmem:[#allocation2 + $0x138] sm:$0xff] }
 0x31a   :  { %v14650_v43 = vpop.f32.mrf.mxu1  ;;  %11286 = vmatprep.subr.bf16.mxu1 %v14676_v46 }
 0x31b   :  { %17603 = vst [vmem:[#allocation243_spill] sm:$0xff] %v14650_v43  ;;  %v17615_v43 = vld [vmem:[#allocation174_spill] sm:$0xff] }
 0x31c   :  { %v14662_v0 = vpop.f32.mrf.mxu1 }
 0x31d   :  { %11119 = vmatmul.mubr.msk.bf16.gmra.mxu1 %vm4062_vm8, %v17605_v10  ;;  %17609 = vst [vmem:[#allocation169_spill] sm:$0xff] %v14662_v0  ;;  %v6813_v10 = vld [vmem:[#allocation2 + $0x118] sm:$0xff] }
 0x31e   :  { %11122 = vmatprep.mubr.msk.bf16.mxu1 %vm4062_vm8, %v17608_v51  ;;  %v14666_v42 = vpop.f32.mrf.mxu1  ;;  %v14678_v51 = vpack.c.bf16 %v6813_v10, %v6812_v60  ;;  %v17614_v0 = vld [vmem:[#allocation56_spill] sm:$0xff] }
 0x31f   :  { %17610 = vst [vmem:[#allocation191_spill] sm:$0xff] %v14666_v42  ;;  %v17616_v2 = vpack.c.bf16 %v17614_v0, %v17615_v43  ;;  %v17619_v42 = vld [vmem:[#allocation198_spill] sm:$0xff]  ;;  %v17622_v0 = vld [vmem:[#allocation205_spill] sm:$0xff] }
 0x320   :  { %v14668_v40 = vpop.f32.mrf.mxu1  ;;  %17613 = vst [vmem:[#allocation245_spill] sm:$0xff] %v14678_v51  ;;  %11255 = vmatmul.mubr.msk.bf16.gmra.mxu0 %vm4062_vm8, %v14678_v51  ;;  %v4865_v10 = vadd.f32 %v17622_v0, %v14418_v41  ;;  %v17626_v41 = vld [vmem:[#allocation204_spill] sm:$0xff] }
 0x321   :  { %17611 = vst [vmem:[#allocation190_spill] sm:$0xff] %v14668_v40  ;;  %v17618_v40 = vld [vmem:[#allocation199_spill] sm:$0xff] }
 0x322   :  { %v11026_v34 = vpop.f32.mrf.mxu1  ;;  %v17620_v35 = vpack.c.bf16 %v17618_v40, %v17619_v42  ;;  %v6815_v42 = vld [vmem:[#allocation2 + $0x128] sm:$0xff] }
 0x323   :  { %v14687_v52 = vadd.f32 %v11026_v34, %v14386_v56  ;;  %v6814_v34 = vld [vmem:[#allocation2 + $0x120] sm:$0xff] }
 0x324   :  { %v5287_v60 = vpop.f32.mrf.mxu1 }
 0x325   :  { %11123 = vmatmul.mubr.msk.bf16.gmra.mxu1 %vm4062_vm8, %v17616_v2  ;;  %17617 = vst [vmem:[#allocation56_spill] sm:$0xff] %v14687_v52  ;;  %v14697_v43 = vadd.f32 %v5287_v60, %v14395_v21  ;;  %v6816_v52 = vld [vmem:[#allocation2 + $0x130] sm:$0xff]  ;;  %v17623_v60 = vld [vmem:[#allocation60_spill] sm:$0xff] }
 0x326   :  { %11126 = vmatprep.mubr.msk.bf16.mxu1 %vm4062_vm8, %v17620_v35  ;;  %v11027_v2 = vpop.f32.mrf.mxu1  ;;  %v14704_v35 = vpack.c.bf16 %v6815_v42, %v6814_v34  ;;  %v14708_v51 = vpack.c.bf16 %v6817_v12, %v6816_v52 }
 0x327   :  { %17621 = vst [vmem:[#allocation174_spill] sm:$0xff] %v14697_v43  ;;  %v14702_v56 = vadd.f32 %v11027_v2, %v14416_v57  ;;  %v17624_v43 = vld [vmem:[#allocation180_spill] sm:$0xff]  ;;  %v17627_v2 = vld [vmem:[#allocation203_spill] sm:$0xff] }
 0x328   :  { %v5290_v40 = vpop.f32.mrf.mxu1  ;;  %v17625_v63 = vpack.c.bf16 %v17623_v60, %v17624_v43  ;;  %11258 = vmatprep.mubr.msk.bf16.mxu0 %vm4062_vm8, %v14704_v35  ;;  %v17628_v0 = vpack.c.bf16 %v17626_v41, %v17627_v2  ;;  %v6821_v60 = vld [vmem:[#allocation2 + $0x158] sm:$0xff] }
 0x329   :  { %v14706_v5 = vadd.f32 %v5290_v40, %v4865_v10  ;;  %11259 = vmatmul.mubr.msk.bf16.gmra.mxu0 %vm4062_vm8, %v14708_v51 }
 0x32a   :  { %v11030_v21 = vpop.f32.mrf.mxu1 }
 0x32b   :  { %v14717_v57 = vadd.f32 %v11030_v21, %v14433_v45  ;;  %v6819_v45 = vld [vmem:[#allocation2 + $0x148] sm:$0xff]  ;;  %v6820_v21 = vld [vmem:[#allocation2 + $0x150] sm:$0xff] }
 0x32c   :  { %v5303_v10 = vpop.f32.mrf.mxu1  ;;  %v14734_v40 = vpack.c.bf16 %v6819_v45, %v17173_v14  ;;  %v14738_v2 = vpack.c.bf16 %v6821_v60, %v6820_v21 }
 0x32d   :  { %11127 = vmatmul.mubr.msk.bf16.gmra.mxu1 %vm4062_vm8, %v17625_v63  ;;  %v14726_v12 = vadd.f32 %v5303_v10, %v14438_v49  ;;  %v17630_v63 = vld [vmem:[#allocation210_spill] sm:$0xff] }
 0x32e   :  { %11130 = vmatprep.mubr.msk.bf16.mxu1 %vm4062_vm8, %v17628_v0  ;;  %v11031_v52 = vpop.f32.mrf.mxu1  ;;  %v4881_v43 = vadd.f32 %v17630_v63, %v14445_v38  ;;  %v17632_v0 = vld [vmem:[#allocation64_spill] sm:$0xff]  ;;  %v17633_v10 = vld [vmem:[#allocation186_spill] sm:$0xff]  ;;  %11262 = vmatprep.mubr.msk.bf16.mxu0 %vm4062_vm8, %v14734_v40  ;;  %v17636_v38 = vld [vmem:[#allocation209_spill] sm:$0xff] }
 0x32f   :  { %17629 = vst [vmem:[#allocation199_spill] sm:$0xff] %v14726_v12  ;;  %v14731_v34 = vadd.f32 %v11031_v52, %v14443_v44  ;;  %v17634_v12 = vpack.c.bf16 %v17632_v0, %v17633_v10  ;;  %v17637_v52 = vld [vmem:[#allocation208_spill] sm:$0xff] }
 0x330   :  { %v5306_v42 = vpop.f32.mrf.mxu1  ;;  %v17638_v63 = vpack.c.bf16 %v17636_v38, %v17637_v52  ;;  %v6824_v38 = vld [vmem:[#allocation2 + $0x170] sm:$0xff]  ;;  %v6825_v52 = vld [vmem:[#allocation2 + $0x178] sm:$0xff] }
 0x331   :  { %v14736_v41 = vadd.f32 %v5306_v42, %v4881_v43  ;;  %11263 = vmatmul.mubr.msk.bf16.gmra.mxu0 %vm4062_vm8, %v14738_v2 }
 0x332   :  { %v11034_v49 = vpop.f32.mrf.mxu1 }
 0x333   :  { %17631 = vst [vmem:[#allocation198_spill] sm:$0xff] %v14736_v41  ;;  %v14747_v44 = vadd.f32 %v11034_v49, %v14457_v62  ;;  %v6822_v62 = vld [vmem:[#allocation2 + $0x160] sm:$0xff]  ;;  %v6823_v49 = vld [vmem:[#allocation2 + $0x168] sm:$0xff] }
 0x334   :  { %v5319_v43 = vpop.f32.mrf.mxu1  ;;  %v14763_v10 = vpack.c.bf16 %v6823_v49, %v6822_v62 }
 0x335   :  { %11131 = vmatmul.mubr.msk.bf16.gmra.mxu1 %vm4062_vm8, %v17634_v12  ;;  %17635 = vst [vmem:[#allocation205_spill] sm:$0xff] %v14747_v44  ;;  %v14756_v45 = vadd.f32 %v5319_v43, %v14465_v7  ;;  %v17640_v12 = vld [vmem:[#allocation215_spill] sm:$0xff]  ;;  %v14767_v44 = vpack.c.bf16 %v6825_v52, %v6824_v38  ;;  %v17641_v43 = vld [vmem:[#allocation68_spill] sm:$0xff] }
 0x336   :  { %11134 = vmatprep.mubr.msk.bf16.mxu1 %vm4062_vm8, %v17638_v63  ;;  %v11035_v42 = vpop.f32.mrf.mxu1  ;;  %v4897_v21 = vadd.f32 %v17640_v12, %v14473_v29  ;;  %11266 = vmatprep.mubr.msk.bf16.mxu0 %vm4062_vm8, %v14763_v10 }
 0x337   :  { %17639 = vst [vmem:[#allocation60_spill] sm:$0xff] %v14756_v45  ;;  %v14761_v60 = vadd.f32 %v11035_v42, %v14471_v36  ;;  %v17642_v45 = vld [vmem:[#allocation194_spill] sm:$0xff]  ;;  %v17645_v42 = vld [vmem:[#allocation213_spill] sm:$0xff] }
 0x338   :  { %v5322_v0 = vpop.f32.mrf.mxu1  ;;  %v17643_v41 = vpack.c.bf16 %v17641_v43, %v17642_v45  ;;  %v17644_v36 = vld [vmem:[#allocation214_spill] sm:$0xff]  ;;  %v6829_v43 = vld [vmem:[#allocation2 + $0x198] sm:$0xff] }
 0x339   :  { %v14765_v63 = vadd.f32 %v5322_v0, %v4897_v21  ;;  %v17646_v12 = vpack.c.bf16 %v17644_v36, %v17645_v42  ;;  %11267 = vmatmul.mubr.msk.bf16.gmra.mxu0 %vm4062_vm8, %v14767_v44 }
 0x33a   :  { %v11038_v7 = vpop.f32.mrf.mxu1 }
 0x33b   :  { %v14776_v29 = vadd.f32 %v11038_v7, %v14485_v27  ;;  %v6827_v27 = vld [vmem:[#allocation2 + $0x188] sm:$0xff]  ;;  %v6828_v7 = vld [vmem:[#allocation2 + $0x190] sm:$0xff] }
 0x33c   :  { %v5335_v21 = vpop.f32.mrf.mxu1  ;;  %v14793_v52 = vpack.c.bf16 %v6827_v27, %v17173_v14  ;;  %v14797_v42 = vpack.c.bf16 %v6829_v43, %v6828_v7 }
 0x33d   :  { %11135 = vmatmul.mubr.msk.bf16.gmra.mxu1 %vm4062_vm8, %v17643_v41  ;;  %v14785_v62 = vadd.f32 %v5335_v21, %v14490_v25  ;;  %v17648_v41 = vld [vmem:[#allocation220_spill] sm:$0xff]  ;;  %v17652_v21 = vld [vmem:[#allocation202_spill] sm:$0xff] }
 0x33e   :  { %11138 = vmatprep.mubr.msk.bf16.mxu1 %vm4062_vm8, %v17646_v12  ;;  %v11039_v45 = vpop.f32.mrf.mxu1  ;;  %v4913_v49 = vadd.f32 %v17648_v41, %v14497_v18  ;;  %v17651_v12 = vld [vmem:[#allocation65_spill] sm:$0xff]  ;;  %11270 = vmatprep.mubr.msk.bf16.mxu0 %vm4062_vm8, %v14793_v52 }
 0x33f   :  { %17647 = vst [vmem:[#allocation180_spill] sm:$0xff] %v14785_v62  ;;  %v14790_v0 = vadd.f32 %v11039_v45, %v14495_v30  ;;  %v17653_v62 = vpack.c.bf16 %v17651_v12, %v17652_v21  ;;  %v17655_v30 = vld [vmem:[#allocation219_spill] sm:$0xff]  ;;  %v17656_v45 = vld [vmem:[#allocation218_spill] sm:$0xff] }
 0x340   :  { %v5338_v38 = vpop.f32.mrf.mxu1  ;;  %v17657_v41 = vpack.c.bf16 %v17655_v30, %v17656_v45  ;;  %v6832_v30 = vld [vmem:[#allocation2 + $0x1b0] sm:$0xff]  ;;  %v6833_v45 = vld [vmem:[#allocation2 + $0x1b8] sm:$0xff] }
 0x341   :  { %17649 = vst [vmem:[#allocation204_spill] sm:$0xff] %v14790_v0  ;;  %v14795_v36 = vadd.f32 %v5338_v38, %v4913_v49  ;;  %v4537_v49 = vpop.f32.mrf.mxu0  ;;  %11271 = vmatmul.mubr.msk.bf16.gmra.mxu0 %vm4062_vm8, %v14797_v42 }
 0x342   :  { %v4929_v7 = vadd.f32 %v14353_v23, %v4537_v49  ;;  %v17664_v23 = vld [vmem:[#allocation207_spill] sm:$0xff] }
 0x343   :  { %17650 = vst [vmem:[#allocation203_spill] sm:$0xff] %v14795_v36 }
 0x344   :  { %v11042_v25 = vpop.f32.mrf.mxu1 }
 0x345   :  { %11139 = vmatmul.mubr.msk.bf16.gmra.mxu1 %vm4062_vm8, %v17653_v62  ;;  %v14806_v18 = vadd.f32 %v11042_v25, %v14511_v1  ;;  %v6830_v1 = vld [vmem:[#allocation2 + $0x1a0] sm:$0xff]  ;;  %v6831_v25 = vld [vmem:[#allocation2 + $0x1a8] sm:$0xff] }
 0x346   :  { %11142 = vmatprep.mubr.msk.bf16.mxu1 %vm4062_vm8, %v17657_v41  ;;  %v5351_v27 = vpop.f32.mrf.mxu1  ;;  %v14821_v21 = vpack.c.bf16 %v6831_v25, %v6830_v1  ;;  %v17660_v41 = vld [vmem:[#allocation145_spill] sm:$0xff]  ;;  %v17668_v25 = vld [vmem:[#allocation222_spill] sm:$0xff] }
 0x347   :  { %17654 = vst [vmem:[#allocation210_spill] sm:$0xff] %v14806_v18  ;;  %v14815_v38 = vadd.f32 %v5351_v27, %v14516_v4  ;;  %v4950_v18 = vadd.f32 %v14367_v39, %v17660_v41  ;;  %v14827_v4 = vpack.c.bf16 %v6833_v45, %v6832_v30  ;;  %v17669_v39 = vld [vmem:[#allocation86_spill] sm:$0xff]  ;;  %v17672_v30 = vld [vmem:[#allocation92_spill] sm:$0xff] }
 0x348   :  { %v11043_v62 = vpop.f32.mrf.mxu1  ;;  %11274 = vmatprep.mubr.msk.bf16.mxu0 %vm4062_vm8, %v14821_v21 }
 0x349   :  { %17658 = vst [vmem:[#allocation64_spill] sm:$0xff] %v14815_v38  ;;  %v14819_v43 = vadd.f32 %v11043_v62, %v14524_v11  ;;  %17662 = vst [vmem:[#allocation208_spill] sm:$0xff] %v14827_v4  ;;  %v17663_v38 = vld [vmem:[#allocation69_spill] sm:$0xff]  ;;  %11275 = vmatmul.mubr.msk.bf16.gmra.mxu0 %vm4062_vm8, %v14827_v4 }
 0x34a   :  { %v5354_v12 = vpop.f32.mrf.mxu1  ;;  %v17665_v49 = vpack.c.bf16 %v17663_v38, %v17664_v23  ;;  %v17666_v11 = vld [vmem:[#allocation21_spill] sm:$0xff]  ;;  %v17671_v38 = vld [vmem:[#allocation27_spill] sm:$0xff] }
 0x34b   :  { %17659 = vst [vmem:[#allocation186_spill] sm:$0xff] %v14819_v43  ;;  %v14825_v36 = vadd.f32 %v5354_v12, %v4929_v7  ;;  %v4942_v62 = vadd.f32 %v14381_v8, %v17666_v11  ;;  %v17670_v7 = vpack.c.bf16 %v17668_v25, %v17669_v39  ;;  %v4953_v45 = vadd.f32 %v17672_v30, %v17671_v38  ;;  %v6836_v39 = vld [vmem:[#allocation2 + $0x1d0] sm:$0xff]  ;;  %v17680_v38 = vld [vmem:[#allocation73_spill] sm:$0xff]  ;;  %v17681_v30 = vld [vmem:[#allocation212_spill] sm:$0xff] }
 0x34c   :  { %v11046_v27 = vpop.f32.mrf.mxu1  ;;  %v17678_v43 = vld [vmem:[#allocation227_spill] sm:$0xff] }
 0x34d   :  { %17661 = vst [vmem:[#allocation209_spill] sm:$0xff] %v14825_v36  ;;  %11143 = vmatmul.mubr.msk.bf16.gmra.mxu1 %vm4062_vm8, %v17665_v49  ;;  %v14837_v1 = vadd.f32 %v11046_v27, %v4950_v18  ;;  %v17674_v49 = vld [vmem:[#allocation147_spill] sm:$0xff]  ;;  %v17675_v36 = vld [vmem:[#allocation226_spill] sm:$0xff] }
 0x34e   :  { %11146 = vmatprep.mubr.msk.bf16.mxu1 %vm4062_vm8, %v17670_v7  ;;  %v5367_v12 = vpop.f32.mrf.mxu1  ;;  %v4945_v8 = vadd.f32 %v17675_v36, %v17674_v49  ;;  %v6835_v27 = vld [vmem:[#allocation2 + $0x1c8] sm:$0xff]  ;;  %v6837_v7 = vld [vmem:[#allocation2 + $0x1d8] sm:$0xff]  ;;  %v17682_v36 = vpack.c.bf16 %v17680_v38, %v17681_v30 }
 0x34f   :  { %17667 = vst [vmem:[#allocation215_spill] sm:$0xff] %v14837_v1  ;;  %v14847_v41 = vadd.f32 %v5367_v12, %v4942_v62  ;;  %v14854_v25 = vpack.c.bf16 %v6835_v27, %v17173_v14  ;;  %v17677_v1 = vld [vmem:[#allocation149_spill] sm:$0xff]  ;;  %v14860_v62 = vpack.c.bf16 %v6837_v7, %v6836_v39 }
 0x350   :  { %v11047_v23 = vpop.f32.mrf.mxu1  ;;  %v4966_v0 = vadd.f32 %v17678_v43, %v17677_v1  ;;  %v17686_v14 = vld [vmem:[#allocation225_spill] sm:$0xff]  ;;  %v17687_v43 = vld [vmem:[#allocation224_spill] sm:$0xff] }
 0x351   :  { %17673 = vst [vmem:[#allocation68_spill] sm:$0xff] %v14847_v41  ;;  %v14851_v18 = vadd.f32 %v11047_v23, %v4953_v45  ;;  %11278 = vmatprep.mubr.msk.bf16.mxu0 %vm4062_vm8, %v14854_v25  ;;  %v17683_v45 = vld [vmem:[#allocation26_spill] sm:$0xff]  ;;  %v17684_v23 = vld [vmem:[#allocation91_spill] sm:$0xff]  ;;  %v17688_v1 = vpack.c.bf16 %v17686_v14, %v17687_v43  ;;  %v17690_v39 = vld [vmem:[#allocation89_spill] sm:$0xff] }
 0x352   :  { %v5370_v11 = vpop.f32.mrf.mxu1  ;;  %v4958_v49 = vadd.f32 %v17684_v23, %v17683_v45  ;;  %11279 = vmatmul.mubr.msk.bf16.gmra.mxu0 %vm4062_vm8, %v14860_v62  ;;  %v6839_v14 = vld [vmem:[#allocation2 + $0x1e8] sm:$0xff] }
 0x353   :  { %17676 = vst [vmem:[#allocation194_spill] sm:$0xff] %v14851_v18  ;;  %v14858_v4 = vadd.f32 %v5370_v11, %v4945_v8  ;;  %v17689_v11 = vld [vmem:[#allocation31_spill] sm:$0xff]  ;;  %v17697_v18 = vld [vmem:[#allocation153_spill] sm:$0xff] }
 0x354   :  { %v11050_v12 = vpop.f32.mrf.mxu1  ;;  %v4969_v7 = vadd.f32 %v17690_v39, %v17689_v11  ;;  %v17698_v11 = vld [vmem:[#allocation94_spill] sm:$0xff] }
 0x355   :  { %17679 = vst [vmem:[#allocation214_spill] sm:$0xff] %v14858_v4  ;;  %11147 = vmatmul.mubr.msk.bf16.gmra.mxu1 %vm4062_vm8, %v17682_v36  ;;  %v14870_v27 = vadd.f32 %v11050_v12, %v4966_v0  ;;  %v17692_v36 = vld [vmem:[#allocation151_spill] sm:$0xff]  ;;  %v17693_v4 = vld [vmem:[#allocation96_spill] sm:$0xff] }
 0x356   :  { %11150 = vmatprep.mubr.msk.bf16.mxu1 %vm4062_vm8, %v17688_v1  ;;  %v5383_v8 = vpop.f32.mrf.mxu1  ;;  %v4961_v45 = vadd.f32 %v17693_v4, %v17692_v36  ;;  %v14886_v12 = vld [vmem:[#allocation2 + $0x1e0] sm:$0xff]  ;;  %v14891_v1 = vld [vmem:[#allocation2 + $0x1f0] sm:$0xff] }
 0x357   :  { %17685 = vst [vmem:[#allocation213_spill] sm:$0xff] %v14870_v27  ;;  %v14880_v38 = vadd.f32 %v5383_v8, %v4958_v49  ;;  %17695 = vst [vmem:[#allocation202_spill] sm:$0xff] %v14886_v12  ;;  %v14889_v43 = vpack.c.bf16 %v6839_v14, %v14886_v12  ;;  %v6841_v27 = vld [vmem:[#allocation2 + $0x1f8] sm:$0xff]  ;;  %v4982_v49 = vadd.f32 %v17698_v11, %v17697_v18  ;;  %v17703_v14 = vld [vmem:[#allocation30_spill] sm:$0xff] }
 0x358   :  { %v11051_v30 = vpop.f32.mrf.mxu1  ;;  %17696 = vst [vmem:[#allocation219_spill] sm:$0xff] %v14891_v1  ;;  %v14898_v39 = vpack.c.bf16 %v6841_v27, %v14891_v1  ;;  %v17704_v12 = vld [vmem:[#allocation95_spill] sm:$0xff]  ;;  %v17706_v18 = vld [vmem:[#allocation100_spill] sm:$0xff]  ;;  %v17709_v11 = vld [vmem:[#allocation34_spill] sm:$0xff] }
 0x359   :  { %17691 = vst [vmem:[#allocation220_spill] sm:$0xff] %v14880_v38  ;;  %v14884_v0 = vadd.f32 %v11051_v30, %v4969_v7  ;;  %v17700_v7 = vld [vmem:[#allocation77_spill] sm:$0xff]  ;;  %11282 = vmatprep.mubr.msk.bf16.mxu0 %vm4062_vm8, %v14889_v43  ;;  %v17715_v1 = vld [vmem:[#allocation99_spill] sm:$0xff] }
 0x35a   :  { %v5386_v23 = vpop.f32.mrf.mxu1  ;;  %v17701_v30 = vld [vmem:[#allocation217_spill] sm:$0xff]  ;;  %11283 = vmatmul.mubr.msk.bf16.gmra.mxu0 %vm4062_vm8, %v14898_v39 }
 0x35b   :  { %17694 = vst [vmem:[#allocation65_spill] sm:$0xff] %v14884_v0  ;;  %v14895_v8 = vadd.f32 %v5386_v23, %v4961_v45  ;;  %v17702_v36 = vpack.c.bf16 %v17700_v7, %v17701_v30  ;;  %v4974_v0 = vadd.f32 %v17704_v12, %v17703_v14  ;;  %v17707_v45 = vld [vmem:[#allocation98_spill] sm:$0xff]  ;;  %v4985_v7 = vadd.f32 %v14462_v26, %v17709_v11  ;;  %v17714_v26 = vld [vmem:[#allocation228_spill] sm:$0xff] }
 0x35c   :  { %v11054_v4 = vpop.f32.mrf.mxu1  ;;  %v17708_v23 = vpack.c.bf16 %v17706_v18, %v17707_v45  ;;  %v11626_v12 = vld [vmem:[%s16855_s3 + $0x30] sm:$0xff]   ;;  %11354 = vmatprep.mubr.msk.bf16.mxu0 %vm4062_vm8, %v14521_v32 }
 0x35d   :  { %17699 = vst [vmem:[#allocation218_spill] sm:$0xff] %v14895_v8  ;;  %11151 = vmatmul.mubr.msk.bf16.gmra.mxu1 %vm4062_vm8, %v17702_v36  ;;  %v14908_v38 = vadd.f32 %v11054_v4, %v4982_v49  ;;  %v17711_v4 = vld [vmem:[#allocation155_spill] sm:$0xff]  ;;  %v17712_v36 = vld [vmem:[#allocation93_spill] sm:$0xff]  ;;  %11352 = vmatprep.subr.bf16.mxu0 %v11626_v12 }
 0x35e   :  { %11156 = vmatprep.mubr.msk.bf16.mxu1 %vm4062_vm8, %v17708_v23  ;;  %v5399_v27 = vpop.f32.mrf.mxu1  ;;  %v4977_v14 = vadd.f32 %v17712_v36, %v17711_v4  ;;  %11353 = vmatpush3.bf16.msra.mxu0 %v11626_v12  ;;  %v17713_v23 = vld [vmem:[#allocation157_spill] sm:$0xff]  ;;  %v17718_v32 = vld [vmem:[#allocation35_spill] sm:$0xff] }
 0x35f   :  { %17705 = vst [vmem:[#allocation145_spill] sm:$0xff] %v14908_v38  ;;  %v14918_v30 = vadd.f32 %v5399_v27, %v4974_v0  ;;  %v4998_v0 = vadd.f32 %v17714_v26, %v17713_v23  ;;  %v17719_v8 = vld [vmem:[#allocation229_spill] sm:$0xff] }
 0x360   :  { %v11055_v49 = vpop.f32.mrf.mxu1  ;;  %v4990_v41 = vadd.f32 %v17719_v8, %v17718_v32  ;;  %v17726_v32 = vld [vmem:[#allocation103_spill] sm:$0xff] }
 0x361   :  { %17710 = vst [vmem:[#allocation69_spill] sm:$0xff] %v14918_v30  ;;  %v14927_v18 = vadd.f32 %v11055_v49, %v4985_v7  ;;  %v17716_v30 = vld [vmem:[#allocation97_spill] sm:$0xff]  ;;  %v17720_v7 = vld [vmem:[#allocation104_spill] sm:$0xff]  ;;  %v17721_v49 = vld [vmem:[#allocation102_spill] sm:$0xff] }
 0x362   :  { %v5402_v45 = vpop.f32.mrf.mxu1  ;;  %v17717_v38 = vpack.c.bf16 %v17715_v1, %v17716_v30  ;;  %v17722_v36 = vpack.c.bf16 %v17720_v7, %v17721_v49  ;;  %11355 = vmatmul.mubr.msk.bf16.vlgmr.msra.gmra.mxu0 %vm4062_vm8, %v14526_v16  ;;  %v17724_v30 = vld [vmem:[#allocation159_spill] sm:$0xff] }
 0x363   :  { %v14931_v27 = vadd.f32 %v5402_v45, %v4977_v14  ;;  %v17723_v14 = vld [vmem:[#allocation38_spill] sm:$0xff]  ;;  %11358 = vmatprep.mubr.msk.bf16.mxu0 %vm4062_vm8, %v14548_v15  ;;  %v4993_v45 = vadd.f32 %v14492_v20, %v17724_v30  ;;  %v17729_v7 = vld [vmem:[#allocation39_spill] sm:$0xff]  ;;  %v17730_v20 = vld [vmem:[#allocation108_spill] sm:$0xff] }
 0x364   :  { %v5001_v1 = vadd.f32 %v14487_v6, %v17723_v14  ;;  %v17727_v6 = vld [vmem:[#allocation101_spill] sm:$0xff]  ;;  %v5006_v15 = vadd.f32 %v14507_v59, %v17729_v7  ;;  %v17734_v30 = vld [vmem:[#allocation163_spill] sm:$0xff] }
 0x365   :  { %v11058_v11 = vpop.f32.mrf.mxu1  ;;  %11157 = vmatmul.mubr.msk.bf16.vlgmr.msra.gmra.mxu1 %vm4062_vm8, %v17717_v38  ;;  %v17739_v7 = vld [vmem:[#allocation43_spill] sm:$0xff] }
 0x366   :  { %v14939_v4 = vadd.f32 %v11058_v11, %v4998_v0  ;;  %11160 = vmatprep.mubr.msk.bf16.mxu1 %vm4062_vm8, %v17722_v36  ;;  %11287 = vmatpush3.bf16.msra.mxu1 %v14676_v46  ;;  %v17725_v46 = vld [vmem:[#allocation161_spill] sm:$0xff]  ;;  %v17731_v36 = vld [vmem:[#allocation106_spill] sm:$0xff] }
 0x367   :  { %v5415_v12 = vpop.f32.mrf.mxu1  ;;  %v5014_v0 = vadd.f32 %v14499_v47, %v17725_v46  ;;  %v17733_v47 = vld [vmem:[#allocation42_spill] sm:$0xff] }
 0x368   :  { %v14950_v38 = vadd.f32 %v5415_v12, %v4990_v41  ;;  %v17728_v41 = vpack.c.bf16 %v17726_v32, %v17727_v6  ;;  %v17732_v12 = vpack.c.bf16 %v17730_v20, %v17731_v36  ;;  %v17736_v6 = vld [vmem:[#allocation107_spill] sm:$0xff]  ;;  %v17741_v20 = vld [vmem:[#allocation110_spill] sm:$0xff] }
 0x369   :  { %v11059_v8 = vpop.f32.mrf.mxu1 }
 0x36a   :  { %v14956_v23 = vadd.f32 %v11059_v8, %v5001_v1  ;;  %11359 = vmatmul.mubr.msk.bf16.gmra.mxu0 %vm4062_vm8, %v14550_v9  ;;  %v5017_v1 = vadd.f32 %v14513_v55, %v17733_v47  ;;  %v17737_v55 = vld [vmem:[#allocation105_spill] sm:$0xff] }
 0x36b   :  { %v5418_v26 = vpop.f32.mrf.mxu1  ;;  %11362 = vmatprep.mubr.msk.bf16.mxu0 %vm4062_vm8, %v14573_v58  ;;  %v5022_v58 = vadd.f32 %v14540_v22, %v17739_v7  ;;  %v17751_v7 = vld [vmem:[#allocation114_spill] sm:$0xff] }
 0x36c   :  { %v14960_v11 = vadd.f32 %v5418_v26, %v4993_v45  ;;  %v5009_v45 = vadd.f32 %v14518_v24, %v17734_v30  ;;  %v17740_v24 = vld [vmem:[#allocation112_spill] sm:$0xff] }
 0x36d   :  { %v11062_v16 = vpop.f32.mrf.mxu1  ;;  %11161 = vmatmul.mubr.msk.bf16.gmra.mxu1 %vm4062_vm8, %v17728_v41  ;;  %v17738_v41 = vpack.c.bf16 %v17736_v6, %v17737_v55  ;;  %v17742_v36 = vpack.c.bf16 %v17740_v24, %v17741_v20  ;;  %v17749_v55 = vld [vmem:[#allocation47_spill] sm:$0xff] }
 0x36e   :  { %v14968_v49 = vadd.f32 %v11062_v16, %v5014_v0  ;;  %11164 = vmatprep.mubr.msk.bf16.mxu1 %vm4062_vm8, %v17732_v12  ;;  %v17735_v0 = vld [vmem:[#allocation165_spill] sm:$0xff] }
 0x36f   :  { %v5431_v14 = vpop.f32.mrf.mxu1  ;;  %v5030_v16 = vadd.f32 %v14528_v31, %v17735_v0  ;;  %v17743_v31 = vld [vmem:[#allocation46_spill] sm:$0xff] }
 0x370   :  { %v14978_v8 = vadd.f32 %v5431_v14, %v5006_v15  ;;  %v5033_v14 = vadd.f32 %v14544_v48, %v17743_v31  ;;  %v17747_v48 = vld [vmem:[#allocation109_spill] sm:$0xff]  ;;  %v17755_v31 = vld [vmem:[#allocation230_spill] sm:$0xff] }
 0x371   :  { %v11063_v59 = vpop.f32.mrf.mxu1 }
 0x372   :  { %v14984_v26 = vadd.f32 %v11063_v59, %v5017_v1  ;;  %11363 = vmatmul.mubr.msk.bf16.gmra.mxu0 %vm4062_vm8, %v14575_v13  ;;  %v17744_v1 = vld [vmem:[#allocation167_spill] sm:$0xff] }
 0x373   :  { %v5434_v46 = vpop.f32.mrf.mxu1  ;;  %11366 = vmatprep.mubr.msk.bf16.mxu0 %vm4062_vm8, %v14597_v3  ;;  %v5025_v59 = vadd.f32 %v14546_v53, %v17744_v1  ;;  %v5038_v3 = vadd.f32 %v14564_v61, %v17749_v55  ;;  %v17750_v53 = vld [vmem:[#allocation116_spill] sm:$0xff] }
 0x374   :  { %v14988_v32 = vadd.f32 %v5434_v46, %v5009_v45  ;;  %v17745_v46 = vld [vmem:[#allocation170_spill] sm:$0xff]  ;;  %v17762_v55 = vld [vmem:[#allocation120_spill] sm:$0xff] }
 0x375   :  { %v11066_v9 = vpop.f32.mrf.mxu1  ;;  %11165 = vmatmul.mubr.msk.bf16.gmra.mxu1 %vm4062_vm8, %v17738_v41  ;;  %v5046_v0 = vadd.f32 %v14552_v17, %v17745_v46  ;;  %v17753_v17 = vld [vmem:[#allocation50_spill] sm:$0xff] }
 0x376   :  { %v14996_v15 = vadd.f32 %v11066_v9, %v5030_v16  ;;  %11168 = vmatprep.mubr.msk.bf16.mxu1 %vm4062_vm8, %v17742_v36  ;;  %v17746_v9 = vld [vmem:[#allocation111_spill] sm:$0xff]  ;;  %v5049_v20 = vadd.f32 %v14568_v33, %v17753_v17  ;;  %v17759_v33 = vld [vmem:[#allocation113_spill] sm:$0xff] }
 0x377   :  { %v5447_v12 = vpop.f32.mrf.mxu1  ;;  %v17748_v6 = vpack.c.bf16 %v17746_v9, %v17747_v48  ;;  %v17761_v48 = vld [vmem:[#allocation51_spill] sm:$0xff] }
 0x378   :  { %v15006_v47 = vadd.f32 %v5447_v12, %v5022_v58  ;;  %v17752_v58 = vpack.c.bf16 %v17750_v53, %v17751_v7  ;;  %v17754_v12 = vld [vmem:[#allocation172_spill] sm:$0xff] }
 0x379   :  { %v11067_v22 = vpop.f32.mrf.mxu1 }
 0x37a   :  { %v15012_v30 = vadd.f32 %v11067_v22, %v5033_v14  ;;  %11367 = vmatmul.mubr.msk.bf16.gmra.mxu0 %vm4062_vm8, %v14599_v28  ;;  %v5041_v14 = vadd.f32 %v17755_v31, %v17754_v12  ;;  %v17768_v12 = vld [vmem:[#allocation232_spill] sm:$0xff] }
 0x37b   :  { %v5450_v45 = vpop.f32.mrf.mxu1  ;;  %11370 = vmatprep.mubr.msk.bf16.mxu0 %vm4062_vm8, %v14622_v54  ;;  %v5054_v54 = vadd.f32 %v14589_v50, %v17761_v48  ;;  %v17775_v48 = vld [vmem:[#allocation234_spill] sm:$0xff] }
 0x37c   :  { %v15016_v16 = vadd.f32 %v5450_v45, %v5025_v59  ;;  %v17756_v59 = vld [vmem:[#allocation175_spill] sm:$0xff] }
 0x37d   :  { %v11070_v13 = vpop.f32.mrf.mxu1  ;;  %11169 = vmatmul.mubr.msk.bf16.gmra.mxu1 %vm4062_vm8, %v17748_v6  ;;  %v17757_v45 = vld [vmem:[#allocation231_spill] sm:$0xff] }
 0x37e   :  { %v15024_v41 = vadd.f32 %v11070_v13, %v5046_v0  ;;  %11172 = vmatprep.mubr.msk.bf16.mxu1 %vm4062_vm8, %v17752_v58  ;;  %v5062_v46 = vadd.f32 %v17757_v45, %v17756_v59  ;;  %v17758_v13 = vld [vmem:[#allocation115_spill] sm:$0xff]  ;;  %v17765_v58 = vld [vmem:[#allocation176_spill] sm:$0xff]  ;;  %v17769_v59 = vld [vmem:[#allocation181_spill] sm:$0xff] }
 0x37f   :  { %v5463_v24 = vpop.f32.mrf.mxu1  ;;  %v17760_v9 = vpack.c.bf16 %v17758_v13, %v17759_v33  ;;  %v17770_v45 = vld [vmem:[#allocation233_spill] sm:$0xff]  ;;  %v17771_v13 = vld [vmem:[#allocation119_spill] sm:$0xff] }
 0x380   :  { %v15034_v36 = vadd.f32 %v5463_v24, %v5038_v3  ;;  %v17763_v3 = vld [vmem:[#allocation118_spill] sm:$0xff]  ;;  %v5065_v24 = vadd.f32 %v14593_v37, %v17765_v58  ;;  %v17772_v37 = vld [vmem:[#allocation117_spill] sm:$0xff] }
 0x381   :  { %v11071_v61 = vpop.f32.mrf.mxu1  ;;  %v17764_v53 = vpack.c.bf16 %v17762_v55, %v17763_v3  ;;  %v17773_v33 = vpack.c.bf16 %v17771_v13, %v17772_v37  ;;  %v17776_v3 = vld [vmem:[#allocation124_spill] sm:$0xff]  ;;  %v17785_v37 = vld [vmem:[#allocation187_spill] sm:$0xff] }
 0x382   :  { %v15040_v22 = vadd.f32 %v11071_v61, %v5049_v20  ;;  %11371 = vmatmul.mubr.msk.bf16.gmra.mxu0 %vm4062_vm8, %v14624_v19  ;;  %v17766_v20 = vld [vmem:[#allocation241_spill] sm:$0xff]  ;;  %v17767_v61 = vld [vmem:[#allocation178_spill] sm:$0xff] }
 0x383   :  { %v5466_v1 = vpop.f32.mrf.mxu1  ;;  %11374 = vmatprep.mubr.msk.bf16.mxu0 %vm4062_vm8, %v17766_v20  ;;  %v5057_v31 = vadd.f32 %v17768_v12, %v17767_v61  ;;  %v17780_v20 = vld [vmem:[#allocation182_spill] sm:$0xff] }
 0x384   :  { %v15044_v0 = vadd.f32 %v5466_v1, %v5041_v14 }
 0x385   :  { %v11074_v28 = vpop.f32.mrf.mxu1  ;;  %11173 = vmatmul.mubr.msk.bf16.gmra.mxu1 %vm4062_vm8, %v17760_v9  ;;  %v17774_v9 = vld [vmem:[#allocation55_spill] sm:$0xff] }
 0x386   :  { %v15052_v6 = vadd.f32 %v11074_v28, %v5062_v46  ;;  %11176 = vmatprep.mubr.msk.bf16.mxu1 %vm4062_vm8, %v17764_v53  ;;  %v5078_v46 = vadd.f32 %v17770_v45, %v17769_v59  ;;  %v17777_v53 = vld [vmem:[#allocation122_spill] sm:$0xff]  ;;  %v17783_v59 = vld [vmem:[#allocation184_spill] sm:$0xff] }
 0x387   :  { %v5479_v7 = vpop.f32.mrf.mxu1  ;;  %v17784_v45 = vld [vmem:[#allocation236_spill] sm:$0xff] }
 0x388   :  { %v15062_v17 = vadd.f32 %v5479_v7, %v5054_v54  ;;  %v5070_v54 = vadd.f32 %v17775_v48, %v17774_v9  ;;  %v17778_v7 = vpack.c.bf16 %v17776_v3, %v17777_v53  ;;  %v17787_v53 = vld [vmem:[#allocation123_spill] sm:$0xff] }
 0x389   :  { %v11075_v50 = vpop.f32.mrf.mxu1 }
 0x38a   :  { %v15068_v14 = vadd.f32 %v11075_v50, %v5065_v24  ;;  %v17779_v24 = vld [vmem:[#allocation242_spill] sm:$0xff]  ;;  %v17781_v50 = vld [vmem:[#allocation235_spill] sm:$0xff] }
 0x38b   :  { %v5482_v1 = vpop.f32.mrf.mxu1  ;;  %11375 = vmatmul.mubr.msk.bf16.gmra.mxu0 %vm4062_vm8, %v17779_v24  ;;  %v5081_v61 = vadd.f32 %v17781_v50, %v17780_v20  ;;  %v17791_v24 = vld [vmem:[#allocation238_spill] sm:$0xff] }
 0x38c   :  { %v15072_v28 = vadd.f32 %v5482_v1, %v5057_v31  ;;  %v17782_v31 = vld [vmem:[#allocation244_spill] sm:$0xff] }
 0x38d   :  { %v11078_v19 = vpop.f32.mrf.mxu1  ;;  %11177 = vmatmul.mubr.msk.bf16.gmra.mxu1 %vm4062_vm8, %v17773_v33  ;;  %11378 = vmatprep.mubr.msk.bf16.mxu0 %vm4062_vm8, %v17782_v31  ;;  %v17786_v33 = vld [vmem:[#allocation237_spill] sm:$0xff]  ;;  %v17793_v31 = vld [vmem:[#allocation128_spill] sm:$0xff] }
 0x38e   :  { %v15080_v55 = vadd.f32 %v11078_v19, %v5078_v46  ;;  %11180 = vmatprep.mubr.msk.bf16.mxu1 %vm4062_vm8, %v17778_v7  ;;  %v5073_v46 = vadd.f32 %v17784_v45, %v17783_v59  ;;  %v5094_v9 = vadd.f32 %v17786_v33, %v17785_v37  ;;  %v17788_v7 = vld [vmem:[#allocation121_spill] sm:$0xff] }
 0x38f   :  { %v5495_v58 = vpop.f32.mrf.mxu1  ;;  %v17796_v45 = vld [vmem:[#allocation245_spill] sm:$0xff] }
 0x390   :  { %v15090_v12 = vadd.f32 %v5495_v58, %v5070_v54  ;;  %v17789_v54 = vpack.c.bf16 %v17787_v53, %v17788_v7  ;;  %v17790_v58 = vld [vmem:[#allocation59_spill] sm:$0xff] }
 0x391   :  { %v11079_v1 = vpop.f32.mrf.mxu1  ;;  %v5086_v20 = vadd.f32 %v17791_v24, %v17790_v58  ;;  %v17802_v24 = vld [vmem:[#allocation195_spill] sm:$0xff] }
 0x392   :  { %v15096_v19 = vadd.f32 %v11079_v1, %v5081_v61  ;;  %v17794_v61 = vld [vmem:[#allocation126_spill] sm:$0xff] }
 0x393   :  { %v5498_v13 = vpop.f32.mrf.mxu1  ;;  %v17795_v1 = vpack.c.bf16 %v17793_v31, %v17794_v61  ;;  %11379 = vmatmul.mubr.msk.bf16.gmra.mxu0 %vm4062_vm8, %v17796_v45  ;;  %v17803_v31 = vld [vmem:[#allocation243_spill] sm:$0xff] }
 0x394   :  { %v15100_v48 = vadd.f32 %v5498_v13, %v5073_v46  ;;  %v17797_v46 = vld [vmem:[#allocation188_spill] sm:$0xff]  ;;  %v17798_v13 = vld [vmem:[#allocation239_spill] sm:$0xff]  ;;  %11382 = vmatprep.mubr.msk.bf16.mxu0 %vm4062_vm8, %v14704_v35  ;;  %v5110_v61 = vadd.f32 %v17803_v31, %v17802_v24  ;;  %v17808_v35 = vld [vmem:[#allocation169_spill] sm:$0xff] }
 0x395   :  { %v11082_v3 = vpop.f32.mrf.mxu1  ;;  %11181 = vmatmul.mubr.msk.bf16.gmra.mxu1 %vm4062_vm8, %v17789_v54  ;;  %v5097_v37 = vadd.f32 %v17798_v13, %v17797_v46  ;;  %v17805_v46 = vld [vmem:[#allocation125_spill] sm:$0xff] }
 0x396   :  { %v15108_v50 = vadd.f32 %v11082_v3, %v5094_v9  ;;  %11184 = vmatprep.mubr.msk.bf16.mxu1 %vm4062_vm8, %v17795_v1  ;;  %v17800_v9 = vld [vmem:[#allocation192_spill] sm:$0xff] }
 0x397   :  { %v5511_v59 = vpop.f32.mrf.mxu1  ;;  %v17801_v3 = vld [vmem:[#allocation240_spill] sm:$0xff] }
 0x398   :  { %17792 = vst [vmem:[#allocation207_spill] sm:$0xff] %v15108_v50  ;;  %v15118_v33 = vadd.f32 %v5511_v59, %v5086_v20  ;;  %v5089_v7 = vadd.f32 %v17801_v3, %v17800_v9  ;;  %v17804_v50 = vld [vmem:[#allocation127_spill] sm:$0xff]  ;;  %v17809_v9 = vld [vmem:[#allocation132_spill] sm:$0xff] }
 0x399   :  { %v11083_v53 = vpop.f32.mrf.mxu1  ;;  %v17806_v20 = vpack.c.bf16 %v17804_v50, %v17805_v46  ;;  %v17807_v59 = vld [vmem:[#allocation63_spill] sm:$0xff] }
 0x39a   :  { %17799 = vst [vmem:[#allocation21_spill] sm:$0xff] %v15118_v33  ;;  %v15124_v54 = vadd.f32 %v11083_v53, %v5097_v37  ;;  %v5102_v13 = vadd.f32 %v17808_v35, %v17807_v59  ;;  %v17810_v37 = vld [vmem:[#allocation130_spill] sm:$0xff] }
 0x39b   :  { %v5514_v58 = vpop.f32.mrf.mxu1  ;;  %v17811_v53 = vpack.c.bf16 %v17809_v9, %v17810_v37  ;;  %11383 = vmatmul.mubr.msk.bf16.gmra.mxu0 %vm4062_vm8, %v14708_v51  ;;  %v15159_v51 = vld [vmem:[%s16855_s3 + $0x40] sm:$0xff]  }
 0x39c   :  { %v15128_v1 = vadd.f32 %v5514_v58, %v5089_v7  ;;  %v17812_v7 = vld [vmem:[#allocation196_spill] sm:$0xff]  ;;  %v17813_v58 = vld [vmem:[#allocation191_spill] sm:$0xff]  ;;  %11386 = vmatprep.mubr.msk.bf16.mxu0 %vm4062_vm8, %v14734_v40  ;;  %v17817_v37 = vld [vmem:[#allocation129_spill] sm:$0xff]  ;;  %11418 = vmatprep.subr.bf16.mxu1 %v15159_v51 }
 0x39d   :  { %v11086_v45 = vpop.f32.mrf.mxu1  ;;  %11185 = vmatmul.mubr.msk.bf16.gmra.mxu1 %vm4062_vm8, %v17806_v20  ;;  %v5113_v24 = vadd.f32 %v17813_v58, %v17812_v7  ;;  %v17819_v40 = vld [vmem:[#allocation56_spill] sm:$0xff]  ;;  %v17821_v58 = vld [vmem:[#allocation134_spill] sm:$0xff] }
 0x39e   :  { %v15136_v33 = vadd.f32 %v11086_v45, %v5110_v61  ;;  %11188 = vmatprep.mubr.msk.bf16.mxu1 %vm4062_vm8, %v17811_v53  ;;  %v17814_v61 = vld [vmem:[#allocation200_spill] sm:$0xff]  ;;  %v17815_v45 = vld [vmem:[#allocation190_spill] sm:$0xff] }
 0x39f   :  { %v5527_v3 = vpop.f32.mrf.mxu1  ;;  %v5105_v46 = vadd.f32 %v17815_v45, %v17814_v61  ;;  %v17820_v7 = vld [vmem:[#allocation136_spill] sm:$0xff]  ;;  %v17824_v45 = vld [vmem:[#allocation174_spill] sm:$0xff] }
 0x3a0   :  { %v15146_v50 = vadd.f32 %v5527_v3, %v5102_v13  ;;  %v17816_v13 = vld [vmem:[#allocation131_spill] sm:$0xff]  ;;  %v15173_v61 = vpop.f32.mrf.mxu0 }
 0x3a1   :  { %v11087_v31 = vpop.f32.mrf.mxu1  ;;  %v17818_v53 = vpack.c.bf16 %v17816_v13, %v17817_v37  ;;  %17823 = vst [vmem:[#allocation222_spill] sm:$0xff] %v15173_v61 }
 0x3a2   :  { %v15152_v20 = vadd.f32 %v11087_v31, %v5113_v24  ;;  %v17822_v24 = vpack.c.bf16 %v17820_v7, %v17821_v58  ;;  %v17828_v58 = vld [vmem:[#allocation133_spill] sm:$0xff] }
 0x3a3   :  { %v5530_v59 = vpop.f32.mrf.mxu1  ;;  %11387 = vmatmul.mubr.msk.bf16.gmra.mxu0 %vm4062_vm8, %v14738_v2  ;;  %v17827_v2 = vld [vmem:[#allocation135_spill] sm:$0xff] }
 0x3a4   :  { %v15154_v35 = vadd.f32 %v5530_v59, %v5105_v46  ;;  %11390 = vmatprep.mubr.msk.bf16.mxu0 %vm4062_vm8, %v14763_v10 }
 0x3a5   :  { %v11092_v9 = vpop.f32.mrf.mxu1  ;;  %11189 = vmatmul.mubr.msk.bf16.gmra.mxu1 %vm4062_vm8, %v17818_v53 }
 0x3a6   :  { %v15166_v3 = vadd.f32 %v11092_v9, %v17819_v40  ;;  %11192 = vmatprep.mubr.msk.bf16.mxu1 %vm4062_vm8, %v17822_v24  ;;  %v15182_v9 = vpop.f32.mrf.mxu0  ;;  %v17829_v24 = vpack.c.bf16 %v17827_v2, %v17828_v58 }
 0x3a7   :  { %v5905_v31 = vpop.f32.mrf.mxu1  ;;  %17825 = vst [vmem:[#allocation86_spill] sm:$0xff] %v15182_v9 }
 0x3a8   :  { %v15178_v46 = vadd.f32 %v5905_v31, %v17824_v45  ;;  %v15187_v53 = vpop.f32.mrf.mxu0  ;;  %v17831_v45 = vld [vmem:[#allocation140_spill] sm:$0xff] }
 0x3a9   :  { %v11093_v59 = vpop.f32.mrf.mxu1  ;;  %17826 = vst [vmem:[#allocation27_spill] sm:$0xff] %v15187_v53 }
 0x3aa   :  { %v15185_v13 = vadd.f32 %v11093_v59, %v14702_v56  ;;  %v15196_v31 = vpop.f32.mrf.mxu0  ;;  %v17832_v56 = vld [vmem:[#allocation138_spill] sm:$0xff] }
 0x3ab   :  { %v5908_v37 = vpop.f32.mrf.mxu1  ;;  %17830 = vst [vmem:[#allocation92_spill] sm:$0xff] %v15196_v31  ;;  %v17833_v59 = vpack.c.bf16 %v17831_v45, %v17832_v56  ;;  %11391 = vmatmul.mubr.msk.bf16.gmra.mxu0 %vm4062_vm8, %v14767_v44  ;;  %v17838_v45 = vld [vmem:[#allocation198_spill] sm:$0xff]  ;;  %v17839_v44 = vld [vmem:[#allocation139_spill] sm:$0xff] }
 0x3ac   :  { %v15190_v40 = vadd.f32 %v5908_v37, %v14706_v5  ;;  %v15205_v9 = vpop.f32.mrf.mxu0  ;;  %v17835_v5 = vld [vmem:[#allocation199_spill] sm:$0xff]  ;;  %11394 = vmatprep.mubr.msk.bf16.mxu0 %vm4062_vm8, %v14793_v52  ;;  %v17843_v52 = vld [vmem:[#allocation205_spill] sm:$0xff] }
 0x3ad   :  { %v11096_v7 = vpop.f32.mrf.mxu1  ;;  %11193 = vmatmul.mubr.msk.bf16.gmra.mxu1 %vm4062_vm8, %v17829_v24  ;;  %17834 = vst [vmem:[#allocation147_spill] sm:$0xff] %v15205_v9  ;;  %v17840_v9 = vld [vmem:[#allocation137_spill] sm:$0xff] }
 0x3ae   :  { %v15199_v10 = vadd.f32 %v11096_v7, %v14717_v57  ;;  %11196 = vmatprep.mubr.msk.bf16.mxu1 %vm4062_vm8, %v17833_v59  ;;  %v15214_v57 = vpop.f32.mrf.mxu0 }
 0x3af   :  { %v5921_v53 = vpop.f32.mrf.mxu1  ;;  %17836 = vst [vmem:[#allocation226_spill] sm:$0xff] %v15214_v57  ;;  %v17844_v57 = vld [vmem:[#allocation143_spill] sm:$0xff] }
 0x3b0   :  { %v15210_v37 = vadd.f32 %v5921_v53, %v17835_v5  ;;  %v15219_v24 = vpop.f32.mrf.mxu0  ;;  %v17841_v53 = vpack.c.bf16 %v17839_v44, %v17840_v9 }
 0x3b1   :  { %v11097_v2 = vpop.f32.mrf.mxu1  ;;  %17837 = vst [vmem:[#allocation149_spill] sm:$0xff] %v15219_v24 }
 0x3b2   :  { %v15217_v7 = vadd.f32 %v11097_v2, %v14731_v34  ;;  %v15228_v5 = vpop.f32.mrf.mxu0  ;;  %v17845_v34 = vld [vmem:[#allocation142_spill] sm:$0xff] }
 0x3b3   :  { %v5924_v58 = vpop.f32.mrf.mxu1  ;;  %17842 = vst [vmem:[#allocation227_spill] sm:$0xff] %v15228_v5  ;;  %v17846_v2 = vpack.c.bf16 %v17844_v57, %v17845_v34  ;;  %11395 = vmatmul.mubr.msk.bf16.gmra.mxu0 %vm4062_vm8, %v14797_v42  ;;  %v17852_v42 = vld [vmem:[#allocation12_spill] sm:$0xff] }
 0x3b4   :  { %v15222_v56 = vadd.f32 %v5924_v58, %v17838_v45  ;;  %v15237_v61 = vpop.f32.mrf.mxu0  ;;  %v17848_v58 = vld [vmem:[#allocation60_spill] sm:$0xff]  ;;  %11398 = vmatprep.mubr.msk.bf16.mxu0 %vm4062_vm8, %v14821_v21 }
 0x3b5   :  { %v11100_v59 = vpop.f32.mrf.mxu1  ;;  %11197 = vmatmul.mubr.msk.bf16.gmra.mxu1 %vm4062_vm8, %v17841_v53  ;;  %17847 = vst [vmem:[#allocation73_spill] sm:$0xff] %v15237_v61  ;;  %v17871_v5 = vld [vmem:[#allocation144_spill] sm:$0xff] }
 0x3b6   :  { %v15231_v31 = vadd.f32 %v11100_v59, %v17843_v52  ;;  %11200 = vmatprep.mubr.msk.bf16.mxu1 %vm4062_vm8, %v17846_v2  ;;  %v15246_v59 = vpop.f32.mrf.mxu0  ;;  %v17853_v2 = vld [vmem:[#allocation141_spill] sm:$0xff] }
 0x3b7   :  { %v5937_v24 = vpop.f32.mrf.mxu1  ;;  %17849 = vst [vmem:[#allocation212_spill] sm:$0xff] %v15246_v59  ;;  %v17857_v59 = vld [vmem:[#allocation16_spill] sm:$0xff] }
 0x3b8   :  { %v15242_v9 = vadd.f32 %v5937_v24, %v17848_v58  ;;  %v15251_v53 = vpop.f32.mrf.mxu0  ;;  %v17854_v24 = vpack.c.bf16 %v17852_v42, %v17853_v2 }
 0x3b9   :  { %v11101_v45 = vpop.f32.mrf.mxu1  ;;  %17850 = vst [vmem:[#allocation26_spill] sm:$0xff] %v15251_v53 }
 0x3ba   :  { %v15249_v44 = vadd.f32 %v11101_v45, %v14761_v60  ;;  %v15260_v58 = vpop.f32.mrf.mxu0  ;;  %v17858_v60 = vld [vmem:[#allocation11_spill] sm:$0xff] }
 0x3bb   :  { %v5940_v57 = vpop.f32.mrf.mxu1  ;;  %17855 = vst [vmem:[#allocation225_spill] sm:$0xff] %v15260_v58  ;;  %v17859_v45 = vpack.c.bf16 %v17857_v59, %v17858_v60 }
 0x3bc   :  { %v15254_v52 = vadd.f32 %v5940_v57, %v14765_v63  ;;  %v15269_v61 = vpop.f32.mrf.mxu0  ;;  %v17861_v63 = vld [vmem:[#allocation208_spill] sm:$0xff] }
 0x3bd   :  { %v11104_v34 = vpop.f32.mrf.mxu1  ;;  %11201 = vmatmul.mubr.msk.bf16.gmra.mxu1 %vm4062_vm8, %v17854_v24  ;;  %17860 = vst [vmem:[#allocation31_spill] sm:$0xff] %v15269_v61  ;;  %11399 = vmatmul.mubr.msk.bf16.gmra.mxu0 %vm4062_vm8, %v17861_v63  ;;  %v17862_v57 = vld [vmem:[#allocation180_spill] sm:$0xff]  ;;  %v17870_v63 = vld [vmem:[#allocation10_spill] sm:$0xff] }
 0x3be   :  { %17851 = vst [vmem:[#allocation91_spill] sm:$0xff] %v15254_v52  ;;  %v15263_v21 = vadd.f32 %v11104_v34, %v14776_v29  ;;  %11204 = vmatprep.mubr.msk.bf16.mxu1 %vm4062_vm8, %v17859_v45  ;;  %11402 = vmatprep.mubr.msk.bf16.mxu0 %vm4062_vm8, %v14854_v25  ;;  %v15278_v29 = vpop.f32.mrf.mxu0  ;;  %v17865_v34 = vld [vmem:[#allocation204_spill] sm:$0xff]  ;;  %v17868_v45 = vld [vmem:[#allocation203_spill] sm:$0xff]  ;;  %v17874_v25 = vld [vmem:[#allocation210_spill] sm:$0xff] }
 0x3bf   :  { %v5953_v53 = vpop.f32.mrf.mxu1  ;;  %17864 = vst [vmem:[#allocation151_spill] sm:$0xff] %v15278_v29  ;;  %v17876_v29 = vld [vmem:[#allocation20_spill] sm:$0xff] }
 0x3c0   :  { %17856 = vst [vmem:[#allocation224_spill] sm:$0xff] %v15263_v21  ;;  %v15274_v42 = vadd.f32 %v5953_v53, %v17862_v57  ;;  %v15283_v60 = vpop.f32.mrf.mxu0  ;;  %v17872_v53 = vpack.c.bf16 %v17870_v63, %v17871_v5  ;;  %v17883_v63 = vld [vmem:[#allocation186_spill] sm:$0xff] }
 0x3c1   :  { %v11105_v2 = vpop.f32.mrf.mxu1  ;;  %17867 = vst [vmem:[#allocation153_spill] sm:$0xff] %v15283_v60  ;;  %v7400_v21 = vld [vmem:[#allocation2 + $0x30] sm:$0xff] }
 0x3c2   :  { %17863 = vst [vmem:[#allocation89_spill] sm:$0xff] %v15274_v42  ;;  %v15281_v24 = vadd.f32 %v11105_v2, %v17865_v34  ;;  %v15292_v57 = vpop.f32.mrf.mxu0  ;;  %v17877_v2 = vld [vmem:[#allocation14_spill] sm:$0xff] }
 0x3c3   :  { %v5956_v59 = vpop.f32.mrf.mxu1  ;;  %17873 = vst [vmem:[#allocation77_spill] sm:$0xff] %v15292_v57  ;;  %v17878_v34 = vpack.c.bf16 %v17876_v29, %v17877_v2  ;;  %v17886_v2 = vld [vmem:[#allocation209_spill] sm:$0xff]  ;;  %v17889_v57 = vld [vmem:[#allocation15_spill] sm:$0xff] }
 0x3c4   :  { %17866 = vst [vmem:[#allocation96_spill] sm:$0xff] %v15281_v24  ;;  %v15286_v61 = vadd.f32 %v5956_v59, %v17868_v45  ;;  %v15301_v24 = vpop.f32.mrf.mxu0  ;;  %v17880_v59 = vld [vmem:[#allocation64_spill] sm:$0xff] }
 0x3c5   :  { %v11108_v58 = vpop.f32.mrf.mxu1  ;;  %11205 = vmatmul.mubr.msk.bf16.gmra.mxu1 %vm4062_vm8, %v17872_v53  ;;  %17879 = vst [vmem:[#allocation30_spill] sm:$0xff] %v15301_v24  ;;  %11403 = vmatmul.mubr.msk.bf16.gmra.mxu0 %vm4062_vm8, %v14860_v62  ;;  %v17888_v62 = vld [vmem:[#allocation13_spill] sm:$0xff] }
 0x3c6   :  { %17869 = vst [vmem:[#allocation94_spill] sm:$0xff] %v15286_v61  ;;  %v15295_v42 = vadd.f32 %v11108_v58, %v17874_v25  ;;  %11208 = vmatprep.mubr.msk.bf16.mxu1 %vm4062_vm8, %v17878_v34  ;;  %11406 = vmatprep.mubr.msk.bf16.mxu0 %vm4062_vm8, %v14889_v43  ;;  %v15310_v58 = vpop.f32.mrf.mxu0  ;;  %v17892_v43 = vld [vmem:[#allocation215_spill] sm:$0xff]  ;;  %v7395_v61 = vld [vmem:[#allocation2 + $0x8] sm:$0xff] }
 0x3c7   :  { %v5969_v60 = vpop.f32.mrf.mxu1  ;;  %17882 = vst [vmem:[#allocation100_spill] sm:$0xff] %v15310_v58  ;;  %v17894_v58 = vld [vmem:[#allocation24_spill] sm:$0xff] }
 0x3c8   :  { %17875 = vst [vmem:[#allocation217_spill] sm:$0xff] %v15295_v42  ;;  %v15306_v5 = vadd.f32 %v5969_v60, %v17880_v59  ;;  %v15315_v25 = vpop.f32.mrf.mxu0  ;;  %v17890_v60 = vpack.c.bf16 %v17888_v62, %v17889_v57  ;;  %v17914_v42 = vld [vmem:[#allocation22_spill] sm:$0xff] }
 0x3c9   :  { %v11109_v45 = vpop.f32.mrf.mxu1  ;;  %17885 = vst [vmem:[#allocation34_spill] sm:$0xff] %v15315_v25 }
 0x3ca   :  { %17881 = vst [vmem:[#allocation95_spill] sm:$0xff] %v15306_v5  ;;  %v15313_v53 = vadd.f32 %v11109_v45, %v17883_v63  ;;  %v15324_v59 = vpop.f32.mrf.mxu0  ;;  %v17895_v45 = vld [vmem:[#allocation18_spill] sm:$0xff] }
 0x3cb   :  { %v5972_v29 = vpop.f32.mrf.mxu1  ;;  %17891 = vst [vmem:[#allocation93_spill] sm:$0xff] %v15324_v59  ;;  %v17896_v63 = vpack.c.bf16 %v17894_v58, %v17895_v45  ;;  %v17904_v58 = vld [vmem:[#allocation214_spill] sm:$0xff] }
 0x3cc   :  { %17884 = vst [vmem:[#allocation98_spill] sm:$0xff] %v15313_v53  ;;  %v15318_v34 = vadd.f32 %v5972_v29, %v17886_v2  ;;  %v15333_v53 = vpop.f32.mrf.mxu0  ;;  %v17898_v29 = vld [vmem:[#allocation68_spill] sm:$0xff] }
 0x3cd   :  { %v11112_v24 = vpop.f32.mrf.mxu1  ;;  %11209 = vmatmul.mubr.msk.bf16.gmra.mxu1 %vm4062_vm8, %v17890_v60  ;;  %17897 = vst [vmem:[#allocation228_spill] sm:$0xff] %v15333_v53  ;;  %11407 = vmatmul.mubr.msk.bf16.gmra.mxu0 %vm4062_vm8, %v14898_v39  ;;  %v17901_v60 = vld [vmem:[#allocation194_spill] sm:$0xff] }
 0x3ce   :  { %17887 = vst [vmem:[#allocation155_spill] sm:$0xff] %v15318_v34  ;;  %v15327_v5 = vadd.f32 %v11112_v24, %v17892_v43  ;;  %11212 = vmatprep.mubr.msk.bf16.mxu1 %vm4062_vm8, %v17896_v63  ;;  %v15340_v62 = vpop.f32.mrf.mxu0  ;;  %v8006_v63 = vld [vmem:[#allocation2 + $0x208] sm:$0xff]  ;;  %v17907_v34 = vld [vmem:[#allocation19_spill] sm:$0xff] }
 0x3cf   :  { %v5985_v25 = vpop.f32.mrf.mxu1  ;;  %17900 = vst [vmem:[#allocation97_spill] sm:$0xff] %v15340_v62 }
 0x3d0   :  { %17893 = vst [vmem:[#allocation157_spill] sm:$0xff] %v15327_v5  ;;  %v15338_v57 = vadd.f32 %v5985_v25, %v17898_v29  ;;  %v15345_v59 = vpop.f32.mrf.mxu0  ;;  %v17906_v5 = vld [vmem:[#allocation17_spill] sm:$0xff]  ;;  %v17910_v29 = vmov 0.0  }
 0x3d1   :  { %v11113_v2 = vpop.f32.mrf.mxu1  ;;  %17903 = vst [vmem:[#allocation229_spill] sm:$0xff] %v15345_v59  ;;  %v17908_v39 = vpack.c.bf16 %v17906_v5, %v17907_v34  ;;  %v8105_v62 = vpack.c.bf16 %v8006_v63, %v17910_v29  ;;  %v17913_v59 = vld [vmem:[#allocation146_spill] sm:$0xff] }
 0x3d2   :  { %17899 = vst [vmem:[#allocation99_spill] sm:$0xff] %v15338_v57  ;;  %v15343_v24 = vadd.f32 %v11113_v2, %v17901_v60  ;;  %v15354_v25 = vpop.f32.mrf.mxu0  ;;  %v8007_v57 = vld [vmem:[#allocation2 + $0x210] sm:$0xff]  ;;  %v8008_v2 = vld [vmem:[#allocation2 + $0x218] sm:$0xff]  ;;  %v17911_v60 = vld [vmem:[#allocation213_spill] sm:$0xff] }
 0x3d3   :  { %v5988_v43 = vpop.f32.mrf.mxu1  ;;  %17909 = vst [vmem:[#allocation102_spill] sm:$0xff] %v15354_v25  ;;  %v7396_v5 = vld [vmem:[#allocation2 + $0x10] sm:$0xff]  ;;  %11410 = vmatprep.mubr.msk.bf16.mxu0 %vm4062_vm8, %v8105_v62  ;;  %v8010_v62 = vld [vmem:[#allocation2 + $0x228] sm:$0xff] }
 0x3d4   :  { %17902 = vst [vmem:[#allocation35_spill] sm:$0xff] %v15343_v24  ;;  %v15348_v45 = vadd.f32 %v5988_v43, %v17904_v58  ;;  %v17915_v43 = vpack.c.bf16 %v17913_v59, %v17914_v42  ;;  %v8106_v58 = vpack.c.bf16 %v8008_v2, %v8007_v57  ;;  %v15364_v34 = vpop.f32.mrf.mxu0  ;;  %v7459_v59 = vpack.c.bf16 %v7396_v5, %v7395_v61  ;;  %v17929_v61 = vld [vmem:[#allocation145_spill] sm:$0xff] }
 0x3d5   :  { %v11116_v53 = vpop.f32.mrf.mxu1  ;;  %11213 = vmatmul.mubr.msk.bf16.gmra.mxu1 %vm4062_vm8, %v17908_v39  ;;  %17916 = vst [vmem:[#allocation159_spill] sm:$0xff] %v15364_v34  ;;  %v17917_v39 = vld [vmem:[#allocation220_spill] sm:$0xff] }
 0x3d6   :  { %17905 = vst [vmem:[#allocation104_spill] sm:$0xff] %v15348_v45  ;;  %v15358_v24 = vadd.f32 %v11116_v53, %v17911_v60  ;;  %11216 = vmatprep.mubr.msk.bf16.mxu1 %vm4062_vm8, %v17915_v43  ;;  %11411 = vmatmul.mubr.msk.bf16.gmra.mxu0 %vm4062_vm8, %v8106_v58  ;;  %v15371_v29 = vpop.f32.mrf.mxu0  ;;  %v17920_v60 = vld [vmem:[#allocation65_spill] sm:$0xff]  ;;  %v17923_v43 = vld [vmem:[#allocation218_spill] sm:$0xff] }
 0x3d7   :  { %v6001_v45 = vpop.f32.mrf.mxu1  ;;  %17919 = vst [vmem:[#allocation103_spill] sm:$0xff] %v15371_v29  ;;  %v8009_v34 = vld [vmem:[#allocation2 + $0x220] sm:$0xff] }
 0x3d8   :  { %17912 = vst [vmem:[#allocation38_spill] sm:$0xff] %v15358_v24  ;;  %v15368_v63 = vadd.f32 %v6001_v45, %v17917_v39  ;;  %v15376_v2 = vpop.f32.mrf.mxu0  ;;  %v17925_v45 = vld [vmem:[#allocation28_spill] sm:$0xff]  ;;  %v17926_v39 = vld [vmem:[#allocation23_spill] sm:$0xff]  ;;  %v8107_v29 = vpack.c.bf16 %v8010_v62, %v8009_v34 }
 0x3d9   :  { %v11117_v53 = vpop.f32.mrf.mxu1  ;;  %17922 = vst [vmem:[#allocation39_spill] sm:$0xff] %v15376_v2 }
 0x3da   :  { %17918 = vst [vmem:[#allocation161_spill] sm:$0xff] %v15368_v63  ;;  %v15374_v42 = vadd.f32 %v11117_v53, %v17920_v60  ;;  %v17927_v63 = vpack.c.bf16 %v17925_v45, %v17926_v39  ;;  %v15385_v58 = vpop.f32.mrf.mxu0  ;;  %v8011_v53 = vld [vmem:[#allocation2 + $0x230] sm:$0xff]  ;;  %v8012_v60 = vld [vmem:[#allocation2 + $0x238] sm:$0xff]  ;;  %11414 = vmatprep.mubr.msk.bf16.mxu0 %vm4062_vm8, %v8107_v29 }
 0x3db   :  { %v6004_v57 = vpop.f32.mrf.mxu1  ;;  %17928 = vst [vmem:[#allocation106_spill] sm:$0xff] %v15385_v58  ;;  %v8108_v2 = vpack.c.bf16 %v8012_v60, %v8011_v53 }
 0x3dc   :  { %17921 = vst [vmem:[#allocation101_spill] sm:$0xff] %v15374_v42  ;;  %v15379_v25 = vadd.f32 %v6004_v57, %v17923_v43  ;;  %v7397_v57 = vld [vmem:[#allocation2 + $0x18] sm:$0xff]  ;;  %v7398_v43 = vld [vmem:[#allocation2 + $0x20] sm:$0xff]  ;;  %v7399_v42 = vld [vmem:[#allocation2 + $0x28] sm:$0xff]  ;;  %v15391_v52 = vpop.f32.mrf.mxu0 }
 0x3dd   :  { %v11120_v24 = vpop.f32.mrf.mxu1  ;;  %11217 = vmatmul.mubr.msk.bf16.gmra.mxu1 %vm4062_vm8, %v17927_v63  ;;  %17930 = vst [vmem:[#allocation42_spill] sm:$0xff] %v15391_v52  ;;  %v17931_v63 = vld [vmem:[#allocation69_spill] sm:$0xff]  ;;  %v7461_v39 = vpack.c.bf16 %v7400_v21, %v7399_v42 }
 0x3de   :  { %17924 = vst [vmem:[#allocation108_spill] sm:$0xff] %v15379_v25  ;;  %v15388_v5 = vadd.f32 %v11120_v24, %v17929_v61  ;;  %11288 = vmatprep.mubr.msk.bf16.mxu1 %vm4062_vm8, %v7459_v59  ;;  %11415 = vmatmul.mubr.msk.bf16.gmra.mxu0 %vm4062_vm8, %v8108_v2  ;;  %v7460_v24 = vpack.c.bf16 %v7398_v43, %v7397_v57  ;;  %v15398_v62 = vpop.f32.mrf.mxu0  ;;  %v7401_v57 = vld [vmem:[#allocation2 + $0x38] sm:$0xff] }
 0x3df   :  { %v6017_v25 = vpop.f32.mrf.mxu1  ;;  %17932 = vst [vmem:[#allocation163_spill] sm:$0xff] %v15398_v62 }
 0x3e0   :  { %v15395_v45 = vadd.f32 %v6017_v25, %v17931_v63  ;;  %v15403_v60 = vpop.f32.mrf.mxu0 }
 0x3e1   :  { %v11121_v34 = vpop.f32.mrf.mxu1  ;;  %17933 = vst [vmem:[#allocation165_spill] sm:$0xff] %v15403_v60 }
 0x3e2   :  { %v15401_v59 = vadd.f32 %v11121_v34, %v14927_v18  ;;  %v15409_v25 = vpop.f32.mrf.mxu0  ;;  %v7402_v18 = vld [vmem:[#allocation2 + $0x40] sm:$0xff] }
 0x3e3   :  { %v6020_v53 = vpop.f32.mrf.mxu1  ;;  %17934 = vst [vmem:[#allocation107_spill] sm:$0xff] %v15409_v25  ;;  %v7462_v63 = vpack.c.bf16 %v7402_v18, %v7401_v57 }
 0x3e4   :  { %v15406_v61 = vadd.f32 %v6020_v53, %v14931_v27  ;;  %v15416_v42 = vpop.f32.mrf.mxu0 }
 0x3e5   :  { %v11124_v29 = vpop.f32.mrf.mxu1  ;;  %11289 = vmatmul.mubr.msk.bf16.vlgmr.msra.gmra.mxu1 %vm4062_vm8, %v7460_v24  ;;  %17935 = vst [vmem:[#allocation105_spill] sm:$0xff] %v15416_v42 }
 0x3e6   :  { %v15412_v2 = vadd.f32 %v11124_v29, %v14939_v4  ;;  %11292 = vmatprep.mubr.msk.bf16.mxu1 %vm4062_vm8, %v7461_v39  ;;  %11419 = vmatpush3.bf16.msra.mxu1 %v15159_v51  ;;  %v15421_v34 = vpop.f32.mrf.mxu0  ;;  %v11636_v51 = vld [vmem:[#allocation2 + $0x48] sm:$0xff]  ;;  %v11637_v29 = vld [vmem:[#allocation2 + $0x50] sm:$0xff] }
 0x3e7   :  { %v6033_v21 = vpop.f32.mrf.mxu1  ;;  %17936 = vst [vmem:[#allocation43_spill] sm:$0xff] %v15421_v34  ;;  %v7463_v25 = vpack.c.bf16 %v11637_v29, %v11636_v51  ;;  %v11638_v51 = vld [vmem:[#allocation2 + $0x58] sm:$0xff]  ;;  %v11639_v29 = vld [vmem:[#allocation2 + $0x60] sm:$0xff] }
 0x3e8   :  { %v15419_v27 = vadd.f32 %v6033_v21, %v14950_v38  ;;  %v15426_v53 = vpop.f32.mrf.mxu0 }
 0x3e9   :  { %v11125_v43 = vpop.f32.mrf.mxu1  ;;  %17937 = vst [vmem:[#allocation112_spill] sm:$0xff] %v15426_v53 }
 0x3ea   :  { %v15424_v24 = vadd.f32 %v11125_v43, %v14956_v23  ;;  %v15432_v38 = vpop.f32.mrf.mxu0 }
 0x3eb   :  { %v6036_v4 = vpop.f32.mrf.mxu1  ;;  %17938 = vst [vmem:[#allocation110_spill] sm:$0xff] %v15432_v38  ;;  %v7464_v38 = vpack.c.bf16 %v11639_v29, %v11638_v51  ;;  %v7410_v29 = vld [vmem:[#allocation2 + $0x80] sm:$0xff] }
 0x3ec   :  { %v15429_v39 = vadd.f32 %v6036_v4, %v14960_v11  ;;  %v15438_v18 = vpop.f32.mrf.mxu0 }
 0x3ed   :  { %v11128_v42 = vpop.f32.mrf.mxu1  ;;  %11293 = vmatmul.mubr.msk.bf16.gmra.mxu1 %vm4062_vm8, %v7462_v63  ;;  %17939 = vst [vmem:[#allocation46_spill] sm:$0xff] %v15438_v18  ;;  %v11641_v18 = vld [vmem:[#allocation2 + $0x70] sm:$0xff] }
 0x3ee   :  { %v15435_v57 = vadd.f32 %v11128_v42, %v14968_v49  ;;  %11296 = vmatprep.mubr.msk.bf16.mxu1 %vm4062_vm8, %v7463_v25  ;;  %v15443_v43 = vpop.f32.mrf.mxu0  ;;  %v11640_v42 = vld [vmem:[#allocation2 + $0x68] sm:$0xff] }
 0x3ef   :  { %v6049_v23 = vpop.f32.mrf.mxu1  ;;  %17940 = vst [vmem:[#allocation167_spill] sm:$0xff] %v15443_v43  ;;  %v7465_v53 = vpack.c.bf16 %v11641_v18, %v11640_v42  ;;  %v11642_v42 = vld [vmem:[#allocation2 + $0x78] sm:$0xff] }
 0x3f0   :  { %v15441_v21 = vadd.f32 %v6049_v23, %v14978_v8  ;;  %v15448_v49 = vpop.f32.mrf.mxu0 }
 0x3f1   :  { %v11129_v11 = vpop.f32.mrf.mxu1  ;;  %17941 = vst [vmem:[#allocation170_spill] sm:$0xff] %v15448_v49  ;;  %v7466_v49 = vpack.c.bf16 %v7410_v29, %v11642_v42  ;;  %v11645_v42 = vld [vmem:[#allocation2 + $0x98] sm:$0xff] }
 0x3f2   :  { %v15446_v4 = vadd.f32 %v11129_v11, %v14984_v26  ;;  %v15458_v11 = vpop.f32.mrf.mxu0 }
 0x3f3   :  { %v6052_v63 = vpop.f32.mrf.mxu1  ;;  %17942 = vst [vmem:[#allocation111_spill] sm:$0xff] %v15458_v11 }
 0x3f4   :  { %v15451_v25 = vadd.f32 %v6052_v63, %v14988_v32 }
 0x3f5   :  { %v11132_v8 = vpop.f32.mrf.mxu1  ;;  %11297 = vmatmul.mubr.msk.bf16.gmra.mxu1 %vm4062_vm8, %v7464_v38  ;;  %v15466_v38 = vpop.f32.mrf.mxu0 }
 0x3f6   :  { %v15455_v23 = vadd.f32 %v11132_v8, %v14996_v15  ;;  %11300 = vmatprep.mubr.msk.bf16.mxu1 %vm4062_vm8, %v7465_v53  ;;  %17943 = vst [vmem:[#allocation109_spill] sm:$0xff] %v15466_v38  ;;  %v11643_v53 = vld [vmem:[#allocation2 + $0x88] sm:$0xff]  ;;  %v11644_v8 = vld [vmem:[#allocation2 + $0x90] sm:$0xff] }
 0x3f7   :  { %v6065_v26 = vpop.f32.mrf.mxu1  ;;  %v7467_v43 = vpack.c.bf16 %v11644_v8, %v11643_v53  ;;  %v11646_v53 = vld [vmem:[#allocation2 + $0xa0] sm:$0xff] }
 0x3f8   :  { %v15461_v51 = vadd.f32 %v6065_v26, %v15006_v47  ;;  %v15476_v26 = vpop.f32.mrf.mxu0  ;;  %v7468_v8 = vpack.c.bf16 %v11646_v53, %v11645_v42  ;;  %v7418_v42 = vld [vmem:[#allocation2 + $0xc0] sm:$0xff] }
 0x3f9   :  { %v11133_v32 = vpop.f32.mrf.mxu1  ;;  %17944 = vst [vmem:[#allocation47_spill] sm:$0xff] %v15476_v26 }
 0x3fa   :  { %v15464_v63 = vadd.f32 %v11133_v32, %v15012_v30 }
 0x3fb   :  { %v6068_v18 = vpop.f32.mrf.mxu1 }
 0x3fc   :  { %v15469_v15 = vadd.f32 %v6068_v18, %v15016_v16 }
 0x3fd   :  { %v11136_v11 = vpop.f32.mrf.mxu1  ;;  %11301 = vmatmul.mubr.msk.bf16.gmra.mxu1 %vm4062_vm8, %v7466_v49  ;;  %v15484_v49 = vpop.f32.mrf.mxu0 }
 0x3fe   :  { %v15473_v47 = vadd.f32 %v11136_v11, %v15024_v41  ;;  %11304 = vmatprep.mubr.msk.bf16.mxu1 %vm4062_vm8, %v7467_v43  ;;  %17945 = vst [vmem:[#allocation116_spill] sm:$0xff] %v15484_v49  ;;  %v11647_v43 = vld [vmem:[#allocation2 + $0xa8] sm:$0xff]  ;;  %v11648_v11 = vld [vmem:[#allocation2 + $0xb0] sm:$0xff] }
 0x3ff   :  { %v6081_v30 = vpop.f32.mrf.mxu1  ;;  %v7469_v38 = vpack.c.bf16 %v11648_v11, %v11647_v43  ;;  %v11649_v43 = vld [vmem:[#allocation2 + $0xb8] sm:$0xff] }
 0x400   :  { %v15479_v29 = vadd.f32 %v6081_v30, %v15034_v36  ;;  %v15494_v30 = vpop.f32.mrf.mxu0  ;;  %v7470_v11 = vpack.c.bf16 %v7418_v42, %v11649_v43  ;;  %v11652_v43 = vld [vmem:[#allocation2 + $0xd8] sm:$0xff] }
 0x401   :  { %v11137_v32 = vpop.f32.mrf.mxu1  ;;  %17946 = vst [vmem:[#allocation114_spill] sm:$0xff] %v15494_v30 }
 0x402   :  { %v15482_v16 = vadd.f32 %v11137_v32, %v15040_v22 }
 0x403   :  { %v6084_v18 = vpop.f32.mrf.mxu1 }
 0x404   :  { %v15487_v41 = vadd.f32 %v6084_v18, %v15044_v0 }
 0x405   :  { %v11140_v26 = vpop.f32.mrf.mxu1  ;;  %11305 = vmatmul.mubr.msk.bf16.gmra.mxu1 %vm4062_vm8, %v7468_v8  ;;  %v15502_v8 = vpop.f32.mrf.mxu0 }
 0x406   :  { %v15491_v36 = vadd.f32 %v11140_v26, %v15052_v6  ;;  %11308 = vmatprep.mubr.msk.bf16.mxu1 %vm4062_vm8, %v7469_v38  ;;  %17947 = vst [vmem:[#allocation50_spill] sm:$0xff] %v15502_v8  ;;  %v11650_v38 = vld [vmem:[#allocation2 + $0xc8] sm:$0xff]  ;;  %v11651_v26 = vld [vmem:[#allocation2 + $0xd0] sm:$0xff] }
 0x407   :  { %v6097_v22 = vpop.f32.mrf.mxu1  ;;  %v7471_v49 = vpack.c.bf16 %v11651_v26, %v11650_v38  ;;  %v11653_v38 = vld [vmem:[#allocation2 + $0xe0] sm:$0xff] }
 0x408   :  { %v15497_v32 = vadd.f32 %v6097_v22, %v15062_v17  ;;  %v15512_v22 = vpop.f32.mrf.mxu0  ;;  %v7472_v26 = vpack.c.bf16 %v11653_v38, %v11652_v43  ;;  %v17952_v43 = vld [vmem:[#allocation21_spill] sm:$0xff] }
 0x409   :  { %v11141_v0 = vpop.f32.mrf.mxu1  ;;  %17948 = vst [vmem:[#allocation172_spill] sm:$0xff] %v15512_v22 }
 0x40a   :  { %v15500_v18 = vadd.f32 %v11141_v0, %v15068_v14 }
 0x40b   :  { %v6100_v53 = vpop.f32.mrf.mxu1 }
 0x40c   :  { %v15505_v6 = vadd.f32 %v6100_v53, %v15072_v28 }
 0x40d   :  { %v11144_v30 = vpop.f32.mrf.mxu1  ;;  %11309 = vmatmul.mubr.msk.bf16.gmra.mxu1 %vm4062_vm8, %v7470_v11  ;;  %v15520_v11 = vpop.f32.mrf.mxu0 }
 0x40e   :  { %v15509_v17 = vadd.f32 %v11144_v30, %v15080_v55  ;;  %11312 = vmatprep.mubr.msk.bf16.mxu1 %vm4062_vm8, %v7471_v49  ;;  %17949 = vst [vmem:[#allocation230_spill] sm:$0xff] %v15520_v11  ;;  %v11654_v49 = vld [vmem:[#allocation2 + $0xe8] sm:$0xff]  ;;  %v11655_v30 = vld [vmem:[#allocation2 + $0xf0] sm:$0xff]  ;;  %v7426_v11 = vld [vmem:[#allocation2 + $0x100] sm:$0xff] }
 0x40f   :  { %v6113_v14 = vpop.f32.mrf.mxu1  ;;  %v7473_v8 = vpack.c.bf16 %v11655_v30, %v11654_v49  ;;  %v11656_v30 = vld [vmem:[#allocation2 + $0xf8] sm:$0xff] }
 0x410   :  { %v15515_v42 = vadd.f32 %v6113_v14, %v15090_v12  ;;  %v17950_v12 = vld [vmem:[#allocation207_spill] sm:$0xff]  ;;  %v7474_v34 = vpack.c.bf16 %v7426_v11, %v11656_v30 }
 0x411   :  { %v11145_v0 = vpop.f32.mrf.mxu1  ;;  %v11659_v30 = vld [vmem:[#allocation2 + $0x118] sm:$0xff] }
 0x412   :  { %v15518_v28 = vadd.f32 %v11145_v0, %v15096_v19  ;;  %v15530_v0 = vpop.f32.mrf.mxu0 }
 0x413   :  { %v6116_v53 = vpop.f32.mrf.mxu1  ;;  %17951 = vst [vmem:[#allocation175_spill] sm:$0xff] %v15530_v0 }
 0x414   :  { %v15523_v55 = vadd.f32 %v6116_v53, %v15100_v48 }
 0x415   :  { %v11148_v22 = vpop.f32.mrf.mxu1  ;;  %11313 = vmatmul.mubr.msk.bf16.gmra.mxu1 %vm4062_vm8, %v7472_v26  ;;  %v15538_v26 = vpop.f32.mrf.mxu0 }
 0x416   :  { %v15527_v14 = vadd.f32 %v11148_v22, %v17950_v12  ;;  %11316 = vmatprep.mubr.msk.bf16.mxu1 %vm4062_vm8, %v7473_v8  ;;  %17953 = vst [vmem:[#allocation231_spill] sm:$0xff] %v15538_v26  ;;  %v11657_v8 = vld [vmem:[#allocation2 + $0x108] sm:$0xff]  ;;  %v11658_v12 = vld [vmem:[#allocation2 + $0x110] sm:$0xff] }
 0x417   :  { %v6129_v19 = vpop.f32.mrf.mxu1  ;;  %v7475_v60 = vpack.c.bf16 %v11658_v12, %v11657_v8  ;;  %v11660_v8 = vld [vmem:[#allocation2 + $0x120] sm:$0xff] }
 0x418   :  { %v15533_v38 = vadd.f32 %v6129_v19, %v17952_v43  ;;  %v15548_v43 = vpop.f32.mrf.mxu0  ;;  %v7476_v12 = vpack.c.bf16 %v11660_v8, %v11659_v30  ;;  %v7434_v30 = vld [vmem:[#allocation2 + $0x140] sm:$0xff] }
 0x419   :  { %v11149_v48 = vpop.f32.mrf.mxu1  ;;  %17954 = vst [vmem:[#allocation115_spill] sm:$0xff] %v15548_v43 }
 0x41a   :  { %v15536_v53 = vadd.f32 %v11149_v48, %v15124_v54 }
 0x41b   :  { %v6132_v49 = vpop.f32.mrf.mxu1 }
 0x41c   :  { %v15541_v22 = vadd.f32 %v6132_v49, %v15128_v1 }
 0x41d   :  { %v11152_v0 = vpop.f32.mrf.mxu1  ;;  %11317 = vmatmul.mubr.msk.bf16.gmra.mxu1 %vm4062_vm8, %v7474_v34  ;;  %v15556_v34 = vpop.f32.mrf.mxu0 }
 0x41e   :  { %v15545_v19 = vadd.f32 %v11152_v0, %v15136_v33  ;;  %11320 = vmatprep.mubr.msk.bf16.mxu1 %vm4062_vm8, %v7475_v60  ;;  %17955 = vst [vmem:[#allocation113_spill] sm:$0xff] %v15556_v34  ;;  %v11661_v60 = vld [vmem:[#allocation2 + $0x128] sm:$0xff]  ;;  %v11662_v0 = vld [vmem:[#allocation2 + $0x130] sm:$0xff] }
 0x41f   :  { %v6145_v54 = vpop.f32.mrf.mxu1  ;;  %v7477_v26 = vpack.c.bf16 %v11662_v0, %v11661_v60  ;;  %v11663_v60 = vld [vmem:[#allocation2 + $0x138] sm:$0xff] }
 0x420   :  { %v15551_v11 = vadd.f32 %v6145_v54, %v15146_v50  ;;  %v15566_v54 = vpop.f32.mrf.mxu0  ;;  %v7478_v0 = vpack.c.bf16 %v7434_v30, %v11663_v60  ;;  %v11666_v60 = vld [vmem:[#allocation2 + $0x158] sm:$0xff] }
 0x421   :  { %v11153_v48 = vpop.f32.mrf.mxu1  ;;  %17956 = vst [vmem:[#allocation51_spill] sm:$0xff] %v15566_v54 }
 0x422   :  { %v15554_v1 = vadd.f32 %v11153_v48, %v15152_v20 }
 0x423   :  { %v6148_v49 = vpop.f32.mrf.mxu1 }
 0x424   :  { %v15559_v33 = vadd.f32 %v6148_v49, %v15154_v35 }
 0x425   :  { %v11158_v43 = vpop.f32.mrf.mxu1  ;;  %11321 = vmatmul.mubr.msk.bf16.gmra.mxu1 %vm4062_vm8, %v7476_v12  ;;  %v15574_v12 = vpop.f32.mrf.mxu0 }
 0x426   :  { %v15563_v50 = vadd.f32 %v11158_v43, %v15166_v3  ;;  %11324 = vmatprep.mubr.msk.bf16.mxu1 %vm4062_vm8, %v7477_v26  ;;  %17957 = vst [vmem:[#allocation120_spill] sm:$0xff] %v15574_v12  ;;  %v11664_v26 = vld [vmem:[#allocation2 + $0x148] sm:$0xff]  ;;  %v11665_v43 = vld [vmem:[#allocation2 + $0x150] sm:$0xff] }
 0x427   :  { %v6395_v20 = vpop.f32.mrf.mxu1  ;;  %v7479_v34 = vpack.c.bf16 %v11665_v43, %v11664_v26  ;;  %v11667_v26 = vld [vmem:[#allocation2 + $0x160] sm:$0xff] }
 0x428   :  { %v15569_v48 = vadd.f32 %v6395_v20, %v15178_v46  ;;  %v15584_v20 = vpop.f32.mrf.mxu0  ;;  %v7480_v43 = vpack.c.bf16 %v11667_v26, %v11666_v60  ;;  %v7442_v60 = vld [vmem:[#allocation2 + $0x180] sm:$0xff] }
 0x429   :  { %v11159_v35 = vpop.f32.mrf.mxu1  ;;  %17958 = vst [vmem:[#allocation118_spill] sm:$0xff] %v15584_v20 }
 0x42a   :  { %v15572_v49 = vadd.f32 %v11159_v35, %v15185_v13 }
 0x42b   :  { %v6398_v8 = vpop.f32.mrf.mxu1 }
 0x42c   :  { %v15577_v3 = vadd.f32 %v6398_v8, %v15190_v40 }
 0x42d   :  { %v11162_v54 = vpop.f32.mrf.mxu1  ;;  %11325 = vmatmul.mubr.msk.bf16.gmra.mxu1 %vm4062_vm8, %v7478_v0  ;;  %v15592_v0 = vpop.f32.mrf.mxu0 }
 0x42e   :  { %v15581_v46 = vadd.f32 %v11162_v54, %v15199_v10  ;;  %11328 = vmatprep.mubr.msk.bf16.mxu1 %vm4062_vm8, %v7479_v34  ;;  %17959 = vst [vmem:[#allocation176_spill] sm:$0xff] %v15592_v0  ;;  %v11668_v34 = vld [vmem:[#allocation2 + $0x168] sm:$0xff]  ;;  %v11669_v54 = vld [vmem:[#allocation2 + $0x170] sm:$0xff] }
 0x42f   :  { %v6411_v13 = vpop.f32.mrf.mxu1  ;;  %v7481_v12 = vpack.c.bf16 %v11669_v54, %v11668_v34  ;;  %v11670_v34 = vld [vmem:[#allocation2 + $0x178] sm:$0xff]  ;;  %v11672_v0 = vld [vmem:[#allocation2 + $0x190] sm:$0xff] }
 0x430   :  { %v15587_v30 = vadd.f32 %v6411_v13, %v15210_v37  ;;  %v15602_v13 = vpop.f32.mrf.mxu0  ;;  %v7482_v54 = vpack.c.bf16 %v7442_v60, %v11670_v34  ;;  %v17967_v60 = vld [vmem:[#allocation89_spill] sm:$0xff] }
 0x431   :  { %v11163_v35 = vpop.f32.mrf.mxu1  ;;  %17960 = vst [vmem:[#allocation241_spill] sm:$0xff] %v15602_v13 }
 0x432   :  { %v15590_v40 = vadd.f32 %v11163_v35, %v15217_v7 }
 0x433   :  { %v6414_v8 = vpop.f32.mrf.mxu1 }
 0x434   :  { %v15595_v10 = vadd.f32 %v6414_v8, %v15222_v56 }
 0x435   :  { %v11166_v20 = vpop.f32.mrf.mxu1  ;;  %11329 = vmatmul.mubr.msk.bf16.gmra.mxu1 %vm4062_vm8, %v7480_v43  ;;  %v15610_v43 = vpop.f32.mrf.mxu0 }
 0x436   :  { %v15599_v37 = vadd.f32 %v11166_v20, %v15231_v31  ;;  %11332 = vmatprep.mubr.msk.bf16.mxu1 %vm4062_vm8, %v7481_v12  ;;  %17961 = vst [vmem:[#allocation178_spill] sm:$0xff] %v15610_v43  ;;  %v17962_v31 = vld [vmem:[#allocation91_spill] sm:$0xff]  ;;  %v11671_v12 = vld [vmem:[#allocation2 + $0x188] sm:$0xff] }
 0x437   :  { %v6427_v7 = vpop.f32.mrf.mxu1  ;;  %v7483_v62 = vpack.c.bf16 %v11672_v0, %v11671_v12  ;;  %v11673_v0 = vld [vmem:[#allocation2 + $0x198] sm:$0xff]  ;;  %v11674_v12 = vld [vmem:[#allocation2 + $0x1a0] sm:$0xff] }
 0x438   :  { %v15605_v35 = vadd.f32 %v6427_v7, %v15242_v9  ;;  %v17964_v9 = vld [vmem:[#allocation224_spill] sm:$0xff]  ;;  %v7484_v58 = vpack.c.bf16 %v11674_v12, %v11673_v0  ;;  %v17977_v0 = vld [vmem:[#allocation95_spill] sm:$0xff] }
 0x439   :  { %v11167_v56 = vpop.f32.mrf.mxu1 }
 0x43a   :  { %v15608_v8 = vadd.f32 %v11167_v56, %v15249_v44  ;;  %v15620_v56 = vpop.f32.mrf.mxu0 }
 0x43b   :  { %v6430_v26 = vpop.f32.mrf.mxu1  ;;  %17966 = vst [vmem:[#allocation233_spill] sm:$0xff] %v15620_v56 }
 0x43c   :  { %v15613_v20 = vadd.f32 %v6430_v26, %v17962_v31  ;;  %v17969_v26 = vld [vmem:[#allocation96_spill] sm:$0xff] }
 0x43d   :  { %v11170_v13 = vpop.f32.mrf.mxu1  ;;  %11333 = vmatmul.mubr.msk.bf16.gmra.mxu1 %vm4062_vm8, %v7482_v54  ;;  %v15628_v54 = vpop.f32.mrf.mxu0 }
 0x43e   :  { %17963 = vst [vmem:[#allocation232_spill] sm:$0xff] %v15613_v20  ;;  %v15617_v7 = vadd.f32 %v11170_v13, %v17964_v9  ;;  %11336 = vmatprep.mubr.msk.bf16.mxu1 %vm4062_vm8, %v7483_v62  ;;  %17971 = vst [vmem:[#allocation55_spill] sm:$0xff] %v15628_v54  ;;  %v17972_v13 = vld [vmem:[#allocation94_spill] sm:$0xff]  ;;  %v7450_v54 = vld [vmem:[#allocation2 + $0x1c0] sm:$0xff] }
 0x43f   :  { %v6443_v44 = vpop.f32.mrf.mxu1  ;;  %v11675_v62 = vld [vmem:[#allocation2 + $0x1a8] sm:$0xff] }
 0x440   :  { %17965 = vst [vmem:[#allocation181_spill] sm:$0xff] %v15617_v7  ;;  %v15623_v34 = vadd.f32 %v6443_v44, %v17967_v60  ;;  %v11676_v7 = vld [vmem:[#allocation2 + $0x1b0] sm:$0xff]  ;;  %v17974_v44 = vld [vmem:[#allocation217_spill] sm:$0xff] }
 0x441   :  { %v11171_v43 = vpop.f32.mrf.mxu1  ;;  %v7485_v20 = vpack.c.bf16 %v11676_v7, %v11675_v62  ;;  %v11677_v62 = vld [vmem:[#allocation2 + $0x1b8] sm:$0xff] }
 0x442   :  { %17968 = vst [vmem:[#allocation119_spill] sm:$0xff] %v15623_v34  ;;  %v15626_v31 = vadd.f32 %v11171_v43, %v17969_v26  ;;  %v15638_v26 = vpop.f32.mrf.mxu0 }
 0x443   :  { %v6446_v52 = vpop.f32.mrf.mxu1  ;;  %17976 = vst [vmem:[#allocation122_spill] sm:$0xff] %v15638_v26 }
 0x444   :  { %17970 = vst [vmem:[#allocation117_spill] sm:$0xff] %v15626_v31  ;;  %v15631_v9 = vadd.f32 %v6446_v52, %v17972_v13  ;;  %v17979_v13 = vld [vmem:[#allocation98_spill] sm:$0xff]  ;;  %v7486_v31 = vpack.c.bf16 %v7450_v54, %v11677_v62  ;;  %v17987_v54 = vld [vmem:[#allocation99_spill] sm:$0xff] }
 0x445   :  { %v11174_v56 = vpop.f32.mrf.mxu1  ;;  %11337 = vmatmul.mubr.msk.bf16.gmra.mxu1 %vm4062_vm8, %v7484_v58  ;;  %v15646_v58 = vpop.f32.mrf.mxu0 }
 0x446   :  { %17973 = vst [vmem:[#allocation234_spill] sm:$0xff] %v15631_v9  ;;  %v15635_v60 = vadd.f32 %v11174_v56, %v17974_v44  ;;  %11340 = vmatprep.mubr.msk.bf16.mxu1 %vm4062_vm8, %v7485_v20  ;;  %17981 = vst [vmem:[#allocation235_spill] sm:$0xff] %v15646_v58  ;;  %v17982_v56 = vld [vmem:[#allocation155_spill] sm:$0xff]  ;;  %v11678_v20 = vld [vmem:[#allocation2 + $0x1c8] sm:$0xff] }
 0x447   :  { %v6459_v43 = vpop.f32.mrf.mxu1 }
 0x448   :  { %17975 = vst [vmem:[#allocation124_spill] sm:$0xff] %v15635_v60  ;;  %v15641_v12 = vadd.f32 %v6459_v43, %v17977_v0  ;;  %v11679_v60 = vld [vmem:[#allocation2 + $0x1d0] sm:$0xff]  ;;  %v17984_v43 = vld [vmem:[#allocation157_spill] sm:$0xff] }
 0x449   :  { %v11175_v52 = vpop.f32.mrf.mxu1  ;;  %v7487_v34 = vpack.c.bf16 %v11679_v60, %v11678_v20  ;;  %v11680_v60 = vld [vmem:[#allocation2 + $0x1d8] sm:$0xff]  ;;  %v17990_v20 = vld [vmem:[#allocation202_spill] sm:$0xff] }
 0x44a   :  { %17978 = vst [vmem:[#allocation242_spill] sm:$0xff] %v15641_v12  ;;  %v15644_v9 = vadd.f32 %v11175_v52, %v17979_v13  ;;  %v15656_v13 = vpop.f32.mrf.mxu0 }
 0x44b   :  { %v6462_v7 = vpop.f32.mrf.mxu1  ;;  %17986 = vst [vmem:[#allocation236_spill] sm:$0xff] %v15656_v13 }
 0x44c   :  { %17980 = vst [vmem:[#allocation182_spill] sm:$0xff] %v15644_v9  ;;  %v15649_v44 = vadd.f32 %v6462_v7, %v17982_v56  ;;  %v17988_v7 = vld [vmem:[#allocation35_spill] sm:$0xff]  ;;  %v7488_v9 = vpack.c.bf16 %v17990_v20, %v11680_v60  ;;  %v17997_v60 = vld [vmem:[#allocation161_spill] sm:$0xff] }
 0x44d   :  { %v11178_v26 = vpop.f32.mrf.mxu1  ;;  %11341 = vmatmul.mubr.msk.bf16.gmra.mxu1 %vm4062_vm8, %v7486_v31  ;;  %v15665_v31 = vpop.f32.mrf.mxu0 }
 0x44e   :  { %17983 = vst [vmem:[#allocation244_spill] sm:$0xff] %v15649_v44  ;;  %v15653_v0 = vadd.f32 %v11178_v26, %v17984_v43  ;;  %11344 = vmatprep.mubr.msk.bf16.mxu1 %vm4062_vm8, %v7487_v34  ;;  %17991 = vst [vmem:[#allocation237_spill] sm:$0xff] %v15665_v31  ;;  %v17992_v26 = vld [vmem:[#allocation104_spill] sm:$0xff]  ;;  %v11681_v34 = vld [vmem:[#allocation2 + $0x1e8] sm:$0xff] }
 0x44f   :  { %v6475_v52 = vpop.f32.mrf.mxu1  ;;  %v7458_v31 = vld [vmem:[#allocation2 + $0x200] sm:$0xff] }
 0x450   :  { %17985 = vst [vmem:[#allocation184_spill] sm:$0xff] %v15653_v0  ;;  %v15659_v62 = vadd.f32 %v6475_v52, %v17987_v54  ;;  %v17994_v0 = vld [vmem:[#allocation219_spill] sm:$0xff]  ;;  %v17995_v52 = vld [vmem:[#allocation38_spill] sm:$0xff] }
 0x451   :  { %v11179_v58 = vpop.f32.mrf.mxu1  ;;  %v7489_v12 = vpack.c.bf16 %v17994_v0, %v11681_v34  ;;  %v11682_v34 = vld [vmem:[#allocation2 + $0x1f8] sm:$0xff] }
 0x452   :  { %v15662_v56 = vadd.f32 %v11179_v58, %v17988_v7  ;;  %v15676_v7 = vpop.f32.mrf.mxu0 }
 0x453   :  { %v6478_v44 = vpop.f32.mrf.mxu1  ;;  %17996 = vst [vmem:[#allocation121_spill] sm:$0xff] %v15676_v7 }
 0x454   :  { %17989 = vst [vmem:[#allocation187_spill] sm:$0xff] %v15662_v56  ;;  %v15668_v43 = vadd.f32 %v6478_v44, %v17992_v26  ;;  %v17999_v26 = vld [vmem:[#allocation101_spill] sm:$0xff]  ;;  %v7490_v56 = vpack.c.bf16 %v7458_v31, %v11682_v34 }
 0x455   :  { %v11182_v13 = vpop.f32.mrf.mxu1  ;;  %11345 = vmatmul.mubr.msk.bf16.gmra.mxu1 %vm4062_vm8, %v7488_v9  ;;  %v15684_v9 = vpop.f32.mrf.mxu0 }
 0x456   :  { %17993 = vst [vmem:[#allocation123_spill] sm:$0xff] %v15668_v43  ;;  %v15673_v54 = vadd.f32 %v11182_v13, %v17995_v52  ;;  %11348 = vmatprep.mubr.msk.bf16.mxu1 %vm4062_vm8, %v7489_v12  ;;  %18000 = vst [vmem:[#allocation238_spill] sm:$0xff] %v15684_v9  ;;  %v18001_v13 = vld [vmem:[#allocation108_spill] sm:$0xff] }
 0x457   :  { %v6491_v58 = vpop.f32.mrf.mxu1 }
 0x458   :  { %v15679_v20 = vadd.f32 %v6491_v58, %v17997_v60  ;;  %v18002_v58 = vld [vmem:[#allocation150_spill] sm:$0xff]  ;;  %v18003_v60 = vld [vmem:[#allocation32_spill] sm:$0xff] }
 0x459   :  { %v11183_v44 = vpop.f32.mrf.mxu1 }
 0x45a   :  { %17998 = vst [vmem:[#allocation59_spill] sm:$0xff] %v15679_v20  ;;  %v15682_v43 = vadd.f32 %v11183_v44, %v17999_v26  ;;  %v18004_v20 = vpack.c.bf16 %v18002_v58, %v18003_v60  ;;  %v15697_v26 = vpop.f32.mrf.mxu0  ;;  %v18007_v58 = vld [vmem:[#allocation25_spill] sm:$0xff]  ;;  %v18008_v60 = vld [vmem:[#allocation148_spill] sm:$0xff] }
 0x45b   :  { %v6494_v0 = vpop.f32.mrf.mxu1  ;;  %18005 = vst [vmem:[#allocation128_spill] sm:$0xff] %v15697_v26 }
 0x45c   :  { %v15687_v52 = vadd.f32 %v6494_v0, %v18001_v13 }
 0x45d   :  { %v11186_v12 = vpop.f32.mrf.mxu1  ;;  %11349 = vmatmul.mubr.msk.bf16.gmra.mxu1 %vm4062_vm8, %v7490_v56  ;;  %v15705_v56 = vpop.f32.mrf.mxu0 }
 0x45e   :  { %v15691_v7 = vadd.f32 %v11186_v12, %v15388_v5  ;;  %11420 = vmatprep.mubr.msk.bf16.mxu1 %vm4062_vm8, %v18004_v20  ;;  %18006 = vst [vmem:[#allocation126_spill] sm:$0xff] %v15705_v56  ;;  %v18009_v20 = vpack.c.bf16 %v18007_v58, %v18008_v60 }
 0x45f   :  { %v6507_v44 = vpop.f32.mrf.mxu1 }
 0x460   :  { %v15700_v31 = vadd.f32 %v6507_v44, %v15395_v45  ;;  %v18010_v45 = vld [vmem:[#allocation154_spill] sm:$0xff]  ;;  %v18011_v44 = vld [vmem:[#allocation36_spill] sm:$0xff] }
 0x461   :  { %v11187_v34 = vpop.f32.mrf.mxu1  ;;  %v18012_v9 = vpack.c.bf16 %v18010_v45, %v18011_v44  ;;  %v18016_v45 = vld [vmem:[#allocation152_spill] sm:$0xff] }
 0x462   :  { %v15703_v0 = vadd.f32 %v11187_v34, %v15401_v59  ;;  %v15721_v34 = vpop.f32.mrf.mxu0 }
 0x463   :  { %v6510_v13 = vpop.f32.mrf.mxu1  ;;  %18013 = vst [vmem:[#allocation245_spill] sm:$0xff] %v15721_v34 }
 0x464   :  { %v15708_v5 = vadd.f32 %v6510_v13, %v15406_v61  ;;  %v15729_v60 = vpop.f32.mrf.mxu0 }
 0x465   :  { %v11190_v12 = vpop.f32.mrf.mxu1  ;;  %11421 = vmatmul.mubr.msk.bf16.vlgmr.msra.gmra.mxu1 %vm4062_vm8, %v18009_v20  ;;  %18014 = vst [vmem:[#allocation188_spill] sm:$0xff] %v15729_v60  ;;  %v18015_v20 = vld [vmem:[#allocation29_spill] sm:$0xff] }
 0x466   :  { %v15715_v26 = vadd.f32 %v11190_v12, %v15412_v2  ;;  %11424 = vmatprep.mubr.msk.bf16.mxu1 %vm4062_vm8, %v18012_v9  ;;  %v18017_v9 = vpack.c.bf16 %v18015_v20, %v18016_v45 }
 0x467   :  { %v6523_v59 = vpop.f32.mrf.mxu1 }
 0x468   :  { %v15724_v61 = vadd.f32 %v6523_v59, %v15419_v27  ;;  %v18018_v27 = vld [vmem:[#allocation158_spill] sm:$0xff]  ;;  %v18019_v59 = vld [vmem:[#allocation40_spill] sm:$0xff] }
 0x469   :  { %v11191_v13 = vpop.f32.mrf.mxu1  ;;  %v18020_v34 = vpack.c.bf16 %v18018_v27, %v18019_v59  ;;  %v18024_v27 = vld [vmem:[#allocation156_spill] sm:$0xff] }
 0x46a   :  { %v15727_v56 = vadd.f32 %v11191_v13, %v15424_v24  ;;  %v15745_v13 = vpop.f32.mrf.mxu0 }
 0x46b   :  { %v6526_v58 = vpop.f32.mrf.mxu1  ;;  %18021 = vst [vmem:[#allocation239_spill] sm:$0xff] %v15745_v13 }
 0x46c   :  { %v15732_v2 = vadd.f32 %v6526_v58, %v15429_v39  ;;  %v15753_v45 = vpop.f32.mrf.mxu0 }
 0x46d   :  { %v11194_v12 = vpop.f32.mrf.mxu1  ;;  %11425 = vmatmul.mubr.msk.bf16.gmra.mxu1 %vm4062_vm8, %v18017_v9  ;;  %v18023_v9 = vld [vmem:[#allocation33_spill] sm:$0xff] }
 0x46e   :  { %v15739_v44 = vadd.f32 %v11194_v12, %v15435_v57  ;;  %11428 = vmatprep.mubr.msk.bf16.mxu1 %vm4062_vm8, %v18020_v34  ;;  %v18025_v34 = vpack.c.bf16 %v18023_v9, %v18024_v27 }
 0x46f   :  { %v6539_v24 = vpop.f32.mrf.mxu1 }
 0x470   :  { %v15748_v39 = vadd.f32 %v6539_v24, %v15441_v21  ;;  %v18026_v21 = vld [vmem:[#allocation162_spill] sm:$0xff]  ;;  %v18027_v24 = vld [vmem:[#allocation44_spill] sm:$0xff] }
 0x471   :  { %v11195_v58 = vpop.f32.mrf.mxu1  ;;  %v18028_v13 = vpack.c.bf16 %v18026_v21, %v18027_v24  ;;  %v18032_v21 = vld [vmem:[#allocation160_spill] sm:$0xff] }
 0x472   :  { %v15751_v60 = vadd.f32 %v11195_v58, %v15446_v4  ;;  %v15769_v58 = vpop.f32.mrf.mxu0 }
 0x473   :  { %v6542_v20 = vpop.f32.mrf.mxu1  ;;  %18029 = vst [vmem:[#allocation240_spill] sm:$0xff] %v15769_v58 }
 0x474   :  { %v15756_v57 = vadd.f32 %v6542_v20, %v15451_v25  ;;  %v15777_v27 = vpop.f32.mrf.mxu0 }
 0x475   :  { %v11198_v12 = vpop.f32.mrf.mxu1  ;;  %11429 = vmatmul.mubr.msk.bf16.gmra.mxu1 %vm4062_vm8, %v18025_v34  ;;  %18030 = vst [vmem:[#allocation195_spill] sm:$0xff] %v15777_v27  ;;  %v18031_v34 = vld [vmem:[#allocation37_spill] sm:$0xff] }
 0x476   :  { %18022 = vst [vmem:[#allocation192_spill] sm:$0xff] %v15756_v57  ;;  %v15763_v59 = vadd.f32 %v11198_v12, %v15455_v23  ;;  %11432 = vmatprep.mubr.msk.bf16.mxu1 %vm4062_vm8, %v18028_v13  ;;  %v18033_v13 = vpack.c.bf16 %v18031_v34, %v18032_v21 }
 0x477   :  { %v6555_v4 = vpop.f32.mrf.mxu1 }
 0x478   :  { %v15772_v25 = vadd.f32 %v6555_v4, %v15461_v51  ;;  %v18034_v51 = vld [vmem:[#allocation166_spill] sm:$0xff]  ;;  %v18035_v4 = vld [vmem:[#allocation48_spill] sm:$0xff] }
 0x479   :  { %v11199_v20 = vpop.f32.mrf.mxu1  ;;  %v18036_v58 = vpack.c.bf16 %v18034_v51, %v18035_v4  ;;  %v18040_v51 = vld [vmem:[#allocation164_spill] sm:$0xff] }
 0x47a   :  { %v15775_v57 = vadd.f32 %v11199_v20, %v15464_v63  ;;  %v15793_v20 = vpop.f32.mrf.mxu0 }
 0x47b   :  { %v6558_v9 = vpop.f32.mrf.mxu1  ;;  %18037 = vst [vmem:[#allocation243_spill] sm:$0xff] %v15793_v20 }
 0x47c   :  { %v15780_v23 = vadd.f32 %v6558_v9, %v15469_v15  ;;  %v15801_v21 = vpop.f32.mrf.mxu0 }
 0x47d   :  { %v11202_v12 = vpop.f32.mrf.mxu1  ;;  %11433 = vmatmul.mubr.msk.bf16.gmra.mxu1 %vm4062_vm8, %v18033_v13  ;;  %18038 = vst [vmem:[#allocation127_spill] sm:$0xff] %v15801_v21  ;;  %v18039_v13 = vld [vmem:[#allocation41_spill] sm:$0xff] }
 0x47e   :  { %v15787_v24 = vadd.f32 %v11202_v12, %v15473_v47  ;;  %11436 = vmatprep.mubr.msk.bf16.mxu1 %vm4062_vm8, %v18036_v58  ;;  %v18041_v58 = vpack.c.bf16 %v18039_v13, %v18040_v51 }
 0x47f   :  { %v6571_v63 = vpop.f32.mrf.mxu1 }
 0x480   :  { %v15796_v15 = vadd.f32 %v6571_v63, %v15479_v29  ;;  %v18042_v29 = vld [vmem:[#allocation171_spill] sm:$0xff]  ;;  %v18043_v63 = vld [vmem:[#allocation52_spill] sm:$0xff] }
 0x481   :  { %v11203_v9 = vpop.f32.mrf.mxu1  ;;  %v18044_v20 = vpack.c.bf16 %v18042_v29, %v18043_v63  ;;  %v18048_v29 = vld [vmem:[#allocation168_spill] sm:$0xff] }
 0x482   :  { %v15799_v27 = vadd.f32 %v11203_v9, %v15482_v16  ;;  %v15817_v9 = vpop.f32.mrf.mxu0 }
 0x483   :  { %v6574_v34 = vpop.f32.mrf.mxu1  ;;  %18045 = vst [vmem:[#allocation125_spill] sm:$0xff] %v15817_v9 }
 0x484   :  { %v15804_v47 = vadd.f32 %v6574_v34, %v15487_v41  ;;  %v15825_v51 = vpop.f32.mrf.mxu0 }
 0x485   :  { %v11206_v12 = vpop.f32.mrf.mxu1  ;;  %11437 = vmatmul.mubr.msk.bf16.gmra.mxu1 %vm4062_vm8, %v18041_v58  ;;  %18046 = vst [vmem:[#allocation63_spill] sm:$0xff] %v15825_v51  ;;  %v18047_v58 = vld [vmem:[#allocation45_spill] sm:$0xff] }
 0x486   :  { %v15811_v4 = vadd.f32 %v11206_v12, %v15491_v36  ;;  %11440 = vmatprep.mubr.msk.bf16.mxu1 %vm4062_vm8, %v18044_v20  ;;  %v18049_v20 = vpack.c.bf16 %v18047_v58, %v18048_v29 }
 0x487   :  { %v6587_v16 = vpop.f32.mrf.mxu1 }
 0x488   :  { %v15820_v41 = vadd.f32 %v6587_v16, %v15497_v32  ;;  %v18050_v32 = vld [vmem:[#allocation177_spill] sm:$0xff]  ;;  %v18051_v16 = vld [vmem:[#allocation54_spill] sm:$0xff] }
 0x489   :  { %v11207_v34 = vpop.f32.mrf.mxu1  ;;  %v18052_v9 = vpack.c.bf16 %v18050_v32, %v18051_v16  ;;  %v18056_v32 = vld [vmem:[#allocation173_spill] sm:$0xff] }
 0x48a   :  { %v15823_v21 = vadd.f32 %v11207_v34, %v15500_v18  ;;  %v15841_v34 = vpop.f32.mrf.mxu0 }
 0x48b   :  { %v6590_v13 = vpop.f32.mrf.mxu1  ;;  %18053 = vst [vmem:[#allocation169_spill] sm:$0xff] %v15841_v34 }
 0x48c   :  { %v15828_v36 = vadd.f32 %v6590_v13, %v15505_v6  ;;  %v15849_v29 = vpop.f32.mrf.mxu0 }
 0x48d   :  { %v11210_v12 = vpop.f32.mrf.mxu1  ;;  %11441 = vmatmul.mubr.msk.bf16.gmra.mxu1 %vm4062_vm8, %v18049_v20  ;;  %18054 = vst [vmem:[#allocation132_spill] sm:$0xff] %v15849_v29  ;;  %v18055_v20 = vld [vmem:[#allocation49_spill] sm:$0xff] }
 0x48e   :  { %v15835_v63 = vadd.f32 %v11210_v12, %v15509_v17  ;;  %11444 = vmatprep.mubr.msk.bf16.mxu1 %vm4062_vm8, %v18052_v9  ;;  %v18057_v9 = vpack.c.bf16 %v18055_v20, %v18056_v32 }
 0x48f   :  { %v6603_v18 = vpop.f32.mrf.mxu1 }
 0x490   :  { %v15844_v6 = vadd.f32 %v6603_v18, %v15515_v42  ;;  %v18058_v42 = vld [vmem:[#allocation183_spill] sm:$0xff]  ;;  %v18059_v18 = vld [vmem:[#allocation58_spill] sm:$0xff] }
 0x491   :  { %v11211_v13 = vpop.f32.mrf.mxu1  ;;  %v18060_v34 = vpack.c.bf16 %v18058_v42, %v18059_v18  ;;  %v18064_v42 = vld [vmem:[#allocation179_spill] sm:$0xff] }
 0x492   :  { %v15847_v51 = vadd.f32 %v11211_v13, %v15518_v28  ;;  %v15865_v13 = vpop.f32.mrf.mxu0 }
 0x493   :  { %v6606_v58 = vpop.f32.mrf.mxu1  ;;  %18061 = vst [vmem:[#allocation130_spill] sm:$0xff] %v15865_v13 }
 0x494   :  { %v15852_v17 = vadd.f32 %v6606_v58, %v15523_v55  ;;  %v15873_v32 = vpop.f32.mrf.mxu0 }
 0x495   :  { %v11214_v12 = vpop.f32.mrf.mxu1  ;;  %11445 = vmatmul.mubr.msk.bf16.gmra.mxu1 %vm4062_vm8, %v18057_v9  ;;  %18062 = vst [vmem:[#allocation196_spill] sm:$0xff] %v15873_v32  ;;  %v18063_v9 = vld [vmem:[#allocation53_spill] sm:$0xff] }
 0x496   :  { %v15859_v16 = vadd.f32 %v11214_v12, %v15527_v14  ;;  %11448 = vmatprep.mubr.msk.bf16.mxu1 %vm4062_vm8, %v18060_v34  ;;  %v18065_v34 = vpack.c.bf16 %v18063_v9, %v18064_v42 }
 0x497   :  { %v6619_v28 = vpop.f32.mrf.mxu1 }
 0x498   :  { %v15868_v55 = vadd.f32 %v6619_v28, %v15533_v38  ;;  %v18066_v38 = vld [vmem:[#allocation189_spill] sm:$0xff]  ;;  %v18067_v28 = vld [vmem:[#allocation62_spill] sm:$0xff] }
 0x499   :  { %v11215_v58 = vpop.f32.mrf.mxu1  ;;  %v18068_v13 = vpack.c.bf16 %v18066_v38, %v18067_v28  ;;  %v18074_v38 = vld [vmem:[#allocation57_spill] sm:$0xff] }
 0x49a   :  { %v15871_v29 = vadd.f32 %v11215_v58, %v15536_v53  ;;  %v15889_v58 = vpop.f32.mrf.mxu0  ;;  %v18075_v28 = vld [vmem:[#allocation185_spill] sm:$0xff] }
 0x49b   :  { %v6622_v20 = vpop.f32.mrf.mxu1  ;;  %18069 = vst [vmem:[#allocation191_spill] sm:$0xff] %v15889_v58  ;;  %v18076_v58 = vpack.c.bf16 %v18074_v38, %v18075_v28 }
 0x49c   :  { %v15876_v14 = vadd.f32 %v6622_v20, %v15541_v22  ;;  %v15897_v42 = vpop.f32.mrf.mxu0 }
 0x49d   :  { %v11218_v12 = vpop.f32.mrf.mxu1  ;;  %11449 = vmatmul.mubr.msk.bf16.gmra.mxu1 %vm4062_vm8, %v18065_v34  ;;  %18071 = vst [vmem:[#allocation190_spill] sm:$0xff] %v15897_v42 }
 0x49e   :  { %v15883_v18 = vadd.f32 %v11218_v12, %v15545_v19  ;;  %11452 = vmatprep.mubr.msk.bf16.mxu1 %vm4062_vm8, %v18068_v13  ;;  %v18072_v19 = vld [vmem:[#allocation222_spill] sm:$0xff] }
 0x49f   :  { %v6635_v53 = vpop.f32.mrf.mxu1  ;;  %v7333_v12 = vadd.f32 %v18072_v19, %v15563_v50  ;;  %v15916_v19 = vpop.f32.mrf.mxu0 }
 0x4a0   :  { %v15892_v22 = vadd.f32 %v6635_v53, %v15551_v11  ;;  %v18077_v11 = vld [vmem:[#allocation86_spill] sm:$0xff]  ;;  %18082 = vst [vmem:[#allocation56_spill] sm:$0xff] %v15916_v19  ;;  %v18087_v19 = vld [vmem:[#allocation61_spill] sm:$0xff] }
 0x4a1   :  { %v11219_v20 = vpop.f32.mrf.mxu1  ;;  %v7331_v53 = vadd.f32 %v18077_v11, %v15569_v48 }
 0x4a2   :  { %v15895_v32 = vadd.f32 %v11219_v20, %v15554_v1  ;;  %v18079_v20 = vld [vmem:[#allocation197_spill] sm:$0xff] }
 0x4a3   :  { %v6638_v9 = vpop.f32.mrf.mxu1 }
 0x4a4   :  { %18070 = vst [vmem:[#allocation200_spill] sm:$0xff] %v15895_v32  ;;  %v15902_v34 = vadd.f32 %v6638_v9, %v15559_v33  ;;  %v18080_v32 = vld [vmem:[#allocation66_spill] sm:$0xff]  ;;  %v18083_v33 = vld [vmem:[#allocation27_spill] sm:$0xff] }
 0x4a5   :  { %v11290_v13 = vpop.f32.mrf.mxu1  ;;  %11453 = vmatmul.mubr.msk.bf16.gmra.mxu1 %vm4062_vm8, %v18076_v58  ;;  %v18081_v42 = vpack.c.bf16 %v18079_v20, %v18080_v32  ;;  %v7334_v9 = vadd.f32 %v18083_v33, %v15572_v49  ;;  %v18084_v58 = vld [vmem:[#allocation92_spill] sm:$0xff]  ;;  %v18086_v32 = vld [vmem:[#allocation147_spill] sm:$0xff]  ;;  %v18091_v33 = vld [vmem:[#allocation70_spill] sm:$0xff] }
 0x4a6   :  { %18073 = vst [vmem:[#allocation131_spill] sm:$0xff] %v15902_v34  ;;  %v15910_v1 = vadd.f32 %v11290_v13, %v7333_v12  ;;  %v7332_v28 = vadd.f32 %v18084_v58, %v15577_v3  ;;  %v15926_v13 = vpop.f32.mrf.mxu0 }
 0x4a7   :  { %11456 = vmatprep.mubr.msk.bf16.mxu1 %vm4062_vm8, %v18081_v42  ;;  %v7630_v50 = vpop.f32.mrf.mxu1  ;;  %18085 = vst [vmem:[#allocation136_spill] sm:$0xff] %v15926_v13  ;;  %v7337_v42 = vadd.f32 %v18086_v32, %v15581_v46  ;;  %v18117_v13 = vld [vmem:[#allocation71_spill] sm:$0xff] }
 0x4a8   :  { %18078 = vst [vmem:[#allocation129_spill] sm:$0xff] %v15910_v1  ;;  %v15920_v34 = vadd.f32 %v7630_v50, %v7331_v53  ;;  %v18088_v1 = vld [vmem:[#allocation193_spill] sm:$0xff]  ;;  %v18090_v53 = vld [vmem:[#allocation226_spill] sm:$0xff]  ;;  %v15944_v46 = vpop.f32.mrf.mxu0 }
 0x4a9   :  { %v11291_v38 = vpop.f32.mrf.mxu1  ;;  %v18089_v49 = vpack.c.bf16 %v18087_v19, %v18088_v1  ;;  %v7335_v50 = vadd.f32 %v18090_v53, %v15587_v30  ;;  %18094 = vst [vmem:[#allocation134_spill] sm:$0xff] %v15944_v46  ;;  %v18096_v19 = vld [vmem:[#allocation227_spill] sm:$0xff]  ;;  %v18098_v53 = vld [vmem:[#allocation73_spill] sm:$0xff] }
 0x4aa   :  { %v15924_v48 = vadd.f32 %v11291_v38, %v7334_v9  ;;  %v18092_v9 = vld [vmem:[#allocation72_spill] sm:$0xff] }
 0x4ab   :  { %v7633_v12 = vpop.f32.mrf.mxu1  ;;  %v18093_v38 = vpack.c.bf16 %v18091_v33, %v18092_v9  ;;  %v7341_v33 = vadd.f32 %v18098_v53, %v15599_v37 }
 0x4ac   :  { %v15930_v11 = vadd.f32 %v7633_v12, %v7332_v28  ;;  %v18095_v28 = vld [vmem:[#allocation149_spill] sm:$0xff] }
 0x4ad   :  { %v11294_v20 = vpop.f32.mrf.mxu1  ;;  %11457 = vmatmul.mubr.msk.bf16.gmra.mxu1 %vm4062_vm8, %v18089_v49  ;;  %v7338_v12 = vadd.f32 %v18095_v28, %v15590_v40  ;;  %v7336_v49 = vadd.f32 %v18096_v19, %v15595_v10  ;;  %v18099_v40 = vld [vmem:[#allocation67_spill] sm:$0xff]  ;;  %v18102_v10 = vld [vmem:[#allocation212_spill] sm:$0xff] }
 0x4ae   :  { %v15938_v3 = vadd.f32 %v11294_v20, %v7337_v42  ;;  %11460 = vmatprep.mubr.msk.bf16.mxu1 %vm4062_vm8, %v18093_v38  ;;  %v15952_v20 = vpop.f32.mrf.mxu0  ;;  %v7339_v28 = vadd.f32 %v18102_v10, %v15605_v35  ;;  %v18105_v19 = vld [vmem:[#allocation76_spill] sm:$0xff]  ;;  %v18114_v10 = vld [vmem:[#allocation181_spill] sm:$0xff] }
 0x4af   :  { %v7646_v58 = vpop.f32.mrf.mxu1  ;;  %18097 = vst [vmem:[#allocation174_spill] sm:$0xff] %v15952_v20 }
 0x4b0   :  { %v15948_v32 = vadd.f32 %v7646_v58, %v7335_v50  ;;  %v18100_v50 = vld [vmem:[#allocation201_spill] sm:$0xff] }
 0x4b1   :  { %v11295_v1 = vpop.f32.mrf.mxu1  ;;  %v18101_v58 = vpack.c.bf16 %v18099_v40, %v18100_v50  ;;  %v18110_v40 = vld [vmem:[#allocation232_spill] sm:$0xff]  ;;  %v18111_v50 = vld [vmem:[#allocation225_spill] sm:$0xff] }
 0x4b2   :  { %v7892_v30 = vadd.f32 %v11295_v1, %v7338_v12  ;;  %v18104_v1 = vld [vmem:[#allocation74_spill] sm:$0xff] }
 0x4b3   :  { %v7649_v42 = vpop.f32.mrf.mxu1  ;;  %v18106_v20 = vpack.c.bf16 %v18104_v1, %v18105_v19  ;;  %v18115_v1 = vld [vmem:[#allocation31_spill] sm:$0xff] }
 0x4b4   :  { %v15957_v9 = vadd.f32 %v15753_v45, %v7892_v30  ;;  %v15959_v38 = vadd.f32 %v7649_v42, %v7336_v49  ;;  %v15973_v45 = vpop.f32.mrf.mxu0  ;;  %v18108_v49 = vld [vmem:[#allocation26_spill] sm:$0xff] }
 0x4b5   :  { %v11298_v46 = vpop.f32.mrf.mxu1  ;;  %11461 = vmatmul.mubr.msk.bf16.gmra.mxu1 %vm4062_vm8, %v18101_v58  ;;  %18107 = vst [vmem:[#allocation133_spill] sm:$0xff] %v15973_v45  ;;  %v7342_v30 = vadd.f32 %v18108_v49, %v15608_v8  ;;  %v7340_v58 = vadd.f32 %v18111_v50, %v18110_v40 }
 0x4b6   :  { %v15967_v12 = vadd.f32 %v11298_v46, %v7341_v33  ;;  %11464 = vmatprep.mubr.msk.bf16.mxu1 %vm4062_vm8, %v18106_v20  ;;  %v15983_v33 = vpop.f32.mrf.mxu0  ;;  %v7345_v20 = vadd.f32 %v18115_v1, %v18114_v10 }
 0x4b7   :  { %v7662_v37 = vpop.f32.mrf.mxu1  ;;  %18113 = vst [vmem:[#allocation199_spill] sm:$0xff] %v15983_v33 }
 0x4b8   :  { %18103 = vst [vmem:[#allocation135_spill] sm:$0xff] %v15967_v12  ;;  %v15977_v42 = vadd.f32 %v7662_v37, %v7339_v28  ;;  %v18118_v12 = vld [vmem:[#allocation206_spill] sm:$0xff]  ;;  %v18120_v28 = vld [vmem:[#allocation119_spill] sm:$0xff]  ;;  %v16001_v10 = vpop.f32.mrf.mxu0 }
 0x4b9   :  { %v11299_v53 = vpop.f32.mrf.mxu1  ;;  %v18119_v8 = vpack.c.bf16 %v18117_v13, %v18118_v12  ;;  %v18121_v37 = vld [vmem:[#allocation151_spill] sm:$0xff]  ;;  %18126 = vst [vmem:[#allocation137_spill] sm:$0xff] %v16001_v10  ;;  %v18130_v12 = vld [vmem:[#allocation234_spill] sm:$0xff] }
 0x4ba   :  { %18109 = vst [vmem:[#allocation140_spill] sm:$0xff] %v15977_v42  ;;  %v15981_v35 = vadd.f32 %v11299_v53, %v7342_v30  ;;  %v7343_v49 = vadd.f32 %v18121_v37, %v18120_v28  ;;  %v18123_v30 = vld [vmem:[#allocation78_spill] sm:$0xff]  ;;  %v18124_v53 = vld [vmem:[#allocation80_spill] sm:$0xff]  ;;  %v18138_v42 = vld [vmem:[#allocation211_spill] sm:$0xff] }
 0x4bb   :  { %v7665_v46 = vpop.f32.mrf.mxu1  ;;  %v18125_v50 = vpack.c.bf16 %v18123_v30, %v18124_v53  ;;  %v18134_v37 = vld [vmem:[#allocation124_spill] sm:$0xff]  ;;  %v18135_v30 = vld [vmem:[#allocation30_spill] sm:$0xff] }
 0x4bc   :  { %18112 = vst [vmem:[#allocation138_spill] sm:$0xff] %v15981_v35  ;;  %v15987_v19 = vadd.f32 %v7665_v46, %v7340_v58  ;;  %v18127_v58 = vld [vmem:[#allocation117_spill] sm:$0xff]  ;;  %v7349_v53 = vadd.f32 %v18135_v30, %v18134_v37 }
 0x4bd   :  { %v11302_v45 = vpop.f32.mrf.mxu1  ;;  %11465 = vmatmul.mubr.msk.bf16.gmra.mxu1 %vm4062_vm8, %v18119_v8  ;;  %v18128_v46 = vld [vmem:[#allocation153_spill] sm:$0xff] }
 0x4be   :  { %18116 = vst [vmem:[#allocation198_spill] sm:$0xff] %v15987_v19  ;;  %v15995_v40 = vadd.f32 %v11302_v45, %v7345_v20  ;;  %11468 = vmatprep.mubr.msk.bf16.mxu1 %vm4062_vm8, %v18125_v50  ;;  %v7346_v1 = vadd.f32 %v18128_v46, %v18127_v58  ;;  %v18131_v8 = vld [vmem:[#allocation77_spill] sm:$0xff]  ;;  %v16011_v20 = vpop.f32.mrf.mxu0 }
 0x4bf   :  { %v7678_v33 = vpop.f32.mrf.mxu1  ;;  %v7344_v35 = vadd.f32 %v18131_v8, %v18130_v12  ;;  %18133 = vst [vmem:[#allocation142_spill] sm:$0xff] %v16011_v20 }
 0x4c0   :  { %18122 = vst [vmem:[#allocation139_spill] sm:$0xff] %v15995_v40  ;;  %v16005_v19 = vadd.f32 %v7678_v33, %v7343_v49  ;;  %v18137_v40 = vld [vmem:[#allocation75_spill] sm:$0xff]  ;;  %v18140_v33 = vld [vmem:[#allocation242_spill] sm:$0xff]  ;;  %v18141_v49 = vld [vmem:[#allocation100_spill] sm:$0xff]  ;;  %v16029_v37 = vpop.f32.mrf.mxu0 }
 0x4c1   :  { %v11303_v13 = vpop.f32.mrf.mxu1  ;;  %v18139_v58 = vpack.c.bf16 %v18137_v40, %v18138_v42  ;;  %v7347_v46 = vadd.f32 %v18141_v49, %v18140_v33  ;;  %18146 = vst [vmem:[#allocation141_spill] sm:$0xff] %v16029_v37  ;;  %v18149_v40 = vld [vmem:[#allocation244_spill] sm:$0xff] }
 0x4c2   :  { %18129 = vst [vmem:[#allocation205_spill] sm:$0xff] %v16005_v19  ;;  %v16009_v28 = vadd.f32 %v11303_v13, %v7346_v1  ;;  %v18143_v1 = vld [vmem:[#allocation82_spill] sm:$0xff]  ;;  %v18144_v13 = vld [vmem:[#allocation84_spill] sm:$0xff] }
 0x4c3   :  { %v7681_v45 = vpop.f32.mrf.mxu1  ;;  %v18145_v8 = vpack.c.bf16 %v18143_v1, %v18144_v13  ;;  %v18152_v49 = vld [vmem:[#allocation184_spill] sm:$0xff] }
 0x4c4   :  { %18132 = vst [vmem:[#allocation143_spill] sm:$0xff] %v16009_v28  ;;  %v16015_v50 = vadd.f32 %v7681_v45, %v7344_v35  ;;  %v18147_v35 = vld [vmem:[#allocation182_spill] sm:$0xff]  ;;  %v18153_v1 = vld [vmem:[#allocation228_spill] sm:$0xff] }
 0x4c5   :  { %v11306_v10 = vpop.f32.mrf.mxu1  ;;  %11469 = vmatmul.mubr.msk.bf16.gmra.mxu1 %vm4062_vm8, %v18139_v58  ;;  %v18148_v45 = vld [vmem:[#allocation34_spill] sm:$0xff]  ;;  %v18150_v58 = vld [vmem:[#allocation93_spill] sm:$0xff]  ;;  %v7353_v13 = vadd.f32 %v18153_v1, %v18152_v49  ;;  %v18156_v19 = vld [vmem:[#allocation216_spill] sm:$0xff] }
 0x4c6   :  { %18136 = vst [vmem:[#allocation60_spill] sm:$0xff] %v16015_v50  ;;  %v16023_v12 = vadd.f32 %v11306_v10, %v7349_v53  ;;  %11472 = vmatprep.mubr.msk.bf16.mxu1 %vm4062_vm8, %v18145_v8  ;;  %v7350_v30 = vadd.f32 %v18148_v45, %v18147_v35  ;;  %v7348_v28 = vadd.f32 %v18150_v58, %v18149_v40  ;;  %v16039_v53 = vpop.f32.mrf.mxu0 }
 0x4c7   :  { %v7694_v20 = vpop.f32.mrf.mxu1  ;;  %18151 = vst [vmem:[#allocation16_spill] sm:$0xff] %v16039_v53 }
 0x4c8   :  { %18142 = vst [vmem:[#allocation12_spill] sm:$0xff] %v16023_v12  ;;  %v16033_v50 = vadd.f32 %v7694_v20, %v7347_v46  ;;  %v18155_v12 = vld [vmem:[#allocation79_spill] sm:$0xff]  ;;  %v18158_v20 = vld [vmem:[#allocation97_spill] sm:$0xff]  ;;  %v16057_v49 = vpop.f32.mrf.mxu0 }
 0x4c9   :  { %v11307_v42 = vpop.f32.mrf.mxu1  ;;  %v18157_v35 = vpack.c.bf16 %v18155_v12, %v18156_v19  ;;  %v7351_v46 = vadd.f32 %v18158_v20, %v15659_v62  ;;  %18163 = vst [vmem:[#allocation180_spill] sm:$0xff] %v16057_v49  ;;  %v18166_v12 = vld [vmem:[#allocation123_spill] sm:$0xff]  ;;  %v18170_v49 = vld [vmem:[#allocation81_spill] sm:$0xff] }
 0x4ca   :  { %v16037_v33 = vadd.f32 %v11307_v42, %v7350_v30  ;;  %v18160_v30 = vld [vmem:[#allocation88_spill] sm:$0xff]  ;;  %v18161_v42 = vld [vmem:[#allocation83_spill] sm:$0xff] }
 0x4cb   :  { %v7697_v10 = vpop.f32.mrf.mxu1  ;;  %v18162_v40 = vpack.c.bf16 %v18160_v30, %v18161_v42  ;;  %v18169_v20 = vld [vmem:[#allocation159_spill] sm:$0xff] }
 0x4cc   :  { %v16043_v8 = vadd.f32 %v7697_v10, %v7348_v28  ;;  %v18164_v28 = vld [vmem:[#allocation187_spill] sm:$0xff]  ;;  %v18165_v10 = vld [vmem:[#allocation229_spill] sm:$0xff]  ;;  %v7357_v30 = vadd.f32 %v18169_v20, %v15673_v54 }
 0x4cd   :  { %v11310_v37 = vpop.f32.mrf.mxu1  ;;  %11473 = vmatmul.mubr.msk.bf16.gmra.mxu1 %vm4062_vm8, %v18157_v35  ;;  %v7354_v1 = vadd.f32 %v18165_v10, %v18164_v28  ;;  %v18167_v35 = vld [vmem:[#allocation102_spill] sm:$0xff] }
 0x4ce   :  { %18154 = vst [vmem:[#allocation11_spill] sm:$0xff] %v16043_v8  ;;  %v16051_v45 = vadd.f32 %v11310_v37, %v7353_v13  ;;  %11476 = vmatprep.mubr.msk.bf16.mxu1 %vm4062_vm8, %v18162_v40  ;;  %v7352_v8 = vadd.f32 %v18167_v35, %v18166_v12  ;;  %v16067_v13 = vpop.f32.mrf.mxu0 }
 0x4cf   :  { %v7710_v58 = vpop.f32.mrf.mxu1  ;;  %18168 = vst [vmem:[#allocation204_spill] sm:$0xff] %v16067_v13 }
 0x4d0   :  { %18159 = vst [vmem:[#allocation208_spill] sm:$0xff] %v16051_v45  ;;  %v16061_v53 = vadd.f32 %v7710_v58, %v7351_v46  ;;  %v18171_v45 = vld [vmem:[#allocation221_spill] sm:$0xff]  ;;  %v18173_v46 = vld [vmem:[#allocation59_spill] sm:$0xff]  ;;  %v16085_v54 = vpop.f32.mrf.mxu0 }
 0x4d1   :  { %v11311_v19 = vpop.f32.mrf.mxu1  ;;  %v18172_v28 = vpack.c.bf16 %v18170_v49, %v18171_v45  ;;  %v18174_v58 = vld [vmem:[#allocation103_spill] sm:$0xff]  ;;  %18179 = vst [vmem:[#allocation10_spill] sm:$0xff] %v16085_v54  ;;  %v18181_v49 = vld [vmem:[#allocation106_spill] sm:$0xff]  ;;  %v18183_v54 = vld [vmem:[#allocation85_spill] sm:$0xff] }
 0x4d2   :  { %v16065_v62 = vadd.f32 %v11311_v19, %v7354_v1  ;;  %v7355_v10 = vadd.f32 %v18174_v58, %v18173_v46  ;;  %v18176_v1 = vld [vmem:[#allocation90_spill] sm:$0xff]  ;;  %v18177_v19 = vld [vmem:[#allocation87_spill] sm:$0xff] }
 0x4d3   :  { %v7713_v37 = vpop.f32.mrf.mxu1  ;;  %v18178_v35 = vpack.c.bf16 %v18176_v1, %v18177_v19  ;;  %v18182_v58 = vld [vmem:[#allocation42_spill] sm:$0xff] }
 0x4d4   :  { %v16071_v42 = vadd.f32 %v7713_v37, %v7352_v8  ;;  %v18180_v8 = vld [vmem:[#allocation39_spill] sm:$0xff]  ;;  %v7361_v1 = vadd.f32 %v18182_v58, %v15691_v7 }
 0x4d5   :  { %v11314_v40 = vpop.f32.mrf.mxu1  ;;  %11477 = vmatmul.mubr.msk.bf16.gmra.mxu1 %vm4062_vm8, %v18172_v28  ;;  %v7358_v37 = vadd.f32 %v18180_v8, %v15682_v43  ;;  %v7356_v28 = vadd.f32 %v18181_v49, %v15687_v52 }
 0x4d6   :  { %v16079_v12 = vadd.f32 %v11314_v40, %v7357_v30  ;;  %11480 = vmatprep.mubr.msk.bf16.mxu1 %vm4062_vm8, %v18178_v35  ;;  %v16095_v40 = vpop.f32.mrf.mxu0 }
 0x4d7   :  { %v7726_v13 = vpop.f32.mrf.mxu1 }
 0x4d8   :  { %18175 = vst [vmem:[#allocation203_spill] sm:$0xff] %v16079_v12  ;;  %v16089_v20 = vadd.f32 %v7726_v13, %v7355_v10  ;;  %v18184_v12 = vld [vmem:[#allocation223_spill] sm:$0xff] }
 0x4d9   :  { %v11315_v45 = vpop.f32.mrf.mxu1  ;;  %v18185_v43 = vpack.c.bf16 %v18183_v54, %v18184_v12  ;;  %v18186_v13 = vld [vmem:[#allocation163_spill] sm:$0xff] }
 0x4da   :  { %v16093_v46 = vadd.f32 %v11315_v45, %v7358_v37  ;;  %v7359_v10 = vadd.f32 %v18186_v13, %v15700_v31  ;;  %v16109_v37 = vpop.f32.mrf.mxu0  ;;  %v18188_v45 = vld [vmem:[#allocation165_spill] sm:$0xff] }
 0x4db   :  { %v7729_v30 = vpop.f32.mrf.mxu1  ;;  %18187 = vst [vmem:[#allocation144_spill] sm:$0xff] %v16109_v37  ;;  %v7362_v49 = vadd.f32 %v18188_v45, %v15703_v0  ;;  %v18191_v31 = vld [vmem:[#allocation105_spill] sm:$0xff]  ;;  %v18192_v37 = vld [vmem:[#allocation43_spill] sm:$0xff] }
 0x4dc   :  { %v16099_v19 = vadd.f32 %v7729_v30, %v7356_v28  ;;  %v18189_v30 = vld [vmem:[#allocation107_spill] sm:$0xff]  ;;  %v7363_v0 = vadd.f32 %v18192_v37, %v15724_v61  ;;  %v18198_v61 = vld [vmem:[#allocation46_spill] sm:$0xff] }
 0x4dd   :  { %v11318_v35 = vpop.f32.mrf.mxu1  ;;  %11481 = vmatmul.mubr.msk.bf16.gmra.mxu1 %vm4062_vm8, %v18185_v43  ;;  %v7360_v58 = vadd.f32 %v18189_v30, %v15708_v5  ;;  %v16119_v43 = vpop.f32.mrf.mxu0  ;;  %v18194_v5 = vld [vmem:[#allocation112_spill] sm:$0xff]  ;;  %v7369_v37 = vadd.f32 %v18198_v61, %v15739_v44 }
 0x4de   :  { %v16107_v52 = vadd.f32 %v11318_v35, %v7361_v1  ;;  %18190 = vst [vmem:[#allocation210_spill] sm:$0xff] %v16119_v43  ;;  %v7365_v1 = vadd.f32 %v18191_v31, %v15715_v26  ;;  %v18195_v43 = vld [vmem:[#allocation110_spill] sm:$0xff] }
 0x4df   :  { %v7742_v8 = vpop.f32.mrf.mxu1  ;;  %v16129_v45 = vpop.f32.mrf.mxu0  ;;  %v7364_v26 = vadd.f32 %v18195_v43, %v15732_v2  ;;  %v18202_v2 = vld [vmem:[#allocation170_spill] sm:$0xff] }
 0x4e0   :  { %v16113_v7 = vadd.f32 %v7742_v8, %v7359_v10  ;;  %18193 = vst [vmem:[#allocation20_spill] sm:$0xff] %v16129_v45  ;;  %v18200_v45 = vld [vmem:[#allocation167_spill] sm:$0xff]  ;;  %v7370_v43 = vadd.f32 %v18202_v2, %v15751_v60  ;;  %v18208_v2 = vld [vmem:[#allocation116_spill] sm:$0xff] }
 0x4e1   :  { %v11319_v28 = vpop.f32.mrf.mxu1  ;;  %v16139_v31 = vpop.f32.mrf.mxu0 }
 0x4e2   :  { %v16117_v12 = vadd.f32 %v11319_v28, %v7362_v49  ;;  %v7366_v49 = vadd.f32 %v18194_v5, %v15727_v56  ;;  %18197 = vst [vmem:[#allocation64_spill] sm:$0xff] %v16139_v31  ;;  %v7367_v56 = vadd.f32 %v18200_v45, %v15748_v39  ;;  %v18203_v31 = vld [vmem:[#allocation192_spill] sm:$0xff] }
 0x4e3   :  { %v7745_v54 = vpop.f32.mrf.mxu1  ;;  %v16149_v5 = vpop.f32.mrf.mxu0 }
 0x4e4   :  { %v16123_v35 = vadd.f32 %v7745_v54, %v7360_v58  ;;  %18201 = vst [vmem:[#allocation209_spill] sm:$0xff] %v16149_v5  ;;  %v18206_v5 = vld [vmem:[#allocation47_spill] sm:$0xff] }
 0x4e5   :  { %v11322_v13 = vpop.f32.mrf.mxu1  ;;  %v7371_v60 = vadd.f32 %v18206_v5, %v15772_v25  ;;  %v18214_v5 = vld [vmem:[#allocation172_spill] sm:$0xff] }
 0x4e6   :  { %v16127_v10 = vadd.f32 %v11322_v13, %v7365_v1 }
 0x4e7   :  { %v7758_v8 = vpop.f32.mrf.mxu1 }
 0x4e8   :  { %v16133_v28 = vadd.f32 %v7758_v8, %v7363_v0 }
 0x4e9   :  { %v11323_v30 = vpop.f32.mrf.mxu1 }
 0x4ea   :  { %v16137_v58 = vadd.f32 %v11323_v30, %v7366_v49 }
 0x4eb   :  { %v7761_v54 = vpop.f32.mrf.mxu1 }
 0x4ec   :  { %18196 = vst [vmem:[#allocation14_spill] sm:$0xff] %v16137_v58  ;;  %v16143_v1 = vadd.f32 %v7761_v54, %v7364_v26  ;;  %v18204_v58 = vld [vmem:[#allocation111_spill] sm:$0xff]  ;;  %v11393_v54 = vpop.f32.mrf.mxu0 }
 0x4ed   :  { %v11326_v13 = vpop.f32.mrf.mxu1  ;;  %v7368_v44 = vadd.f32 %v18204_v58, %v18203_v31  ;;  %v7374_v58 = vadd.f32 %v18208_v2, %v15775_v57 }
 0x4ee   :  { %18199 = vst [vmem:[#allocation186_spill] sm:$0xff] %v16143_v1  ;;  %v16147_v0 = vadd.f32 %v11326_v13, %v7369_v37  ;;  %v18205_v1 = vld [vmem:[#allocation109_spill] sm:$0xff] }
 0x4ef   :  { %v7774_v8 = vpop.f32.mrf.mxu1  ;;  %v7373_v39 = vadd.f32 %v18205_v1, %v15763_v59 }
 0x4f0   :  { %v16153_v49 = vadd.f32 %v7774_v8, %v7367_v56 }
 0x4f1   :  { %v11327_v30 = vpop.f32.mrf.mxu1 }
 0x4f2   :  { %v7924_v26 = vadd.f32 %v11327_v30, %v7370_v43  ;;  %v18210_v30 = vld [vmem:[#allocation114_spill] sm:$0xff] }
 0x4f3   :  { %v7777_v61 = vpop.f32.mrf.mxu1  ;;  %v7372_v59 = vadd.f32 %v18210_v30, %v15780_v23 }
 0x4f4   :  { %v16159_v45 = vadd.f32 %v11393_v54, %v7924_v26  ;;  %v16161_v37 = vadd.f32 %v7777_v61, %v7368_v44  ;;  %v18212_v26 = vld [vmem:[#allocation50_spill] sm:$0xff] }
 0x4f5   :  { %v11330_v13 = vpop.f32.mrf.mxu1  ;;  %v7377_v54 = vadd.f32 %v18212_v26, %v15787_v24 }
 0x4f6   :  { %v16165_v56 = vadd.f32 %v11330_v13, %v7373_v39  ;;  %v7375_v39 = vadd.f32 %v18214_v5, %v15796_v15 }
 0x4f7   :  { %v7790_v8 = vpop.f32.mrf.mxu1 }
 0x4f8   :  { %18207 = vst [vmem:[#allocation13_spill] sm:$0xff] %v16165_v56  ;;  %v16169_v31 = vadd.f32 %v7790_v8, %v7371_v60  ;;  %v18216_v60 = vld [vmem:[#allocation230_spill] sm:$0xff]  ;;  %v18287_v56 = vld [vmem:[#allocation143_spill] sm:$0xff] }
 0x4f9   :  { %v11331_v43 = vpop.f32.mrf.mxu1  ;;  %v7378_v8 = vadd.f32 %v18216_v60, %v15799_v27 }
 0x4fa   :  { %18209 = vst [vmem:[#allocation15_spill] sm:$0xff] %v16169_v31  ;;  %v16173_v1 = vadd.f32 %v11331_v43, %v7374_v58  ;;  %v18218_v58 = vld [vmem:[#allocation175_spill] sm:$0xff]  ;;  %v18286_v31 = vld [vmem:[#allocation169_spill] sm:$0xff] }
 0x4fb   :  { %v7793_v44 = vpop.f32.mrf.mxu1  ;;  %v7376_v43 = vadd.f32 %v18218_v58, %v15804_v47 }
 0x4fc   :  { %18211 = vst [vmem:[#allocation215_spill] sm:$0xff] %v16173_v1  ;;  %v16177_v61 = vadd.f32 %v7793_v44, %v7372_v59  ;;  %v18220_v59 = vld [vmem:[#allocation231_spill] sm:$0xff] }
 0x4fd   :  { %v11334_v25 = vpop.f32.mrf.mxu1  ;;  %v7381_v44 = vadd.f32 %v18220_v59, %v15811_v4 }
 0x4fe   :  { %18213 = vst [vmem:[#allocation24_spill] sm:$0xff] %v16177_v61  ;;  %v16181_v13 = vadd.f32 %v11334_v25, %v7377_v54  ;;  %v18222_v54 = vld [vmem:[#allocation115_spill] sm:$0xff] }
 0x4ff   :  { %v7806_v57 = vpop.f32.mrf.mxu1  ;;  %v7379_v25 = vadd.f32 %v18222_v54, %v15820_v41  ;;  %v18283_v61 = vld [vmem:[#allocation139_spill] sm:$0xff] }
 0x500   :  { %18215 = vst [vmem:[#allocation18_spill] sm:$0xff] %v16181_v13  ;;  %v16185_v2 = vadd.f32 %v7806_v57, %v7375_v39  ;;  %v18224_v39 = vld [vmem:[#allocation113_spill] sm:$0xff] }
 0x501   :  { %v11335_v23 = vpop.f32.mrf.mxu1  ;;  %v7382_v57 = vadd.f32 %v18224_v39, %v15823_v21  ;;  %v18282_v13 = vld [vmem:[#allocation125_spill] sm:$0xff] }
 0x502   :  { %18217 = vst [vmem:[#allocation68_spill] sm:$0xff] %v16185_v2  ;;  %v16189_v30 = vadd.f32 %v11335_v23, %v7378_v8  ;;  %v18226_v8 = vld [vmem:[#allocation51_spill] sm:$0xff]  ;;  %v18281_v2 = vld [vmem:[#allocation198_spill] sm:$0xff] }
 0x503   :  { %v7809_v24 = vpop.f32.mrf.mxu1  ;;  %v7380_v23 = vadd.f32 %v18226_v8, %v15828_v36 }
 0x504   :  { %18219 = vst [vmem:[#allocation194_spill] sm:$0xff] %v16189_v30  ;;  %v16193_v26 = vadd.f32 %v7809_v24, %v7376_v43  ;;  %v18228_v43 = vld [vmem:[#allocation120_spill] sm:$0xff] }
 0x505   :  { %v11338_v15 = vpop.f32.mrf.mxu1  ;;  %v7385_v24 = vadd.f32 %v18228_v43, %v15835_v63 }
 0x506   :  { %18221 = vst [vmem:[#allocation214_spill] sm:$0xff] %v16193_v26  ;;  %v16197_v5 = vadd.f32 %v11338_v15, %v7381_v44  ;;  %v18230_v44 = vld [vmem:[#allocation118_spill] sm:$0xff]  ;;  %v18280_v26 = vld [vmem:[#allocation127_spill] sm:$0xff] }
 0x507   :  { %v7822_v27 = vpop.f32.mrf.mxu1  ;;  %v7383_v15 = vadd.f32 %v18230_v44, %v15844_v6 }
 0x508   :  { %18223 = vst [vmem:[#allocation17_spill] sm:$0xff] %v16197_v5  ;;  %v16201_v60 = vadd.f32 %v7822_v27, %v7379_v25  ;;  %v18232_v25 = vld [vmem:[#allocation176_spill] sm:$0xff]  ;;  %v18279_v5 = vld [vmem:[#allocation138_spill] sm:$0xff] }
 0x509   :  { %v11339_v47 = vpop.f32.mrf.mxu1  ;;  %v7386_v27 = vadd.f32 %v18232_v25, %v15847_v51  ;;  %v8514_v30 = vadd.f32 %v18280_v26, %v18279_v5 }
 0x50a   :  { %18225 = vst [vmem:[#allocation19_spill] sm:$0xff] %v16201_v60  ;;  %v16205_v58 = vadd.f32 %v11339_v47, %v7382_v57  ;;  %v18234_v57 = vld [vmem:[#allocation241_spill] sm:$0xff] }
 0x50b   :  { %v7825_v4 = vpop.f32.mrf.mxu1  ;;  %v7384_v47 = vadd.f32 %v18234_v57, %v15852_v17 }
 0x50c   :  { %18227 = vst [vmem:[#allocation213_spill] sm:$0xff] %v16205_v58  ;;  %v16209_v59 = vadd.f32 %v7825_v4, %v7380_v23  ;;  %v18236_v23 = vld [vmem:[#allocation178_spill] sm:$0xff]  ;;  %v18278_v58 = vld [vmem:[#allocation243_spill] sm:$0xff] }
 0x50d   :  { %v11342_v41 = vpop.f32.mrf.mxu1  ;;  %v7389_v4 = vadd.f32 %v18236_v23, %v15859_v16 }
 0x50e   :  { %18229 = vst [vmem:[#allocation146_spill] sm:$0xff] %v16209_v59  ;;  %v16213_v54 = vadd.f32 %v11342_v41, %v7385_v24  ;;  %v18238_v24 = vld [vmem:[#allocation233_spill] sm:$0xff]  ;;  %v18277_v59 = vld [vmem:[#allocation140_spill] sm:$0xff] }
 0x50f   :  { %v7838_v21 = vpop.f32.mrf.mxu1  ;;  %v7387_v41 = vadd.f32 %v18238_v24, %v15868_v55  ;;  %v8511_v60 = vadd.f32 %v18278_v58, %v18277_v59  ;;  %v18291_v59 = vld [vmem:[#allocation12_spill] sm:$0xff] }
 0x510   :  { %18231 = vst [vmem:[#allocation22_spill] sm:$0xff] %v16213_v54  ;;  %v16217_v39 = vadd.f32 %v7838_v21, %v7383_v15  ;;  %v18240_v15 = vld [vmem:[#allocation55_spill] sm:$0xff] }
 0x511   :  { %v11343_v36 = vpop.f32.mrf.mxu1  ;;  %v7390_v21 = vadd.f32 %v18240_v15, %v15871_v29 }
 0x512   :  { %18233 = vst [vmem:[#allocation220_spill] sm:$0xff] %v16217_v39  ;;  %v16221_v8 = vadd.f32 %v11343_v36, %v7386_v27  ;;  %v18242_v27 = vld [vmem:[#allocation122_spill] sm:$0xff]  ;;  %v18276_v39 = vld [vmem:[#allocation195_spill] sm:$0xff] }
 0x513   :  { %v7841_v63 = vpop.f32.mrf.mxu1  ;;  %v7388_v36 = vadd.f32 %v18242_v27, %v15876_v14 }
 0x514   :  { %18235 = vst [vmem:[#allocation65_spill] sm:$0xff] %v16221_v8  ;;  %v16225_v43 = vadd.f32 %v7841_v63, %v7384_v47  ;;  %v18244_v47 = vld [vmem:[#allocation235_spill] sm:$0xff] }
 0x515   :  { %v11346_v6 = vpop.f32.mrf.mxu1  ;;  %v7393_v63 = vadd.f32 %v18244_v47, %v15883_v18  ;;  %v18275_v8 = vld [vmem:[#allocation135_spill] sm:$0xff] }
 0x516   :  { %18237 = vst [vmem:[#allocation218_spill] sm:$0xff] %v16225_v43  ;;  %v16229_v44 = vadd.f32 %v11346_v6, %v7389_v4  ;;  %v18246_v4 = vld [vmem:[#allocation236_spill] sm:$0xff]  ;;  %v8513_v54 = vadd.f32 %v18276_v39, %v18275_v8 }
 0x517   :  { %v7854_v51 = vpop.f32.mrf.mxu1  ;;  %v7391_v6 = vadd.f32 %v18246_v4, %v15892_v22  ;;  %v18289_v8 = vld [vmem:[#allocation60_spill] sm:$0xff] }
 0x518   :  { %18239 = vst [vmem:[#allocation28_spill] sm:$0xff] %v16229_v44  ;;  %v16233_v25 = vadd.f32 %v7854_v51, %v7387_v41  ;;  %v18248_v41 = vld [vmem:[#allocation200_spill] sm:$0xff]  ;;  %v18249_v51 = vld [vmem:[#allocation237_spill] sm:$0xff] }
 0x519   :  { %v11347_v17 = vpop.f32.mrf.mxu1  ;;  %v7394_v15 = vadd.f32 %v18249_v51, %v18248_v41  ;;  %v18259_v41 = vld [vmem:[#allocation126_spill] sm:$0xff] }
 0x51a   :  { %18241 = vst [vmem:[#allocation23_spill] sm:$0xff] %v16233_v25  ;;  %v16237_v57 = vadd.f32 %v11347_v17, %v7390_v21  ;;  %v18251_v21 = vld [vmem:[#allocation131_spill] sm:$0xff]  ;;  %v18252_v17 = vld [vmem:[#allocation121_spill] sm:$0xff]  ;;  %v8506_v51 = vadd.f32 %v18259_v41, %v15924_v48 }
 0x51b   :  { %v7857_v16 = vpop.f32.mrf.mxu1  ;;  %v7392_v27 = vadd.f32 %v18252_v17, %v18251_v21  ;;  %v18261_v21 = vld [vmem:[#allocation245_spill] sm:$0xff] }
 0x51c   :  { %18243 = vst [vmem:[#allocation145_spill] sm:$0xff] %v16237_v57  ;;  %v16241_v23 = vadd.f32 %v7857_v16, %v7388_v36  ;;  %v18254_v36 = vld [vmem:[#allocation129_spill] sm:$0xff]  ;;  %v18255_v16 = vld [vmem:[#allocation238_spill] sm:$0xff]  ;;  %v8504_v17 = vadd.f32 %v18261_v21, %v15930_v11  ;;  %v18266_v11 = vld [vmem:[#allocation240_spill] sm:$0xff] }
 0x51d   :  { %v11350_v55 = vpop.f32.mrf.mxu1  ;;  %v8505_v47 = vadd.f32 %v18255_v16, %v18254_v36  ;;  %v8508_v41 = vadd.f32 %v18266_v11, %v15959_v38 }
 0x51e   :  { %18245 = vst [vmem:[#allocation69_spill] sm:$0xff] %v16241_v23  ;;  %v16245_v24 = vadd.f32 %v11350_v55, %v7393_v63  ;;  %v18257_v63 = vld [vmem:[#allocation128_spill] sm:$0xff] }
 0x51f   :  { %v7870_v29 = vpop.f32.mrf.mxu1  ;;  %v8503_v55 = vadd.f32 %v18257_v63, %v15920_v34 }
 0x520   :  { %18247 = vst [vmem:[#allocation207_spill] sm:$0xff] %v16245_v24  ;;  %v16249_v25 = vadd.f32 %v7870_v29, %v7391_v6  ;;  %v9321_v6 = vld [vmem:[%s16857_s5 + $0x8] sm:$0xff] }
 0x521   :  { %v11351_v14 = vpop.f32.mrf.mxu1  ;;  %9388 = vmatprep.mubr.f32.mxu0 %v9321_v6 }
 0x522   :  { %18250 = vst [vmem:[#allocation21_spill] sm:$0xff] %v16249_v25  ;;  %v16253_v57 = vadd.f32 %v11351_v14, %v7394_v15 }
 0x523   :  { %v7873_v18 = vpop.f32.mrf.mxu1 }
 0x524   :  { %18253 = vst [vmem:[#allocation91_spill] sm:$0xff] %v16253_v57  ;;  %v16257_v23 = vadd.f32 %v7873_v18, %v7392_v27  ;;  %v18262_v18 = vld [vmem:[#allocation188_spill] sm:$0xff] }
 0x525   :  { %v11422_v22 = vpop.f32.mrf.mxu1  ;;  %v8509_v36 = vadd.f32 %v18262_v18, %v15938_v3 }
 0x526   :  { %18256 = vst [vmem:[#allocation224_spill] sm:$0xff] %v16257_v23  ;;  %v16261_v4 = vadd.f32 %v11422_v22, %v8505_v47  ;;  %v18264_v22 = vld [vmem:[#allocation239_spill] sm:$0xff] }
 0x527   :  { %v8738_v29 = vpop.f32.mrf.mxu1  ;;  %v8507_v63 = vadd.f32 %v18264_v22, %v15948_v32 }
 0x528   :  { %18258 = vst [vmem:[#allocation89_spill] sm:$0xff] %v16261_v4  ;;  %v16268_v15 = vadd.f32 %v8738_v29, %v8503_v55  ;;  %v18292_v4 = vld [vmem:[#allocation196_spill] sm:$0xff] }
 0x529   :  { %v11423_v14 = vpop.f32.mrf.mxu1  ;;  %v16345_v26 = vadd.f32 %v18292_v4, %v18291_v59  ;;  %v18303_v59 = vld [vmem:[#allocation174_spill] sm:$0xff] }
 0x52a   :  { %18260 = vst [vmem:[#allocation96_spill] sm:$0xff] %v16268_v15  ;;  %v16272_v27 = vadd.f32 %v11423_v14, %v8506_v51  ;;  %v18288_v15 = vld [vmem:[#allocation132_spill] sm:$0xff] }
 0x52b   :  { %v8741_v34 = vpop.f32.mrf.mxu1  ;;  %v8518_v39 = vadd.f32 %v18288_v15, %v18287_v56  ;;  %v18299_v56 = vld [vmem:[#allocation208_spill] sm:$0xff] }
 0x52c   :  { %v16276_v16 = vadd.f32 %v8741_v34, %v8504_v17  ;;  %v18300_v15 = vld [vmem:[#allocation136_spill] sm:$0xff] }
 0x52d   :  { %v11426_v47 = vpop.f32.mrf.mxu1 }
 0x52e   :  { %18263 = vst [vmem:[#allocation94_spill] sm:$0xff] %v16276_v16  ;;  %v16280_v6 = vadd.f32 %v11426_v47, %v8509_v36  ;;  %v16293_v36 = vpop.f32.mrf.mxu0  ;;  %v18290_v16 = vld [vmem:[#allocation130_spill] sm:$0xff] }
 0x52f   :  { %v8754_v48 = vpop.f32.mrf.mxu1  ;;  %v8516_v58 = vadd.f32 %v18290_v16, %v18289_v8  ;;  %v18302_v8 = vld [vmem:[#allocation134_spill] sm:$0xff] }
 0x530   :  { %v16282_v55 = vadd.f32 %v8754_v48, %v8507_v63  ;;  %v16297_v63 = vpop.f32.mrf.mxu0 }
 0x531   :  { %v11427_v29 = vpop.f32.mrf.mxu1  ;;  %18267 = vst [vmem:[#allocation95_spill] sm:$0xff] %v16297_v63 }
 0x532   :  { %18265 = vst [vmem:[#allocation217_spill] sm:$0xff] %v16282_v55  ;;  %v16287_v51 = vadd.f32 %v11427_v29, %v15957_v9  ;;  %v16303_v48 = vpop.f32.mrf.mxu0 }
 0x533   :  { %v8757_v14 = vpop.f32.mrf.mxu1  ;;  %18269 = vst [vmem:[#allocation155_spill] sm:$0xff] %v16303_v48 }
 0x534   :  { %v16289_v3 = vadd.f32 %v8757_v14, %v8508_v41  ;;  %v16309_v41 = vpop.f32.mrf.mxu0 }
 0x535   :  { %v11430_v21 = vpop.f32.mrf.mxu1  ;;  %18271 = vst [vmem:[#allocation99_spill] sm:$0xff] %v16309_v41  ;;  %v18284_v41 = vld [vmem:[#allocation63_spill] sm:$0xff] }
 0x536   :  { %v16315_v57 = vpop.f32.mrf.mxu0  ;;  %v8517_v1 = vadd.f32 %v18284_v41, %v18283_v61  ;;  %v18295_v61 = vld [vmem:[#allocation190_spill] sm:$0xff]  ;;  %v18296_v41 = vld [vmem:[#allocation11_spill] sm:$0xff] }
 0x537   :  { %v8770_v17 = vpop.f32.mrf.mxu1  ;;  %18273 = vst [vmem:[#allocation202_spill] sm:$0xff] %v16315_v57  ;;  %v8512_v57 = vadd.f32 %v18282_v13, %v18281_v2  ;;  %v18293_v13 = vld [vmem:[#allocation191_spill] sm:$0xff]  ;;  %v16353_v5 = vadd.f32 %v18295_v61, %v16037_v33  ;;  %v16373_v33 = vadd.f32 %v18303_v59, %v16065_v62  ;;  %v9003_v62 = vadd.f32 %v11430_v21, %v8513_v54 }
 0x538   :  { %v16321_v43 = vpop.f32.mrf.mxu0  ;;  %v16349_v2 = vadd.f32 %v18293_v13, %v16033_v50  ;;  %v16369_v50 = vadd.f32 %v18302_v8, %v16061_v53  ;;  %v18304_v13 = vld [vmem:[#allocation133_spill] sm:$0xff] }
 0x539   :  { %v11431_v34 = vpop.f32.mrf.mxu1  ;;  %18274 = vst [vmem:[#allocation104_spill] sm:$0xff] %v16321_v43  ;;  %v18285_v43 = vld [vmem:[#allocation205_spill] sm:$0xff]  ;;  %v16377_v61 = vadd.f32 %v18304_v13, %v16071_v42  ;;  %v18311_v13 = vld [vmem:[#allocation180_spill] sm:$0xff] }
 0x53a   :  { %v8515_v63 = vadd.f32 %v18286_v31, %v18285_v43  ;;  %18294 = vst [vmem:[#allocation219_spill] sm:$0xff] %v16349_v2  ;;  %v18297_v31 = vld [vmem:[#allocation56_spill] sm:$0xff]  ;;  %v16363_v16 = vpop.f32.mrf.mxu0  ;;  %v18308_v2 = vld [vmem:[#allocation142_spill] sm:$0xff]  ;;  %v18309_v53 = vld [vmem:[#allocation141_spill] sm:$0xff]  ;;  %v8531_v55 = vadd.f32 %v18311_v13, %v16113_v7  ;;  %v8537_v7 = vadd.f32 %v16095_v40, %v16127_v10 }
 0x53b   :  { %v16291_v18 = vpop.f32.mrf.mxu1  ;;  %v16357_v43 = vadd.f32 %v18297_v31, %v18296_v41  ;;  %18301 = vst [vmem:[#allocation161_spill] sm:$0xff] %v16363_v16  ;;  %v18305_v41 = vld [vmem:[#allocation203_spill] sm:$0xff]  ;;  %v16389_v8 = vadd.f32 %v18309_v53, %v16099_v19  ;;  %v16404_v19 = vld [vmem:[%s16856_s4] ss:$0 sm:$0xff] }
 0x53c   :  { %v18306_v31 = vld [vmem:[#allocation199_spill] sm:$0xff]  ;;  %v16428_v40 = vadd.f32 %v16404_v19, %v16287_v51  ;;  %v16431_v10 = vadd.f32 %v16404_v19, %v9003_v62 }
 0x53d   :  { %v11434_v32 = vpop.f32.mrf.mxu1  ;;  %18298 = vst [vmem:[#allocation38_spill] sm:$0xff] %v16357_v43  ;;  %v18310_v43 = vld [vmem:[#allocation16_spill] sm:$0xff] }
 0x53e   :  { %v8533_v42 = vadd.f32 %v18310_v43, %v16107_v52  ;;  %v9007_v54 = vadd.f32 %v11434_v32, %v8517_v1  ;;  %v18318_v43 = vld [vmem:[#allocation20_spill] sm:$0xff]  ;;  %vm9138_vm9 = vcmp.ge.f32.partialorder %v16431_v10, 0.0 }
 0x53f   :  { %v16295_v47 = vpop.f32.mrf.mxu1  ;;  %v18319_v1 = vld [vmem:[#allocation64_spill] sm:$0xff] }
 0x540   :  { %v16424_v32 = vadd.f32 %v18319_v1, %v16147_v0  ;;  %v16443_v0 = vadd.f32 %v16404_v19, %v9007_v54  ;;  %v9005_v51 = vadd.f32 %v16295_v47, %v8515_v63  ;;  %v16464_v47 = vmul.f32 0.2, %v16428_v40 }
 0x541   :  { %v11435_v22 = vpop.f32.mrf.mxu1  ;;  %v16467_v63 = vmul.f32 0.2, %v16431_v10 }
 0x542   :  { %v9008_v52 = vadd.f32 %v11435_v22, %v8518_v39  ;;  %v9002_v39 = vadd.f32 %v16291_v18, %v8512_v57  ;;  %v16454_v57 = vadd.f32 %v16293_v36, %v16161_v37  ;;  %v16458_v18 = vadd.f32 %v16404_v19, %v16272_v27 }
 0x543   :  { %v16299_v38 = vpop.f32.mrf.mxu1  ;;  %vm9142_vm5 = vcmp.ge.f32.partialorder %v16443_v0, 0.0 }
 0x544   :  { %v9079_v62 = vadd.f32 %v16404_v19, %v9008_v52  ;;  %v16477_v27 = vadd.f32 %v16404_v19, %v9002_v39  ;;  %v9206_v52 = vmul.f32 0.2, %v16443_v0 }
 0x545   :  { %v16301_v9 = vpop.f32.mrf.mxu1 }
 0x546   :  { %18268 = vst [vmem:[#allocation98_spill] sm:$0xff] %v16301_v9  ;;  %v18313_v9 = vld [vmem:[#allocation10_spill] sm:$0xff]  ;;  %vm9143_vm8 = vcmp.ge.f32.partialorder %v9079_v62, 0.0  ;;  %vm9137_vm3 = vcmp.ge.f32.partialorder %v16477_v27, 0.0 }
 0x547   :  { %v16305_v29 = vpop.f32.mrf.mxu1 }
 0x548   :  { %18270 = vst [vmem:[#allocation157_spill] sm:$0xff] %v16305_v29  ;;  %v16361_v29 = vadd.f32 %v18300_v15, %v18299_v56  ;;  %v8529_v56 = vadd.f32 %v18306_v31, %v18305_v41  ;;  %v18307_v15 = vld [vmem:[#allocation137_spill] sm:$0xff]  ;;  %v9001_v41 = vadd.f32 %v8770_v17, %v8511_v60  ;;  %v9004_v31 = vadd.f32 %v11431_v34, %v8514_v30  ;;  %v18314_v30 = vld [vmem:[#allocation144_spill] sm:$0xff]  ;;  %v18316_v17 = vld [vmem:[#allocation210_spill] sm:$0xff] }
 0x549   :  { %v16307_v11 = vpop.f32.mrf.mxu1  ;;  %v16383_v16 = vadd.f32 %v18307_v15, %v16089_v20  ;;  %v18312_v20 = vld [vmem:[#allocation204_spill] sm:$0xff]  ;;  %v8535_v60 = vadd.f32 %v18314_v30, %v16133_v28  ;;  %v9006_v30 = vadd.f32 %v16299_v38, %v8516_v58 }
 0x54a   :  { %v8534_v15 = vadd.f32 %v18312_v20, %v16117_v12  ;;  %v18315_v12 = vld [vmem:[#allocation14_spill] sm:$0xff]  ;;  %v16434_v22 = vadd.f32 %v16404_v19, %v9001_v41  ;;  %v18321_v41 = vld [vmem:[#allocation209_spill] sm:$0xff] }
 0x54b   :  { %v16311_v14 = vpop.f32.mrf.mxu1  ;;  %v16412_v34 = vadd.f32 %v18316_v17, %v18315_v12  ;;  %v16450_v17 = vadd.f32 %v18321_v41, %v16153_v49 }
 0x54c   :  { %18272 = vst [vmem:[#allocation35_spill] sm:$0xff] %v16311_v14  ;;  %v8530_v14 = vadd.f32 %v18308_v2, %v16093_v46  ;;  %v8532_v46 = vadd.f32 %v18313_v9, %v16123_v35  ;;  %v16399_v2 = vpop.f32.mrf.mxu0  ;;  %v16416_v35 = vadd.f32 %v16404_v19, %v16280_v6  ;;  %v18317_v9 = vld [vmem:[#allocation186_spill] sm:$0xff]  ;;  %v16437_v6 = vadd.f32 %v16404_v19, %v9004_v31 }
 0x54d   :  { %v16313_v23 = vpop.f32.mrf.mxu1  ;;  %v16420_v53 = vadd.f32 %v18318_v43, %v18317_v9  ;;  %v16471_v37 = vmul.f32 0.2, %v16434_v22  ;;  %v16483_v9 = vadd.f32 %v16404_v19, %v9005_v51  ;;  %v9207_v43 = vmul.f32 0.2, %v9079_v62 }
 0x54e   :  { %v16440_v20 = vpop.f32.mrf.mxu0  ;;  %v16474_v36 = vmul.f32 0.2, %v16437_v6  ;;  %vm9139_vm15 = vcmp.ge.f32.partialorder %v16437_v6, 0.0 }
 0x54f   :  { %v16317_v25 = vpop.f32.mrf.mxu1  ;;  %18320 = vst [vmem:[#allocation101_spill] sm:$0xff] %v16440_v20  ;;  %vm9140_vm13 = vcmp.ge.f32.partialorder %v16483_v9, 0.0 }
 0x550   :  { %v16479_v54 = vpop.f32.mrf.mxu0 }
 0x551   :  { %v16319_v44 = vpop.f32.mrf.mxu1  ;;  %18322 = vst [vmem:[#allocation108_spill] sm:$0xff] %v16479_v54 }
 0x552   :  { %v16493_v20 = vpop.f32.mrf.mxu0 }
 0x553   :  { %v16323_v24 = vpop.f32.mrf.mxu1 }
 0x555   :  { %v16335_v48 = vpop.f32.mrf.mxu1 }
 0x556   :  { %v9019_v39 = vadd.f32 %v16335_v48, %v8529_v56 }
 0x557   :  { %v16365_v4 = vpop.f32.mrf.mxu1 }
 0x559   :  { %v11447_v59 = vpop.f32.mrf.mxu1 }
 0x55b   :  { %v8837_v21 = vpop.f32.mrf.mxu1 }
 0x55c   :  { %v9018_v56 = vadd.f32 %v8837_v21, %v16389_v8 }
 0x55d   :  { %v11450_v28 = vpop.f32.mrf.mxu1 }
 0x55e   :  { %v9023_v13 = vadd.f32 %v11450_v28, %v8533_v42  ;;  %v16461_v42 = vmul.f32 0.2, %v16416_v35  ;;  %v9020_v28 = vadd.f32 %v11447_v59, %v8530_v14  ;;  %v9204_v14 = vmul.f32 0.2, %v16483_v9 }
 0x55f   :  { %v8850_v12 = vpop.f32.mrf.mxu1 }
 0x560   :  { %v9094_v49 = vadd.f32 %v16404_v19, %v9023_v13  ;;  %v9021_v38 = vadd.f32 %v8850_v12, %v8531_v55  ;;  %v9077_v55 = vadd.f32 %v16404_v19, %v9006_v30  ;;  %v9091_v48 = vadd.f32 %v16404_v19, %v9020_v28 }
 0x561   :  { %v11451_v58 = vpop.f32.mrf.mxu1  ;;  %v9016_v28 = vadd.f32 %v16319_v44, %v16373_v33  ;;  %v9015_v44 = vadd.f32 %v16313_v23, %v16361_v29  ;;  %v9201_v23 = vmul.f32 0.2, %v16477_v27 }
 0x562   :  { %v9024_v31 = vadd.f32 %v11451_v58, %v8534_v15  ;;  %v9092_v15 = vadd.f32 %v16404_v19, %v9021_v38  ;;  %v9222_v58 = vmul.f32 0.2, %v9094_v49  ;;  %v9205_v59 = vmul.f32 0.2, %v9077_v55 }
 0x563   :  { %v8853_v1 = vpop.f32.mrf.mxu1  ;;  %vm9158_vm7 = vcmp.ge.f32.partialorder %v9094_v49, 0.0  ;;  %vm9141_vm11 = vcmp.ge.f32.partialorder %v9077_v55, 0.0  ;;  %vm9155_vm14 = vcmp.ge.f32.partialorder %v9091_v48, 0.0  ;;  %v9087_v29 = vadd.f32 %v16404_v19, %v9016_v28 }
 0x564   :  { %v9095_v13 = vadd.f32 %v16404_v19, %v9024_v31  ;;  %v9022_v12 = vadd.f32 %v8853_v1, %v8532_v46  ;;  %v9271_v31 = vsel %vm9143_vm8, %v9079_v62, %v9207_v43  ;;  %v9017_v62 = vadd.f32 %v16365_v4, %v16383_v16 }
 0x565   :  { %v11454_v41 = vpop.f32.mrf.mxu1  ;;  %v9286_v8 = vsel %vm9158_vm7, %v9094_v49, %v9222_v58  ;;  %v9220_v21 = vmul.f32 0.2, %v9092_v15  ;;  %vm9156_vm12 = vcmp.ge.f32.partialorder %v9092_v15, 0.0  ;;  %v9089_v16 = vadd.f32 %v16404_v19, %v9018_v56 }
 0x566   :  { %v9093_v51 = vadd.f32 %v16404_v19, %v9022_v12  ;;  %v16491_v54 = vadd.f32 %v11454_v41, %v8537_v7  ;;  %vm9159_vm6 = vcmp.ge.f32.partialorder %v9095_v13, 0.0  ;;  %v9223_v30 = vmul.f32 0.2, %v9095_v13 }
 0x567   :  { %v8866_v46 = vpop.f32.mrf.mxu1  ;;  %v9090_v7 = vadd.f32 %v16404_v19, %v9019_v39  ;;  %v9270_v39 = vsel %vm9142_vm5, %v16443_v0, %v9206_v52  ;;  %v9219_v49 = vmul.f32 0.2, %v9091_v48  ;;  %v9269_v58 = vsel %vm9141_vm11, %v9077_v55, %v9205_v59 }
 0x568   :  { %18323 = vst [vmem:[#allocation150_spill] sm:$0xff] %v16491_v54  ;;  %v16498_v38 = vadd.f32 %v8866_v46, %v8535_v60  ;;  %v9287_v1 = vsel %vm9159_vm6, %v9095_v13, %v9223_v30  ;;  %vm9157_vm10 = vcmp.ge.f32.partialorder %v9093_v51, 0.0  ;;  %v9221_v41 = vmul.f32 0.2, %v9093_v51  ;;  %v16507_v60 = vpop.f32.mrf.mxu0  ;;  %v18366_v54 = vld [vmem:[#allocation224_spill] sm:$0xff] }
 0x569   :  { %v11455_v12 = vpop.f32.mrf.mxu1  ;;  %10560 = vmatprep.subr.mxu0 %v9287_v1  ;;  %v9088_v0 = vadd.f32 %v16404_v19, %v9017_v62  ;;  %v9268_v55 = vsel %vm9140_vm13, %v16483_v9, %v9204_v14  ;;  %vm9154_vm1 = vcmp.ge.f32.partialorder %v9090_v7, 0.0  ;;  %v9086_v56 = vadd.f32 %v16404_v19, %v9015_v44 }
 0x56a   :  { %18324 = vst [vmem:[#allocation32_spill] sm:$0xff] %v16498_v38  ;;  %v16505_v43 = vadd.f32 %v11455_v12, %v16412_v34  ;;  %10561 = vmatpush3.msra.mxu0 %v9271_v31  ;;  %v9285_v34 = vsel %vm9157_vm10, %v9093_v51, %v9221_v41  ;;  %v9218_v51 = vmul.f32 0.2, %v9090_v7  ;;  %v16529_v30 = vpop.f32.mrf.mxu0  ;;  %v9217_v31 = vmul.f32 0.2, %v9089_v16  ;;  %v18365_v38 = vld [vmem:[#allocation91_spill] sm:$0xff] }
 0x56b   :  { %v8869_v13 = vpop.f32.mrf.mxu1  ;;  %10562 = vmatprep.subr.mxu0 %v9286_v8  ;;  %v9267_v9 = vsel %vm9139_vm15, %v16437_v6, %v16474_v36  ;;  %vm9153_vm2 = vcmp.ge.f32.partialorder %v9089_v16, 0.0  ;;  %v9216_v14 = vmul.f32 0.2, %v9088_v0  ;;  %v9012_v12 = vadd.f32 %v16307_v11, %v16353_v5 }
 0x56c   :  { %v16517_v4 = vadd.f32 %v8869_v13, %v16420_v53  ;;  %10563 = vmatpush3.msra.mxu0 %v9270_v39  ;;  %v9284_v53 = vsel %vm9156_vm12, %v9092_v15, %v9220_v21  ;;  %v9283_v15 = vsel %vm9155_vm14, %v9091_v48, %v9219_v49  ;;  %v16553_v48 = vpop.f32.mrf.mxu0  ;;  %v9266_v6 = vsel %vm9138_vm9, %v16431_v10, %v16467_v63  ;;  %v18327_v21 = vld [vmem:[#allocation217_spill] sm:$0xff]  ;;  %v18328_v39 = vld [vmem:[#allocation38_spill] sm:$0xff] }
 0x56d   :  { %v11458_v33 = vpop.f32.mrf.mxu1  ;;  %10564 = vmatprep.subr.mxu0 %v9285_v34  ;;  %vm9152_vm4 = vcmp.ge.f32.partialorder %v9088_v0, 0.0  ;;  %vm9136_vm8 = vcmp.ge.f32.partialorder %v16434_v22, 0.0  ;;  %v9215_v36 = vmul.f32 0.2, %v9087_v29  ;;  %v9069_v11 = vadd.f32 %v16404_v19, %v16289_v3 }
 0x56e   :  { %18325 = vst [vmem:[#allocation25_spill] sm:$0xff] %v16517_v4  ;;  %v16526_v52 = vadd.f32 %v11458_v33, %v16424_v32  ;;  %10565 = vmatpush3.msra.mxu0 %v9269_v58  ;;  %v9014_v32 = vadd.f32 %v16323_v24, %v16377_v61  ;;  %v9013_v24 = vadd.f32 %v16317_v25, %v16369_v50  ;;  %vm9151_vm5 = vcmp.ge.f32.partialorder %v9087_v29, 0.0  ;;  %v16579_v3 = vpop.f32.mrf.mxu0 }
 0x56f   :  { %v8882_v46 = vpop.f32.mrf.mxu1  ;;  %10566 = vmatprep.subr.mxu0 %v9284_v53  ;;  %v9281_v50 = vsel %vm9153_vm2, %v9089_v16, %v9217_v31  ;;  %v9265_v10 = vsel %vm9137_vm3, %v16477_v27, %v9201_v23  ;;  %vm9135_vm6 = vcmp.ge.f32.partialorder %v16428_v40, 0.0  ;;  %v9280_v62 = vsel %vm9152_vm4, %v9088_v0, %v9216_v14  ;;  %v18329_v16 = vld [vmem:[#allocation35_spill] sm:$0xff]  ;;  %v18331_v53 = vld [vmem:[#allocation157_spill] sm:$0xff] }
 0x570   :  { %v16539_v59 = vadd.f32 %v8882_v46, %v16450_v17  ;;  %10567 = vmatpush3.msra.mxu0 %v9268_v55  ;;  %v9282_v17 = vsel %vm9154_vm1, %v9090_v7, %v9218_v51  ;;  %v9084_v7 = vadd.f32 %v16404_v19, %v9013_v24  ;;  %v9214_v8 = vmul.f32 0.2, %v9086_v56  ;;  %v18330_v0 = vld [vmem:[#allocation219_spill] sm:$0xff]  ;;  %v16604_v46 = vpop.f32.mrf.mxu0  ;;  %v18332_v55 = vld [vmem:[#allocation89_spill] sm:$0xff]  ;;  %v18333_v24 = vld [vmem:[#allocation94_spill] sm:$0xff] }
 0x571   :  { %v11459_v1 = vpop.f32.mrf.mxu1  ;;  %10568 = vmatprep.subr.mxu0 %v9283_v15  ;;  %v9068_v28 = vadd.f32 %v16404_v19, %v18327_v21  ;;  %v9264_v27 = vsel %vm9136_vm8, %v16434_v22, %v16471_v37  ;;  %vm9150_vm7 = vcmp.ge.f32.partialorder %v9086_v56, 0.0  ;;  %vm9134_vm9 = vcmp.ge.f32.partialorder %v16416_v35, 0.0 }
 0x572   :  { %v16551_v61 = vadd.f32 %v11459_v1, %v16159_v45  ;;  %10569 = vmatpush3.msra.mxu0 %v9267_v9  ;;  %v9085_v45 = vadd.f32 %v16404_v19, %v9014_v32  ;;  %v9010_v34 = vadd.f32 %v18329_v16, %v18328_v39  ;;  %v9279_v49 = vsel %vm9151_vm5, %v9087_v29, %v9215_v36 }
 0x573   :  { %v8885_v41 = vpop.f32.mrf.mxu1  ;;  %10570 = vmatprep.subr.mxu0 %v9282_v17  ;;  %v9197_v33 = vmul.f32 0.2, %v9069_v11  ;;  %v9263_v22 = vsel %vm9135_vm6, %v16428_v40, %v16464_v47  ;;  %vm9133_vm11 = vcmp.ge.f32.partialorder %v9069_v11, 0.0  ;;  %v9009_v51 = vadd.f32 %v18331_v53, %v18330_v0  ;;  %v9323_v53 = vld [vmem:[%s16857_s5 + $0x18] sm:$0xff] }
 0x574   :  { %v16564_v25 = vadd.f32 %v8885_v41, %v16454_v57  ;;  %10571 = vmatpush3.msra.mxu0 %v9266_v6  ;;  %v18326_v57 = vld [vmem:[#allocation98_spill] sm:$0xff]  ;;  %v9213_v44 = vmul.f32 0.2, %v9085_v45  ;;  %vm9149_vm10 = vcmp.ge.f32.partialorder %v9085_v45, 0.0  ;;  %v9278_v23 = vsel %vm9150_vm7, %v9086_v56, %v9214_v8  ;;  %v16624_v6 = vpop.f32.mrf.mxu0 }
 0x575   :  { %v16569_v5 = vpop.f32.mrf.mxu1  ;;  %10572 = vmatprep.subr.mxu0 %v9281_v50  ;;  %v9011_v63 = vadd.f32 %v18326_v57, %v16345_v26  ;;  %v9083_v26 = vadd.f32 %v16404_v19, %v9012_v12  ;;  %v9212_v29 = vmul.f32 0.2, %v9084_v7  ;;  %v9066_v32 = vadd.f32 %v16404_v19, %v18332_v55  ;;  %v18334_v50 = vld [vmem:[#allocation96_spill] sm:$0xff] }
 0x576   :  { %10573 = vmatpush3.msra.mxu0 %v9265_v10  ;;  %v9196_v15 = vmul.f32 0.2, %v9068_v28  ;;  %v9262_v40 = vsel %vm9134_vm9, %v16416_v35, %v16461_v42  ;;  %vm9148_vm12 = vcmp.ge.f32.partialorder %v9084_v7, 0.0  ;;  %v9081_v47 = vadd.f32 %v16404_v19, %v9010_v34 }
 0x577   :  { %v16583_v13 = vpop.f32.mrf.mxu1  ;;  %10574 = vmatprep.subr.mxu0 %v9280_v62  ;;  %v9082_v37 = vadd.f32 %v16404_v19, %v9011_v63  ;;  %v9277_v56 = vsel %vm9149_vm10, %v9085_v45, %v9213_v44  ;;  %vm9132_vm13 = vcmp.ge.f32.partialorder %v9068_v28, 0.0  ;;  %v9211_v1 = vmul.f32 0.2, %v9083_v26 }
 0x578   :  { %10575 = vmatpush3.msra.mxu0 %v9264_v27  ;;  %v9195_v9 = vmul.f32 0.2, %v16458_v18  ;;  %v9065_v17 = vadd.f32 %v16404_v19, %v18333_v24  ;;  %v9261_v12 = vsel %vm9133_vm11, %v9069_v11, %v9197_v33  ;;  %vm9147_vm14 = vcmp.ge.f32.partialorder %v9083_v26, 0.0 }
 0x579   :  { %v16594_v58 = vpop.f32.mrf.mxu1  ;;  %10576 = vmatprep.subr.mxu0 %v9279_v49  ;;  %v9080_v35 = vadd.f32 %v16404_v19, %v9009_v51  ;;  %v9276_v42 = vsel %vm9148_vm12, %v9084_v7, %v9212_v29  ;;  %vm9131_vm15 = vcmp.ge.f32.partialorder %v16458_v18, 0.0  ;;  %v9210_v41 = vmul.f32 0.2, %v9082_v37  ;;  %v16631_v7 = vpop.f32.mrf.mxu0 }
 0x57a   :  { %10577 = vmatpush3.msra.mxu0 %v9263_v22  ;;  %v9194_v45 = vmul.f32 0.2, %v9066_v32  ;;  %v9064_v36 = vadd.f32 %v16404_v19, %v18334_v50  ;;  %v9260_v57 = vsel %vm9132_vm13, %v9068_v28, %v9196_v15  ;;  %vm9146_vm1 = vcmp.ge.f32.partialorder %v9082_v37, 0.0  ;;  %v9320_v22 = vld [vmem:[%s16857_s5] sm:$0xff]  ;;  %v18339_v50 = vld [vmem:[#allocation215_spill] sm:$0xff] }
 0x57b   :  { %v16608_v31 = vpop.f32.mrf.mxu1  ;;  %10578 = vmatprep.subr.mxu0 %v9278_v23  ;;  %v9275_v11 = vsel %vm9147_vm14, %v9083_v26, %v9211_v1  ;;  %vm9130_vm2 = vcmp.ge.f32.partialorder %v9066_v32, 0.0  ;;  %v9209_v63 = vmul.f32 0.2, %v9081_v47  ;;  %v9193_v62 = vmul.f32 0.2, %v9065_v17  ;;  %v8472_v49 = vpop.f32.mrf.mxu0 }
 0x57c   :  { %10579 = vmatpush3.msra.mxu0 %v9262_v40  ;;  %v9259_v21 = vsel %vm9131_vm15, %v16458_v18, %v9195_v9  ;;  %vm9145_vm3 = vcmp.ge.f32.partialorder %v9081_v47, 0.0  ;;  %v9274_v27 = vsel %vm9146_vm1, %v9082_v37, %v9210_v41  ;;  %vm9129_vm4 = vcmp.ge.f32.partialorder %v9065_v17, 0.0  ;;  %v18338_v41 = vld [vmem:[#allocation155_spill] sm:$0xff] }
 0x57d   :  { %v16619_v14 = vpop.f32.mrf.mxu1  ;;  %10580 = vmatprep.subr.mxu0 %v9277_v56  ;;  %v9208_v28 = vmul.f32 0.2, %v9080_v35  ;;  %v9192_v39 = vmul.f32 0.2, %v9064_v36  ;;  %v9258_v26 = vsel %vm9130_vm2, %v9066_v32, %v9194_v45  ;;  %vm9144_vm8 = vcmp.ge.f32.partialorder %v9080_v35, 0.0  ;;  %v11413_v51 = vpop.f32.mrf.mxu0 }
 0x57e   :  { %10581 = vmatpush3.msra.mxu0 %v9261_v12  ;;  %v9273_v34 = vsel %vm9145_vm3, %v9081_v47, %v9209_v63  ;;  %vm9128_vm5 = vcmp.ge.f32.partialorder %v9064_v36, 0.0  ;;  %v9257_v33 = vsel %vm9129_vm4, %v9065_v17, %v9193_v62  ;;  %v18335_v17 = vld [vmem:[#allocation13_spill] sm:$0xff]  ;;  %v18336_v12 = vld [vmem:[#allocation95_spill] sm:$0xff]  ;;  %v18342_v63 = vld [vmem:[#allocation202_spill] sm:$0xff] }
 0x57f   :  { %v16628_v10 = vpop.f32.mrf.mxu1  ;;  %10582 = vmatprep.subr.mxu0 %v9276_v42  ;;  %v9272_v18 = vsel %vm9144_vm8, %v9080_v35, %v9208_v28  ;;  %v9256_v0 = vsel %vm9128_vm5, %v9064_v36, %v9192_v39  ;;  %v8475_v55 = vpop.f32.mrf.mxu0  ;;  %v8545_v35 = vadd.f32 %v18336_v12, %v18335_v17  ;;  %v18337_v42 = vld [vmem:[#allocation15_spill] sm:$0xff]  ;;  %v18345_v39 = vld [vmem:[#allocation68_spill] sm:$0xff]  ;;  %v18349_v17 = vld [vmem:[#allocation101_spill] sm:$0xff] }
 0x580   :  { %10583 = vmatpush3.msra.mxu0 %v9260_v57  ;;  %v8543_v45 = vadd.f32 %v18338_v41, %v18337_v42  ;;  %v18340_v36 = vld [vmem:[#allocation99_spill] sm:$0xff]  ;;  %v18350_v42 = vld [vmem:[#allocation17_spill] sm:$0xff]  ;;  %v18351_v41 = vld [vmem:[#allocation108_spill] sm:$0xff] }
 0x581   :  { %v16633_v8 = vpop.f32.mrf.mxu1  ;;  %10584 = vmatprep.subr.mxu0 %v9275_v11  ;;  %v11416_v40 = vpop.f32.mrf.mxu0  ;;  %v8546_v57 = vadd.f32 %v18340_v36, %v18339_v50  ;;  %v18341_v11 = vld [vmem:[#allocation24_spill] sm:$0xff]  ;;  %v16682_v50 = vadd.f32 %v18351_v41, %v18350_v42  ;;  %v18352_v36 = vld [vmem:[#allocation19_spill] sm:$0xff] }
 0x582   :  { %10585 = vmatpush3.msra.mxu0 %v9259_v21  ;;  %v8544_v62 = vadd.f32 %v18342_v63, %v18341_v11  ;;  %v18343_v21 = vld [vmem:[#allocation18_spill] sm:$0xff]  ;;  %v16686_v11 = vadd.f32 %v16493_v20, %v18352_v36  ;;  %v9035_v63 = vadd.f32 %v16569_v5, %v8545_v35  ;;  %v18356_v42 = vld [vmem:[#allocation220_spill] sm:$0xff]  ;;  %v18357_v5 = vld [vmem:[#allocation65_spill] sm:$0xff] }
 0x583   :  { %v16638_v16 = vpop.f32.mrf.mxu1  ;;  %10586 = vmatprep.subr.mxu0 %v9274_v27  ;;  %v8488_v1 = vpop.f32.mrf.mxu0  ;;  %v18344_v27 = vld [vmem:[#allocation104_spill] sm:$0xff]  ;;  %v16704_v20 = vadd.f32 %v16579_v3, %v18356_v42  ;;  %v16708_v35 = vadd.f32 %v16604_v46, %v18357_v5  ;;  %v18359_v36 = vld [vmem:[#allocation218_spill] sm:$0xff]  ;;  %v16720_v3 = vadd.f32 %v16404_v19, %v16526_v52  ;;  %v16724_v46 = vadd.f32 %v16404_v19, %v16551_v61  ;;  %v18363_v5 = vld [vmem:[#allocation69_spill] sm:$0xff] }
 0x584   :  { %10587 = vmatpush3.msra.mxu0 %v9258_v26  ;;  %v8549_v28 = vadd.f32 %v18344_v27, %v18343_v21  ;;  %v18346_v26 = vld [vmem:[#allocation161_spill] sm:$0xff] }
 0x585   :  { %v16640_v44 = vpop.f32.mrf.mxu1  ;;  %10588 = vmatprep.subr.mxu0 %v9273_v34  ;;  %v8547_v34 = vadd.f32 %v18346_v26, %v18345_v39  ;;  %v18353_v21 = vld [vmem:[#allocation213_spill] sm:$0xff]  ;;  %v18355_v26 = vld [vmem:[#allocation22_spill] sm:$0xff] }
 0x586   :  { %10589 = vmatpush3.msra.mxu0 %v9257_v33  ;;  %v18347_v33 = vld [vmem:[#allocation194_spill] sm:$0xff]  ;;  %v16691_v27 = vadd.f32 %v16507_v60, %v18353_v21  ;;  %v18358_v60 = vld [vmem:[#allocation207_spill] sm:$0xff]  ;;  %v16714_v21 = vadd.f32 %v16624_v6, %v18359_v36  ;;  %v16729_v6 = vadd.f32 %v16404_v19, %v9035_v63 }
 0x587   :  { %v16645_v37 = vpop.f32.mrf.mxu1  ;;  %10590 = vmatprep.subr.mxu0 %v9272_v18  ;;  %v8550_v18 = vadd.f32 %v16399_v2, %v18347_v33  ;;  %v18354_v2 = vld [vmem:[#allocation146_spill] sm:$0xff]  ;;  %v16699_v33 = vadd.f32 %v16553_v48, %v18355_v26  ;;  %v8565_v41 = vadd.f32 %v11416_v40, %v18358_v60  ;;  %v18360_v48 = vld [vmem:[#allocation28_spill] sm:$0xff]  ;;  %v18361_v40 = vld [vmem:[#allocation23_spill] sm:$0xff] }
 0x588   :  { %10591 = vmatpush3.msra.mxu0 %v9256_v0  ;;  %v16695_v39 = vadd.f32 %v16529_v30, %v18354_v2  ;;  %v8559_v26 = vadd.f32 %v8472_v49, %v18361_v40  ;;  %v18364_v60 = vld [vmem:[#allocation21_spill] sm:$0xff]  ;;  %vm9170_vm3 = vcmp.ge.f32.partialorder %v16729_v6, 0.0 }
 0x589   :  { %v16650_v23 = vpop.f32.mrf.mxu1  ;;  %9389 = vmatmul.mubr.f32.vlgmr.msra.gmra.mxu0 %v9320_v22  ;;  %v11417_v22 = vpop.f32.mrf.mxu0  ;;  %v9040_v30 = vadd.f32 %v16633_v8, %v8550_v18  ;;  %v18362_v8 = vld [vmem:[#allocation145_spill] sm:$0xff]  ;;  %v8563_v36 = vadd.f32 %v8488_v1, %v18364_v60  ;;  %v16748_v1 = vmul.f32 0.2, %v16724_v46 }
 0x58a   :  { %9458 = vmatprep.mubr.f32.mxu0 %v9323_v53  ;;  %v18348_v53 = vld [vmem:[#allocation214_spill] sm:$0xff]  ;;  %v8562_v18 = vadd.f32 %v11413_v51, %v18362_v8  ;;  %v8566_v4 = vadd.f32 %v11417_v22, %v18365_v38  ;;  %v16741_v51 = vadd.f32 %v16404_v19, %v16505_v43  ;;  %v16752_v38 = vmul.f32 0.2, %v16729_v6 }
 0x58b   :  { %v16652_v29 = vpop.f32.mrf.mxu1  ;;  %v8548_v12 = vadd.f32 %v18349_v17, %v18348_v53  ;;  %v9036_v53 = vadd.f32 %v16594_v58, %v8546_v57  ;;  %v8561_v58 = vadd.f32 %v16631_v7, %v18360_v48  ;;  %v8491_v57 = vpop.f32.mrf.mxu0  ;;  %v8560_v7 = vadd.f32 %v8475_v55, %v18363_v5 }
 0x58c   :  { %v9039_v48 = vadd.f32 %v16619_v14, %v8549_v28  ;;  %v8564_v49 = vadd.f32 %v8491_v57, %v18366_v54  ;;  %v9111_v63 = vadd.f32 %v16404_v19, %v9040_v30  ;;  %v16745_v55 = vmul.f32 0.2, %v16720_v3 }
 0x58d   :  { %v16654_v32 = vpop.f32.mrf.mxu1  ;;  %v16734_v52 = vadd.f32 %v16404_v19, %v9036_v53  ;;  %v9038_v53 = vadd.f32 %v16638_v16, %v8548_v12  ;;  %v9033_v54 = vadd.f32 %v16583_v13, %v8543_v45  ;;  %v9034_v30 = vadd.f32 %v16608_v31, %v8544_v62 }
 0x58e   :  { %v9110_v57 = vadd.f32 %v16404_v19, %v9039_v48  ;;  %v9239_v12 = vmul.f32 0.2, %v9111_v63  ;;  %vm9175_vm6 = vcmp.ge.f32.partialorder %v9111_v63, 0.0 }
 0x58f   :  { %v16656_v15 = vpop.f32.mrf.mxu1  ;;  %v9109_v13 = vadd.f32 %v16404_v19, %v9038_v53  ;;  %vm9171_vm1 = vcmp.ge.f32.partialorder %v16734_v52, 0.0 }
 0x590   :  { %v9238_v60 = vmul.f32 0.2, %v9110_v57  ;;  %vm9174_vm10 = vcmp.ge.f32.partialorder %v9110_v57, 0.0 }
 0x591   :  { %v16658_v47 = vpop.f32.mrf.mxu1  ;;  %v9237_v48 = vmul.f32 0.2, %v9109_v13  ;;  %vm9173_vm12 = vcmp.ge.f32.partialorder %v9109_v13, 0.0 }
 0x593   :  { %v16660_v56 = vpop.f32.mrf.mxu1 }
 0x595   :  { %v11478_v9 = vpop.f32.mrf.mxu1 }
 0x596   :  { %v9051_v45 = vadd.f32 %v11478_v9, %v8561_v58  ;;  %v9303_v9 = vsel %vm9175_vm6, %v9111_v63, %v9239_v12  ;;  %v9046_v12 = vadd.f32 %v16660_v56, %v16714_v21 }
 0x597   :  { %v16662_v24 = vpop.f32.mrf.mxu1 }
 0x598   :  { %v9122_v58 = vadd.f32 %v16404_v19, %v9051_v45  ;;  %v9298_v45 = vsel %vm9170_vm3, %v16729_v6, %v16752_v38  ;;  %v9043_v6 = vadd.f32 %v16640_v44, %v16682_v50 }
 0x599   :  { %v11479_v0 = vpop.f32.mrf.mxu1 }
 0x59a   :  { %v9052_v40 = vadd.f32 %v11479_v0, %v8562_v18  ;;  %vm9186_vm2 = vcmp.ge.f32.partialorder %v9122_v58, 0.0 }
 0x59b   :  { %v8965_v17 = vpop.f32.mrf.mxu1 }
 0x59c   :  { %v9050_v0 = vadd.f32 %v8965_v17, %v8560_v7  ;;  %v9048_v17 = vadd.f32 %v16658_v47, %v16708_v35  ;;  %v9250_v35 = vmul.f32 0.2, %v9122_v58 }
 0x59d   :  { %v11482_v2 = vpop.f32.mrf.mxu1 }
 0x59e   :  { %v9055_v42 = vadd.f32 %v11482_v2, %v8565_v41  ;;  %v16757_v41 = vmul.f32 0.2, %v16734_v52  ;;  %v9037_v2 = vadd.f32 %v16628_v10, %v8547_v34  ;;  %v9123_v34 = vadd.f32 %v16404_v19, %v9052_v40 }
 0x59f   :  { %v8978_v61 = vpop.f32.mrf.mxu1  ;;  %v9121_v7 = vadd.f32 %v16404_v19, %v9050_v0  ;;  %v9041_v0 = vadd.f32 %v16645_v37, %v16686_v11  ;;  %v9227_v11 = vmul.f32 0.2, %v16741_v51 }
 0x5a0   :  { %v9053_v14 = vadd.f32 %v8978_v61, %v8563_v36  ;;  %v9126_v43 = vadd.f32 %v16404_v19, %v9055_v42  ;;  %v9108_v10 = vadd.f32 %v16404_v19, %v9037_v2  ;;  %v9049_v61 = vadd.f32 %v16662_v24, %v8559_v26 }
 0x5a1   :  { %v11483_v28 = vpop.f32.mrf.mxu1  ;;  %v9105_v2 = vadd.f32 %v16404_v19, %v9034_v30  ;;  %v9301_v24 = vsel %vm9173_vm12, %v9109_v13, %v9237_v48  ;;  %vm9187_vm15 = vcmp.ge.f32.partialorder %v9123_v34, 0.0  ;;  %v9047_v26 = vadd.f32 %v16654_v32, %v16699_v33 }
 0x5a2   :  { %v9056_v22 = vadd.f32 %v11483_v28, %v8566_v4  ;;  %v9124_v4 = vadd.f32 %v16404_v19, %v9053_v14  ;;  %v9254_v62 = vmul.f32 0.2, %v9126_v43  ;;  %vm9190_vm9 = vcmp.ge.f32.partialorder %v9126_v43, 0.0 }
 0x5a3   :  { %v8981_v16 = vpop.f32.mrf.mxu1  ;;  %v9236_v14 = vmul.f32 0.2, %v9108_v10  ;;  %v9302_v28 = vsel %vm9174_vm10, %v9110_v57, %v9238_v60  ;;  %vm9172_vm14 = vcmp.ge.f32.partialorder %v9108_v10, 0.0  ;;  %v9104_v57 = vadd.f32 %v16404_v19, %v9033_v54 }
 0x5a4   :  { %v9127_v8 = vadd.f32 %v16404_v19, %v9056_v22  ;;  %v9054_v5 = vadd.f32 %v8981_v16, %v8564_v49  ;;  %v9318_v49 = vsel %vm9190_vm9, %v9126_v43, %v9254_v62  ;;  %v9252_v53 = vmul.f32 0.2, %v9124_v4 }
 0x5a5   :  { %vm9188_vm13 = vcmp.ge.f32.partialorder %v9124_v4, 0.0  ;;  %v9251_v22 = vmul.f32 0.2, %v9123_v34  ;;  %v9120_v43 = vadd.f32 %v16404_v19, %v9049_v61  ;;  %v9300_v16 = vsel %vm9172_vm14, %v9108_v10, %v9236_v14 }
 0x5a6   :  { %v9125_v42 = vadd.f32 %v16404_v19, %v9054_v5  ;;  %vm9191_vm7 = vcmp.ge.f32.partialorder %v9127_v8, 0.0  ;;  %v9255_v31 = vmul.f32 0.2, %v9127_v8  ;;  %v9316_v47 = vsel %vm9188_vm13, %v9124_v4, %v9252_v53 }
 0x5a7   :  { %v9119_v30 = vadd.f32 %v16404_v19, %v9048_v17  ;;  %v9315_v32 = vsel %vm9187_vm15, %v9123_v34, %v9251_v22  ;;  %v9249_v33 = vmul.f32 0.2, %v9121_v7  ;;  %v9233_v40 = vmul.f32 0.2, %v9105_v2 }
 0x5a8   :  { %v9319_v18 = vsel %vm9191_vm7, %v9127_v8, %v9255_v31  ;;  %v9253_v36 = vmul.f32 0.2, %v9125_v42  ;;  %vm9189_vm11 = vcmp.ge.f32.partialorder %v9125_v42, 0.0  ;;  %v9299_v54 = vsel %vm9171_vm1, %v16734_v52, %v16757_v41 }
 0x5a9   :  { %10595 = vmatprep.subr.mxu0 %v9319_v18  ;;  %vm9185_vm4 = vcmp.ge.f32.partialorder %v9121_v7, 0.0  ;;  %vm9169_vm8 = vcmp.ge.f32.partialorder %v9105_v2, 0.0  ;;  %v9118_v8 = vadd.f32 %v16404_v19, %v9047_v26  ;;  %v9045_v5 = vadd.f32 %v16656_v15, %v16704_v20 }
 0x5aa   :  { %10596 = vmatpush3.msra.mxu0 %v9303_v9  ;;  %v9317_v63 = vsel %vm9189_vm11, %v9125_v42, %v9253_v36  ;;  %v9314_v13 = vsel %vm9186_vm2, %v9122_v58, %v9250_v35  ;;  %v9248_v56 = vmul.f32 0.2, %v9120_v43  ;;  %v9232_v21 = vmul.f32 0.2, %v9104_v57  ;;  %v18368_v58 = vld [vmem:[#allocation25_spill] sm:$0xff] }
 0x5ab   :  { %10597 = vmatprep.subr.mxu0 %v9318_v49  ;;  %vm9184_vm5 = vcmp.ge.f32.partialorder %v9120_v43, 0.0  ;;  %vm9168_vm6 = vcmp.ge.f32.partialorder %v9104_v57, 0.0  ;;  %v9044_v52 = vadd.f32 %v16650_v23, %v16691_v27  ;;  %v9117_v41 = vadd.f32 %v16404_v19, %v9046_v12 }
 0x5ac   :  { %10598 = vmatpush3.msra.mxu0 %v9302_v28  ;;  %v9313_v4 = vsel %vm9185_vm4, %v9121_v7, %v9249_v33  ;;  %v9247_v15 = vmul.f32 0.2, %v9119_v30  ;;  %v9101_v20 = vadd.f32 %v16404_v19, %v16564_v25  ;;  %v9297_v42 = vsel %vm9169_vm8, %v9105_v2, %v9233_v40  ;;  %v18369_v28 = vld [vmem:[#allocation32_spill] sm:$0xff] }
 0x5ad   :  { %10599 = vmatprep.subr.mxu0 %v9317_v63  ;;  %vm9183_vm7 = vcmp.ge.f32.partialorder %v9119_v30, 0.0  ;;  %vm9167_vm9 = vcmp.ge.f32.partialorder %v16724_v46, 0.0  ;;  %v9116_v38 = vadd.f32 %v16404_v19, %v9045_v5  ;;  %v9312_v23 = vsel %vm9184_vm5, %v9120_v43, %v9248_v56  ;;  %v10131_v5 = vld [vmem:[%s16858_s6] ss:$0 sm:$0xff] }
 0x5ae   :  { %10600 = vmatpush3.msra.mxu0 %v9301_v24  ;;  %v9246_v27 = vmul.f32 0.2, %v9118_v8  ;;  %v9100_v31 = vadd.f32 %v16404_v19, %v16539_v59  ;;  %v9296_v25 = vsel %vm9168_vm6, %v9104_v57, %v9232_v21  ;;  %vm9182_vm10 = vcmp.ge.f32.partialorder %v9118_v8, 0.0 }
 0x5af   :  { %10601 = vmatprep.subr.mxu0 %v9316_v47  ;;  %vm9166_vm11 = vcmp.ge.f32.partialorder %v16720_v3, 0.0  ;;  %v9115_v62 = vadd.f32 %v16404_v19, %v9044_v52  ;;  %v9042_v60 = vadd.f32 %v16652_v29, %v16695_v39  ;;  %v9311_v44 = vsel %vm9183_vm7, %v9119_v30, %v9247_v15  ;;  %v18367_v39 = vld [vmem:[#allocation150_spill] sm:$0xff] }
 0x5b0   :  { %10602 = vmatpush3.msra.mxu0 %v9300_v16  ;;  %v9245_v50 = vmul.f32 0.2, %v9117_v41  ;;  %v9229_v10 = vmul.f32 0.2, %v9101_v20  ;;  %v9295_v59 = vsel %vm9167_vm9, %v16724_v46, %v16748_v1  ;;  %vm9181_vm12 = vcmp.ge.f32.partialorder %v9117_v41, 0.0 }
 0x5b1   :  { %10603 = vmatprep.subr.mxu0 %v9315_v32  ;;  %vm9165_vm13 = vcmp.ge.f32.partialorder %v9101_v20, 0.0  ;;  %v9114_v34 = vadd.f32 %v16404_v19, %v9043_v6  ;;  %v9310_v18 = vsel %vm9182_vm10, %v9118_v8, %v9246_v27  ;;  %v9244_v29 = vmul.f32 0.2, %v9116_v38 }
 0x5b2   :  { %10604 = vmatpush3.msra.mxu0 %v9299_v54  ;;  %v9098_v36 = vadd.f32 %v16404_v19, %v18367_v39  ;;  %v9228_v48 = vmul.f32 0.2, %v9100_v31  ;;  %v9294_v46 = vsel %vm9166_vm11, %v16720_v3, %v16745_v55  ;;  %vm9180_vm14 = vcmp.ge.f32.partialorder %v9116_v38, 0.0 }
 0x5b3   :  { %10605 = vmatprep.subr.mxu0 %v9314_v13  ;;  %v9113_v1 = vadd.f32 %v16404_v19, %v9042_v60  ;;  %v9309_v9 = vsel %vm9181_vm12, %v9117_v41, %v9245_v50  ;;  %vm9164_vm15 = vcmp.ge.f32.partialorder %v9100_v31, 0.0  ;;  %v9243_v37 = vmul.f32 0.2, %v9115_v62 }
 0x5b4   :  { %10606 = vmatpush3.msra.mxu0 %v9298_v45  ;;  %v9097_v61 = vadd.f32 %v16404_v19, %v18368_v58  ;;  %v9293_v49 = vsel %vm9165_vm13, %v9101_v20, %v9229_v10  ;;  %vm9179_vm1 = vcmp.ge.f32.partialorder %v9115_v62, 0.0  ;;  %v9112_v53 = vadd.f32 %v16404_v19, %v9041_v0  ;;  %v10132_v45 = vld [vmem:[#allocation3] ss:$0 sm:$0xff] }
 0x5b5   :  { %10607 = vmatprep.subr.mxu0 %v9313_v4  ;;  %v9308_v3 = vsel %vm9180_vm14, %v9116_v38, %v9244_v29  ;;  %vm9163_vm2 = vcmp.ge.f32.partialorder %v16741_v51, 0.0  ;;  %v9242_v55 = vmul.f32 0.2, %v9114_v34  ;;  %v9226_v14 = vmul.f32 0.2, %v9098_v36 }
 0x5b6   :  { %10608 = vmatpush3.msra.mxu0 %v9297_v42  ;;  %v9096_v17 = vadd.f32 %v16404_v19, %v18369_v28  ;;  %v9292_v7 = vsel %vm9164_vm15, %v9100_v31, %v9228_v48  ;;  %vm9178_vm3 = vcmp.ge.f32.partialorder %v9114_v34, 0.0  ;;  %v9307_v63 = vsel %vm9179_vm1, %v9115_v62, %v9243_v37 }
 0x5b7   :  { %10609 = vmatprep.subr.mxu0 %v9312_v23  ;;  %vm9162_vm4 = vcmp.ge.f32.partialorder %v9098_v36, 0.0  ;;  %v9241_v22 = vmul.f32 0.2, %v9113_v1  ;;  %v9225_v2 = vmul.f32 0.2, %v9097_v61  ;;  %v9291_v24 = vsel %vm9163_vm2, %v16741_v51, %v9227_v11  ;;  %v9322_v51 = vld [vmem:[%s16857_s5 + $0x10] sm:$0xff] }
 0x5b8   :  { %10610 = vmatpush3.msra.mxu0 %v9296_v25  ;;  %vm9177_vm8 = vcmp.ge.f32.partialorder %v9113_v1, 0.0  ;;  %v9306_v26 = vsel %vm9178_vm3, %v9114_v34, %v9242_v55  ;;  %vm9161_vm5 = vcmp.ge.f32.partialorder %v9097_v61, 0.0  ;;  %v9240_v43 = vmul.f32 0.2, %v9112_v53  ;;  %s11728_s5 = smov [#allocation4]  }
 0x5b9   :  { %10611 = vmatprep.subr.mxu0 %v9311_v44  ;;  %v9224_v47 = vmul.f32 0.2, %v9096_v17  ;;  %v9290_v35 = vsel %vm9162_vm4, %v9098_v36, %v9226_v14  ;;  %vm9176_vm6 = vcmp.ge.f32.partialorder %v9112_v53, 0.0  ;;  %v9305_v19 = vsel %vm9177_vm8, %v9113_v1, %v9241_v22  ;;  %s9536_s6 = sshll.u32 %s11728_s5, 4  ;;  %s9537_s6 = int_to_ptr.vmem [resolvable:$true] %s9536_s6 }
 0x5ba   :  { %10612 = vmatpush3.msra.mxu0 %v9295_v59  ;;  %vm9160_vm7 = vcmp.ge.f32.partialorder %v9096_v17, 0.0  ;;  %v9289_v57 = vsel %vm9161_vm5, %v9097_v61, %v9225_v2  ;;  %v9304_v16 = vsel %vm9176_vm6, %v9112_v53, %v9240_v43  ;;  %v3165_v38 = vlaneseq  ;;  %s11683_s30 = scalar_lea.vmem %s9537_s6, 16  ;;  %s11687_s10 = scalar_lea.vmem %s9537_s6, 32 }
 0x5bb   :  { %10613 = vmatprep.subr.mxu0 %v9310_v18  ;;  %v9288_v30 = vsel %vm9160_vm7, %v9096_v17, %v9224_v47  ;;  %vm9498_vm9 = vcmask 7168   ;;  %vm9527_vm10 = vcmask 0   ;;  %p11684_p0 = scmp.ne.s32.totalorder %s9537_s6, %s11683_s30  ;;  %p11688_p1 = scmp.lt.s32.totalorder %s9537_s6, %s9537_s6 }
 0x5bc   :  { %10614 = vmatpush3.msra.mxu0 %v9294_v46  ;;  %v3166_v31 = vshrl.u32 %v3165_v38, 7  ;;  %p11689_p2 = scmp.lt.s32.totalorder %s11687_s10, %s11683_s30 }
 0x5bd   :  { %10615 = vmatprep.subr.mxu0 %v9309_v9 }
 0x5be   :  { %10616 = vmatpush3.msra.mxu0 %v9293_v49  ;;  %p11690_p3 = por %p11689_p2, %p11688_p1 }
 0x5bf   :  { %10617 = vmatprep.subr.mxu0 %v9308_v3 }
 0x5c0   :  { %10618 = vmatpush3.msra.mxu0 %v9292_v7  ;;  %p11691_p4 = pnand %p11690_p3, %p11684_p0 }
 0x5c1   :  { %10619 = vmatprep.subr.mxu0 %v9307_v63 }
 0x5c2   :  { %10620 = vmatpush3.msra.mxu0 %v9291_v24 }
 0x5c3   :  { %10621 = vmatprep.subr.mxu0 %v9306_v26 }
 0x5c4   :  { %10622 = vmatpush3.msra.mxu0 %v9290_v35 }
 0x5c5   :  { %10623 = vmatprep.subr.mxu0 %v9305_v19 }
 0x5c6   :  { %10624 = vmatpush3.msra.mxu0 %v9289_v57 }
 0x5c7   :  { %10625 = vmatprep.subr.mxu0 %v9304_v16 }
 0x5c8   :  { %10626 = vmatpush3.msra.mxu0 %v9288_v30 }
 0x5c9   :  { %9459 = vmatmul.mubr.f32.vlgmr.msra.gmra.mxu0 %v9322_v51 }
 0x649   :  { %v10592_v12 = vpop.f32.mrf.mxu0 }
 0x64b   :  { %v10593_v32 = vpop.f32.mrf.mxu0 }
 0x64c   :  { %v10594_v54 = vadd.f32 %v10593_v32, %v10592_v12 }
 0x689   :  { %v10627_v33 = vpop.f32.mrf.mxu0 }
 0x68b   :  { %v10628_v40 = vpop.f32.mrf.mxu0 }
 0x68c   :  { %v10629_v8 = vadd.f32 %v10628_v40, %v10627_v33 }
 0x68e   :  { %v9461_v13 = vadd.f32 %v10629_v8, %v10594_v54 }
 0x690   :  { %v9471_v56 = vmul.f32 %v10131_v5, %v9461_v13 }
 0x692   :  { %v9472_v21 = vsel %vm955_vm0, %v9471_v56, 0.0  ;;  %vm9483_vm0 = vcmp.lt.s32.totalorder %v3166_v31, 4 }
 0x693   :  { %9473 = vadd.xlane.f32.xlu0 %v9472_v21 }
 0x71c   :  { %v9474_v52 = vpop.xlane.xlu0 %9473 }
 0x71d   :  { %v9482_v41 = vadd.f32 %v10132_v45, %v9474_v52 }
 0x71f   :  { %v9487_v4 = vand.u32 2147483647, %v9482_v41  ;;  %v9484_v23 = vmax.f32 %v9482_v41, 0.0  ;;  %v9485_v27 = vmul.f32 0.0, %v9482_v41 }
 0x721   :  { %v9488_v15 = vsub.f32 0.0, %v9487_v4  ;;  %v9486_v62 = vsub.f32 %v9484_v23, %v9485_v27  ;;  %v9495_v44 = vsub.f32 %v9484_v23, %v9482_v41 }
 0x723   :  { %v9489_v20 = vmul.f32 1.442695, %v9488_v15 }
 0x725   :  { %11628 = vpow2.f32 %v9489_v20 }
 0x732   :  { %v11629_v42 = vpop.eup %11628 }
 0x733   :  { %v9491_v6 = vadd.f32 1.0, %v11629_v42 }
 0x735   :  { %11630 = vlog2.f32 %v9491_v6 }
 0x742   :  { %v11631_v25 = vpop.eup %11630 }
 0x743   :  { %v9493_v60 = vmul.f32 0.6931472, %v11631_v25 }
 0x745   :  { %v9494_v50 = vadd.f32 %v9493_v60, %v9486_v62  ;;  %v9496_v10 = vadd.f32 %v9495_v44, %v9493_v60 }
 0x747   :  { %v9508_v59 = vsel %vm9483_vm0, %v9496_v10, 0.0  ;;  %v9497_v34 = vsel %vm9483_vm0, %v9494_v50, 0.0  ;;  %v9517_v0 = vsel %vm9483_vm0, 0.0, %v9496_v10 }
 0x748   :  { %v9509_v18 = vsel %vm9498_vm9, %v9508_v59, 0.0  ;;  %v9499_v29 = vsel %vm9498_vm9, %v9497_v34, 0.0  ;;  %v9518_v39 = vsel %vm9498_vm9, %v9517_v0, 0.0 }
 0x749   :  { %v9510_v36 = vrot.slane %v9509_v18, 4  ;;  %v9500_v48 = vrot.slane %v9499_v29, 4  ;;  %v9519_v46 = vrot.slane %v9518_v39, 4 }
 0x74b   :  { %v9511_v1 = vadd.f32 %v9510_v36, %v9509_v18  ;;  %v9501_v9 = vadd.f32 %v9500_v48, %v9499_v29  ;;  %v9520_v37 = vadd.f32 %v9519_v46, %v9518_v39 }
 0x74d   :  { %v9512_v11 = vrot.slane %v9511_v1, 2  ;;  %v9502_v58 = vrot.slane %v9501_v9, 2  ;;  %v9521_v61 = vrot.slane %v9520_v37, 2 }
 0x74f   :  { %v9513_v49 = vadd.f32 %v9512_v11, %v9511_v1  ;;  %v9503_v53 = vadd.f32 %v9502_v58, %v9501_v9  ;;  %v9522_v3 = vadd.f32 %v9521_v61, %v9520_v37 }
 0x751   :  { %v9514_v55 = vrot.slane %v9513_v49, 1  ;;  %v9504_v14 = vrot.slane %v9503_v53, 1  ;;  %v9523_v28 = vrot.slane %v9522_v3, 1 }
 0x753   :  { %v9515_v17 = vadd.f32 %v9514_v55, %v9513_v49  ;;  %v9505_v7 = vadd.f32 %v9504_v14, %v9503_v53  ;;  %v9524_v63 = vadd.f32 %v9523_v28, %v9522_v3 }
 0x755   :  { %v9516_v22 = vmul.f32 0.25, %v9515_v17  ;;  %v9507_v2 = vmul.f32 0.25, %v9505_v7  ;;  %v9525_v24 = vmul.f32 0.25, %v9524_v63 }
 0x757   :  { %9529 = vst.msk [vmem:[#allocation4] sm:$0x1] %vm9527_vm10, %v9516_v22  ;;  %v9526_v26 = vadd.f32 %v9525_v24, %v9507_v2 }
 0x758   :  { %11694 = shalt.err (!%p11691_p4)
}
 0x759   :  { %9539 = dma.vmem_to_hbm [thread:$0]  %s9537_s6, 16, %s16860_s8, [#allocation5]   ;;  %9528 = vst.msk [vmem:[#allocation6] sm:$0x1] %vm9527_vm10, %v9526_v26 }
 0x75a   :  { %s11703_s13 = scalar_lea.vmem %s9547_s29, 16  ;;  %s11707_s2 = scalar_lea.vmem %s9547_s29, 32 }
 0x75b   :  { %p11704_p5 = scmp.ne.s32.totalorder %s9547_s29, %s11703_s13  ;;  %p11708_p6 = scmp.lt.s32.totalorder %s9547_s29, %s9547_s29 }
 0x75c   :  { %p11709_p7 = scmp.lt.s32.totalorder %s11707_s2, %s11703_s13 }
 0x75e   :  { %p11710_p8 = por %p11709_p7, %p11708_p6 }
 0x760   :  { %p11711_p9 = pnand %p11710_p8, %p11704_p5 }
 0x762   :  { %11714 = shalt.err (!%p11711_p9)
}
 0x763   :  { %9549 = dma.vmem_to_hbm [thread:$0]  %s9547_s29, 16, %s16861_s9, [#allocation7]  }
 0x764   :  { %11723 = dma.done.wait [#allocation5], 16  }
 0x765   :  { %11724 = vsyncadd [#allocation5], 4294967280 }
 0x766   :  { %11725 = dma.done.wait [#allocation7], 16  }
 0x767   :  { %11726 = vsyncadd [#allocation7], 4294967280 }
 0x768   :  { %9556 = vsyncpa [#allocation5], 1 }
 0x769   :  { %9557 = vsyncpa [#allocation7], 1 }

</bundles_post_ra>
